<compile_context>
chip_gen: v6e
topology: v6e:2x2x1
jax: 0.10.0
libtpu: 0.0.40
codegen_flags: <defaults>
</compile_context>

<pallas_src>
import functools

import jax
import jax.numpy as jnp
from jax.experimental import pallas as pl
from jax.experimental.pallas import tpu as pltpu

_VMEM_LIMIT = 32 * 1024 * 1024        # safe on v5e / v6e / v7x


# ---------------------------------------------------------------------------
# Fused Block17 kernel: one grid step == one image (HW = H*W rows).
# ---------------------------------------------------------------------------
def _block17_kernel(x_ref, widx_ref,
                    w01_ref, b01_ref, w17_ref, b17_ref,
                    w71_ref, b71_ref, wo0_ref, wo1_ref, bo_ref,
                    o_ref,
                    y1pad_ref, y2pad_ref,
                    *, H, W, scale):
    HW = H * W
    x = x_ref[0]                                  # (HW, 1088) f32 (residual)
    a = x.astype(jnp.bfloat16)

    c1 = w17_ref.shape[1]                         # 128  (branch1[0] channels)
    c2 = w71_ref.shape[1]                         # 160  (branch1[1] channels)

    # ---- merged 1x1 convs: columns [0:c1) = branch1[0], [c1:) = branch0 ----
    t01 = jnp.dot(a, w01_ref[...], preferred_element_type=jnp.float32)
    t01 = jnp.maximum(t01 + b01_ref[...], 0.0)
    y1 = t01[:, :c1]                              # (HW, 128) f32
    x0 = t01[:, c1:].astype(jnp.bfloat16)         # (HW, 192) branch0 output

    w_idx = widx_ref[...]                         # (HW, 1) int32: w coordinate

    # ---- branch1[1]: 1x7 conv along W (pad 3) = 7 shifted GEMMs -----------
    # Halo buffer: rows [0,3) and [3+HW, 6+HW) stay zero.
    y1pad_ref[0:3, :] = jnp.zeros((3, c1), jnp.float32)
    y1pad_ref[3 + HW:6 + HW, :] = jnp.zeros((3, c1), jnp.float32)
    y1pad_ref[3:3 + HW, :] = y1
    acc = None
    for tap in range(7):
        d = tap - 3                               # input column offset
        win = y1pad_ref[3 + d:3 + d + HW, :]      # rows r+d (zero past ends)
        if d != 0:                                # mask taps that leave the row
            valid = jnp.logical_and(w_idx + d >= 0, w_idx + d < W)
            win = jnp.where(valid, win, 0.0)
        part = jnp.dot(win.astype(jnp.bfloat16), w17_ref[tap],
                       preferred_element_type=jnp.float32)
        acc = part if acc is None else acc + part
    y2 = jnp.maximum(acc + b17_ref[...], 0.0)     # (HW, 160) f32

    # ---- branch1[2]: 7x1 conv along H (pad 3): whole-row shifts, no mask ---
    y2pad_ref[0:3 * W, :] = jnp.zeros((3 * W, c2), jnp.float32)
    y2pad_ref[3 * W + HW:6 * W + HW, :] = jnp.zeros((3 * W, c2), jnp.float32)
    y2pad_ref[3 * W:3 * W + HW, :] = y2
    acc = None
    for tap in range(7):
        d = tap - 3
        win = y2pad_ref[(3 + d) * W:(3 + d) * W + HW, :]
        part = jnp.dot(win.astype(jnp.bfloat16), w71_ref[tap],
                       preferred_element_type=jnp.float32)
        acc = part if acc is None else acc + part
    x1 = jnp.maximum(acc + b71_ref[...], 0.0).astype(jnp.bfloat16)   # (HW,192)

    # ---- output 1x1 conv (split weight, no concat) + residual + ReLU ------
    out = jnp.dot(x0, wo0_ref[...], preferred_element_type=jnp.float32)
    out = out + jnp.dot(x1, wo1_ref[...], preferred_element_type=jnp.float32)
    out = (out + bo_ref[...]) * scale + x
    o_ref[0] = jnp.maximum(out, 0.0)


# ---------------------------------------------------------------------------
# Wrapper: NCHW in/out (PyTorch convention), single fused pallas_call.
# ---------------------------------------------------------------------------
def block17_forward(fp, x_nchw, scale=1.0):
    x = jnp.transpose(x_nchw, (0, 2, 3, 1)).astype(jnp.float32)   # NHWC
    B, H, W, C = x.shape
    HW = H * W
    x_flat = x.reshape(B, HW, C)

    # Per-row w coordinate for the 1x7 boundary masks (precomputed; tiny).
    w_idx = (jnp.arange(HW, dtype=jnp.int32) % W).reshape(HW, 1)

    c1 = fp["w17"].shape[1]       # 128
    c2 = fp["w71"].shape[1]       # 160

    kernel = functools.partial(_block17_kernel, H=H, W=W, scale=float(scale))

    def _full(shape):
        nd = len(shape)
        return pl.BlockSpec(shape, lambda b, _nd=nd: (0,) * _nd)

    in_specs = [
        pl.BlockSpec((1, HW, C), lambda b: (b, 0, 0)),            # x
        _full((HW, 1)),                                           # w_idx
        _full(fp["w01"].shape), _full(fp["b01"].shape),
        _full(fp["w17"].shape), _full(fp["b17"].shape),
        _full(fp["w71"].shape), _full(fp["b71"].shape),
        _full(fp["wo0"].shape), _full(fp["wo1"].shape),
        _full(fp["bo"].shape),
    ]

    weight_bytes = sum(int(v.size) * v.dtype.itemsize for v in fp.values())
    flops_per_row = 2 * (
        fp["w01"].shape[0] * fp["w01"].shape[1]
        + 7 * fp["w17"].shape[1] * fp["w17"].shape[2]
        + 7 * fp["w71"].shape[1] * fp["w71"].shape[2]
        + (fp["wo0"].shape[0] + fp["wo1"].shape[0]) * fp["wo0"].shape[1])
    cost = pl.CostEstimate(flops=B * HW * flops_per_row, transcendentals=0,
                           bytes_accessed=2 * B * HW * C * 4 + weight_bytes)

    out = pl.pallas_call(
        kernel,
        out_shape=jax.ShapeDtypeStruct((B, HW, C), jnp.float32),
        grid_spec=pltpu.PrefetchScalarGridSpec(
            num_scalar_prefetch=0,
            grid=(B,),
            in_specs=in_specs,
            out_specs=pl.BlockSpec((1, HW, C), lambda b: (b, 0, 0)),
            scratch_shapes=[
                pltpu.VMEM((HW + 6, c1), jnp.float32),       # 1x7 halo buffer
                pltpu.VMEM((HW + 6 * W, c2), jnp.float32),   # 7x1 halo buffer
            ],
        ),
        compiler_params=pltpu.CompilerParams(
            dimension_semantics=("parallel",),
            vmem_limit_bytes=_VMEM_LIMIT),
        cost_estimate=cost,
    )(x_flat, w_idx,
      fp["w01"], fp["b01"], fp["w17"], fp["b17"],
      fp["w71"], fp["b71"], fp["wo0"], fp["wo1"], fp["bo"])

    out = out.reshape(B, H, W, C)
    return jnp.transpose(out, (0, 3, 1, 2))                       # NCHW


# ---------------------------------------------------------------------------
# Pure-XLA reference (same folded bf16 weights, same bf16-act / f32-acc
# recipe, independent pad+slice conv implementation) for a runtime check.
# ---------------------------------------------------------------------------
def block17_reference(fp, x_nchw, scale=1.0):
    x = jnp.transpose(x_nchw, (0, 2, 3, 1)).astype(jnp.float32)
    B, H, W, C = x.shape
    c1 = fp["w17"].shape[1]

    def mm(u, w):   # u: f32 NHWC activations, w: bf16 (Cin, Cout)
        return jnp.einsum("bhwc,cd->bhwd", u.astype(jnp.bfloat16), w,
                          preferred_element_type=jnp.float32)

    t01 = jax.nn.relu(mm(x, fp["w01"]) + fp["b01"].reshape(1, 1, 1, -1))
    y1, x0 = t01[..., :c1], t01[..., c1:]

    y1p = jnp.pad(y1, ((0, 0), (0, 0), (3, 3), (0, 0)))
    acc = 0.0
    for t in range(7):
        acc = acc + mm(y1p[:, :, t:t + W, :], fp["w17"][t])
    y2 = jax.nn.relu(acc + fp["b17"].reshape(1, 1, 1, -1))

    y2p = jnp.pad(y2, ((0, 0), (3, 3), (0, 0), (0, 0)))
    acc = 0.0
    for t in range(7):
        acc = acc + mm(y2p[:, t:t + H, :, :], fp["w71"][t])
    x1 = jax.nn.relu(acc + fp["b71"].reshape(1, 1, 1, -1))

    out = mm(x0, fp["wo0"]) + mm(x1, fp["wo1"]) + fp["bo"].reshape(1, 1, 1, -1)
    out = jax.nn.relu(out * scale + x)
    return jnp.transpose(out, (0, 3, 1, 2))


# ---------------------------------------------------------------------------
# Deterministic synthetic parameters in PyTorch layouts + BN folding.
# ---------------------------------------------------------------------------
def init_block17_params(key):
    """Conv2d weights in PyTorch (Cout, Cin, kh, kw) layout + BN params."""
    ks = jax.random.split(key, 6)

    def conv_w(k, cout, cin, kh, kw):
        fan_in = cin * kh * kw
        return jax.random.normal(k, (cout, cin, kh, kw), jnp.float32) \
            * (2.0 / fan_in) ** 0.5

    def bn(cout):
        # PyTorch BatchNorm2d defaults (eval mode): gamma=1, beta=0, mean=0, var=1
        return {"gamma": jnp.ones((cout,), jnp.float32),
                "beta": jnp.zeros((cout,), jnp.float32),
                "mean": jnp.zeros((cout,), jnp.float32),
                "var": jnp.ones((cout,), jnp.float32)}

    bound = 1.0 / (384 ** 0.5)
    return {
        "branch0":   {"w": conv_w(ks[0], 192, 1088, 1, 1), "bn": bn(192)},
        "branch1_0": {"w": conv_w(ks[1], 128, 1088, 1, 1), "bn": bn(128)},
        "branch1_1": {"w": conv_w(ks[2], 160, 128, 1, 7), "bn": bn(160)},
        "branch1_2": {"w": conv_w(ks[3], 192, 160, 7, 1), "bn": bn(192)},
        "conv2d":    {"w": conv_w(ks[4], 1088, 384, 1, 1),
                      "b": jax.random.uniform(ks[5], (1088,), jnp.float32,
                                              -bound, bound)},
    }


def prepare_fused_params(raw, eps=0.001):
    """Fold eval-mode BN into the conv weights and convert to kernel layouts."""
    def fold(w, bn_p):
        s = bn_p["gamma"] / jnp.sqrt(bn_p["var"] + eps)
        return w * s[:, None, None, None], bn_p["beta"] - bn_p["mean"] * s

    w0, b0 = fold(raw["branch0"]["w"], raw["branch0"]["bn"])
    w10, b10 = fold(raw["branch1_0"]["w"], raw["branch1_0"]["bn"])
    w11, b11 = fold(raw["branch1_1"]["w"], raw["branch1_1"]["bn"])
    w12, b12 = fold(raw["branch1_2"]["w"], raw["branch1_2"]["bn"])

    # merged 1x1 GEMM weight: [branch1_0 (128) | branch0 (192)] -> (1088, 320)
    w01 = jnp.concatenate([jnp.transpose(w10[:, :, 0, 0]),
                           jnp.transpose(w0[:, :, 0, 0])], axis=1)
    b01 = jnp.concatenate([b10, b0])

    # 1x7 conv (160,128,1,7) -> per-tap (cin, cout) weights, taps along kw
    w17 = jnp.transpose(w11[:, :, 0, :], (2, 1, 0))      # (7, 128, 160)
    # 7x1 conv (192,160,7,1) -> per-tap weights, taps along kh
    w71 = jnp.transpose(w12[:, :, :, 0], (2, 1, 0))      # (7, 160, 192)

    # output 1x1 conv (384 -> 1088) with bias; split rows for x0 / x1
    wo = jnp.transpose(raw["conv2d"]["w"][:, :, 0, 0])   # (384, 1088)

    bf = jnp.bfloat16
    f32 = jnp.float32
    return {
        "w01": w01.astype(bf), "b01": b01.reshape(1, -1).astype(f32),
        "w17": w17.astype(bf), "b17": b11.reshape(1, -1).astype(f32),
        "w71": w71.astype(bf), "b71": b12.reshape(1, -1).astype(f32),
        "wo0": wo[:192].astype(bf), "wo1": wo[192:].astype(bf),
        "bo": raw["conv2d"]["b"].reshape(1, -1).astype(f32),
    }


# ---------------------------------------------------------------------------
if __name__ == "__main__":
    key = jax.random.PRNGKey(0)
    pkey, xkey = jax.random.split(key)
    raw = init_block17_params(pkey)
    fp = prepare_fused_params(raw)

    # Block17 operates on a 1088-channel feature map; small 8x8 spatial size.
    x = jax.random.normal(xkey, (2, 1088, 8, 8), jnp.float32)      # NCHW

    fwd = jax.jit(functools.partial(block17_forward, scale=0.10))
    out = jax.block_until_ready(fwd(fp, x))

    assert out.shape == (2, 1088, 8, 8), out.shape
    assert bool(jnp.all(jnp.isfinite(out)))
    assert bool(jnp.all(out >= 0.0))                               # final ReLU

    # Numerical cross-check against an independent pure-XLA reference that
    # uses the same folded bf16 weights and bf16-act / f32-acc recipe.
    ref = jax.jit(functools.partial(block17_reference, scale=0.10))(fp, x)
    err = float(jnp.max(jnp.abs(out - ref)))
    assert err < 5e-3, f"max abs error vs reference: {err}"

    print("KERNEL_OK")
</pallas_src>

<mosaic_0001>
module attributes {stable_mosaic.version = 11 : i64} {
  func.func @_block17_kernel(%arg0: i32, %arg1: memref<1x64x1088xf32, #tpu.memory_space<vmem>>, %arg2: memref<64x1xi32, #tpu.memory_space<vmem>>, %arg3: memref<1088x320xbf16, #tpu.memory_space<vmem>>, %arg4: memref<1x320xf32, #tpu.memory_space<vmem>>, %arg5: memref<7x128x160xbf16, #tpu.memory_space<vmem>>, %arg6: memref<1x160xf32, #tpu.memory_space<vmem>>, %arg7: memref<7x160x192xbf16, #tpu.memory_space<vmem>>, %arg8: memref<1x192xf32, #tpu.memory_space<vmem>>, %arg9: memref<192x1088xbf16, #tpu.memory_space<vmem>>, %arg10: memref<192x1088xbf16, #tpu.memory_space<vmem>>, %arg11: memref<1x1088xf32, #tpu.memory_space<vmem>>, %arg12: memref<1x64x1088xf32, #tpu.memory_space<vmem>>, %arg13: memref<70x128xf32, #tpu.memory_space<vmem>>, %arg14: memref<112x160xf32, #tpu.memory_space<vmem>>) attributes {dimension_semantics = [#tpu.dimension_semantics<parallel>], iteration_bounds = array<i64: 2>, scalar_prefetch = 0 : i64, scratch_operands = 2 : i64, tpu.core_type = #tpu.core_type<tc>, window_params = [{transform_indices = @transform_0, window_bounds = array<i64: 1, 64, 1088>}, {pipeline_mode = #tpu.pipeline_mode<synchronous>, transform_indices = @transform_1, window_bounds = array<i64: 64, 1>}, {pipeline_mode = #tpu.pipeline_mode<synchronous>, transform_indices = @transform_2, window_bounds = array<i64: 1088, 320>}, {pipeline_mode = #tpu.pipeline_mode<synchronous>, transform_indices = @transform_3, window_bounds = array<i64: 1, 320>}, {pipeline_mode = #tpu.pipeline_mode<synchronous>, transform_indices = @transform_4, window_bounds = array<i64: 7, 128, 160>}, {pipeline_mode = #tpu.pipeline_mode<synchronous>, transform_indices = @transform_5, window_bounds = array<i64: 1, 160>}, {pipeline_mode = #tpu.pipeline_mode<synchronous>, transform_indices = @transform_6, window_bounds = array<i64: 7, 160, 192>}, {pipeline_mode = #tpu.pipeline_mode<synchronous>, transform_indices = @transform_7, window_bounds = array<i64: 1, 192>}, {pipeline_mode = #tpu.pipeline_mode<synchronous>, transform_indices = @transform_8, window_bounds = array<i64: 192, 1088>}, {pipeline_mode = #tpu.pipeline_mode<synchronous>, transform_indices = @transform_9, window_bounds = array<i64: 192, 1088>}, {pipeline_mode = #tpu.pipeline_mode<synchronous>, transform_indices = @transform_10, window_bounds = array<i64: 1, 1088>}, {transform_indices = @transform_11, window_bounds = array<i64: 1, 64, 1088>}]} {
    %c0 = arith.constant 0 : index
    %c0_0 = arith.constant 0 : index
    %c0_1 = arith.constant 0 : index
    %0 = vector.load %arg1[%c0, %c0_0, %c0_1] : memref<1x64x1088xf32, #tpu.memory_space<vmem>>, vector<1x64x1088xf32>
    %1 = vector.shape_cast %0 : vector<1x64x1088xf32> to vector<64x1088xf32>
    %2 = arith.truncf %1 : vector<64x1088xf32> to vector<64x1088xbf16>
    %c0_2 = arith.constant 0 : index
    %c0_3 = arith.constant 0 : index
    %3 = vector.load %arg3[%c0_2, %c0_3] : memref<1088x320xbf16, #tpu.memory_space<vmem>>, vector<1088x320xbf16>
    %cst = arith.constant dense<0.000000e+00> : vector<64x320xf32>
    %4 = tpu.matmul %2, %3, %cst {dimension_numbers = #tpu.dot_dimension_numbers<[1], [0], [0], [1], [0, 0, 1, 1], [], []>} : vector<64x1088xbf16>, vector<1088x320xbf16>, vector<64x320xf32> -> vector<64x320xf32>
    %c0_4 = arith.constant 0 : index
    %c0_5 = arith.constant 0 : index
    %5 = vector.load %arg4[%c0_4, %c0_5] : memref<1x320xf32, #tpu.memory_space<vmem>>, vector<1x320xf32>
    %6 = vector.broadcast %5 : vector<1x320xf32> to vector<64x320xf32>
    %7 = arith.addf %4, %6 : vector<64x320xf32>
    %cst_6 = arith.constant 0.000000e+00 : f32
    %8 = vector.broadcast %cst_6 : f32 to vector<64x320xf32>
    %9 = arith.maximumf %7, %8 : vector<64x320xf32>
    %10 = vector.extract_strided_slice %9 {offsets = [0, 0], sizes = [64, 128], strides = [1, 1]} : vector<64x320xf32> to vector<64x128xf32>
    %11 = vector.extract_strided_slice %9 {offsets = [0, 128], sizes = [64, 192], strides = [1, 1]} : vector<64x320xf32> to vector<64x192xf32>
    %12 = arith.truncf %11 : vector<64x192xf32> to vector<64x192xbf16>
    %c0_7 = arith.constant 0 : index
    %c0_8 = arith.constant 0 : index
    %13 = vector.load %arg2[%c0_7, %c0_8] : memref<64x1xi32, #tpu.memory_space<vmem>>, vector<64x1xi32>
    %cst_9 = arith.constant 0.000000e+00 : f32
    %14 = vector.broadcast %cst_9 : f32 to vector<3x128xf32>
    %c0_10 = arith.constant 0 : index
    %c0_11 = arith.constant 0 : index
    %15 = vector.load %arg13[%c0_10, %c0_11] : memref<70x128xf32, #tpu.memory_space<vmem>>, vector<3x128xf32>
    tpu.vector_store %arg13[%c0_10, %c0_11], %14 {strides = array<i32>} : memref<70x128xf32, #tpu.memory_space<vmem>>, vector<3x128xf32>,
    %cst_12 = arith.constant 0.000000e+00 : f32
    %16 = vector.broadcast %cst_12 : f32 to vector<3x128xf32>
    %c67 = arith.constant 67 : index
    %c0_13 = arith.constant 0 : index
    %17 = vector.load %arg13[%c67, %c0_13] : memref<70x128xf32, #tpu.memory_space<vmem>>, vector<3x128xf32>
    tpu.vector_store %arg13[%c67, %c0_13], %16 {strides = array<i32>} : memref<70x128xf32, #tpu.memory_space<vmem>>, vector<3x128xf32>,
    %c3 = arith.constant 3 : index
    %c0_14 = arith.constant 0 : index
    %18 = vector.load %arg13[%c3, %c0_14] : memref<70x128xf32, #tpu.memory_space<vmem>>, vector<64x128xf32>
    tpu.vector_store %arg13[%c3, %c0_14], %10 {strides = array<i32>} : memref<70x128xf32, #tpu.memory_space<vmem>>, vector<64x128xf32>,
    %c0_15 = arith.constant 0 : index
    %c0_16 = arith.constant 0 : index
    %19 = vector.load %arg13[%c0_15, %c0_16] : memref<70x128xf32, #tpu.memory_space<vmem>>, vector<64x128xf32>
    %c-3_i32 = arith.constant -3 : i32
    %20 = vector.broadcast %c-3_i32 : i32 to vector<64x1xi32>
    %21 = arith.addi %13, %20 : vector<64x1xi32>
    %c0_i32 = arith.constant 0 : i32
    %22 = vector.broadcast %c0_i32 : i32 to vector<64x1xi32>
    %23 = arith.cmpi sge, %21, %22 : vector<64x1xi32>
    %c-3_i32_17 = arith.constant -3 : i32
    %24 = vector.broadcast %c-3_i32_17 : i32 to vector<64x1xi32>
    %25 = arith.addi %13, %24 : vector<64x1xi32>
    %c8_i32 = arith.constant 8 : i32
    %26 = vector.broadcast %c8_i32 : i32 to vector<64x1xi32>
    %27 = arith.cmpi slt, %25, %26 : vector<64x1xi32>
    %28 = arith.andi %23, %27 : vector<64x1xi1>
    %cst_18 = arith.constant 0.000000e+00 : f32
    %29 = vector.shape_cast %28 : vector<64x1xi1> to vector<64x1xi1>
    %30 = vector.broadcast %29 : vector<64x1xi1> to vector<64x128xi1>
    %31 = vector.broadcast %cst_18 : f32 to vector<64x128xf32>
    %32 = arith.select %30, %19, %31 : vector<64x128xi1>, vector<64x128xf32>
    %33 = arith.truncf %32 : vector<64x128xf32> to vector<64x128xbf16>
    %c0_19 = arith.constant 0 : index
    %c0_20 = arith.constant 0 : index
    %c0_21 = arith.constant 0 : index
    %34 = vector.load %arg5[%c0_19, %c0_20, %c0_21] : memref<7x128x160xbf16, #tpu.memory_space<vmem>>, vector<1x128x160xbf16>
    %35 = vector.shape_cast %34 : vector<1x128x160xbf16> to vector<128x160xbf16>
    %cst_22 = arith.constant dense<0.000000e+00> : vector<64x160xf32>
    %36 = tpu.matmul %33, %35, %cst_22 {dimension_numbers = #tpu.dot_dimension_numbers<[1], [0], [0], [1], [0, 0, 1, 1], [], []>} : vector<64x128xbf16>, vector<128x160xbf16>, vector<64x160xf32> -> vector<64x160xf32>
    %c1 = arith.constant 1 : index
    %c0_23 = arith.constant 0 : index
    %37 = vector.load %arg13[%c1, %c0_23] : memref<70x128xf32, #tpu.memory_space<vmem>>, vector<64x128xf32>
    %c-2_i32 = arith.constant -2 : i32
    %38 = vector.broadcast %c-2_i32 : i32 to vector<64x1xi32>
    %39 = arith.addi %13, %38 : vector<64x1xi32>
    %c0_i32_24 = arith.constant 0 : i32
    %40 = vector.broadcast %c0_i32_24 : i32 to vector<64x1xi32>
    %41 = arith.cmpi sge, %39, %40 : vector<64x1xi32>
    %c-2_i32_25 = arith.constant -2 : i32
    %42 = vector.broadcast %c-2_i32_25 : i32 to vector<64x1xi32>
    %43 = arith.addi %13, %42 : vector<64x1xi32>
    %c8_i32_26 = arith.constant 8 : i32
    %44 = vector.broadcast %c8_i32_26 : i32 to vector<64x1xi32>
    %45 = arith.cmpi slt, %43, %44 : vector<64x1xi32>
    %46 = arith.andi %41, %45 : vector<64x1xi1>
    %cst_27 = arith.constant 0.000000e+00 : f32
    %47 = vector.shape_cast %46 : vector<64x1xi1> to vector<64x1xi1>
    %48 = vector.broadcast %47 : vector<64x1xi1> to vector<64x128xi1>
    %49 = vector.broadcast %cst_27 : f32 to vector<64x128xf32>
    %50 = arith.select %48, %37, %49 : vector<64x128xi1>, vector<64x128xf32>
    %51 = arith.truncf %50 : vector<64x128xf32> to vector<64x128xbf16>
    %c1_28 = arith.constant 1 : index
    %c0_29 = arith.constant 0 : index
    %c0_30 = arith.constant 0 : index
    %52 = vector.load %arg5[%c1_28, %c0_29, %c0_30] : memref<7x128x160xbf16, #tpu.memory_space<vmem>>, vector<1x128x160xbf16>
    %53 = vector.shape_cast %52 : vector<1x128x160xbf16> to vector<128x160xbf16>
    %cst_31 = arith.constant dense<0.000000e+00> : vector<64x160xf32>
    %54 = tpu.matmul %51, %53, %cst_31 {dimension_numbers = #tpu.dot_dimension_numbers<[1], [0], [0], [1], [0, 0, 1, 1], [], []>} : vector<64x128xbf16>, vector<128x160xbf16>, vector<64x160xf32> -> vector<64x160xf32>
    %55 = arith.addf %36, %54 : vector<64x160xf32>
    %c2 = arith.constant 2 : index
    %c0_32 = arith.constant 0 : index
    %56 = vector.load %arg13[%c2, %c0_32] : memref<70x128xf32, #tpu.memory_space<vmem>>, vector<64x128xf32>
    %c-1_i32 = arith.constant -1 : i32
    %57 = vector.broadcast %c-1_i32 : i32 to vector<64x1xi32>
    %58 = arith.addi %13, %57 : vector<64x1xi32>
    %c0_i32_33 = arith.constant 0 : i32
    %59 = vector.broadcast %c0_i32_33 : i32 to vector<64x1xi32>
    %60 = arith.cmpi sge, %58, %59 : vector<64x1xi32>
    %c-1_i32_34 = arith.constant -1 : i32
    %61 = vector.broadcast %c-1_i32_34 : i32 to vector<64x1xi32>
    %62 = arith.addi %13, %61 : vector<64x1xi32>
    %c8_i32_35 = arith.constant 8 : i32
    %63 = vector.broadcast %c8_i32_35 : i32 to vector<64x1xi32>
    %64 = arith.cmpi slt, %62, %63 : vector<64x1xi32>
    %65 = arith.andi %60, %64 : vector<64x1xi1>
    %cst_36 = arith.constant 0.000000e+00 : f32
    %66 = vector.shape_cast %65 : vector<64x1xi1> to vector<64x1xi1>
    %67 = vector.broadcast %66 : vector<64x1xi1> to vector<64x128xi1>
    %68 = vector.broadcast %cst_36 : f32 to vector<64x128xf32>
    %69 = arith.select %67, %56, %68 : vector<64x128xi1>, vector<64x128xf32>
    %70 = arith.truncf %69 : vector<64x128xf32> to vector<64x128xbf16>
    %c2_37 = arith.constant 2 : index
    %c0_38 = arith.constant 0 : index
    %c0_39 = arith.constant 0 : index
    %71 = vector.load %arg5[%c2_37, %c0_38, %c0_39] : memref<7x128x160xbf16, #tpu.memory_space<vmem>>, vector<1x128x160xbf16>
    %72 = vector.shape_cast %71 : vector<1x128x160xbf16> to vector<128x160xbf16>
    %cst_40 = arith.constant dense<0.000000e+00> : vector<64x160xf32>
    %73 = tpu.matmul %70, %72, %cst_40 {dimension_numbers = #tpu.dot_dimension_numbers<[1], [0], [0], [1], [0, 0, 1, 1], [], []>} : vector<64x128xbf16>, vector<128x160xbf16>, vector<64x160xf32> -> vector<64x160xf32>
    %74 = arith.addf %55, %73 : vector<64x160xf32>
    %c3_41 = arith.constant 3 : index
    %c0_42 = arith.constant 0 : index
    %75 = vector.load %arg13[%c3_41, %c0_42] : memref<70x128xf32, #tpu.memory_space<vmem>>, vector<64x128xf32>
    %76 = arith.truncf %75 : vector<64x128xf32> to vector<64x128xbf16>
    %c3_43 = arith.constant 3 : index
    %c0_44 = arith.constant 0 : index
    %c0_45 = arith.constant 0 : index
    %77 = vector.load %arg5[%c3_43, %c0_44, %c0_45] : memref<7x128x160xbf16, #tpu.memory_space<vmem>>, vector<1x128x160xbf16>
    %78 = vector.shape_cast %77 : vector<1x128x160xbf16> to vector<128x160xbf16>
    %cst_46 = arith.constant dense<0.000000e+00> : vector<64x160xf32>
    %79 = tpu.matmul %76, %78, %cst_46 {dimension_numbers = #tpu.dot_dimension_numbers<[1], [0], [0], [1], [0, 0, 1, 1], [], []>} : vector<64x128xbf16>, vector<128x160xbf16>, vector<64x160xf32> -> vector<64x160xf32>
    %80 = arith.addf %74, %79 : vector<64x160xf32>
    %c4 = arith.constant 4 : index
    %c0_47 = arith.constant 0 : index
    %81 = vector.load %arg13[%c4, %c0_47] : memref<70x128xf32, #tpu.memory_space<vmem>>, vector<64x128xf32>
    %c1_i32 = arith.constant 1 : i32
    %82 = vector.broadcast %c1_i32 : i32 to vector<64x1xi32>
    %83 = arith.addi %13, %82 : vector<64x1xi32>
    %c0_i32_48 = arith.constant 0 : i32
    %84 = vector.broadcast %c0_i32_48 : i32 to vector<64x1xi32>
    %85 = arith.cmpi sge, %83, %84 : vector<64x1xi32>
    %c1_i32_49 = arith.constant 1 : i32
    %86 = vector.broadcast %c1_i32_49 : i32 to vector<64x1xi32>
    %87 = arith.addi %13, %86 : vector<64x1xi32>
    %c8_i32_50 = arith.constant 8 : i32
    %88 = vector.broadcast %c8_i32_50 : i32 to vector<64x1xi32>
    %89 = arith.cmpi slt, %87, %88 : vector<64x1xi32>
    %90 = arith.andi %85, %89 : vector<64x1xi1>
    %cst_51 = arith.constant 0.000000e+00 : f32
    %91 = vector.shape_cast %90 : vector<64x1xi1> to vector<64x1xi1>
    %92 = vector.broadcast %91 : vector<64x1xi1> to vector<64x128xi1>
    %93 = vector.broadcast %cst_51 : f32 to vector<64x128xf32>
    %94 = arith.select %92, %81, %93 : vector<64x128xi1>, vector<64x128xf32>
    %95 = arith.truncf %94 : vector<64x128xf32> to vector<64x128xbf16>
    %c4_52 = arith.constant 4 : index
    %c0_53 = arith.constant 0 : index
    %c0_54 = arith.constant 0 : index
    %96 = vector.load %arg5[%c4_52, %c0_53, %c0_54] : memref<7x128x160xbf16, #tpu.memory_space<vmem>>, vector<1x128x160xbf16>
    %97 = vector.shape_cast %96 : vector<1x128x160xbf16> to vector<128x160xbf16>
    %cst_55 = arith.constant dense<0.000000e+00> : vector<64x160xf32>
    %98 = tpu.matmul %95, %97, %cst_55 {dimension_numbers = #tpu.dot_dimension_numbers<[1], [0], [0], [1], [0, 0, 1, 1], [], []>} : vector<64x128xbf16>, vector<128x160xbf16>, vector<64x160xf32> -> vector<64x160xf32>
    %99 = arith.addf %80, %98 : vector<64x160xf32>
    %c5 = arith.constant 5 : index
    %c0_56 = arith.constant 0 : index
    %100 = vector.load %arg13[%c5, %c0_56] : memref<70x128xf32, #tpu.memory_space<vmem>>, vector<64x128xf32>
    %c2_i32 = arith.constant 2 : i32
    %101 = vector.broadcast %c2_i32 : i32 to vector<64x1xi32>
    %102 = arith.addi %13, %101 : vector<64x1xi32>
    %c0_i32_57 = arith.constant 0 : i32
    %103 = vector.broadcast %c0_i32_57 : i32 to vector<64x1xi32>
    %104 = arith.cmpi sge, %102, %103 : vector<64x1xi32>
    %c2_i32_58 = arith.constant 2 : i32
    %105 = vector.broadcast %c2_i32_58 : i32 to vector<64x1xi32>
    %106 = arith.addi %13, %105 : vector<64x1xi32>
    %c8_i32_59 = arith.constant 8 : i32
    %107 = vector.broadcast %c8_i32_59 : i32 to vector<64x1xi32>
    %108 = arith.cmpi slt, %106, %107 : vector<64x1xi32>
    %109 = arith.andi %104, %108 : vector<64x1xi1>
    %cst_60 = arith.constant 0.000000e+00 : f32
    %110 = vector.shape_cast %109 : vector<64x1xi1> to vector<64x1xi1>
    %111 = vector.broadcast %110 : vector<64x1xi1> to vector<64x128xi1>
    %112 = vector.broadcast %cst_60 : f32 to vector<64x128xf32>
    %113 = arith.select %111, %100, %112 : vector<64x128xi1>, vector<64x128xf32>
    %114 = arith.truncf %113 : vector<64x128xf32> to vector<64x128xbf16>
    %c5_61 = arith.constant 5 : index
    %c0_62 = arith.constant 0 : index
    %c0_63 = arith.constant 0 : index
    %115 = vector.load %arg5[%c5_61, %c0_62, %c0_63] : memref<7x128x160xbf16, #tpu.memory_space<vmem>>, vector<1x128x160xbf16>
    %116 = vector.shape_cast %115 : vector<1x128x160xbf16> to vector<128x160xbf16>
    %cst_64 = arith.constant dense<0.000000e+00> : vector<64x160xf32>
    %117 = tpu.matmul %114, %116, %cst_64 {dimension_numbers = #tpu.dot_dimension_numbers<[1], [0], [0], [1], [0, 0, 1, 1], [], []>} : vector<64x128xbf16>, vector<128x160xbf16>, vector<64x160xf32> -> vector<64x160xf32>
    %118 = arith.addf %99, %117 : vector<64x160xf32>
    %c6 = arith.constant 6 : index
    %c0_65 = arith.constant 0 : index
    %119 = vector.load %arg13[%c6, %c0_65] : memref<70x128xf32, #tpu.memory_space<vmem>>, vector<64x128xf32>
    %c3_i32 = arith.constant 3 : i32
    %120 = vector.broadcast %c3_i32 : i32 to vector<64x1xi32>
    %121 = arith.addi %13, %120 : vector<64x1xi32>
    %c0_i32_66 = arith.constant 0 : i32
    %122 = vector.broadcast %c0_i32_66 : i32 to vector<64x1xi32>
    %123 = arith.cmpi sge, %121, %122 : vector<64x1xi32>
    %c3_i32_67 = arith.constant 3 : i32
    %124 = vector.broadcast %c3_i32_67 : i32 to vector<64x1xi32>
    %125 = arith.addi %13, %124 : vector<64x1xi32>
    %c8_i32_68 = arith.constant 8 : i32
    %126 = vector.broadcast %c8_i32_68 : i32 to vector<64x1xi32>
    %127 = arith.cmpi slt, %125, %126 : vector<64x1xi32>
    %128 = arith.andi %123, %127 : vector<64x1xi1>
    %cst_69 = arith.constant 0.000000e+00 : f32
    %129 = vector.shape_cast %128 : vector<64x1xi1> to vector<64x1xi1>
    %130 = vector.broadcast %129 : vector<64x1xi1> to vector<64x128xi1>
    %131 = vector.broadcast %cst_69 : f32 to vector<64x128xf32>
    %132 = arith.select %130, %119, %131 : vector<64x128xi1>, vector<64x128xf32>
    %133 = arith.truncf %132 : vector<64x128xf32> to vector<64x128xbf16>
    %c6_70 = arith.constant 6 : index
    %c0_71 = arith.constant 0 : index
    %c0_72 = arith.constant 0 : index
    %134 = vector.load %arg5[%c6_70, %c0_71, %c0_72] : memref<7x128x160xbf16, #tpu.memory_space<vmem>>, vector<1x128x160xbf16>
    %135 = vector.shape_cast %134 : vector<1x128x160xbf16> to vector<128x160xbf16>
    %cst_73 = arith.constant dense<0.000000e+00> : vector<64x160xf32>
    %136 = tpu.matmul %133, %135, %cst_73 {dimension_numbers = #tpu.dot_dimension_numbers<[1], [0], [0], [1], [0, 0, 1, 1], [], []>} : vector<64x128xbf16>, vector<128x160xbf16>, vector<64x160xf32> -> vector<64x160xf32>
    %137 = arith.addf %118, %136 : vector<64x160xf32>
    %c0_74 = arith.constant 0 : index
    %c0_75 = arith.constant 0 : index
    %138 = vector.load %arg6[%c0_74, %c0_75] : memref<1x160xf32, #tpu.memory_space<vmem>>, vector<1x160xf32>
    %139 = vector.broadcast %138 : vector<1x160xf32> to vector<64x160xf32>
    %140 = arith.addf %137, %139 : vector<64x160xf32>
    %cst_76 = arith.constant 0.000000e+00 : f32
    %141 = vector.broadcast %cst_76 : f32 to vector<64x160xf32>
    %142 = arith.maximumf %140, %141 : vector<64x160xf32>
    %cst_77 = arith.constant 0.000000e+00 : f32
    %143 = vector.broadcast %cst_77 : f32 to vector<24x160xf32>
    %c0_78 = arith.constant 0 : index
    %c0_79 = arith.constant 0 : index
    %144 = vector.load %arg14[%c0_78, %c0_79] : memref<112x160xf32, #tpu.memory_space<vmem>>, vector<24x160xf32>
    tpu.vector_store %arg14[%c0_78, %c0_79], %143 {strides = array<i32>} : memref<112x160xf32, #tpu.memory_space<vmem>>, vector<24x160xf32>,
    %cst_80 = arith.constant 0.000000e+00 : f32
    %145 = vector.broadcast %cst_80 : f32 to vector<24x160xf32>
    %c88 = arith.constant 88 : index
    %c0_81 = arith.constant 0 : index
    %146 = vector.load %arg14[%c88, %c0_81] : memref<112x160xf32, #tpu.memory_space<vmem>>, vector<24x160xf32>
    tpu.vector_store %arg14[%c88, %c0_81], %145 {strides = array<i32>} : memref<112x160xf32, #tpu.memory_space<vmem>>, vector<24x160xf32>,
    %c24 = arith.constant 24 : index
    %c0_82 = arith.constant 0 : index
    %147 = vector.load %arg14[%c24, %c0_82] : memref<112x160xf32, #tpu.memory_space<vmem>>, vector<64x160xf32>
    tpu.vector_store %arg14[%c24, %c0_82], %142 {strides = array<i32>} : memref<112x160xf32, #tpu.memory_space<vmem>>, vector<64x160xf32>,
    %c0_83 = arith.constant 0 : index
    %c0_84 = arith.constant 0 : index
    %148 = vector.load %arg14[%c0_83, %c0_84] : memref<112x160xf32, #tpu.memory_space<vmem>>, vector<64x160xf32>
    %149 = arith.truncf %148 : vector<64x160xf32> to vector<64x160xbf16>
    %c0_85 = arith.constant 0 : index
    %c0_86 = arith.constant 0 : index
    %c0_87 = arith.constant 0 : index
    %150 = vector.load %arg7[%c0_85, %c0_86, %c0_87] : memref<7x160x192xbf16, #tpu.memory_space<vmem>>, vector<1x160x192xbf16>
    %151 = vector.shape_cast %150 : vector<1x160x192xbf16> to vector<160x192xbf16>
    %cst_88 = arith.constant dense<0.000000e+00> : vector<64x192xf32>
    %152 = tpu.matmul %149, %151, %cst_88 {dimension_numbers = #tpu.dot_dimension_numbers<[1], [0], [0], [1], [0, 0, 1, 1], [], []>} : vector<64x160xbf16>, vector<160x192xbf16>, vector<64x192xf32> -> vector<64x192xf32>
    %c8 = arith.constant 8 : index
    %c0_89 = arith.constant 0 : index
    %153 = vector.load %arg14[%c8, %c0_89] : memref<112x160xf32, #tpu.memory_space<vmem>>, vector<64x160xf32>
    %154 = arith.truncf %153 : vector<64x160xf32> to vector<64x160xbf16>
    %c1_90 = arith.constant 1 : index
    %c0_91 = arith.constant 0 : index
    %c0_92 = arith.constant 0 : index
    %155 = vector.load %arg7[%c1_90, %c0_91, %c0_92] : memref<7x160x192xbf16, #tpu.memory_space<vmem>>, vector<1x160x192xbf16>
    %156 = vector.shape_cast %155 : vector<1x160x192xbf16> to vector<160x192xbf16>
    %cst_93 = arith.constant dense<0.000000e+00> : vector<64x192xf32>
    %157 = tpu.matmul %154, %156, %cst_93 {dimension_numbers = #tpu.dot_dimension_numbers<[1], [0], [0], [1], [0, 0, 1, 1], [], []>} : vector<64x160xbf16>, vector<160x192xbf16>, vector<64x192xf32> -> vector<64x192xf32>
    %158 = arith.addf %152, %157 : vector<64x192xf32>
    %c16 = arith.constant 16 : index
    %c0_94 = arith.constant 0 : index
    %159 = vector.load %arg14[%c16, %c0_94] : memref<112x160xf32, #tpu.memory_space<vmem>>, vector<64x160xf32>
    %160 = arith.truncf %159 : vector<64x160xf32> to vector<64x160xbf16>
    %c2_95 = arith.constant 2 : index
    %c0_96 = arith.constant 0 : index
    %c0_97 = arith.constant 0 : index
    %161 = vector.load %arg7[%c2_95, %c0_96, %c0_97] : memref<7x160x192xbf16, #tpu.memory_space<vmem>>, vector<1x160x192xbf16>
    %162 = vector.shape_cast %161 : vector<1x160x192xbf16> to vector<160x192xbf16>
    %cst_98 = arith.constant dense<0.000000e+00> : vector<64x192xf32>
    %163 = tpu.matmul %160, %162, %cst_98 {dimension_numbers = #tpu.dot_dimension_numbers<[1], [0], [0], [1], [0, 0, 1, 1], [], []>} : vector<64x160xbf16>, vector<160x192xbf16>, vector<64x192xf32> -> vector<64x192xf32>
    %164 = arith.addf %158, %163 : vector<64x192xf32>
    %c24_99 = arith.constant 24 : index
    %c0_100 = arith.constant 0 : index
    %165 = vector.load %arg14[%c24_99, %c0_100] : memref<112x160xf32, #tpu.memory_space<vmem>>, vector<64x160xf32>
    %166 = arith.truncf %165 : vector<64x160xf32> to vector<64x160xbf16>
    %c3_101 = arith.constant 3 : index
    %c0_102 = arith.constant 0 : index
    %c0_103 = arith.constant 0 : index
    %167 = vector.load %arg7[%c3_101, %c0_102, %c0_103] : memref<7x160x192xbf16, #tpu.memory_space<vmem>>, vector<1x160x192xbf16>
    %168 = vector.shape_cast %167 : vector<1x160x192xbf16> to vector<160x192xbf16>
    %cst_104 = arith.constant dense<0.000000e+00> : vector<64x192xf32>
    %169 = tpu.matmul %166, %168, %cst_104 {dimension_numbers = #tpu.dot_dimension_numbers<[1], [0], [0], [1], [0, 0, 1, 1], [], []>} : vector<64x160xbf16>, vector<160x192xbf16>, vector<64x192xf32> -> vector<64x192xf32>
    %170 = arith.addf %164, %169 : vector<64x192xf32>
    %c32 = arith.constant 32 : index
    %c0_105 = arith.constant 0 : index
    %171 = vector.load %arg14[%c32, %c0_105] : memref<112x160xf32, #tpu.memory_space<vmem>>, vector<64x160xf32>
    %172 = arith.truncf %171 : vector<64x160xf32> to vector<64x160xbf16>
    %c4_106 = arith.constant 4 : index
    %c0_107 = arith.constant 0 : index
    %c0_108 = arith.constant 0 : index
    %173 = vector.load %arg7[%c4_106, %c0_107, %c0_108] : memref<7x160x192xbf16, #tpu.memory_space<vmem>>, vector<1x160x192xbf16>
    %174 = vector.shape_cast %173 : vector<1x160x192xbf16> to vector<160x192xbf16>
    %cst_109 = arith.constant dense<0.000000e+00> : vector<64x192xf32>
    %175 = tpu.matmul %172, %174, %cst_109 {dimension_numbers = #tpu.dot_dimension_numbers<[1], [0], [0], [1], [0, 0, 1, 1], [], []>} : vector<64x160xbf16>, vector<160x192xbf16>, vector<64x192xf32> -> vector<64x192xf32>
    %176 = arith.addf %170, %175 : vector<64x192xf32>
    %c40 = arith.constant 40 : index
    %c0_110 = arith.constant 0 : index
    %177 = vector.load %arg14[%c40, %c0_110] : memref<112x160xf32, #tpu.memory_space<vmem>>, vector<64x160xf32>
    %178 = arith.truncf %177 : vector<64x160xf32> to vector<64x160xbf16>
    %c5_111 = arith.constant 5 : index
    %c0_112 = arith.constant 0 : index
    %c0_113 = arith.constant 0 : index
    %179 = vector.load %arg7[%c5_111, %c0_112, %c0_113] : memref<7x160x192xbf16, #tpu.memory_space<vmem>>, vector<1x160x192xbf16>
    %180 = vector.shape_cast %179 : vector<1x160x192xbf16> to vector<160x192xbf16>
    %cst_114 = arith.constant dense<0.000000e+00> : vector<64x192xf32>
    %181 = tpu.matmul %178, %180, %cst_114 {dimension_numbers = #tpu.dot_dimension_numbers<[1], [0], [0], [1], [0, 0, 1, 1], [], []>} : vector<64x160xbf16>, vector<160x192xbf16>, vector<64x192xf32> -> vector<64x192xf32>
    %182 = arith.addf %176, %181 : vector<64x192xf32>
    %c48 = arith.constant 48 : index
    %c0_115 = arith.constant 0 : index
    %183 = vector.load %arg14[%c48, %c0_115] : memref<112x160xf32, #tpu.memory_space<vmem>>, vector<64x160xf32>
    %184 = arith.truncf %183 : vector<64x160xf32> to vector<64x160xbf16>
    %c6_116 = arith.constant 6 : index
    %c0_117 = arith.constant 0 : index
    %c0_118 = arith.constant 0 : index
    %185 = vector.load %arg7[%c6_116, %c0_117, %c0_118] : memref<7x160x192xbf16, #tpu.memory_space<vmem>>, vector<1x160x192xbf16>
    %186 = vector.shape_cast %185 : vector<1x160x192xbf16> to vector<160x192xbf16>
    %cst_119 = arith.constant dense<0.000000e+00> : vector<64x192xf32>
    %187 = tpu.matmul %184, %186, %cst_119 {dimension_numbers = #tpu.dot_dimension_numbers<[1], [0], [0], [1], [0, 0, 1, 1], [], []>} : vector<64x160xbf16>, vector<160x192xbf16>, vector<64x192xf32> -> vector<64x192xf32>
    %188 = arith.addf %182, %187 : vector<64x192xf32>
    %c0_120 = arith.constant 0 : index
    %c0_121 = arith.constant 0 : index
    %189 = vector.load %arg8[%c0_120, %c0_121] : memref<1x192xf32, #tpu.memory_space<vmem>>, vector<1x192xf32>
    %190 = vector.broadcast %189 : vector<1x192xf32> to vector<64x192xf32>
    %191 = arith.addf %188, %190 : vector<64x192xf32>
    %cst_122 = arith.constant 0.000000e+00 : f32
    %192 = vector.broadcast %cst_122 : f32 to vector<64x192xf32>
    %193 = arith.maximumf %191, %192 : vector<64x192xf32>
    %194 = arith.truncf %193 : vector<64x192xf32> to vector<64x192xbf16>
    %c0_123 = arith.constant 0 : index
    %c0_124 = arith.constant 0 : index
    %195 = vector.load %arg9[%c0_123, %c0_124] : memref<192x1088xbf16, #tpu.memory_space<vmem>>, vector<192x1088xbf16>
    %cst_125 = arith.constant dense<0.000000e+00> : vector<64x1088xf32>
    %196 = tpu.matmul %12, %195, %cst_125 {dimension_numbers = #tpu.dot_dimension_numbers<[1], [0], [0], [1], [0, 0, 1, 1], [], []>} : vector<64x192xbf16>, vector<192x1088xbf16>, vector<64x1088xf32> -> vector<64x1088xf32>
    %c0_126 = arith.constant 0 : index
    %c0_127 = arith.constant 0 : index
    %197 = vector.load %arg10[%c0_126, %c0_127] : memref<192x1088xbf16, #tpu.memory_space<vmem>>, vector<192x1088xbf16>
    %cst_128 = arith.constant dense<0.000000e+00> : vector<64x1088xf32>
    %198 = tpu.matmul %194, %197, %cst_128 {dimension_numbers = #tpu.dot_dimension_numbers<[1], [0], [0], [1], [0, 0, 1, 1], [], []>} : vector<64x192xbf16>, vector<192x1088xbf16>, vector<64x1088xf32> -> vector<64x1088xf32>
    %199 = arith.addf %196, %198 : vector<64x1088xf32>
    %c0_129 = arith.constant 0 : index
    %c0_130 = arith.constant 0 : index
    %200 = vector.load %arg11[%c0_129, %c0_130] : memref<1x1088xf32, #tpu.memory_space<vmem>>, vector<1x1088xf32>
    %201 = vector.broadcast %200 : vector<1x1088xf32> to vector<64x1088xf32>
    %202 = arith.addf %199, %201 : vector<64x1088xf32>
    %cst_131 = arith.constant 1.000000e-01 : f32
    %203 = vector.broadcast %cst_131 : f32 to vector<64x1088xf32>
    %204 = arith.mulf %202, %203 : vector<64x1088xf32>
    %205 = arith.addf %204, %1 : vector<64x1088xf32>
    %cst_132 = arith.constant 0.000000e+00 : f32
    %206 = vector.broadcast %cst_132 : f32 to vector<64x1088xf32>
    %207 = arith.maximumf %205, %206 : vector<64x1088xf32>
    %c0_133 = arith.constant 0 : index
    %c0_134 = arith.constant 0 : index
    %c0_135 = arith.constant 0 : index
    %208 = vector.load %arg12[%c0_133, %c0_134, %c0_135] : memref<1x64x1088xf32, #tpu.memory_space<vmem>>, vector<1x64x1088xf32>
    %209 = vector.shape_cast %208 : vector<1x64x1088xf32> to vector<64x1088xf32>
    %210 = vector.shape_cast %207 : vector<64x1088xf32> to vector<1x64x1088xf32>
    tpu.vector_store %arg12[%c0_133, %c0_134, %c0_135], %210 {strides = array<i32>} : memref<1x64x1088xf32, #tpu.memory_space<vmem>>, vector<1x64x1088xf32>,
    return
  }
  func.func @transform_0(%arg0: i32) -> (i32, i32, i32) {
    %c0_i32 = arith.constant 0 : i32
    %c0_i32_0 = arith.constant 0 : i32
    %c0_i32_1 = arith.constant 0 : i32
    return %arg0, %c0_i32, %c0_i32_0 : i32, i32, i32
  }
  func.func @transform_1(%arg0: i32) -> (i32, i32) {
    %c0_i32 = arith.constant 0 : i32
    %c0_i32_0 = arith.constant 0 : i32
    %c0_i32_1 = arith.constant 0 : i32
    return %c0_i32, %c0_i32_0 : i32, i32
  }
  func.func @transform_2(%arg0: i32) -> (i32, i32) {
    %c0_i32 = arith.constant 0 : i32
    %c0_i32_0 = arith.constant 0 : i32
    %c0_i32_1 = arith.constant 0 : i32
    return %c0_i32, %c0_i32_0 : i32, i32
  }
  func.func @transform_3(%arg0: i32) -> (i32, i32) {
    %c0_i32 = arith.constant 0 : i32
    %c0_i32_0 = arith.constant 0 : i32
    %c0_i32_1 = arith.constant 0 : i32
    return %c0_i32, %c0_i32_0 : i32, i32
  }
  func.func @transform_4(%arg0: i32) -> (i32, i32, i32) {
    %c0_i32 = arith.constant 0 : i32
    %c0_i32_0 = arith.constant 0 : i32
    %c0_i32_1 = arith.constant 0 : i32
    %c0_i32_2 = arith.constant 0 : i32
    return %c0_i32, %c0_i32_0, %c0_i32_1 : i32, i32, i32
  }
  func.func @transform_5(%arg0: i32) -> (i32, i32) {
    %c0_i32 = arith.constant 0 : i32
    %c0_i32_0 = arith.constant 0 : i32
    %c0_i32_1 = arith.constant 0 : i32
    return %c0_i32, %c0_i32_0 : i32, i32
  }
  func.func @transform_6(%arg0: i32) -> (i32, i32, i32) {
    %c0_i32 = arith.constant 0 : i32
    %c0_i32_0 = arith.constant 0 : i32
    %c0_i32_1 = arith.constant 0 : i32
    %c0_i32_2 = arith.constant 0 : i32
    return %c0_i32, %c0_i32_0, %c0_i32_1 : i32, i32, i32
  }
  func.func @transform_7(%arg0: i32) -> (i32, i32) {
    %c0_i32 = arith.constant 0 : i32
    %c0_i32_0 = arith.constant 0 : i32
    %c0_i32_1 = arith.constant 0 : i32
    return %c0_i32, %c0_i32_0 : i32, i32
  }
  func.func @transform_8(%arg0: i32) -> (i32, i32) {
    %c0_i32 = arith.constant 0 : i32
    %c0_i32_0 = arith.constant 0 : i32
    %c0_i32_1 = arith.constant 0 : i32
    return %c0_i32, %c0_i32_0 : i32, i32
  }
  func.func @transform_9(%arg0: i32) -> (i32, i32) {
    %c0_i32 = arith.constant 0 : i32
    %c0_i32_0 = arith.constant 0 : i32
    %c0_i32_1 = arith.constant 0 : i32
    return %c0_i32, %c0_i32_0 : i32, i32
  }
  func.func @transform_10(%arg0: i32) -> (i32, i32) {
    %c0_i32 = arith.constant 0 : i32
    %c0_i32_0 = arith.constant 0 : i32
    %c0_i32_1 = arith.constant 0 : i32
    return %c0_i32, %c0_i32_0 : i32, i32
  }
  func.func @transform_11(%arg0: i32) -> (i32, i32, i32) {
    %c0_i32 = arith.constant 0 : i32
    %c0_i32_0 = arith.constant 0 : i32
    %c0_i32_1 = arith.constant 0 : i32
    return %arg0, %c0_i32, %c0_i32_0 : i32, i32, i32
  }
}

</mosaic_0001>

<bundles_post_ra>
// kernel: block17_forward.1
= control target key start
LH: loop header
LB: loop body
LE: loop exit
PB: predicated region body
PF: predicated region fallthrough
CT: control target
= control target key end

     0   :  { %s15883_s0 = inlined_call_operand.vmem [shape: f32[2,64,1088], index: 0, kind: input, shape index: {}]   ;;  %s15884_s1 = inlined_call_operand.vmem [shape: s32[64,1], index: 1, kind: input, shape index: {}]   ;;  %s15885_s2 = inlined_call_operand.vmem [shape: bf16[1088,320], index: 2, kind: input, shape index: {}]   ;;  %s15886_s3 = inlined_call_operand.vmem [shape: f32[1,320], index: 3, kind: input, shape index: {}]   ;;  %s15887_s4 = inlined_call_operand.vmem [shape: bf16[7,128,160], index: 4, kind: input, shape index: {}]   ;;  %s15888_s5 = inlined_call_operand.vmem [shape: f32[1,160], index: 5, kind: input, shape index: {}]   ;;  %s15889_s6 = inlined_call_operand.vmem [shape: bf16[7,160,192], index: 6, kind: input, shape index: {}]   ;;  %s15890_s7 = inlined_call_operand.vmem [shape: f32[1,192], index: 7, kind: input, shape index: {}]   ;;  %s15891_s8 = inlined_call_operand.vmem [shape: bf16[192,1088], index: 8, kind: input, shape index: {}]   ;;  %s15892_s9 = inlined_call_operand.hbm [shape: bf16[192,1088], index: 9, kind: input, shape index: {}]   ;;  %s15893_s10 = inlined_call_operand.vmem [shape: f32[1,1088], index: 10, kind: input, shape index: {}]   ;;  %s15894_s11 = inlined_call_operand.hbm [shape: f32[2,64,1088], index: 11, kind: output, shape index: {}]  }
   0x1   :  { %15923 = sst [smem:[#allocation72_spill]] %s15892_s9 }
   0x2   :  { %16 = vsyncpa [#allocation5], 0 }
   0x3   :  { %17 = vsyncpa [#allocation6], 0 }
   0x4   :  { %19 = vsyncpa [#allocation6 + $0x1], 0  ;;  %s11340_s17 = smov 0   ;;  %s11342_s18 = smov 0  }
   0x5   :  { %s11344_s19 = smov 0   ;;  %s11346_s20 = smov 0  }
   0x6 LB: > { %s11361_s21 = sadd.s32 4294967295, %s11270_s20   ;;  %s8851_s22 = sadd.s32 4294967294, %s11270_s20   ;;  %s11270_s20 = sphi %s11346_s20, %s16336_s20   ;;  %s11266_s19 = sphi %s11344_s19, %s16335_s19   ;;  %s11262_s18 = sphi %s11342_s18, %s16334_s18   ;;  %s11258_s17 = sphi %s11340_s17, %s16333_s17  }
   0x7   : > { %s11365_s23 = sadd.s32 1, %s11270_s20   ;;  %s268_s24 = sadd.s32 1, %s11266_s19 }
   0x8   : > { %s265_s25 = ssub.s32 %s11270_s20, %s11365_s23  ;;  %p278_p0 = scmp.ne.s32.totalorder %s11266_s19, %s11262_s18 }
   0x9   : > { %p266_p1 = scmp.eq.s32.totalorder %s265_s25, 0  ;;  %p279_p2 = scmp.eq.s32.totalorder %s11361_s21, 1 }
   0xa   : > { %p284_p3 = scmp.ne.s32.totalorder %s11262_s18, %s11258_s17  ;;  %p285_p4 = scmp.eq.s32.totalorder %s8851_s22, 1 }
   0xb   : > { %s11376_s26 = scalar_select %p266_p1, %s11266_s19, %s268_s24  }
   0xc   : > { %p11378_p5 = por %p279_p2, %p278_p0  ;;  %p11382_p6 = por %p285_p4, %p284_p3 }
   0xd   : > { %p8852_p7 = scmp.ge.s32.totalorder %s11270_s20, 1  ;;  %p292_p8 = scmp.lt.s32.totalorder %s11270_s20, 3 }
   0xe   : > { %s15925_s28 = scalar_select %p11382_p6, 1, 0 }
   0xf   : > { %p10099_p9 = scmp.eq.s32.totalorder %s11361_s21, 0  ;;  %p11389_p10 = pnand %p8852_p7, %p292_p8 }
  0x10   : > { %s11272_s30 = smov [#allocation4]  }
  0x11   : > { %s328_s12 = sshll.u32 %s11272_s30, 4  ;;  %p10091_p11 = pneg %p11389_p10  ;;  %s329_s12 = int_to_ptr.vmem [resolvable:$true] %s328_s12 }
  0x12   : > { %s11191_s13 = scalar_lea.vmem %s329_s12, 13824  ;;  %p11199_p3 = scmp.lt.s32.totalorder %s329_s12, %s329_s12 }
  0x13   : > { %p10092_p12 = pnand %p10099_p9, %p10091_p11  ;;  %p11192_p0 = scmp.ne.s32.totalorder %s329_s12, %s11191_s13 }
  0x14   : > { %p11200_p4 = scmp.lt.s32.totalorder %s11191_s13, %s11191_s13 }
  0x15   : > { %p11182_p13 = pneg %p10092_p12 }
  0x16   : > { %p11201_p6 = por %p11200_p4, %p11199_p3 }
  0x17   : > { %p11194_p1 = pnand %p11192_p0, %p11182_p13 }
  0x19   : > { %p11195_p2 = pneg %p11194_p1 }
  0x1b   : > { %p11202_p7 = pnand %p11201_p6, %p11195_p2 }
  0x1d   : > { %11205 = shalt.err (!%p11202_p7)
}
  0x1e   : > { %s11273_s14 = smov 576   ;;  %s11274_s15 = smov 36  }
  0x1f   : > { %s15927_s9 = sld [smem:[#allocation72_spill]] }
  0x21   : > { %355 = sbr.rel (%p11389_p10) target bundleno = 1477 (0x5c5), region = 64 }
  0x25   : > { %10094 = dma.hbm_to_vmem [thread:$0]  (!%p10092_p12), %s15927_s9, 13824, %s329_s12, [#allocation5], %s11273_s14, %s11273_s14, %s11274_s15  }
  0x26   : > { %11249 = dma.done.wait (%p10099_p9), [#allocation5], 13824  }
  0x27   : > { %11251 = vsyncadd (%p10099_p9), [#allocation5], 4294953472  ;;  %v10143_v0 = vld [vmem:[%s15885_s2 + $0xac] ss:$12 sps:$4 sm:$0xff]   ;;  %v10145_v1 = vld [vmem:[%s15885_s2 + $0xa8] ss:$12 sps:$4 sm:$0xff]  }
  0x28   : > { %1899 = vmatprep.subr.bf16.mxu0 %v10143_v0  ;;  %v10146_v2 = vld [vmem:[%s15885_s2 + $0x22c] ss:$12 sps:$4 sm:$0xff]   ;;  %v10148_v3 = vld [vmem:[%s15885_s2 + $0x228] ss:$12 sps:$4 sm:$0xff]   ;;  %v10151_v5 = vld [vmem:[%s15885_s2 + $0x90] ss:$12 sps:$4 sm:$0xff]  }
  0x29   : > { %1900 = vmatpush1.bf16.msra.mxu0 %v10145_v1  ;;  %v10149_v4 = vld [vmem:[%s15885_s2 + $0x94] ss:$12 sps:$4 sm:$0xff]   ;;  %1972 = vmatprep.subr.bf16.mxu1 %v10146_v2  ;;  %v10154_v7 = vld [vmem:[%s15885_s2 + $0x210] ss:$12 sps:$4 sm:$0xff]   ;;  %v10157_v9 = vld [vmem:[%s15885_s2 + $0x78] ss:$12 sps:$4 sm:$0xff]  }
  0x2a   : > { %v10152_v6 = vld [vmem:[%s15885_s2 + $0x214] ss:$12 sps:$4 sm:$0xff]   ;;  %1973 = vmatpush1.bf16.msra.mxu1 %v10148_v3  ;;  %1901 = vmatprep.subr.bf16.mxu0 %v10149_v4  ;;  %v10155_v8 = vld [vmem:[%s15885_s2 + $0x7c] ss:$12 sps:$4 sm:$0xff]   ;;  %v10161_v11 = vld [vmem:[%s15885_s2 + $0x64] ss:$12 sps:$4 sm:$0xff]  }
  0x2b   : > { %1974 = vmatprep.subr.bf16.mxu1 %v10152_v6  ;;  %v10158_v10 = vld [vmem:[%s15885_s2 + $0x1fc] ss:$12 sps:$4 sm:$0xff]   ;;  %v10160_v12 = vld [vmem:[%s15885_s2 + $0x1f8] ss:$12 sps:$4 sm:$0xff]   ;;  %v10163_v14 = vld [vmem:[%s15885_s2 + $0x60] ss:$12 sps:$4 sm:$0xff]  }
  0x2c   : > { %v10164_v13 = vld [vmem:[%s15885_s2 + $0x1e4] ss:$12 sps:$4 sm:$0xff]   ;;  %v10167_v15 = vld [vmem:[%s15885_s2 + $0x4c] ss:$12 sps:$4 sm:$0xff]   ;;  %v10169_v18 = vld [vmem:[%s15885_s2 + $0x48] ss:$12 sps:$4 sm:$0xff]  }
  0x2d   : > { %1902 = vmatpush1.bf16.msra.mxu0 %v10151_v5  ;;  %v10166_v16 = vld [vmem:[%s15885_s2 + $0x1e0] ss:$12 sps:$4 sm:$0xff]   ;;  %v10172_v20 = vld [vmem:[%s15885_s2 + $0x1c8] ss:$12 sps:$4 sm:$0xff]   ;;  %v10175_v22 = vld [vmem:[%s15885_s2 + $0x30] ss:$12 sps:$4 sm:$0xff]  }
  0x2e   : > { %1903 = vmatprep.subr.bf16.mxu0 %v10155_v8  ;;  %1975 = vmatpush1.bf16.msra.mxu1 %v10154_v7  ;;  %v10170_v17 = vld [vmem:[%s15885_s2 + $0x1cc] ss:$12 sps:$4 sm:$0xff]   ;;  %v10173_v19 = vld [vmem:[%s15885_s2 + $0x34] ss:$12 sps:$4 sm:$0xff]   ;;  %v10179_v23 = vld [vmem:[%s15885_s2 + $0x1c] ss:$12 sps:$4 sm:$0xff]  }
  0x2f   : > { %1976 = vmatprep.subr.bf16.mxu1 %v10158_v10  ;;  %v10176_v21 = vld [vmem:[%s15885_s2 + $0x1b4] ss:$12 sps:$4 sm:$0xff]   ;;  %v10178_v24 = vld [vmem:[%s15885_s2 + $0x1b0] ss:$12 sps:$4 sm:$0xff]   ;;  %v15895_v25 = vmov 0   ;;  %p395_p6 = scmp.lt.s32.totalorder %s11361_s21, 1 }
  0x30   : > { %10142 = vset.pattern.permute.xlu1 %v15895_v25  ;;  %v10182_v26 = vld [vmem:[%s15885_s2 + $0x19c] ss:$12 sps:$4 sm:$0xff]   ;;  %10141 = vset.pattern.permute.xlu0 %v15895_v25  ;;  %v10181_v27 = vld [vmem:[%s15885_s2 + $0x18] ss:$12 sps:$4 sm:$0xff]   ;;  %v10187_v31 = vld [vmem:[%s15885_s2] ss:$12 sps:$4 sm:$0xff]  }
  0x31   : > { %1904 = vmatpush1.bf16.msra.mxu0 %v10157_v9  ;;  %v10185_v28 = vld [vmem:[%s15885_s2 + $0x4] ss:$12 sps:$4 sm:$0xff]   ;;  %v10191_v32 = vld [vmem:[%s15885_s2 + $0x16c] ss:$12 sps:$4 sm:$0xff]   ;;  %v10193_v35 = vld [vmem:[%s15885_s2 + $0x168] ss:$12 sps:$4 sm:$0xff]  }
  0x32   : > { %1905 = vmatprep.subr.bf16.mxu0 %v10161_v11  ;;  %1977 = vmatpush1.bf16.msra.mxu1 %v10160_v12  ;;  %v10184_v29 = vld [vmem:[%s15885_s2 + $0x198] ss:$12 sps:$4 sm:$0xff]   ;;  %v10190_v33 = vld [vmem:[%s15885_s2 + $0x180] ss:$12 sps:$4 sm:$0xff]   ;;  %s396_s24 = scalar_select %p395_p6, %s11361_s21, 1 }
  0x33   : > { %1978 = vmatprep.subr.bf16.mxu1 %v10164_v13  ;;  %v10188_v30 = vld [vmem:[%s15885_s2 + $0x184] ss:$12 sps:$4 sm:$0xff]   ;;  %v10194_v34 = vld [vmem:[%s15885_s2 + $0x2ec] ss:$12 sps:$4 sm:$0xff]   ;;  %v10197_v36 = vld [vmem:[%s15885_s2 + $0x154] ss:$12 sps:$4 sm:$0xff]  }
  0x34   : > { %v10196_v37 = vld [vmem:[%s15885_s2 + $0x2e8] ss:$12 sps:$4 sm:$0xff]   ;;  %v10199_v39 = vld [vmem:[%s15885_s2 + $0x150] ss:$12 sps:$4 sm:$0xff]   ;;  %s10083_s22 = smul.u32 576, %s396_s24  ;;  %s392_s24 = sand.u32 1, %s11262_s18  }
  0x35   : > { %1906 = vmatpush1.bf16.msra.mxu0 %v10163_v14  ;;  %v10200_v38 = vld [vmem:[%s15885_s2 + $0x2d4] ss:$12 sps:$4 sm:$0xff]   ;;  %v10203_v40 = vld [vmem:[%s15885_s2 + $0x13c] ss:$12 sps:$4 sm:$0xff]   ;;  %v10205_v43 = vld [vmem:[%s15885_s2 + $0x138] ss:$12 sps:$4 sm:$0xff]  }
  0x36   : > { %1907 = vmatprep.subr.bf16.mxu0 %v10167_v15  ;;  %1979 = vmatpush1.bf16.msra.mxu1 %v10166_v16  ;;  %v10202_v41 = vld [vmem:[%s15885_s2 + $0x2d0] ss:$12 sps:$4 sm:$0xff]   ;;  %s11542_s9 = scalar_lea.vmem %s15883_s0, %s10083_s22  ;;  %v10208_v45 = vld [vmem:[%s15885_s2 + $0x2b8] ss:$12 sps:$4 sm:$0xff]   ;;  %v10211_v49 = vld [vmem:[%s15885_s2 + $0x120] ss:$12 sps:$4 sm:$0xff]  }
  0x37   : > { %1980 = vmatprep.subr.bf16.mxu1 %v10170_v17  ;;  %v10206_v42 = vld [vmem:[%s15885_s2 + $0x2bc] ss:$12 sps:$4 sm:$0xff]   ;;  %v10209_v44 = vld [vmem:[%s15885_s2 + $0x124] ss:$12 sps:$4 sm:$0xff]   ;;  %v10215_v51 = vld [vmem:[%s15885_s2 + $0x10c] ss:$12 sps:$4 sm:$0xff]  }
  0x38   : > { %v10212_v46 = vld [vmem:[%s15885_s2 + $0x2a4] ss:$12 sps:$4 sm:$0xff]   ;;  %v402_v47 = vld [vmem:[%s11542_s9 + $0x8] sm:$0xff]  ;;  %v404_v53 = vld [vmem:[%s11542_s9 + $0x18] sm:$0xff]  ;;  %s10082_s15 = smul.u32 576, %s392_s24 }
  0x39   : > { %1908 = vmatpush1.bf16.msra.mxu0 %v10169_v18  ;;  %v411_v48 = vld [vmem:[%s11542_s9 + $0x50] sm:$0xff]  ;;  %v10214_v52 = vld [vmem:[%s15885_s2 + $0x2a0] ss:$12 sps:$4 sm:$0xff]   ;;  %v10227_v62 = vld [vmem:[%s15885_s2 + $0xdc] ss:$12 sps:$4 sm:$0xff]   ;;  %s10084_s16 = smul.u32 9216, %s11361_s21 }
  0x3a   : > { %1909 = vmatprep.subr.bf16.mxu0 %v10173_v19  ;;  %1981 = vmatpush1.bf16.msra.mxu1 %v10172_v20  ;;  %v11558_v50 = vpack.c.bf16 %v411_v48, %v402_v47  ;;  %v413_v54 = vld [vmem:[%s11542_s9 + $0x60] sm:$0xff]  ;;  %v10218_v55 = vld [vmem:[%s15885_s2 + $0x28c] ss:$12 sps:$4 sm:$0xff]   ;;  %v10217_v57 = vld [vmem:[%s15885_s2 + $0x108] ss:$12 sps:$4 sm:$0xff]   ;;  %s15505_s25 = scalar_lea.vmem [#allocation7], %s10082_s15 }
  0x3b   : > { %1982 = vmatprep.subr.bf16.mxu1 %v10176_v21  ;;  %v11572_v56 = vpack.c.bf16 %v413_v54, %v404_v53  ;;  %v10221_v58 = vld [vmem:[%s15885_s2 + $0xf4] ss:$12 sps:$4 sm:$0xff]   ;;  %v10223_v61 = vld [vmem:[%s15885_s2 + $0xf0] ss:$12 sps:$4 sm:$0xff]   ;;  %v10229_v1 = vld [vmem:[%s15885_s2 + $0xd8] ss:$12 sps:$4 sm:$0xff]   ;;  %s15833_s22 = scalar_lea.hbm %s15894_s11, %s10084_s16 }
  0x3c   : > { %1931 = vmatprep.mubr.bf16.mxu0 %v11558_v50  ;;  %v10220_v59 = vld [vmem:[%s15885_s2 + $0x288] ss:$12 sps:$4 sm:$0xff]   ;;  %v10226_v63 = vld [vmem:[%s15885_s2 + $0x270] ss:$12 sps:$4 sm:$0xff]   ;;  %v10232_v2 = vld [vmem:[%s15885_s2 + $0x258] ss:$12 sps:$4 sm:$0xff]  }
  0x3d   : > { %1910 = vmatpush1.bf16.msra.mxu0 %v10175_v22  ;;  %2004 = vmatprep.mubr.bf16.mxu1 %v11572_v56  ;;  %v10224_v60 = vld [vmem:[%s15885_s2 + $0x274] ss:$12 sps:$4 sm:$0xff]   ;;  %v10230_v0 = vld [vmem:[%s15885_s2 + $0x25c] ss:$12 sps:$4 sm:$0xff]   ;;  %v10233_v3 = vld [vmem:[%s15885_s2 + $0xc4] ss:$12 sps:$4 sm:$0xff]  }
  0x3e   : > { %1911 = vmatprep.subr.bf16.mxu0 %v10179_v23  ;;  %1983 = vmatpush1.bf16.msra.mxu1 %v10178_v24  ;;  %v10235_v4 = vld [vmem:[%s15885_s2 + $0xc0] ss:$12 sps:$4 sm:$0xff]   ;;  %v10236_v5 = vld [vmem:[%s15885_s2 + $0x244] ss:$12 sps:$4 sm:$0xff]   ;;  %v412_v11 = vld [vmem:[%s11542_s9 + $0x58] sm:$0xff]  ;;  %s8777_s12 = sshll.u32 %s15505_s25, 4  ;;  %s15835_s12 = int_to_ptr.vmem [resolvable:$true] %s8777_s12 }
  0x3f   : > { %1984 = vmatprep.subr.bf16.mxu1 %v10182_v26  ;;  %v401_v6 = vld [vmem:[%s11542_s9] sm:$0xff]  ;;  %v410_v8 = vld [vmem:[%s11542_s9 + $0x48] sm:$0xff]  ;;  %v403_v10 = vld [vmem:[%s11542_s9 + $0x10] sm:$0xff]  ;;  %s11206_s14 = scalar_lea.vmem %s15835_s12, 9216  ;;  %s11277_s15 = smov [#allocation7]  }
  0x40   : > { %v10238_v7 = vld [vmem:[%s15885_s2 + $0x240] ss:$12 sps:$4 sm:$0xff]   ;;  %v11624_v12 = vpack.c.bf16 %v410_v8, %v401_v6  ;;  %v10239_v14 = vld [vmem:[%s15885_s2 + $0x3a8] ss:$12 sps:$4 sm:$0xff]   ;;  %v11632_v15 = vpack.c.bf16 %v412_v11, %v403_v10  ;;  %v10245_v18 = vld [vmem:[%s15885_s2 + $0x390] ss:$12 sps:$4 sm:$0xff]   ;;  %p11207_p8 = scmp.ne.s32.totalorder %s15835_s12, %s11206_s14 }
  0x41   : > { %1912 = vmatpush1.bf16.msra.mxu0 %v10181_v27  ;;  %v10241_v9 = vld [vmem:[%s15885_s2 + $0x3ac] ss:$12 sps:$4 sm:$0xff]   ;;  %v10247_v16 = vld [vmem:[%s15885_s2 + $0x394] ss:$12 sps:$4 sm:$0xff]   ;;  %v10248_v20 = vld [vmem:[%s15885_s2 + $0x510] ss:$12 sps:$4 sm:$0xff]  }
  0x42   : > { %1913 = vmatprep.subr.bf16.mxu0 %v10185_v28  ;;  %1985 = vmatpush1.bf16.msra.mxu1 %v10184_v29  ;;  %v10244_v13 = vld [vmem:[%s15885_s2 + $0x52c] ss:$12 sps:$4 sm:$0xff]   ;;  %v10242_v17 = vld [vmem:[%s15885_s2 + $0x528] ss:$12 sps:$4 sm:$0xff]   ;;  %v429_v23 = vld [vmem:[%s11542_s9 + $0xe0] sm:$0xff]  ;;  %p11208_p9 = pnand %p11207_p8, %p11378_p5  ;;  %s11210_s30 = sshll.u32 %s11277_s15, 4  ;;  %s11211_s30 = int_to_ptr.vmem [resolvable:$false] %s11210_s30 }
  0x43   : > { %1986 = vmatprep.subr.bf16.mxu1 %v10188_v30  ;;  %v10250_v19 = vld [vmem:[%s15885_s2 + $0x514] ss:$12 sps:$4 sm:$0xff]   ;;  %v10253_v21 = vld [vmem:[%s15885_s2 + $0x37c] ss:$12 sps:$4 sm:$0xff]   ;;  %v10251_v24 = vld [vmem:[%s15885_s2 + $0x378] ss:$12 sps:$4 sm:$0xff]   ;;  %p11213_p11 = scmp.lt.s32.totalorder %s15835_s12, %s11211_s30 }
  0x44   : > { %v420_v22 = vld [vmem:[%s11542_s9 + $0x98] sm:$0xff]  ;;  %v419_v28 = vld [vmem:[%s11542_s9 + $0x90] sm:$0xff]  ;;  %v422_v30 = vld [vmem:[%s11542_s9 + $0xa8] sm:$0xff]  ;;  %p11209_p10 = pneg %p11208_p9  ;;  %s11212_s13 = scalar_lea.vmem %s11211_s30, 18432 }
  0x45   : > { %1914 = vmatpush1.bf16.msra.mxu0 %v10187_v31  ;;  %v10256_v26 = vld [vmem:[%s15885_s2 + $0x4fc] ss:$12 sps:$4 sm:$0xff]   ;;  %v11662_v27 = vpack.c.bf16 %v429_v23, %v420_v22  ;;  %v437_v48 = vld [vmem:[%s11542_s9 + $0x120] sm:$0xff]  ;;  %v455_v6 = vld [vmem:[%s11542_s9 + $0x1b0] sm:$0xff]  ;;  %p11214_p12 = scmp.lt.s32.totalorder %s11212_s13, %s11206_s14 }
  0x46   : > { %1915 = vmatprep.subr.bf16.mxu0 %v10191_v32  ;;  %1987 = vmatpush1.bf16.msra.mxu1 %v10190_v33  ;;  %v428_v29 = vld [vmem:[%s11542_s9 + $0xd8] sm:$0xff]  ;;  %v431_v32 = vld [vmem:[%s11542_s9 + $0xf0] sm:$0xff]  ;;  %v449_v53 = vld [vmem:[%s11542_s9 + $0x180] sm:$0xff] }
  0x47   : > { %1988 = vmatprep.subr.bf16.mxu1 %v10194_v34  ;;  %v11668_v31 = vpack.c.bf16 %v428_v29, %v419_v28  ;;  %v10254_v33 = vld [vmem:[%s15885_s2 + $0x4f8] ss:$12 sps:$4 sm:$0xff]   ;;  %v10266_v54 = vld [vmem:[%s15885_s2 + $0x4c8] ss:$12 sps:$4 sm:$0xff]   ;;  %v10284_v22 = vld [vmem:[%s15885_s2 + $0x480] ss:$12 sps:$4 sm:$0xff]   ;;  %p11215_p13 = por %p11214_p12, %p11213_p11 }
  0x48   : > { %v10259_v34 = vld [vmem:[%s15885_s2 + $0x364] ss:$12 sps:$4 sm:$0xff]   ;;  %v458_v8 = vld [vmem:[%s11542_s9 + $0x1c8] sm:$0xff] }
  0x49   : > { %1916 = vmatpush2.bf16.msra.mxu0 %v10193_v35  ;;  %v11677_v35 = vpack.c.bf16 %v431_v32, %v422_v30  ;;  %v467_v10 = vld [vmem:[%s11542_s9 + $0x210] sm:$0xff]  ;;  %v10278_v11 = vld [vmem:[%s15885_s2 + $0x498] ss:$12 sps:$4 sm:$0xff]   ;;  %v406_v28 = vld [vmem:[%s11542_s9 + $0x28] sm:$0xff]  ;;  %p11216_p0 = pnand %p11215_p13, %p11209_p10 }
  0x4a   : > { %1917 = vmatprep.subr.bf16.mxu0 %v10197_v36  ;;  %1989 = vmatpush2.bf16.msra.mxu1 %v10196_v37  ;;  %v421_v36 = vld [vmem:[%s11542_s9 + $0xa0] sm:$0xff]  ;;  %v430_v37 = vld [vmem:[%s11542_s9 + $0xe8] sm:$0xff]  ;;  %v415_v29 = vld [vmem:[%s11542_s9 + $0x70] sm:$0xff] }
  0x4b   : > { %1990 = vmatprep.subr.bf16.mxu1 %v10200_v38  ;;  %v10257_v38 = vld [vmem:[%s15885_s2 + $0x360] ss:$12 sps:$4 sm:$0xff]   ;;  %v10290_v30 = vld [vmem:[%s15885_s2 + $0x5e8] ss:$12 sps:$4 sm:$0xff]   ;;  %v11800_v32 = vpack.c.bf16 %v415_v29, %v406_v28 }
  0x4c   : > { %v10292_v23 = vld [vmem:[%s15885_s2 + $0x5ec] ss:$12 sps:$4 sm:$0xff]  }
  0x4d   : > { %1918 = vmatpush2.bf16.msra.mxu0 %v10199_v39  ;;  %v10262_v39 = vld [vmem:[%s15885_s2 + $0x4e4] ss:$12 sps:$4 sm:$0xff]  }
  0x4e   : > { %1919 = vmatprep.subr.bf16.mxu0 %v10203_v40  ;;  %1991 = vmatpush2.bf16.msra.mxu1 %v10202_v41  ;;  %v11688_v40 = vpack.c.bf16 %v430_v37, %v421_v36  ;;  %v10260_v41 = vld [vmem:[%s15885_s2 + $0x4e0] ss:$12 sps:$4 sm:$0xff]   ;;  %v10293_v36 = vld [vmem:[%s15885_s2 + $0x450] ss:$12 sps:$4 sm:$0xff]  }
  0x4f   : > { %1992 = vmatprep.subr.bf16.mxu1 %v10206_v42  ;;  %v10265_v42 = vld [vmem:[%s15885_s2 + $0x34c] ss:$12 sps:$4 sm:$0xff]   ;;  %v417_v37 = vld [vmem:[%s11542_s9 + $0x80] sm:$0xff] }
  0x51   : > { %1920 = vmatpush2.bf16.msra.mxu0 %v10205_v43  ;;  %v438_v43 = vld [vmem:[%s11542_s9 + $0x128] sm:$0xff] }
  0x52   : > { %1921 = vmatprep.subr.bf16.mxu0 %v10209_v44  ;;  %1993 = vmatpush2.bf16.msra.mxu1 %v10208_v45  ;;  %v447_v44 = vld [vmem:[%s11542_s9 + $0x170] sm:$0xff] }
  0x53   : > { %1994 = vmatprep.subr.bf16.mxu1 %v10212_v46  ;;  %v10263_v45 = vld [vmem:[%s15885_s2 + $0x348] ss:$12 sps:$4 sm:$0xff]   ;;  %v10268_v46 = vld [vmem:[%s15885_s2 + $0x4cc] ss:$12 sps:$4 sm:$0xff]   ;;  %v11706_v47 = vpack.c.bf16 %v447_v44, %v438_v43  ;;  %v10307_v44 = vld [vmem:[%s15885_s2 + $0x424] ss:$12 sps:$4 sm:$0xff]  }
  0x54   : > { %v10299_v43 = vld [vmem:[%s15885_s2 + $0x438] ss:$12 sps:$4 sm:$0xff]  }
  0x55   : > { %1922 = vmatpush2.bf16.msra.mxu0 %v10211_v49  ;;  %v446_v49 = vld [vmem:[%s11542_s9 + $0x168] sm:$0xff] }
  0x56   : > { %1923 = vmatprep.subr.bf16.mxu0 %v10215_v51  ;;  %1995 = vmatpush2.bf16.msra.mxu1 %v10214_v52  ;;  %v440_v51 = vld [vmem:[%s11542_s9 + $0x138] sm:$0xff]  ;;  %v11712_v52 = vpack.c.bf16 %v446_v49, %v437_v48  ;;  %v10310_v48 = vld [vmem:[%s15885_s2 + $0x5a4] ss:$12 sps:$4 sm:$0xff]   ;;  %v10308_v49 = vld [vmem:[%s15885_s2 + $0x5a0] ss:$12 sps:$4 sm:$0xff]  }
  0x57   : > { %1996 = vmatprep.subr.bf16.mxu1 %v10218_v55  ;;  %v10271_v55 = vld [vmem:[%s15885_s2 + $0x334] ss:$12 sps:$4 sm:$0xff]  }
  0x59   : > { %1924 = vmatpush2.bf16.msra.mxu0 %v10217_v57  ;;  %v11721_v57 = vpack.c.bf16 %v449_v53, %v440_v51  ;;  %v10313_v51 = vld [vmem:[%s15885_s2 + $0x40c] ss:$12 sps:$4 sm:$0xff]   ;;  %v405_v53 = vld [vmem:[%s11542_s9 + $0x20] sm:$0xff] }
  0x5a   : > { %1925 = vmatprep.subr.bf16.mxu0 %v10221_v58  ;;  %1997 = vmatpush2.bf16.msra.mxu1 %v10220_v59  ;;  %v439_v58 = vld [vmem:[%s11542_s9 + $0x130] sm:$0xff]  ;;  %v448_v59 = vld [vmem:[%s11542_s9 + $0x178] sm:$0xff] }
  0x5b   : > { %1998 = vmatprep.subr.bf16.mxu1 %v10224_v60  ;;  %v10269_v60 = vld [vmem:[%s15885_s2 + $0x330] ss:$12 sps:$4 sm:$0xff]  }
  0x5d   : > { %1926 = vmatpush2.bf16.msra.mxu0 %v10223_v61  ;;  %v10274_v61 = vld [vmem:[%s15885_s2 + $0x4b4] ss:$12 sps:$4 sm:$0xff]  }
  0x5e   : > { %1927 = vmatprep.subr.bf16.mxu0 %v10227_v62  ;;  %1999 = vmatpush2.bf16.msra.mxu1 %v10226_v63  ;;  %v11732_v62 = vpack.c.bf16 %v448_v59, %v439_v58  ;;  %v10272_v63 = vld [vmem:[%s15885_s2 + $0x4b0] ss:$12 sps:$4 sm:$0xff]   ;;  %v11857_v59 = vld [vmem:[%s15884_s1] sm:$0xff] }
  0x5f   : > { %2000 = vmatprep.subr.bf16.mxu1 %v10230_v0  ;;  %v10277_v0 = vld [vmem:[%s15885_s2 + $0x31c] ss:$12 sps:$4 sm:$0xff]   ;;  %v11852_v58 = vld [vmem:[%s15884_s1 + $0x10] sm:$0xff] }
  0x61   : > { %1928 = vmatpush2.bf16.msra.mxu0 %v10229_v1  ;;  %v456_v1 = vld [vmem:[%s11542_s9 + $0x1b8] sm:$0xff] }
  0x62   : > { %1929 = vmatprep.subr.bf16.mxu0 %v10233_v3  ;;  %2001 = vmatpush2.bf16.msra.mxu1 %v10232_v2  ;;  %v465_v2 = vld [vmem:[%s11542_s9 + $0x200] sm:$0xff] }
  0x63   : > { %2002 = vmatprep.subr.bf16.mxu1 %v10236_v5  ;;  %v10275_v3 = vld [vmem:[%s15885_s2 + $0x318] ss:$12 sps:$4 sm:$0xff]   ;;  %v11750_v5 = vpack.c.bf16 %v465_v2, %v456_v1  ;;  %v2757_v1 = vadd.s32 4294967294, %v11852_v58  ;;  %v2755_v2 = vadd.s32 4294967294, %v11857_v59 }
  0x65   : > { %1930 = vmatpush2.bf16.msra.mxu0 %v10235_v4  ;;  %v10280_v4 = vld [vmem:[%s15885_s2 + $0x49c] ss:$12 sps:$4 sm:$0xff]   ;;  %vm2765_vm0 = vcmp.ge.s32.totalorder %v2757_v1, 0  ;;  %vm2773_vm1 = vcmp.lt.s32.totalorder %v2757_v1, 8  ;;  %vm2763_vm2 = vcmp.ge.s32.totalorder %v2755_v2, 0  ;;  %vm2771_vm3 = vcmp.lt.s32.totalorder %v2755_v2, 8 }
  0x66   : > { %2045 = vmatprep.subr.bf16.mxu0 %v10241_v9  ;;  %2003 = vmatpush2.bf16.msra.mxu1 %v10238_v7  ;;  %v464_v7 = vld [vmem:[%s11542_s9 + $0x1f8] sm:$0xff]  ;;  %vm2781_vm4 = vmand %vm2765_vm0, %vm2773_vm1  ;;  %v434_v1 = vld [vmem:[%s11542_s9 + $0x108] sm:$0xff] }
  0x67   : > { %2118 = vmatprep.subr.bf16.mxu1 %v10244_v13  ;;  %v11756_v9 = vpack.c.bf16 %v464_v7, %v455_v6  ;;  %v10283_v13 = vld [vmem:[%s15885_s2 + $0x304] ss:$12 sps:$4 sm:$0xff]   ;;  %v11870_v6 = vadd.s32 4294967295, %v11857_v59  ;;  %v10314_v7 = vld [vmem:[%s15885_s2 + $0x588] ss:$12 sps:$4 sm:$0xff]   ;;  %vm2779_vm5 = vmand %vm2763_vm2, %vm2771_vm3 }
  0x68   : > { %1932 = vmatmul.mubr.bf16.vlgmr.msra.gmra.mxu0 %v11624_v12  ;;  %v2787_v28 = vsel %vm2779_vm5, 1, %v15895_v25 }
  0x69   : > { %2046 = vmatpush1.bf16.msra.mxu0 %v10239_v14  ;;  %2005 = vmatmul.mubr.bf16.vlgmr.msra.gmra.mxu1 %v11632_v15  ;;  %v11765_v14 = vpack.c.bf16 %v467_v10, %v458_v8  ;;  %v423_v8 = vld [vmem:[%s11542_s9 + $0xb0] sm:$0xff]  ;;  %v432_v10 = vld [vmem:[%s11542_s9 + $0xf8] sm:$0xff]  ;;  %vm3178_vm8 = vcmp.ge.s32.totalorder %v11870_v6, 0 }
  0x6a   : > { %2047 = vmatprep.subr.bf16.mxu0 %v10247_v16  ;;  %2119 = vmatpush1.bf16.msra.mxu1 %v10242_v17  ;;  %v457_v16 = vld [vmem:[%s11542_s9 + $0x1c0] sm:$0xff]  ;;  %v466_v17 = vld [vmem:[%s11542_s9 + $0x208] sm:$0xff] }
  0x6b   : > { %2120 = vmatprep.subr.bf16.mxu1 %v10250_v19  ;;  %1941 = vmatprep.mubr.bf16.mxu0 %v11662_v27  ;;  %v11773_v19 = vpack.c.bf16 %v466_v17, %v457_v16 }
  0x6c   : > { %2014 = vmatprep.mubr.bf16.mxu1 %v11677_v35  ;;  %2796 = vperm.xlu0 %10141, %v2787_v28   ;;  %v450_v28 = vld [vmem:[%s11542_s9 + $0x188] sm:$0xff] }
  0x6d   : > { %2048 = vmatpush1.bf16.msra.mxu0 %v10245_v18  ;;  %v10286_v18 = vld [vmem:[%s15885_s2 + $0x484] ss:$12 sps:$4 sm:$0xff]   ;;  %15928 = vst [vmem:[#allocation10_spill] sm:$0xff] %v11773_v19 }
  0x6e   : > { %2049 = vmatprep.subr.bf16.mxu0 %v10253_v21  ;;  %2121 = vmatpush1.bf16.msra.mxu1 %v10248_v20  ;;  %v10281_v20 = vld [vmem:[%s15885_s2 + $0x300] ss:$12 sps:$4 sm:$0xff]  }
  0x6f   : > { %2122 = vmatprep.subr.bf16.mxu1 %v10256_v26  ;;  %v10289_v21 = vld [vmem:[%s15885_s2 + $0x46c] ss:$12 sps:$4 sm:$0xff]   ;;  %v10295_v26 = vld [vmem:[%s15885_s2 + $0x454] ss:$12 sps:$4 sm:$0xff]  }
  0x70   : > { %1942 = vmatmul.mubr.bf16.gmra.mxu0 %v11668_v31 }
  0x71   : > { %2050 = vmatpush1.bf16.msra.mxu0 %v10251_v24  ;;  %2015 = vmatmul.mubr.bf16.gmra.mxu1 %v11688_v40  ;;  %v10287_v24 = vld [vmem:[%s15885_s2 + $0x468] ss:$12 sps:$4 sm:$0xff]  }
  0x72   : > { %2051 = vmatprep.subr.bf16.mxu0 %v10259_v34  ;;  %2123 = vmatpush1.bf16.msra.mxu1 %v10254_v33  ;;  %v10298_v33 = vld [vmem:[%s15885_s2 + $0x5d4] ss:$12 sps:$4 sm:$0xff]   ;;  %v408_v34 = vld [vmem:[%s11542_s9 + $0x38] sm:$0xff] }
  0x73   : > { %2124 = vmatprep.subr.bf16.mxu1 %v10262_v39  ;;  %1951 = vmatprep.mubr.bf16.mxu0 %v11706_v47  ;;  %v11814_v39 = vpack.c.bf16 %v417_v37, %v408_v34  ;;  %v10320_v34 = vld [vmem:[%s15885_s2 + $0x570] ss:$12 sps:$4 sm:$0xff]   ;;  %v11923_v37 = vld [vmem:[%s15884_s1 + $0x20] sm:$0xff] }
  0x74   : > { %2024 = vmatprep.mubr.bf16.mxu1 %v11721_v57 }
  0x75   : > { %2052 = vmatpush1.bf16.msra.mxu0 %v10257_v38  ;;  %v10301_v38 = vld [vmem:[%s15885_s2 + $0x43c] ss:$12 sps:$4 sm:$0xff]   ;;  %15929 = vst [vmem:[#allocation11_spill] sm:$0xff] %v11814_v39 }
  0x76   : > { %2053 = vmatprep.subr.bf16.mxu0 %v10265_v42  ;;  %2125 = vmatpush1.bf16.msra.mxu1 %v10260_v41  ;;  %v10296_v41 = vld [vmem:[%s15885_s2 + $0x5d0] ss:$12 sps:$4 sm:$0xff]  }
  0x77   : > { %2126 = vmatprep.subr.bf16.mxu1 %v10268_v46  ;;  %v10304_v42 = vld [vmem:[%s15885_s2 + $0x5bc] ss:$12 sps:$4 sm:$0xff]   ;;  %v10305_v46 = vld [vmem:[%s15885_s2 + $0x420] ss:$12 sps:$4 sm:$0xff]  }
  0x78   : > { %1952 = vmatmul.mubr.bf16.gmra.mxu0 %v11712_v52 }
  0x79   : > { %2054 = vmatpush1.bf16.msra.mxu0 %v10263_v45  ;;  %2025 = vmatmul.mubr.bf16.gmra.mxu1 %v11732_v62  ;;  %v10302_v45 = vld [vmem:[%s15885_s2 + $0x5b8] ss:$12 sps:$4 sm:$0xff]  }
  0x7a   : > { %2055 = vmatprep.subr.bf16.mxu0 %v10271_v55  ;;  %2127 = vmatpush1.bf16.msra.mxu1 %v10266_v54  ;;  %v10316_v54 = vld [vmem:[%s15885_s2 + $0x58c] ss:$12 sps:$4 sm:$0xff]  }
  0x7b   : > { %2128 = vmatprep.subr.bf16.mxu1 %v10274_v61  ;;  %1961 = vmatprep.mubr.bf16.mxu0 %v11750_v5  ;;  %v414_v55 = vld [vmem:[%s11542_s9 + $0x68] sm:$0xff]  ;;  %v407_v61 = vld [vmem:[%s11542_s9 + $0x30] sm:$0xff] }
  0x7c   : > { %2034 = vmatprep.mubr.bf16.mxu1 %v11765_v14  ;;  %v11883_v16 = vpack.c.bf16 %v414_v55, %v405_v53  ;;  %v426_v53 = vld [vmem:[%s11542_s9 + $0xc8] sm:$0xff] }
  0x7d   : > { %2056 = vmatpush1.bf16.msra.mxu0 %v10269_v60  ;;  %v10311_v60 = vld [vmem:[%s15885_s2 + $0x408] ss:$12 sps:$4 sm:$0xff]  }
  0x7e   : > { %2057 = vmatprep.subr.bf16.mxu0 %v10277_v0  ;;  %2129 = vmatpush1.bf16.msra.mxu1 %v10272_v63  ;;  %v416_v63 = vld [vmem:[%s11542_s9 + $0x78] sm:$0xff] }
  0x7f   : > { %2130 = vmatprep.subr.bf16.mxu1 %v10280_v4  ;;  %v424_v0 = vld [vmem:[%s11542_s9 + $0xb8] sm:$0xff]  ;;  %v433_v4 = vld [vmem:[%s11542_s9 + $0x100] sm:$0xff]  ;;  %v11885_v17 = vpack.c.bf16 %v416_v63, %v407_v61 }
  0x80   : > { %1962 = vmatmul.mubr.bf16.gmra.mxu0 %v11756_v9  ;;  %v10326_v63 = vld [vmem:[%s15885_s2 + $0x558] ss:$12 sps:$4 sm:$0xff]  }
  0x81   : > { %2058 = vmatpush1.bf16.msra.mxu0 %v10275_v3  ;;  %2035 = vmatmul.mubr.bf16.gmra.mxu1 %v11773_v19  ;;  %v2647_v3 = vadd.s32 4294967293, %v11857_v59  ;;  %15930 = vst [vmem:[#allocation12_spill] sm:$0xff] %v11885_v17  ;;  %v10360_v19 = vld [vmem:[%s15885_s2 + $0x20] ss:$12 sps:$4 sm:$0xff]  }
  0x82   : > { %2059 = vmatprep.subr.bf16.mxu0 %v10283_v13  ;;  %2131 = vmatpush1.bf16.msra.mxu1 %v10278_v11  ;;  %v10319_v11 = vld [vmem:[%s15885_s2 + $0x3f4] ss:$12 sps:$4 sm:$0xff]  }
  0x83   : > { %2132 = vmatprep.subr.bf16.mxu1 %v10286_v18  ;;  %2077 = vmatprep.mubr.bf16.mxu0 %v11800_v32  ;;  %v10322_v13 = vld [vmem:[%s15885_s2 + $0x574] ss:$12 sps:$4 sm:$0xff]   ;;  %v10317_v18 = vld [vmem:[%s15885_s2 + $0x3f0] ss:$12 sps:$4 sm:$0xff]   ;;  %vm2655_vm6 = vcmp.ge.s32.totalorder %v2647_v3, 0  ;;  %vm2663_vm7 = vcmp.lt.s32.totalorder %v2647_v3, 8 }
  0x84   : > { %2150 = vmatprep.mubr.bf16.mxu1 %v11814_v39  ;;  %vm11944_vm13 = vmand %vm2655_vm6, %vm2663_vm7  ;;  %v10334_v3 = vld [vmem:[%s15885_s2 + $0x544] ss:$12 sps:$4 sm:$0xff]   ;;  %v4202_v39 = vadd.s32 3, %v11857_v59 }
  0x85   : > { %2060 = vmatpush1.bf16.msra.mxu0 %v10281_v20  ;;  %v11890_v20 = vpack.c.bf16 %v433_v4, %v424_v0  ;;  %v425_v0 = vld [vmem:[%s11542_s9 + $0xc0] sm:$0xff]  ;;  %v442_v4 = vld [vmem:[%s11542_s9 + $0x148] sm:$0xff] }
  0x86   : > { %2061 = vmatprep.subr.bf16.mxu0 %v10289_v21  ;;  %2133 = vmatpush1.bf16.msra.mxu1 %v10284_v22  ;;  %v2789_v21 = vsel %vm2781_vm4, 1, %v15895_v25  ;;  %v11896_v22 = vld [vmem:[%s15884_s1 + $0x18] sm:$0xff] }
  0x87   : > { %2134 = vmatprep.subr.bf16.mxu1 %v10292_v23  ;;  %v11901_v23 = vld [vmem:[%s15884_s1 + $0x8] sm:$0xff]  ;;  %2802 = vperm.xlu1 %10142, %v2789_v21   ;;  %v2758_v29 = vadd.s32 4294967294, %v11896_v22 }
  0x88   : > { %v10337_v21 = vld [vmem:[%s15885_s2 + $0x64c] ss:$12 sps:$4 sm:$0xff]  }
  0x89   : > { %2062 = vmatpush2.bf16.msra.mxu0 %v10287_v24  ;;  %v10325_v24 = vld [vmem:[%s15885_s2 + $0x3dc] ss:$12 sps:$4 sm:$0xff]   ;;  %vm2766_vm9 = vcmp.ge.s32.totalorder %v2758_v29, 0  ;;  %vm2774_vm10 = vcmp.lt.s32.totalorder %v2758_v29, 8 }
  0x8a   : > { %2063 = vmatprep.subr.bf16.mxu0 %v10295_v26  ;;  %2135 = vmatpush2.bf16.msra.mxu1 %v10290_v30  ;;  %v11906_v26 = vpack.c.bf16 %v432_v10, %v423_v8  ;;  %v2756_v30 = vadd.s32 4294967294, %v11901_v23  ;;  %vm2782_vm14 = vmand %vm2766_vm9, %vm2774_vm10  ;;  %v10329_v10 = vld [vmem:[%s15885_s2 + $0x3c0] ss:$12 sps:$4 sm:$0xff]  }
  0x8b   : > { %2136 = vmatprep.subr.bf16.mxu1 %v10298_v33  ;;  %v11914_v33 = vld [vmem:[%s15884_s1 + $0x28] sm:$0xff]  ;;  %v2790_v55 = vsel %vm2782_vm14, 1, %v15895_v25 }
  0x8c   : > { %vm2764_vm11 = vcmp.ge.s32.totalorder %v2756_v30, 0  ;;  %vm2772_vm12 = vcmp.lt.s32.totalorder %v2756_v30, 8  ;;  %2805 = vperm.xlu1 %10142, %v2790_v55   ;;  %v2650_v30 = vadd.s32 4294967293, %v11896_v22  ;;  %v10335_v55 = vld [vmem:[%s15885_s2 + $0x648] ss:$12 sps:$4 sm:$0xff]  }
  0x8d   : > { %2064 = vmatpush2.bf16.msra.mxu0 %v10293_v36  ;;  %v2760_v36 = vadd.s32 4294967294, %v11914_v33  ;;  %vm2780_vm1 = vmand %vm2764_vm11, %vm2772_vm12 }
  0x8e   : > { %2065 = vmatprep.subr.bf16.mxu0 %v10301_v38  ;;  %2137 = vmatpush2.bf16.msra.mxu1 %v10296_v41  ;;  %v11926_v38 = vadd.s32 4294967293, %v11901_v23  ;;  %v11930_v41 = vadd.s32 4294967293, %v11852_v58  ;;  %v2788_v2 = vsel %vm2780_vm1, 1, %v15895_v25 }
  0x8f   : > { %2138 = vmatprep.subr.bf16.mxu1 %v10304_v42  ;;  %v11935_v42 = vld [vmem:[%s15884_s1 + $0x38] sm:$0xff]  ;;  %vm2768_vm15 = vcmp.ge.s32.totalorder %v2760_v36, 0  ;;  %vm2776_vm0 = vcmp.lt.s32.totalorder %v2760_v36, 8  ;;  %2799 = vperm.xlu0 %10141, %v2788_v2   ;;  %v12007_v36 = vpack.c.bf16 %v434_v1, %v425_v0  ;;  %v2679_v0 = vsel %vm11944_vm13, 1, %v15895_v25 }
  0x90   : > { %vm2656_vm2 = vcmp.ge.s32.totalorder %v11926_v38, 0  ;;  %vm2784_vm3 = vmand %vm2768_vm15, %vm2776_vm0  ;;  %vm2664_vm6 = vcmp.lt.s32.totalorder %v11926_v38, 8  ;;  %vm3186_vm15 = vcmp.lt.s32.totalorder %v11870_v6, 8  ;;  %v2652_v38 = vadd.s32 4294967293, %v11914_v33  ;;  %v10341_v6 = vld [vmem:[%s15885_s2 + $0x618] ss:$12 sps:$4 sm:$0xff]  }
  0x91   : > { %2066 = vmatpush2.bf16.msra.mxu0 %v10299_v43  ;;  %v11940_v43 = vld [vmem:[%s15884_s1 + $0x30] sm:$0xff]  ;;  %v2792_v8 = vsel %vm2784_vm3, 1, %v15895_v25  ;;  %15938 = vst [vmem:[#allocation14_spill] sm:$0xff] %v12007_v36 }
  0x92   : > { %2067 = vmatprep.subr.bf16.mxu0 %v10307_v44  ;;  %2139 = vmatpush2.bf16.msra.mxu1 %v10302_v45  ;;  %v10323_v45 = vld [vmem:[%s15885_s2 + $0x3d8] ss:$12 sps:$4 sm:$0xff]   ;;  %v2761_v61 = vadd.s32 4294967294, %v11940_v43  ;;  %vm2668_vm13 = vcmp.lt.s32.totalorder %v2652_v38, 8  ;;  %v2651_v44 = vadd.s32 4294967293, %v11923_v37 }
  0x93   : > { %2140 = vmatprep.subr.bf16.mxu1 %v10310_v48  ;;  %v2759_v48 = vadd.s32 4294967294, %v11923_v37  ;;  %2811 = vperm.xlu1 %10142, %v2792_v8   ;;  %v2654_v8 = vadd.s32 4294967293, %v11935_v42 }
  0x94   : > { %vm2769_vm11 = vcmp.ge.s32.totalorder %v2761_v61, 0  ;;  %vm2777_vm14 = vcmp.lt.s32.totalorder %v2761_v61, 8  ;;  %v10347_v61 = vld [vmem:[%s15885_s2 + $0x170] ss:$12 sps:$4 sm:$0xff]  }
  0x95   : > { %2068 = vmatpush2.bf16.msra.mxu0 %v10305_v46  ;;  %v10328_v46 = vld [vmem:[%s15885_s2 + $0x55c] ss:$12 sps:$4 sm:$0xff]   ;;  %vm2767_vm4 = vcmp.ge.s32.totalorder %v2759_v48, 0  ;;  %vm2775_vm5 = vcmp.lt.s32.totalorder %v2759_v48, 8  ;;  %vm11998_vm0 = vmand %vm2769_vm11, %vm2777_vm14  ;;  %v3173_v48 = vadd.s32 4294967295, %v11896_v22 }
  0x96   : > { %2069 = vmatprep.subr.bf16.mxu0 %v10313_v51  ;;  %2141 = vmatpush2.bf16.msra.mxu1 %v10308_v49  ;;  %v3171_v49 = vadd.s32 4294967295, %v11901_v23  ;;  %v10331_v51 = vld [vmem:[%s15885_s2 + $0x3c4] ss:$12 sps:$4 sm:$0xff]   ;;  %vm2783_vm7 = vmand %vm2767_vm4, %vm2775_vm5  ;;  %vm2657_vm4 = vcmp.ge.s32.totalorder %v11930_v41, 0 }
  0x97   : > { %2142 = vmatprep.subr.bf16.mxu1 %v10316_v54  ;;  %v435_v54 = vld [vmem:[%s11542_s9 + $0x110] sm:$0xff]  ;;  %vm12013_vm5 = vmand %vm2656_vm2, %vm2664_vm6  ;;  %vm2658_vm2 = vcmp.ge.s32.totalorder %v2650_v30, 0  ;;  %vm2666_vm6 = vcmp.lt.s32.totalorder %v2650_v30, 8  ;;  %vm3181_vm11 = vcmp.ge.s32.totalorder %v3173_v48, 0 }
  0x98   : > { %vm3179_vm1 = vcmp.ge.s32.totalorder %v3171_v49, 0  ;;  %vm3187_vm3 = vcmp.lt.s32.totalorder %v3171_v49, 8  ;;  %vm12054_vm14 = vmand %vm2658_vm2, %vm2666_vm6  ;;  %v3177_v49 = vadd.s32 4294967295, %v11935_v42 }
  0x99   : > { %2070 = vmatpush2.bf16.msra.mxu0 %v10311_v60  ;;  %v2762_v60 = vadd.s32 4294967294, %v11935_v42 }
  0x9a   : > { %2071 = vmatprep.subr.bf16.mxu0 %v10319_v11  ;;  %2143 = vmatpush2.bf16.msra.mxu1 %v10314_v7  ;;  %v451_v7 = vld [vmem:[%s11542_s9 + $0x190] sm:$0xff]  ;;  %v11985_v11 = vpack.c.bf16 %v435_v54, %v426_v53 }
  0x9b   : > { %2144 = vmatprep.subr.bf16.mxu1 %v10322_v13  ;;  %vm2770_vm9 = vcmp.ge.s32.totalorder %v2762_v60, 0  ;;  %vm2778_vm10 = vcmp.lt.s32.totalorder %v2762_v60, 8  ;;  %v2791_v13 = vsel %vm2783_vm7, 1, %v15895_v25  ;;  %vm2665_vm7 = vcmp.lt.s32.totalorder %v11930_v41, 8 }
  0x9c   : > { %15933 = vst [vmem:[#allocation13_spill] sm:$0xff] %v11985_v11  ;;  %vm11988_vm12 = vmand %vm2770_vm9, %vm2778_vm10  ;;  %2808 = vperm.xlu0 %10141, %v2791_v13   ;;  %v2793_v60 = vsel %vm11998_vm0, 1, %v15895_v25  ;;  %vm2660_vm0 = vcmp.ge.s32.totalorder %v2652_v38, 0  ;;  %v3174_v41 = vadd.s32 4294967295, %v11923_v37  ;;  %v10348_v13 = vld [vmem:[%s15885_s2 + $0xb0] ss:$12 sps:$4 sm:$0xff]  }
  0x9d   : > { %2072 = vmatpush2.bf16.msra.mxu0 %v10317_v18  ;;  %v2794_v53 = vsel %vm11988_vm12, 1, %v15895_v25  ;;  %vm12024_vm9 = vmand %vm3179_vm1, %vm3187_vm3  ;;  %vm3189_vm12 = vcmp.lt.s32.totalorder %v3173_v48, 8  ;;  %v10338_v18 = vld [vmem:[%s15885_s2 + $0x630] ss:$12 sps:$4 sm:$0xff]   ;;  %v10351_v38 = vld [vmem:[%s15885_s2 + $0x140] ss:$12 sps:$4 sm:$0xff]  }
  0x9e   : > { %2073 = vmatprep.subr.bf16.mxu0 %v10325_v24  ;;  %2145 = vmatpush2.bf16.msra.mxu1 %v10320_v34  ;;  %v441_v24 = vld [vmem:[%s11542_s9 + $0x140] sm:$0xff]  ;;  %vm12041_vm10 = vmand %vm3178_vm8, %vm3186_vm15  ;;  %v460_v48 = vld [vmem:[%s11542_s9 + $0x1d8] sm:$0xff] }
  0x9f   : > { %2146 = vmatprep.subr.bf16.mxu1 %v10328_v46  ;;  %v10332_v34 = vld [vmem:[%s15885_s2 + $0x540] ss:$12 sps:$4 sm:$0xff]   ;;  %v12058_v1 = vpack.c.bf16 %v450_v28, %v441_v24  ;;  %2817 = vperm.xlu1 %10142, %v2794_v53   ;;  %vm12064_vm1 = vmand %vm2657_vm4, %vm2665_vm7  ;;  %vm2667_vm7 = vcmp.lt.s32.totalorder %v2651_v44, 8  ;;  %v10343_v28 = vld [vmem:[%s15885_s2 + $0x61c] ss:$12 sps:$4 sm:$0xff]   ;;  %v12104_v29 = vsel %vm12041_vm10, 1, %v15895_v25 }
  0xa0   : > { %2814 = vperm.xlu0 %10141, %v2793_v60   ;;  %vm12075_vm3 = vmand %vm3181_vm11, %vm3189_vm12  ;;  %vm3182_vm11 = vcmp.ge.s32.totalorder %v3174_v41, 0  ;;  %vm3190_vm12 = vcmp.lt.s32.totalorder %v3174_v41, 8  ;;  %v453_v46 = vld [vmem:[%s11542_s9 + $0x1a0] sm:$0xff]  ;;  %v12120_v53 = vsel %vm12054_vm14, 1, %v15895_v25  ;;  %v12125_v54 = vsel %vm12064_vm1, 1, %v15895_v25  ;;  %v452_v41 = vld [vmem:[%s11542_s9 + $0x198] sm:$0xff] }
  0xa1   : > { %2074 = vmatpush2.bf16.msra.mxu0 %v10323_v45  ;;  %v3172_v45 = vadd.s32 4294967295, %v11852_v58 }
  0xa2   : > { %2075 = vmatprep.subr.bf16.mxu0 %v10331_v51  ;;  %2147 = vmatpush2.bf16.msra.mxu1 %v10326_v63  ;;  %v12032_v51 = vpack.c.bf16 %v451_v7, %v442_v4  ;;  %v10340_v63 = vld [vmem:[%s15885_s2 + $0x634] ss:$12 sps:$4 sm:$0xff]   ;;  %v2680_v4 = vsel %vm12013_vm5, 1, %v15895_v25  ;;  %vm2659_vm5 = vcmp.ge.s32.totalorder %v2651_v44, 0  ;;  %v10346_v7 = vld [vmem:[%s15885_s2 + $0x604] ss:$12 sps:$4 sm:$0xff]  }
  0xa3   : > { %2148 = vmatprep.subr.bf16.mxu1 %v10334_v3  ;;  %vm3180_vm8 = vcmp.ge.s32.totalorder %v3172_v45, 0  ;;  %vm3188_vm15 = vcmp.lt.s32.totalorder %v3172_v45, 8  ;;  %v3175_v3 = vadd.s32 4294967295, %v11914_v33  ;;  %v469_v45 = vld [vmem:[%s11542_s9 + $0x220] sm:$0xff]  ;;  %vm12129_vm10 = vmand %vm2659_vm5, %vm2667_vm7  ;;  %2691 = vperm.xlu1 %10142, %v2680_v4   ;;  %v3646_v4 = vadd.s32 1, %v11857_v59  ;;  %v443_v44 = vld [vmem:[%s11542_s9 + $0x150] sm:$0xff] }
  0xa4   : > { %vm12093_vm4 = vmand %vm3180_vm8, %vm3188_vm15  ;;  %vm2662_vm8 = vcmp.ge.s32.totalorder %v2654_v8, 0  ;;  %vm2670_vm15 = vcmp.lt.s32.totalorder %v2654_v8, 8  ;;  %2688 = vperm.xlu0 %10141, %v2679_v0   ;;  %vm3193_vm5 = vcmp.lt.s32.totalorder %v3177_v49, 8  ;;  %v3649_v8 = vadd.s32 1, %v11896_v22 }
  0xa5   : > { %2076 = vmatpush2.bf16.msra.mxu0 %v10329_v10  ;;  %v2653_v10 = vadd.s32 4294967293, %v11940_v43  ;;  %vm3183_vm2 = vcmp.ge.s32.totalorder %v3175_v3, 0  ;;  %vm3191_vm6 = vcmp.lt.s32.totalorder %v3175_v3, 8  ;;  %v12157_v2 = vsel %vm12093_vm4, 1, %v15895_v25 }
  0xa6   : > { %2199 = vmatprep.subr.bf16.mxu0 %v10337_v21  ;;  %2149 = vmatpush2.bf16.msra.mxu1 %v10332_v34  ;;  %v3203_v21 = vsel %vm12024_vm9, 1, %v15895_v25  ;;  %vm12108_vm9 = vmand %vm2660_vm0, %vm2668_vm13  ;;  %v444_v34 = vld [vmem:[%s11542_s9 + $0x158] sm:$0xff]  ;;  %v3647_v3 = vadd.s32 1, %v11901_v23  ;;  %vm3185_vm4 = vcmp.ge.s32.totalorder %v3177_v49, 0 }
  0xa7   : > { %9898 = vmatprep.subr.bf16.mxu1 %v10347_v61  ;;  %vm12139_vm14 = vmand %vm3183_vm2, %vm3191_vm6  ;;  %vm2661_vm0 = vcmp.ge.s32.totalorder %v2653_v10, 0  ;;  %vm2669_vm1 = vcmp.lt.s32.totalorder %v2653_v10, 8  ;;  %v3176_v61 = vadd.s32 4294967295, %v11940_v43  ;;  %v12173_v24 = vsel %vm12108_vm9, 1, %v15895_v25  ;;  %v10350_v10 = vld [vmem:[%s15885_s2 + $0x98] ss:$12 sps:$4 sm:$0xff]   ;;  %3214 = vperm.xlu1 %10142, %v3203_v21  }
  0xa8   : > { %2078 = vmatmul.mubr.bf16.vlgmr.msra.gmra.mxu0 %v11883_v16  ;;  %vm12161_vm13 = vmand %vm3182_vm11, %vm3190_vm12  ;;  %vm3655_vm9 = vcmp.ge.s32.totalorder %v3647_v3, 0  ;;  %vm3663_vm11 = vcmp.lt.s32.totalorder %v3647_v3, 8  ;;  %v12188_v30 = vpack.c.bf16 %v453_v46, %v444_v34  ;;  %v3648_v21 = vadd.s32 1, %v11852_v58  ;;  %3211 = vperm.xlu0 %10141, %v12104_v29  }
  0xa9   : > { %2200 = vmatpush1.bf16.msra.mxu0 %v10335_v55  ;;  %2087 = vmatprep.mubr.bf16.mxu0 %v11890_v20  ;;  %v10349_v55 = vld [vmem:[%s15885_s2 + $0x158] ss:$12 sps:$4 sm:$0xff]   ;;  %vm3184_vm7 = vcmp.ge.s32.totalorder %v3176_v61, 0  ;;  %vm12183_vm2 = vmand %vm2661_vm0, %vm2669_vm1  ;;  %vm3192_vm6 = vcmp.lt.s32.totalorder %v3176_v61, 8  ;;  %v3650_v61 = vadd.s32 1, %v11923_v37  ;;  %vm3657_vm1 = vcmp.ge.s32.totalorder %v3649_v8, 0 }
  0xaa   : > { %2151 = vmatmul.mubr.bf16.vlgmr.msra.gmra.mxu1 %v11885_v17  ;;  %2201 = vmatprep.subr.bf16.mxu0 %v10340_v63  ;;  %v12152_v63 = vsel %vm12075_vm3, 1, %v15895_v25  ;;  %vm12177_vm3 = vmand %vm2662_vm8, %vm2670_vm15  ;;  %15965 = vst [vmem:[#allocation15_spill] sm:$0xff] %v12188_v30  ;;  %v12190_v25 = vpack.c.bf16 %v469_v45, %v460_v48  ;;  %vm3654_vm8 = vcmp.ge.s32.totalorder %v3646_v4, 0  ;;  %vm3662_vm15 = vcmp.lt.s32.totalorder %v3646_v4, 8  ;;  %v471_v17 = vld [vmem:[%s11542_s9 + $0x230] sm:$0xff] }
  0xab   : > { %2160 = vmatprep.mubr.bf16.mxu1 %v11985_v11  ;;  %9899 = vmatpush3.bf16.msra.mxu1 %v10348_v13  ;;  %vm12192_vm12 = vmand %vm3185_vm4, %vm3193_vm5  ;;  %v3651_v45 = vadd.s32 1, %v11914_v33  ;;  %v3653_v3 = vadd.s32 1, %v11935_v42  ;;  %v462_v11 = vld [vmem:[%s11542_s9 + $0x1e8] sm:$0xff]  ;;  %vm3664_vm4 = vcmp.lt.s32.totalorder %v3648_v21, 8  ;;  %v3652_v4 = vadd.s32 1, %v11940_v43 }
  0xac   : > { %9900 = vmatprep.subr.bf16.mxu1 %v10349_v55  ;;  %vm12214_vm0 = vmand %vm3184_vm7, %vm3192_vm6  ;;  %2697 = vperm.xlu1 %10142, %v12120_v53   ;;  %vm3658_vm6 = vcmp.ge.s32.totalorder %v3650_v61, 0  ;;  %v3925_v53 = vadd.s32 2, %v11901_v23  ;;  %v3924_v29 = vadd.s32 2, %v11857_v59  ;;  %v10353_v59 = vld [vmem:[%s15885_s2 + $0x128] ss:$12 sps:$4 sm:$0xff]  }
  0xad   : > { %2202 = vmatpush1.bf16.msra.mxu0 %v10338_v18  ;;  %v10344_v18 = vld [vmem:[%s15885_s2 + $0x600] ss:$12 sps:$4 sm:$0xff]   ;;  %vm3659_vm5 = vcmp.ge.s32.totalorder %v3651_v45, 0  ;;  %vm3667_vm7 = vcmp.lt.s32.totalorder %v3651_v45, 8  ;;  %2694 = vperm.xlu0 %10141, %v12125_v54  }
  0xae   : > { %2203 = vmatprep.subr.bf16.mxu0 %v10343_v28  ;;  %v15968_v28 = vmov 0   ;;  %v461_v45 = vld [vmem:[%s11542_s9 + $0x1e0] sm:$0xff] }
  0xaf   : > { %v12205_v34 = vsel %vm12129_vm10, 1, %v15968_v28  ;;  %v12210_v46 = vsel %vm12139_vm14, 1, %v15968_v28  ;;  %v12228_v55 = vsel %vm12161_vm13, 1, %v15968_v28  ;;  %v12233_v60 = vsel %vm12177_vm3, 1, %v15968_v28  ;;  %vm12242_vm10 = vmand %vm3655_vm9, %vm3663_vm11  ;;  %9901 = vmatpush3.bf16.msra.mxu1 %v10350_v10  ;;  %v10352_v10 = vld [vmem:[%s15885_s2 + $0x80] ss:$12 sps:$4 sm:$0xff]  }
  0xb0   : > { %2088 = vmatmul.mubr.bf16.gmra.mxu0 %v11906_v26  ;;  %v12238_v49 = vsel %vm12183_vm2, 1, %v15968_v28  ;;  %v12253_v0 = vsel %vm12192_vm12, 1, %v15968_v28  ;;  %vm3670_vm14 = vmand %vm3654_vm8, %vm3662_vm15  ;;  %vm3665_vm13 = vcmp.lt.s32.totalorder %v3649_v8, 8  ;;  %vm3656_vm3 = vcmp.ge.s32.totalorder %v3648_v21, 0  ;;  %9902 = vmatprep.subr.bf16.mxu1 %v10351_v38  ;;  %v470_v38 = vld [vmem:[%s11542_s9 + $0x228] sm:$0xff] }
  0xb1   : > { %2097 = vmatprep.mubr.bf16.mxu0 %v12032_v51  ;;  %2204 = vmatpush1.bf16.msra.mxu0 %v10341_v6  ;;  %v12264_v6 = vsel %vm12214_vm0, 1, %v15968_v28  ;;  %v12275_v13 = vsel %vm3670_vm14, 1, %v15968_v28  ;;  %vm12280_vm2 = vmand %vm3657_vm1, %vm3665_vm13  ;;  %vm3666_vm9 = vcmp.lt.s32.totalorder %v3650_v61, 8  ;;  %vm3661_vm12 = vcmp.ge.s32.totalorder %v3653_v3, 0 }
  0xb2   : > { %2161 = vmatmul.mubr.bf16.gmra.mxu1 %v12007_v36  ;;  %2205 = vmatprep.subr.bf16.mxu0 %v10346_v7  ;;  %v12272_v7 = vsel %vm12242_vm10, 1, %v15968_v28  ;;  %v468_v36 = vld [vmem:[%s11542_s9 + $0x218] sm:$0xff]  ;;  %vm12290_vm11 = vmand %vm3656_vm3, %vm3664_vm4  ;;  %vm3669_vm8 = vcmp.lt.s32.totalorder %v3653_v3, 8  ;;  %v4203_v8 = vadd.s32 3, %v11901_v23  ;;  %v12301_v21 = vpack.c.bf16 %v471_v17, %v462_v11 }
  0xb3   : > { %2170 = vmatprep.mubr.bf16.mxu1 %v12188_v30  ;;  %v459_v30 = vld [vmem:[%s11542_s9 + $0x1d0] sm:$0xff]  ;;  %vm12305_vm15 = vmand %vm3659_vm5, %vm3667_vm7  ;;  %vm3660_vm0 = vcmp.ge.s32.totalorder %v3652_v4, 0  ;;  %vm3668_vm10 = vcmp.lt.s32.totalorder %v3652_v4, 8  ;;  %3220 = vperm.xlu1 %10142, %v12152_v63   ;;  %v12316_v23 = vsel %vm12280_vm2, 1, %v15968_v28  ;;  %vm3933_vm1 = vcmp.ge.s32.totalorder %v3925_v53, 0 }
  0xb4   : > { %vm12320_vm14 = vmand %vm3658_vm6, %vm3666_vm9  ;;  %vm3941_vm13 = vcmp.lt.s32.totalorder %v3925_v53, 8  ;;  %v3927_v11 = vadd.s32 2, %v11896_v22  ;;  %3217 = vperm.xlu0 %10141, %v12157_v2   ;;  %v12332_v63 = vsel %vm12290_vm11, 1, %v15968_v28  ;;  %vm3932_vm4 = vcmp.ge.s32.totalorder %v3924_v29, 0  ;;  %9903 = vmatpush3.bf16.msra.mxu1 %v10352_v10  ;;  %v10355_v10 = vld [vmem:[%s15885_s2 + $0x110] ss:$12 sps:$4 sm:$0xff]  }
  0xb5   : > { %2206 = vmatpush1.bf16.msra.mxu0 %v10344_v18  ;;  %v12299_v18 = vpack.c.bf16 %v452_v41, %v443_v44  ;;  %vm12336_vm3 = vmand %vm3661_vm12, %vm3669_vm8  ;;  %vm3940_vm5 = vcmp.lt.s32.totalorder %v3924_v29, 8  ;;  %vm4211_vm7 = vcmp.ge.s32.totalorder %v4203_v8, 0  ;;  %v10354_v44 = vld [vmem:[%s15885_s2 + $0x68] ss:$12 sps:$4 sm:$0xff]   ;;  %vm4219_vm6 = vcmp.lt.s32.totalorder %v4203_v8, 8  ;;  %9904 = vmatprep.subr.bf16.mxu1 %v10353_v59 }
  0xb6   : > { %vm12346_vm2 = vmand %vm3660_vm0, %vm3668_vm10  ;;  %vm4210_vm9 = vcmp.ge.s32.totalorder %v4202_v39, 0  ;;  %v3926_v41 = vadd.s32 2, %v11852_v58  ;;  %v4205_v3 = vadd.s32 3, %v11896_v22  ;;  %v12353_v48 = vpack.c.bf16 %v468_v36, %v459_v30  ;;  %v10356_v29 = vld [vmem:[%s15885_s2 + $0x50] ss:$12 sps:$4 sm:$0xff]  }
  0xb7   : > { %vm12357_vm11 = vmand %vm3933_vm1, %vm3941_vm13  ;;  %vm4218_vm12 = vcmp.lt.s32.totalorder %v4202_v39, 8  ;;  %v4204_v4 = vadd.s32 3, %v11852_v58  ;;  %2703 = vperm.xlu1 %10142, %v12173_v24   ;;  %v12370_v22 = vsel %vm12305_vm15, 1, %v15968_v28  ;;  %vm3943_vm10 = vcmp.lt.s32.totalorder %v3927_v11, 8  ;;  %v10357_v17 = vld [vmem:[%s15885_s2 + $0xf8] ss:$12 sps:$4 sm:$0xff]  }
  0xb8   : > { %2098 = vmatmul.mubr.bf16.gmra.mxu0 %v12058_v1  ;;  %vm12374_vm8 = vmand %vm3932_vm4, %vm3940_vm5  ;;  %v3929_v58 = vadd.s32 2, %v11914_v33  ;;  %2700 = vperm.xlu0 %10141, %v12205_v34   ;;  %v12383_v24 = vsel %vm12320_vm14, 1, %v15968_v28  ;;  %vm3934_vm1 = vcmp.ge.s32.totalorder %v3926_v41, 0  ;;  %vm3942_vm13 = vcmp.lt.s32.totalorder %v3926_v41, 8  ;;  %v436_v39 = vld [vmem:[%s11542_s9 + $0x118] sm:$0xff]  ;;  %v445_v41 = vld [vmem:[%s11542_s9 + $0x160] sm:$0xff] }
  0xb9   : > { %2107 = vmatprep.mubr.bf16.mxu0 %v12190_v25  ;;  %vm12387_vm15 = vmand %vm4211_vm7, %vm4219_vm6  ;;  %v3928_v30 = vadd.s32 2, %v11923_v37  ;;  %v12392_v53 = vpack.c.bf16 %v470_v38, %v461_v45  ;;  %vm4213_vm14 = vcmp.ge.s32.totalorder %v4205_v3, 0  ;;  %vm4221_vm0 = vcmp.lt.s32.totalorder %v4205_v3, 8  ;;  %9905 = vmatpush3.bf16.msra.mxu1 %v10354_v44  ;;  %v418_v38 = vld [vmem:[%s11542_s9 + $0x88] sm:$0xff]  ;;  %v10358_v44 = vld [vmem:[%s15885_s2 + $0x38] ss:$12 sps:$4 sm:$0xff]  }
  0xba   : > { %2171 = vmatmul.mubr.bf16.gmra.mxu1 %v12299_v18  ;;  %vm12396_vm5 = vmand %vm4210_vm9, %vm4218_vm12  ;;  %v12406_v8 = vsel %vm12336_vm3, 1, %v15968_v28  ;;  %vm15993_vm7 = vcmp.ge.s32.totalorder %v3927_v11, 0  ;;  %vm4212_vm9 = vcmp.ge.s32.totalorder %v4204_v4, 0  ;;  %vm4220_vm12 = vcmp.lt.s32.totalorder %v4204_v4, 8  ;;  %9906 = vmatprep.subr.bf16.mxu1 %v10355_v10  ;;  %v409_v11 = vld [vmem:[%s11542_s9 + $0x40] sm:$0xff] }
  0xbb   : > { %2180 = vmatprep.mubr.bf16.mxu1 %v12301_v21  ;;  %vm12410_vm6 = vmand %vm15993_vm7, %vm3943_vm10  ;;  %v4207_v59 = vadd.s32 3, %v11914_v33  ;;  %3226 = vperm.xlu1 %10142, %v12210_v46   ;;  %v12432_v33 = vsel %vm12346_vm2, 1, %v15968_v28  ;;  %v4206_v61 = vadd.s32 3, %v11923_v37  ;;  %v12455_v37 = vsel %vm12357_vm11, 1, %v15968_v28  ;;  %v10359_v3 = vld [vmem:[%s15885_s2 + $0xe0] ss:$12 sps:$4 sm:$0xff]  }
  0xbc   : > { %vm12421_vm3 = vmand %vm3934_vm1, %vm3942_vm13  ;;  %3223 = vperm.xlu0 %10141, %v12228_v55   ;;  %vm3936_vm1 = vcmp.ge.s32.totalorder %v3928_v30, 0  ;;  %vm3944_vm13 = vcmp.lt.s32.totalorder %v3928_v30, 8  ;;  %v12460_v2 = vsel %vm12374_vm8, 1, %v15968_v28  ;;  %v12471_v4 = vpack.c.bf16 %v418_v38, %v409_v11  ;;  %v10361_v45 = vld [vmem:[%s15885_s2 + $0xc8] ss:$12 sps:$4 sm:$0xff]   ;;  %v472_v38 = vld [vmem:[%s11542_s9 + $0x238] sm:$0xff] }
  0xbd   : > { %vm12436_vm4 = vmand %vm4213_vm14, %vm4221_vm0  ;;  %9907 = vmatpush3.bf16.msra.mxu1 %v10356_v29  ;;  %vm4215_vm2 = vcmp.ge.s32.totalorder %v4207_v59, 0  ;;  %vm4223_vm7 = vcmp.lt.s32.totalorder %v4207_v59, 8  ;;  %vm16002_vm0 = vcmp.lt.s32.totalorder %v3929_v58, 8  ;;  %vm16003_vm14 = vcmp.ge.s32.totalorder %v3929_v58, 0  ;;  %v427_v29 = vld [vmem:[%s11542_s9 + $0xd0] sm:$0xff] }
  0xbe   : > { %vm12444_vm10 = vmand %vm4212_vm9, %vm4220_vm12  ;;  %9908 = vmatprep.subr.bf16.mxu1 %v10357_v17  ;;  %v12477_v54 = vsel %vm12387_vm15, 1, %v15968_v28  ;;  %v12482_v10 = vsel %vm12396_vm5, 1, %v15968_v28  ;;  %v12496_v36 = vsel %vm12421_vm3, 1, %v15968_v28  ;;  %v12501_v58 = vsel %vm12436_vm4, 1, %v15968_v28  ;;  %v10365_v46 = vld [vmem:[%s15885_s2 + $0x2d8] ss:$12 sps:$4 sm:$0xff]  }
  0xbf   : > { %vm12464_vm9 = vmand %vm16003_vm14, %vm16002_vm0  ;;  %2709 = vperm.xlu1 %10142, %v12233_v60   ;;  %v12491_v60 = vsel %vm12410_vm6, 1, %v15968_v28  ;;  %vm4214_vm15 = vcmp.ge.s32.totalorder %v4206_v61, 0  ;;  %vm4222_vm4 = vcmp.lt.s32.totalorder %v4206_v61, 8  ;;  %v12531_v17 = vadd.s32 2, %v11940_v43  ;;  %v10366_v55 = vld [vmem:[%s15885_s2 + $0x470] ss:$12 sps:$4 sm:$0xff]  }
  0xc0   : > { %2108 = vmatmul.mubr.bf16.gmra.mxu0 %v12353_v48  ;;  %vm3952_vm11 = vmand %vm3936_vm1, %vm3944_vm13  ;;  %2706 = vperm.xlu0 %10141, %v12238_v49   ;;  %v12511_v49 = vsel %vm12444_vm10, 1, %v15968_v28  ;;  %v12519_v30 = vsel %vm12464_vm9, 1, %v15968_v28  ;;  %vm16006_vm5 = vcmask 523264   ;;  %v12540_v11 = vadd.s32 3, %v11935_v42 }
  0xc1   : > { %2223 = vmatprep.mubr.bf16.mxu0 %v15968_v28  ;;  %vm4231_vm8 = vmand %vm4215_vm2, %vm4223_vm7  ;;  %9909 = vmatpush3.bf16.msra.mxu1 %v10358_v44  ;;  %v12522_v34 = vsel %vm3952_vm11, 1, %v15968_v28  ;;  %v12561_v61 = vpack.c.bf16 %v436_v39, %v427_v29  ;;  %v10367_v44 = vld [vmem:[%s15885_s2 + $0x218] ss:$12 sps:$4 sm:$0xff]   ;;  %v10373_v29 = vld [vmem:[%s15885_s2 + $0x2a8] ss:$12 sps:$4 sm:$0xff]   ;;  %vm3938_vm13 = vcmp.ge.s32.totalorder %v12531_v17, 0 }
  0xc2   : > { %2181 = vmatmul.mubr.bf16.gmra.mxu1 %v12392_v53  ;;  %9910 = vmatprep.subr.bf16.mxu1 %v10359_v3  ;;  %v12528_v59 = vsel %vm4231_vm8, 1, %v15968_v28  ;;  %vm12547_vm6 = vmand %vm4214_vm15, %vm4222_vm4  ;;  %v454_v3 = vld [vmem:[%s11542_s9 + $0x1a8] sm:$0xff]  ;;  %vm3946_vm2 = vcmp.lt.s32.totalorder %v12531_v17, 8  ;;  %vm4217_vm14 = vcmp.ge.s32.totalorder %v12540_v11, 0  ;;  %vm4225_vm9 = vcmp.lt.s32.totalorder %v12540_v11, 8 }
  0xc3   : > { %2296 = vmatprep.mubr.bf16.mxu1 %v11558_v50  ;;  %v12506_v50 = vadd.s32 2, %v11935_v42  ;;  %3232 = vperm.xlu1 %10142, %v12253_v0   ;;  %v10362_v0 = vld [vmem:[%s15885_s2 + $0x2f0] ss:$12 sps:$4 sm:$0xff]   ;;  %vm16009_vm12 = vmmov %vm16006_vm5  ;;  %v12603_v39 = vsel %vm12547_vm6, 1, %v15968_v28 }
  0xc4   : > { %3229 = vperm.xlu0 %10141, %v12264_v6   ;;  %v10363_v6 = vld [vmem:[%s15885_s2 + $0x8] ss:$12 sps:$4 sm:$0xff]   ;;  %9938 = vmatprep.subr.bf16.mxu0 %v10362_v0  ;;  %v10364_v42 = vld [vmem:[%s15885_s2 + $0x230] ss:$12 sps:$4 sm:$0xff]   ;;  %vm16010_vm3 = vmmov %vm16006_vm5 }
  0xc5   : > { %9911 = vmatpush3.bf16.msra.mxu1 %v10360_v19  ;;  %v10370_v19 = vld [vmem:[%s15885_s2 + $0x458] ss:$12 sps:$4 sm:$0xff]   ;;  %v463_v0 = vld [vmem:[%s11542_s9 + $0x1f0] sm:$0xff]  ;;  %vm3939_vm10 = vcmp.ge.s32.totalorder %v12506_v50, 0  ;;  %vm3947_vm7 = vcmp.lt.s32.totalorder %v12506_v50, 8  ;;  %vm16011_vm1 = vmmov %vm16010_vm3 }
  0xc6   : > { %9912 = vmatprep.subr.bf16.mxu1 %v10361_v45  ;;  %v12606_v45 = vadd.s32 3, %v11940_v43  ;;  %v10376_v43 = vld [vmem:[%s15885_s2 + $0x380] ss:$12 sps:$4 sm:$0xff]   ;;  %vm12685_vm0 = vmand %vm3939_vm10, %vm3947_vm7 }
  0xc7   : > { %3690 = vperm.xlu1 %10142, %v12272_v7   ;;  %v10368_v7 = vld [vmem:[%s15885_s2 + $0x3b0] ss:$12 sps:$4 sm:$0xff]   ;;  %v10392_v50 = vld [vmem:[%s15885_s2 + $0x320] ss:$12 sps:$4 sm:$0xff]   ;;  %vm3954_vm11 = vmand %vm3938_vm13, %vm3946_vm2 }
  0xc8   : > { %9062 = vmatmul.mubr.msk.bf16.vlgmr.msra.gmra.mxu0 %vm16006_vm5, %v12471_v4  ;;  %3687 = vperm.xlu0 %10141, %v12275_v13   ;;  %v10369_v13 = vld [vmem:[%s15885_s2 + $0x2c0] ss:$12 sps:$4 sm:$0xff]   ;;  %vm4216_vm8 = vcmp.ge.s32.totalorder %v12606_v45, 0  ;;  %vm4224_vm15 = vcmp.lt.s32.totalorder %v12606_v45, 8  ;;  %vm4233_vm4 = vmand %vm4217_vm14, %vm4225_vm9  ;;  %v16017_v45 = vld [vmem:[#allocation12_spill] sm:$0xff] }
  0xc9   : > { %2233 = vmatprep.mubr.bf16.mxu0 %v15968_v28  ;;  %9939 = vmatpush3.bf16.msra.mxu0 %v10364_v42  ;;  %v10381_v42 = vld [vmem:[%s15885_s2 + $0x278] ss:$12 sps:$4 sm:$0xff]   ;;  %vm4232_vm5 = vmand %vm4216_vm8, %vm4224_vm15  ;;  %v4241_v17 = vsel %vm4233_vm4, 1, %v15968_v28 }
  0xca   : > { %9913 = vmatpush3.bf16.msra.mxu1 %v10363_v6  ;;  %9940 = vmatprep.subr.bf16.mxu0 %v10365_v46  ;;  %v12641_v6 = vpack.c.bf16 %v472_v38, %v463_v0  ;;  %v10383_v46 = vld [vmem:[%s15885_s2 + $0x1b8] ss:$12 sps:$4 sm:$0xff]   ;;  %v4240_v11 = vsel %vm4232_vm5, 1, %v15968_v28  ;;  %vm16016_vm6 = vmmov %vm16011_vm1  ;;  %v10429_v38 = vld [vmem:[%s15887_s4 + $0xd4] ss:$8 sps:$4 sm:$0xff]  }
  0xcb   : > { %9978 = vmatprep.subr.bf16.mxu1 %v10366_v55  ;;  %3696 = vperm.xlu1 %10142, %v12316_v23   ;;  %v10371_v23 = vld [vmem:[%s15885_s2 + $0x200] ss:$12 sps:$4 sm:$0xff]   ;;  %v10389_v55 = vld [vmem:[%s15885_s2 + $0x248] ss:$12 sps:$4 sm:$0xff]   ;;  %vm16023_vm10 = vmmov %vm16011_vm1 }
  0xcc   : > { %3693 = vperm.xlu0 %10141, %v12332_v63   ;;  %v10372_v63 = vld [vmem:[%s15885_s2 + $0x398] ss:$12 sps:$4 sm:$0xff]  }
  0xcd   : > { %2297 = vmatmul.mubr.bf16.vlgmr.msra.gmra.mxu1 %v11624_v12  ;;  %9941 = vmatpush3.bf16.msra.mxu0 %v10367_v44  ;;  %v12597_v12 = vpack.c.bf16 %v454_v3, %v445_v41  ;;  %v10403_v41 = vld [vmem:[%s15885_s2 + $0x590] ss:$12 sps:$4 sm:$0xff]   ;;  %v10412_v3 = vld [vmem:[%s15885_s2 + $0x620] ss:$12 sps:$4 sm:$0xff]  }
  0xce   : > { %9979 = vmatpush3.bf16.msra.mxu1 %v10368_v7  ;;  %9942 = vmatprep.subr.bf16.mxu0 %v10369_v13  ;;  %v10402_v7 = vld [vmem:[%s15885_s2 + $0x4e8] ss:$12 sps:$4 sm:$0xff]   ;;  %v16018_v0 = vld [vmem:[#allocation13_spill] sm:$0xff] }
  0xcf   : > { %3702 = vperm.xlu1 %10142, %v12370_v22   ;;  %9980 = vmatprep.subr.bf16.mxu1 %v10370_v19  ;;  %v10374_v22 = vld [vmem:[%s15885_s2 + $0x440] ss:$12 sps:$4 sm:$0xff]   ;;  %v10414_v13 = vld [vmem:[%s15885_s2 + $0x608] ss:$12 sps:$4 sm:$0xff]  }
  0xd0   : > { %9063 = vmatmul.mubr.msk.bf16.gmra.mxu0 %vm16009_vm12, %v12561_v61  ;;  %3699 = vperm.xlu0 %10141, %v12383_v24   ;;  %v10375_v24 = vld [vmem:[%s15885_s2 + $0x1e8] ss:$12 sps:$4 sm:$0xff]   ;;  %vm16019_vm12 = vmmov %vm16011_vm1  ;;  %v10450_v44 = vld [vmem:[%s15887_s4 + $0x24] ss:$8 sps:$4 sm:$0xff]  }
  0xd1   : > { %2243 = vmatprep.mubr.bf16.mxu0 %v15968_v28  ;;  %2304 = vmatprep.mubr.bf16.mxu1 %v11662_v27  ;;  %v10377_v27 = vld [vmem:[%s15885_s2 + $0x290] ss:$12 sps:$4 sm:$0xff]  }
  0xd2   : > { %9943 = vmatpush3.bf16.msra.mxu0 %v10371_v23  ;;  %9981 = vmatpush3.bf16.msra.mxu1 %v10372_v63  ;;  %v10420_v19 = vld [vmem:[%s15887_s4 + $0x74] ss:$8 sps:$4 sm:$0xff]   ;;  %v16014_v23 = vld [vmem:[#allocation10_spill] sm:$0xff] }
  0xd3   : > { %3708 = vperm.xlu1 %10142, %v12406_v8   ;;  %9944 = vmatprep.subr.bf16.mxu0 %v10373_v29  ;;  %v10378_v8 = vld [vmem:[%s15885_s2 + $0x428] ss:$12 sps:$4 sm:$0xff]   ;;  %v10415_v29 = vld [vmem:[%s15887_s4 + $0xf0] ss:$8 sps:$4 sm:$0xff]  }
  0xd4   : > { %3705 = vperm.xlu0 %10141, %v12432_v33   ;;  %9982 = vmatprep.subr.bf16.mxu1 %v10374_v22  ;;  %v10379_v33 = vld [vmem:[%s15885_s2 + $0x1d0] ss:$12 sps:$4 sm:$0xff]  }
  0xd5   : > { %2305 = vmatmul.mubr.bf16.gmra.mxu1 %v11668_v31  ;;  %v10380_v31 = vld [vmem:[%s15885_s2 + $0x368] ss:$12 sps:$4 sm:$0xff]   ;;  %v10418_v22 = vld [vmem:[%s15887_s4 + $0x70] ss:$8 sps:$4 sm:$0xff]  }
  0xd6   : > { %9945 = vmatpush3.bf16.msra.mxu0 %v10375_v24  ;;  %9983 = vmatpush3.bf16.msra.mxu1 %v10376_v43  ;;  %v16015_v63 = vld [vmem:[#allocation11_spill] sm:$0xff]  ;;  %v11276_v24 = vmov 0.0   ;;  %v10424_v43 = vld [vmem:[%s15887_s4 + $0x60] ss:$8 sps:$4 sm:$0xff]  }
  0xd7   : > { %3968 = vperm.xlu1 %10142, %v12455_v37   ;;  %9946 = vmatprep.subr.bf16.mxu0 %v10377_v27  ;;  %v10382_v37 = vld [vmem:[%s15885_s2 + $0x410] ss:$12 sps:$4 sm:$0xff]   ;;  %2629 = vst [vmem:[#allocation2] sm:$0x7] %v11276_v24  ;;  %2630 = vst [vmem:[#allocation2 + $0x43] sm:$0x7] %v11276_v24 }
  0xd8   : > { %9064 = vmatmul.mubr.msk.bf16.gmra.mxu0 %vm16010_vm3, %v12597_v12  ;;  %3965 = vperm.xlu0 %10141, %v12460_v2   ;;  %v10384_v2 = vld [vmem:[%s15885_s2 + $0x350] ss:$12 sps:$4 sm:$0xff]   ;;  %4516 = vst [vmem:[#allocation3] sm:$0xff] %v11276_v24  ;;  %vm16020_vm3 = vmmov %vm16011_vm1 }
  0xd9   : > { %2253 = vmatprep.mubr.bf16.mxu0 %v15968_v28  ;;  %9984 = vmatprep.subr.bf16.mxu1 %v10378_v8  ;;  %v10427_v27 = vld [vmem:[%s15887_s4 + $0xd0] ss:$8 sps:$4 sm:$0xff]   ;;  %v10432_v8 = vld [vmem:[%s15887_s4 + $0x54] ss:$8 sps:$4 sm:$0xff]  }
  0xda   : > { %2312 = vmatprep.mubr.bf16.mxu1 %v11706_v47  ;;  %9947 = vmatpush3.bf16.msra.mxu0 %v10379_v33  ;;  %v10385_v47 = vld [vmem:[%s15885_s2 + $0x260] ss:$12 sps:$4 sm:$0xff]  }
  0xdb   : > { %4246 = vperm.xlu1 %10142, %v12477_v54   ;;  %9985 = vmatpush3.bf16.msra.mxu1 %v10380_v31  ;;  %v10386_v54 = vld [vmem:[%s15885_s2 + $0x3f8] ss:$12 sps:$4 sm:$0xff]   ;;  %v16021_v31 = vld [vmem:[#allocation14_spill] sm:$0xff] }
  0xdc   : > { %4243 = vperm.xlu0 %10141, %v12482_v10   ;;  %9948 = vmatprep.subr.bf16.mxu0 %v10381_v42  ;;  %v10387_v10 = vld [vmem:[%s15885_s2 + $0x1a0] ss:$12 sps:$4 sm:$0xff]   ;;  %v16022_v42 = vld [vmem:[#allocation15_spill] sm:$0xff] }
  0xdd   : > { %2313 = vmatmul.mubr.bf16.gmra.mxu1 %v11712_v52  ;;  %9986 = vmatprep.subr.bf16.mxu1 %v10382_v37  ;;  %v10388_v52 = vld [vmem:[%s15885_s2 + $0x338] ss:$12 sps:$4 sm:$0xff]   ;;  %v10433_v37 = vld [vmem:[%s15887_s4 + $0xc0] ss:$8 sps:$4 sm:$0xff]  }
  0xde   : > { %9949 = vmatpush3.bf16.msra.mxu0 %v10383_v46  ;;  %2320 = vmatprep.mubr.bf16.mxu1 %v11750_v5  ;;  %v10393_v5 = vld [vmem:[%s15885_s2 + $0x3c8] ss:$12 sps:$4 sm:$0xff]   ;;  %v10435_v33 = vld [vmem:[%s15887_s4 + $0xc4] ss:$8 sps:$4 sm:$0xff]  }
  0xdf   : > { %3974 = vperm.xlu1 %10142, %v12491_v60   ;;  %9987 = vmatpush3.bf16.msra.mxu1 %v10384_v2  ;;  %v10390_v60 = vld [vmem:[%s15885_s2 + $0x3e0] ss:$12 sps:$4 sm:$0xff]   ;;  %v10441_v46 = vld [vmem:[%s15887_s4 + $0xb4] ss:$8 sps:$4 sm:$0xff]  }
  0xe0   : > { %9065 = vmatmul.mubr.msk.bf16.gmra.mxu0 %vm16011_vm1, %v12641_v6  ;;  %3971 = vperm.xlu0 %10141, %v12496_v36   ;;  %v10391_v36 = vld [vmem:[%s15885_s2 + $0x188] ss:$12 sps:$4 sm:$0xff]  }
  0xe1   : > { %9950 = vmatprep.subr.bf16.mxu0 %v10385_v47  ;;  %9988 = vmatprep.subr.bf16.mxu1 %v10386_v54  ;;  %v10436_v2 = vld [vmem:[%s15887_s4 + $0x40] ss:$8 sps:$4 sm:$0xff]   ;;  %v10439_v47 = vld [vmem:[%s15887_s4 + $0xb0] ss:$8 sps:$4 sm:$0xff]   ;;  %v10444_v54 = vld [vmem:[%s15887_s4 + $0x34] ss:$8 sps:$4 sm:$0xff]  }
  0xe2   : > { %9951 = vmatpush3.bf16.msra.mxu0 %v10387_v10  ;;  %2361 = vmatprep.mubr.bf16.mxu0 %v11572_v56  ;;  %v10394_v56 = vld [vmem:[%s15885_s2 + $0x5f0] ss:$12 sps:$4 sm:$0xff]   ;;  %v783_v10 = vlaneseq }
  0xe3   : > { %4252 = vperm.xlu1 %10142, %v12501_v58   ;;  %9989 = vmatpush3.bf16.msra.mxu1 %v10388_v52  ;;  %v10395_v58 = vld [vmem:[%s15885_s2 + $0x308] ss:$12 sps:$4 sm:$0xff]   ;;  %v10442_v52 = vld [vmem:[%s15887_s4 + $0x30] ss:$8 sps:$4 sm:$0xff]  }
  0xe4   : > { %4249 = vperm.xlu0 %10141, %v12511_v49   ;;  %9952 = vmatprep.subr.bf16.mxu0 %v10389_v55  ;;  %v10396_v49 = vld [vmem:[%s15885_s2 + $0x530] ss:$12 sps:$4 sm:$0xff]   ;;  %v10445_v55 = vld [vmem:[%s15887_s4 + $0xa0] ss:$8 sps:$4 sm:$0xff]  }
  0xe5   : > { %2321 = vmatmul.mubr.bf16.gmra.mxu1 %v11756_v9  ;;  %9990 = vmatprep.subr.bf16.mxu1 %v10390_v60  ;;  %v10397_v9 = vld [vmem:[%s15885_s2 + $0x5d8] ss:$12 sps:$4 sm:$0xff]   ;;  %v12893_v60 = vshrl.u32 %v783_v10, 7 }
  0xe6   : > { %9953 = vmatpush3.bf16.msra.mxu0 %v10391_v36  ;;  %2426 = vmatprep.mubr.bf16.mxu1 %v11800_v32  ;;  %v10398_v32 = vld [vmem:[%s15885_s2 + $0x518] ss:$12 sps:$4 sm:$0xff]   ;;  %v12904_v36 = vld [vmem:[%s15886_s3] sm:$0x7] }
  0xe7   : > { %3980 = vperm.xlu1 %10142, %v12519_v30   ;;  %9991 = vmatpush3.bf16.msra.mxu1 %v10392_v50  ;;  %v10399_v30 = vld [vmem:[%s15885_s2 + $0x5c0] ss:$12 sps:$4 sm:$0xff]   ;;  %16024 = vst [vmem:[#allocation10_spill] sm:$0xff] %v12893_v60  ;;  %v10451_v50 = vld [vmem:[%s15887_s4 + $0x90] ss:$8 sps:$4 sm:$0xff]  }
  0xe8   : > { %3977 = vperm.xlu0 %10141, %v12522_v34   ;;  %9992 = vmatprep.subr.bf16.mxu1 %v10393_v5  ;;  %v10400_v34 = vld [vmem:[%s15885_s2 + $0x500] ss:$12 sps:$4 sm:$0xff]   ;;  %v10456_v5 = vld [vmem:[%s15887_s4 + $0x14] ss:$8 sps:$4 sm:$0xff]  }
  0xe9   : > { %2362 = vmatmul.mubr.bf16.vlgmr.msra.gmra.mxu0 %v11632_v15  ;;  %10018 = vmatprep.subr.bf16.mxu0 %v10394_v56  ;;  %v3963_v15 = vsel %vm12685_vm0, 1, %v15968_v28  ;;  %v12913_v56 = vsub.s32 1, %v12893_v60 }
  0xea   : > { %10019 = vmatpush3.bf16.msra.mxu0 %v10396_v49  ;;  %2369 = vmatprep.mubr.bf16.mxu0 %v11677_v35  ;;  %v3962_v35 = vsel %vm3954_vm11, 1, %v15968_v28  ;;  %v10454_v49 = vld [vmem:[%s15887_s4 + $0x10] ss:$8 sps:$4 sm:$0xff]  }
  0xeb   : > { %4258 = vperm.xlu1 %10142, %v12528_v59   ;;  %9993 = vmatpush3.bf16.msra.mxu1 %v10395_v58  ;;  %v10401_v59 = vld [vmem:[%s15885_s2 + $0x5a8] ss:$12 sps:$4 sm:$0xff]   ;;  %v10459_v58 = vld [vmem:[%s15887_s4 + $0x84] ss:$8 sps:$4 sm:$0xff]  }
  0xec   : > { %4255 = vperm.xlu0 %10141, %v12603_v39   ;;  %10020 = vmatprep.subr.bf16.mxu0 %v10397_v9  ;;  %v10423_v39 = vld [vmem:[%s15887_s4 + $0xe4] ss:$8 sps:$4 sm:$0xff]   ;;  %v10457_v9 = vld [vmem:[%s15887_s4 + $0x80] ss:$8 sps:$4 sm:$0xff]  }
  0xee   : > { %2427 = vmatmul.mubr.bf16.vlgmr.msra.gmra.mxu1 %v11883_v16  ;;  %10021 = vmatpush3.bf16.msra.mxu0 %v10398_v32  ;;  %v10406_v16 = vld [vmem:[%s15885_s2 + $0x650] ss:$12 sps:$4 sm:$0xff]   ;;  %v10462_v32 = vld [vmem:[%s15887_s4 + $0x4] ss:$8 sps:$4 sm:$0xff]  }
  0xef   : > { %3986 = vperm.xlu1 %10142, %v3963_v15   ;;  %10022 = vmatprep.subr.bf16.mxu0 %v10399_v30  ;;  %v10465_v30 = vld [vmem:[%s15887_s4 + $0x174] ss:$8 sps:$4 sm:$0xff]  }
  0xf0   : > { %3983 = vperm.xlu0 %10141, %v3962_v35   ;;  %2434 = vmatprep.mubr.bf16.mxu1 %v11890_v20  ;;  %v10404_v20 = vld [vmem:[%s15885_s2 + $0x4d0] ss:$12 sps:$4 sm:$0xff]  }
  0xf1   : > { %2370 = vmatmul.mubr.bf16.gmra.mxu0 %v11688_v40  ;;  %10066 = vmatprep.subr.bf16.mxu1 %v10406_v16  ;;  %v10409_v40 = vld [vmem:[%s15885_s2 + $0x638] ss:$12 sps:$4 sm:$0xff]  }
  0xf2   : > { %10023 = vmatpush3.bf16.msra.mxu0 %v10400_v34  ;;  %2377 = vmatprep.mubr.bf16.mxu0 %v11721_v57  ;;  %v10405_v57 = vld [vmem:[%s15885_s2 + $0x578] ss:$12 sps:$4 sm:$0xff]  }
  0xf3   : > { %4264 = vperm.xlu1 %10142, %v4241_v17   ;;  %10024 = vmatprep.subr.bf16.mxu0 %v10401_v59  ;;  %v10460_v59 = vld [vmem:[%s15887_s4] ss:$8 sps:$4 sm:$0xff]  }
  0xf4   : > { %4261 = vperm.xlu0 %10141, %v4240_v11   ;;  %10067 = vmatpush3.bf16.msra.mxu1 %v10406_v16 }
  0xf5   : > { %10068 = vmatprep.subr.bf16.mxu1 %v10409_v40 }
  0xf6   : > { %2435 = vmatmul.mubr.bf16.gmra.mxu1 %v11906_v26  ;;  %10025 = vmatpush3.bf16.msra.mxu0 %v10402_v7  ;;  %v10407_v26 = vld [vmem:[%s15885_s2 + $0x4b8] ss:$12 sps:$4 sm:$0xff]   ;;  %v10468_v7 = vld [vmem:[%s15887_s4 + $0x1f4] ss:$8 sps:$4 sm:$0xff]  }
  0xf7   : > { %10026 = vmatprep.subr.bf16.mxu0 %v10403_v41  ;;  %2442 = vmatprep.mubr.bf16.mxu1 %v12032_v51  ;;  %v10408_v51 = vld [vmem:[%s15885_s2 + $0x560] ss:$12 sps:$4 sm:$0xff]  }
  0xf8   : > { %10069 = vmatpush3.bf16.msra.mxu1 %v10409_v40 }
  0xf9   : > { %2378 = vmatmul.mubr.bf16.gmra.mxu0 %v11732_v62  ;;  %10070 = vmatprep.subr.bf16.mxu1 %v10412_v3  ;;  %v10410_v62 = vld [vmem:[%s15885_s2 + $0x4a0] ss:$12 sps:$4 sm:$0xff]  }
  0xfa   : > { %10027 = vmatpush3.bf16.msra.mxu0 %v10404_v20  ;;  %2385 = vmatprep.mubr.bf16.mxu0 %v11765_v14  ;;  %v10411_v14 = vld [vmem:[%s15885_s2 + $0x548] ss:$12 sps:$4 sm:$0xff]  }
  0xfb   : > { %10028 = vmatprep.subr.bf16.mxu0 %v10405_v57 }
  0xfc   : > { %10071 = vmatpush3.bf16.msra.mxu1 %v10412_v3 }
  0xfd   : > { %10072 = vmatprep.subr.bf16.mxu1 %v10414_v13 }
  0xfe   : > { %2443 = vmatmul.mubr.bf16.gmra.mxu1 %v12058_v1  ;;  %10029 = vmatpush3.bf16.msra.mxu0 %v10407_v26  ;;  %v10413_v1 = vld [vmem:[%s15885_s2 + $0x488] ss:$12 sps:$4 sm:$0xff]  }
  0xff   : > { %10030 = vmatprep.subr.bf16.mxu0 %v10408_v51  ;;  %2450 = vmatprep.mubr.bf16.mxu1 %v12190_v25  ;;  %v10417_v25 = vld [vmem:[%s15887_s4 + $0xf4] ss:$8 sps:$4 sm:$0xff]  }
 0x100   : > { %10073 = vmatpush3.bf16.msra.mxu1 %v10414_v13 }
 0x101   : > { %2386 = vmatmul.mubr.bf16.gmra.mxu0 %v16014_v23  ;;  %3089 = vmatprep.subr.bf16.mxu1 %v10420_v19 }
 0x102   : > { %10031 = vmatpush3.bf16.msra.mxu0 %v10410_v62  ;;  %2491 = vmatprep.mubr.bf16.mxu0 %v16015_v63 }
 0x103   : > { %10032 = vmatprep.subr.bf16.mxu0 %v10411_v14 }
 0x106   : > { %2451 = vmatmul.mubr.bf16.gmra.mxu1 %v12353_v48  ;;  %10033 = vmatpush3.bf16.msra.mxu0 %v10413_v1  ;;  %v10421_v48 = vld [vmem:[%s15887_s4 + $0xe0] ss:$8 sps:$4 sm:$0xff]  }
 0x107   : > { %10074 = vmatprep.mubr.msk.bf16.mxu1 %vm16016_vm6, %v12471_v4  ;;  %2936 = vmatprep.subr.bf16.mxu0 %v10417_v25  ;;  %v10426_v4 = vld [vmem:[%s15887_s4 + $0x64] ss:$8 sps:$4 sm:$0xff]  }
 0x109   : > { %2492 = vmatmul.mubr.bf16.vlgmr.msra.gmra.mxu0 %v16017_v45 }
 0x10a   : > { %2499 = vmatprep.mubr.bf16.mxu0 %v16018_v0  ;;  %2937 = vmatpush1.bf16.msra.mxu0 %v10415_v29 }
 0x10b   : > { %2938 = vmatprep.subr.bf16.mxu0 %v10423_v39 }
 0x10e   : > { %10075 = vmatmul.mubr.msk.bf16.vlgmr.msra.gmra.mxu1 %vm16019_vm12, %v12561_v61  ;;  %2939 = vmatpush1.bf16.msra.mxu0 %v10421_v48  ;;  %v10430_v61 = vld [vmem:[%s15887_s4 + $0x50] ss:$8 sps:$4 sm:$0xff]  }
 0x10f   : > { %10078 = vmatprep.mubr.msk.bf16.mxu1 %vm16020_vm3, %v12597_v12  ;;  %3090 = vmatpush1.bf16.msra.mxu1 %v10418_v22  ;;  %v10438_v12 = vld [vmem:[%s15887_s4 + $0x44] ss:$8 sps:$4 sm:$0xff]  }
 0x110   : > { %3091 = vmatprep.subr.bf16.mxu1 %v10426_v4  ;;  %2940 = vmatprep.subr.bf16.mxu0 %v10429_v38 }
 0x111   : > { %2500 = vmatmul.mubr.bf16.gmra.mxu0 %v16021_v31 }
 0x112   : > { %2507 = vmatprep.mubr.bf16.mxu0 %v16022_v42  ;;  %2941 = vmatpush1.bf16.msra.mxu0 %v10427_v27 }
 0x113   : > { %3092 = vmatpush1.bf16.msra.mxu1 %v10424_v43  ;;  %2942 = vmatprep.subr.bf16.mxu0 %v10435_v33 }
 0x114   : > { %3093 = vmatprep.subr.bf16.mxu1 %v10432_v8 }
 0x116   : > { %10079 = vmatmul.mubr.msk.bf16.gmra.mxu1 %vm16023_vm10, %v12641_v6  ;;  %2943 = vmatpush1.bf16.msra.mxu0 %v10433_v37  ;;  %v10447_v6 = vld [vmem:[%s15887_s4 + $0xa4] ss:$8 sps:$4 sm:$0xff]  }
 0x117   : > { %3094 = vmatpush1.bf16.msra.mxu1 %v10430_v61  ;;  %2944 = vmatprep.subr.bf16.mxu0 %v10441_v46  ;;  %v12992_v46 = vpop.permute.xlu1 %2802 }
 0x118   : > { %3095 = vmatprep.subr.bf16.mxu1 %v10438_v12  ;;  %3121 = vmatprep.mubr.bf16.mxu1 %v15968_v28  ;;  %vm2821_vm9 = vcmp.eq.s32.totalorder %v12992_v46, 1  ;;  %v10480_v46 = vld [vmem:[%s15887_s4 + $0x1d4] ss:$8 sps:$4 sm:$0xff]  }
 0x119   : > { %2508 = vmatmul.mubr.bf16.gmra.mxu0 %v12299_v18  ;;  %v10453_v18 = vld [vmem:[%s15887_s4 + $0x94] ss:$8 sps:$4 sm:$0xff]  }
 0x11a   : > { %2515 = vmatprep.mubr.bf16.mxu0 %v12301_v21  ;;  %2945 = vmatpush1.bf16.msra.mxu0 %v10439_v47  ;;  %v10448_v21 = vld [vmem:[%s15887_s4 + $0x20] ss:$8 sps:$4 sm:$0xff]  }
 0x11b   : > { %3096 = vmatpush1.bf16.msra.mxu1 %v10436_v2  ;;  %2946 = vmatprep.subr.bf16.mxu0 %v10447_v6 }
 0x11c   : > { %3097 = vmatprep.subr.bf16.mxu1 %v10444_v54  ;;  %v12996_v54 = vpop.permute.xlu0 %2796 }
 0x11d   : > { %vm2819_vm7 = vcmp.eq.s32.totalorder %v12996_v54, 1 }
 0x11e   : > { %2947 = vmatpush1.bf16.msra.mxu0 %v10445_v55 }
 0x11f   : > { %3098 = vmatpush1.bf16.msra.mxu1 %v10442_v52  ;;  %2948 = vmatprep.subr.bf16.mxu0 %v10453_v18  ;;  %v12998_v18 = vpop.permute.xlu1 %2805 }
 0x120   : > { %3099 = vmatprep.subr.bf16.mxu1 %v10450_v44  ;;  %vm2822_vm11 = vcmp.eq.s32.totalorder %v12998_v18, 1 }
 0x121   : > { %2516 = vmatmul.mubr.bf16.gmra.mxu0 %v12392_v53  ;;  %v12934_v53 = vrot.slane %v12904_v36, %v12913_v56  ;;  %vm13195_vm8 = vmpackc.low %vm2822_vm11, %vm2821_vm9 }
 0x122   : > { %2949 = vmatpush1.bf16.msra.mxu0 %v10451_v50  ;;  %2968 = vmatprep.mubr.bf16.mxu0 %v15968_v28 }
 0x123   : > { %16025 = vst [vmem:[#allocation11_spill] sm:$0xff] %v12934_v53  ;;  %3100 = vmatpush1.bf16.msra.mxu1 %v10448_v21  ;;  %2950 = vmatprep.subr.bf16.mxu0 %v10459_v58  ;;  %v13002_v58 = vpop.permute.xlu0 %2799 }
 0x124   : > { %3101 = vmatprep.subr.bf16.mxu1 %v10456_v5  ;;  %vm2820_vm1 = vcmp.eq.s32.totalorder %v13002_v58, 1 }
 0x125   : > { %vm13114_vm13 = vmpackc.low %vm2820_vm1, %vm2819_vm7 }
 0x126   : > { %2951 = vmatpush1.bf16.msra.mxu0 %v10457_v9 }
 0x127   : > { %3102 = vmatpush1.bf16.msra.mxu1 %v10454_v49  ;;  %3351 = vmatprep.subr.bf16.mxu0 %v10465_v30 }
 0x128   : > { %v12936_v15 = vpop.f32.mrf.mxu0  ;;  %3103 = vmatprep.subr.bf16.mxu1 %v10462_v32 }
 0x129   : > { %v12938_v34 = vpop.f32.mrf.mxu1 }
 0x12a   : > { %v1935_v35 = vpop.f32.mrf.mxu0 }
 0x12b   : > { %v1936_v17 = vadd.f32 %v1935_v35, %v12934_v53  ;;  %v2008_v16 = vpop.f32.mrf.mxu1  ;;  %3104 = vmatpush1.bf16.msra.mxu1 %v10460_v59  ;;  %v13006_v35 = vpop.permute.xlu1 %2811 }
 0x12c   : > { %v12944_v11 = vpop.f32.mrf.mxu0  ;;  %3549 = vmatprep.subr.bf16.mxu1 %v10468_v7  ;;  %v13009_v7 = vsub.s32 0, %v12893_v60  ;;  %vm2824_vm6 = vcmp.eq.s32.totalorder %v13006_v35, 1 }
 0x12d   : > { %v2009_v41 = vadd.f32 %v2008_v16, %v1936_v17  ;;  %v12951_v20 = vpop.f32.mrf.mxu1 }
 0x12e   : > { %v12949_v40 = vpop.f32.mrf.mxu0 }
 0x12f   : > { %16026 = vst [vmem:[#allocation12_spill] sm:$0xff] %v12949_v40  ;;  %v12953_v57 = vpop.f32.mrf.mxu1 }
 0x130   : > { %16027 = vst [vmem:[#allocation13_spill] sm:$0xff] %v12953_v57  ;;  %v12955_v3 = vpop.f32.mrf.mxu0 }
 0x131   : > { %v12957_v51 = vpop.f32.mrf.mxu1 }
 0x132   : > { %v1945_v26 = vpop.f32.mrf.mxu0 }
 0x133   : > { %v1946_v13 = vadd.f32 %v1945_v26, %v12934_v53  ;;  %v2018_v14 = vpop.f32.mrf.mxu1 }
 0x134   : > { %v12960_v62 = vpop.f32.mrf.mxu0 }
 0x135   : > { %v2019_v19 = vadd.f32 %v2018_v14, %v1946_v13  ;;  %v12964_v1 = vpop.f32.mrf.mxu1 }
 0x136   : > { %v12962_v23 = vpop.f32.mrf.mxu0 }
 0x137   : > { %16028 = vst [vmem:[#allocation14_spill] sm:$0xff] %v12962_v23  ;;  %v12968_v25 = vpop.f32.mrf.mxu1 }
 0x138   : > { %v12966_v63 = vpop.f32.mrf.mxu0  ;;  %16029 = vst [vmem:[#allocation15_spill] sm:$0xff] %v12968_v25 }
 0x139   : > { %v12970_v39 = vpop.f32.mrf.mxu1 }
 0x13a   : > { %v1955_v29 = vpop.f32.mrf.mxu0 }
 0x13b   : > { %v1956_v45 = vadd.f32 %v1955_v29, %v12934_v53  ;;  %v2028_v48 = vpop.f32.mrf.mxu1 }
 0x13c   : > { %v12973_v22 = vpop.f32.mrf.mxu0 }
 0x13d   : > { %v2029_v24 = vadd.f32 %v2028_v48, %v1956_v45  ;;  %v12977_v4 = vpop.f32.mrf.mxu1  ;;  %v13027_v48 = vpop.permute.xlu1 %2817 }
 0x13e   : > { %v12975_v0 = vpop.f32.mrf.mxu0 }
 0x13f   : > { %16030 = vst [vmem:[#allocation16_spill] sm:$0xff] %v12975_v0  ;;  %v12981_v43 = vpop.f32.mrf.mxu1 }
 0x140   : > { %v12979_v38 = vpop.f32.mrf.mxu0  ;;  %16031 = vst [vmem:[#allocation17_spill] sm:$0xff] %v12981_v43 }
 0x141   : > { %v12983_v8 = vpop.f32.mrf.mxu1 }
 0x142   : > { %v1965_v27 = vpop.f32.mrf.mxu0 }
 0x143   : > { %v1966_v33 = vadd.f32 %v1965_v27, %v12934_v53  ;;  %v2038_v31 = vpop.f32.mrf.mxu1 }
 0x144   : > { %v12986_v42 = vpop.f32.mrf.mxu0 }
 0x145   : > { %v2039_v61 = vadd.f32 %v2038_v31, %v1966_v33  ;;  %v12988_v37 = vpop.f32.mrf.mxu1 }
 0x146   : > { %v12990_v12 = vpop.f32.mrf.mxu0 }
 0x147   : > { %16032 = vst [vmem:[#allocation18_spill] sm:$0xff] %v12990_v12  ;;  %v12994_v2 = vpop.f32.mrf.mxu1 }
 0x148   : > { %16033 = vst [vmem:[#allocation19_spill] sm:$0xff] %v12994_v2  ;;  %v13043_v2 = vpop.permute.xlu1 %2691 }
 0x149   : > { %vm2712_vm2 = vcmp.eq.s32.totalorder %v13043_v2, 1  ;;  %v10474_v2 = vld [vmem:[%s15887_s4 + $0x1e4] ss:$8 sps:$4 sm:$0xff]  }
 0x168   : > { %v2079_v47 = vpop.f32.mrf.mxu0 }
 0x16a   : > { %v2081_v10 = vpop.f32.mrf.mxu0  ;;  %v2152_v6 = vpop.f32.mrf.mxu1 }
 0x16b   : > { %v2082_v52 = vadd.f32 %v2081_v10, %v2009_v41  ;;  %v13011_v41 = vpop.permute.xlu0 %2808 }
 0x16c   : > { %v2083_v55 = vpop.f32.mrf.mxu0  ;;  %v2154_v44 = vpop.f32.mrf.mxu1  ;;  %vm2823_vm12 = vcmp.eq.s32.totalorder %v13011_v41, 1  ;;  %v10492_v41 = vld [vmem:[%s15887_s4 + $0x1b4] ss:$8 sps:$4 sm:$0xff]  }
 0x16d   : > { %v2155_v21 = vadd.f32 %v2154_v44, %v2082_v52  ;;  %vm13276_vm3 = vmpackc.low %vm2824_vm6, %vm2823_vm12 }
 0x16e   : > { %v13000_v50 = vpop.f32.mrf.mxu0  ;;  %v2156_v5 = vpop.f32.mrf.mxu1 }
 0x16f   : > { %16034 = vst [vmem:[#allocation20_spill] sm:$0xff] %v13000_v50  ;;  %v13031_v31 = vpop.permute.xlu0 %2814 }
 0x170   : > { %v2089_v49 = vpop.f32.mrf.mxu0  ;;  %v13004_v9 = vpop.f32.mrf.mxu1 }
 0x171   : > { %16035 = vst [vmem:[#allocation21_spill] sm:$0xff] %v13004_v9 }
 0x172   : > { %v2091_v32 = vpop.f32.mrf.mxu0  ;;  %v2162_v30 = vpop.f32.mrf.mxu1 }
 0x173   : > { %v2092_v59 = vadd.f32 %v2091_v32, %v2019_v19  ;;  %v13025_v19 = vrot.slane %v12904_v36, %v13009_v7 }
 0x174   : > { %v2093_v17 = vpop.f32.mrf.mxu0  ;;  %v2164_v16 = vpop.f32.mrf.mxu1 }
 0x175   : > { %v13013_v26 = vadd.f32 %v2164_v16, %v2092_v59  ;;  %v1934_v32 = vadd.f32 %v12936_v15, %v13025_v19 }
 0x176   : > { %v13015_v13 = vpop.f32.mrf.mxu0  ;;  %v13017_v14 = vpop.f32.mrf.mxu1 }
 0x177   : > { %16036 = vst [vmem:[#allocation22_spill] sm:$0xff] %v13015_v13 }
 0x178   : > { %v13019_v29 = vpop.f32.mrf.mxu0  ;;  %v13021_v45 = vpop.f32.mrf.mxu1 }
 0x179   : > { %16037 = vst [vmem:[#allocation23_spill] sm:$0xff] %v13021_v45  ;;  %v13052_v45 = vpop.permute.xlu0 %2688 }
 0x17a   : > { %v2101_v27 = vpop.f32.mrf.mxu0  ;;  %v13029_v33 = vpop.f32.mrf.mxu1  ;;  %vm2711_vm0 = vcmp.eq.s32.totalorder %v13052_v45, 1  ;;  %v10471_v45 = vld [vmem:[%s15887_s4 + $0x164] ss:$8 sps:$4 sm:$0xff]  }
 0x17b   : > { %v2102_v10 = vadd.f32 %v2101_v27, %v2029_v24  ;;  %v2007_v24 = vadd.f32 %v12938_v34, %v1934_v32  ;;  %v1938_v27 = vadd.f32 %v12944_v11, %v13025_v19  ;;  %v13063_v34 = vpop.permute.xlu1 %3214  ;;  %vm13153_vm14 = vmpackc.low %vm2712_vm2, %vm2711_vm0  ;;  %vm2825_vm2 = vcmp.eq.s32.totalorder %v13031_v31, 1  ;;  %v10510_v31 = vld [vmem:[%s15887_s4 + $0x184] ss:$8 sps:$4 sm:$0xff]  }
 0x17c   : > { %v13033_v52 = vpop.f32.mrf.mxu0  ;;  %v2174_v44 = vpop.f32.mrf.mxu1  ;;  %vm3235_vm0 = vcmp.eq.s32.totalorder %v13063_v34, 1 }
 0x17d   : > { %v13037_v59 = vadd.f32 %v2174_v44, %v2102_v10  ;;  %v2080_v44 = vadd.f32 %v2079_v47, %v2007_v24  ;;  %v2011_v25 = vadd.f32 %v12951_v20, %v1938_v27  ;;  %v13067_v50 = vpop.permute.xlu0 %3211  ;;  %v1948_v24 = vadd.f32 %v12960_v62, %v13025_v19 }
 0x17e   : > { %v13039_v16 = vpop.f32.mrf.mxu0  ;;  %v13041_v36 = vpop.f32.mrf.mxu1 }
 0x17f   : > { %16038 = vst [vmem:[#allocation24_spill] sm:$0xff] %v13039_v16  ;;  %v2153_v32 = vadd.f32 %v2152_v6, %v2080_v44  ;;  %v2084_v23 = vadd.f32 %v2083_v55, %v2011_v25  ;;  %v13079_v25 = vpop.permute.xlu1 %2697  ;;  %v2021_v55 = vadd.f32 %v12964_v1, %v1948_v24 }
 0x180   : > { %v13045_v12 = vpop.f32.mrf.mxu0  ;;  %v13047_v43 = vpop.f32.mrf.mxu1  ;;  %vm2714_vm15 = vcmp.eq.s32.totalorder %v13079_v25, 1  ;;  %v10486_v25 = vld [vmem:[%s15887_s4 + $0x1c4] ss:$8 sps:$4 sm:$0xff]  }
 0x181   : > { %16039 = vst [vmem:[#allocation25_spill] sm:$0xff] %v13047_v43  ;;  %v1944_v43 = vadd.f32 %v12955_v3, %v13025_v19  ;;  %v2157_v3 = vadd.f32 %v2156_v5, %v2084_v23  ;;  %v13088_v23 = vpop.permute.xlu0 %2694 }
 0x182   : > { %v2111_v15 = vpop.f32.mrf.mxu0  ;;  %v13054_v10 = vpop.f32.mrf.mxu1  ;;  %vm2713_vm4 = vcmp.eq.s32.totalorder %v13088_v23, 1 }
 0x183   : > { %v2112_v16 = vadd.f32 %v2111_v15, %v2039_v61  ;;  %v2017_v61 = vadd.f32 %v12957_v51, %v1944_v43  ;;  %v1954_v51 = vadd.f32 %v12966_v63, %v13025_v19  ;;  %vm13237_vm5 = vmpackc.low %vm2714_vm15, %vm2713_vm4 }
 0x184   : > { %v13056_v0 = vpop.f32.mrf.mxu0  ;;  %v2184_v13 = vpop.f32.mrf.mxu1 }
 0x185   : > { %v13061_v9 = vadd.f32 %v2184_v13, %v2112_v16  ;;  %v2090_v13 = vadd.f32 %v2089_v49, %v2017_v61  ;;  %v2027_v63 = vadd.f32 %v12970_v39, %v1954_v51 }
 0x186   : > { %v13065_v11 = vpop.f32.mrf.mxu0  ;;  %v13074_v16 = vpop.f32.mrf.mxu1 }
 0x187   : > { %16040 = vst [vmem:[#allocation26_spill] sm:$0xff] %v13065_v11  ;;  %v2163_v5 = vadd.f32 %v2162_v30, %v2090_v13  ;;  %v13118_v13 = vpop.permute.xlu0 %3217 }
 0x188   : > { %v2225_v47 = vpop.f32.mrf.mxu0  ;;  %v13092_v49 = vpop.f32.mrf.mxu1  ;;  %vm3236_vm6 = vcmp.eq.s32.totalorder %v13118_v13, 1  ;;  %v10528_v13 = vld [vmem:[%s15887_s4 + $0x2d4] ss:$8 sps:$4 sm:$0xff]  }
 0x189   : > { %v13072_v20 = vadd.f32 %v2225_v47, %v2153_v32  ;;  %16043 = vst [vmem:[#allocation29_spill] sm:$0xff] %v13092_v49  ;;  %v1958_v32 = vadd.f32 %v12973_v22, %v13025_v19 }
 0x18a   : > { %v2227_v27 = vpop.f32.mrf.mxu0 }
 0x18b   : > { %v15911_v15 = vmax.f32 %v13072_v20, 0.0  ;;  %v13077_v11 = vadd.f32 %v2227_v27, %v2155_v21  ;;  %v2094_v21 = vadd.f32 %v2093_v17, %v2021_v55  ;;  %v13104_v17 = vpop.permute.xlu1 %3220  ;;  %v2100_v27 = vadd.f32 %v13019_v29, %v2027_v63 }
 0x18c   : > { %v2229_v6 = vpop.f32.mrf.mxu0  ;;  %v2031_v29 = vadd.f32 %v12977_v4, %v1958_v32  ;;  %v10466_v4 = vld [vmem:[%s15887_s4 + $0x1f0] ss:$8 sps:$4 sm:$0xff]  }
 0x18d   : > { %16041 = vst [vmem:[#allocation27_spill] sm:$0xff] %v13077_v11  ;;  %2631 = vst [vmem:[#allocation2 + $0x3] sm:$0xff] %v15911_v15  ;;  %v13086_v62 = vadd.f32 %v2229_v6, %v2157_v3  ;;  %v9914_v30 = vpop.f32.mrf.mxu1  ;;  %v2167_v24 = vadd.f32 %v13017_v14, %v2094_v21  ;;  %v1964_v6 = vadd.f32 %v12979_v38, %v13025_v19  ;;  %v10463_v38 = vld [vmem:[%s15887_s4 + $0x170] ss:$8 sps:$4 sm:$0xff]  }
 0x18e   : > { %v13090_v43 = vpop.f32.mrf.mxu0  ;;  %v2173_v21 = vadd.f32 %v13029_v33, %v2100_v27 }
 0x18f   : > { %16042 = vst [vmem:[#allocation28_spill] sm:$0xff] %v13090_v43  ;;  %v15910_v44 = vmax.f32 %v13086_v62, 0.0  ;;  %v9915_v3 = vpop.f32.mrf.mxu1 }
 0x190   : > { %v2235_v1 = vpop.f32.mrf.mxu0  ;;  %v13122_v55 = vadd.f32 %v9915_v3, %v9914_v30  ;;  %v13146_v30 = vpop.permute.xlu1 %2703 }
 0x191   : > { %2632 = vst [vmem:[#allocation2 + $0xb] sm:$0xff] %v15910_v44  ;;  %v13102_v47 = vadd.f32 %v2235_v1, %v2163_v5  ;;  %v13129_v54 = vpop.f32.mrf.mxu1  ;;  %v2104_v1 = vadd.f32 %v13033_v52, %v2031_v29  ;;  %v1968_v52 = vadd.f32 %v12986_v42, %v13025_v19  ;;  %v13171_v42 = vpop.permute.xlu0 %2700  ;;  %vm2716_vm10 = vcmp.eq.s32.totalorder %v13146_v30, 1  ;;  %v11105_v30 = vld [vmem:[%s15886_s3] sm:$0x7] }
 0x192   : > { %v2237_v61 = vpop.f32.mrf.mxu0  ;;  %vm2715_vm7 = vcmp.eq.s32.totalorder %v13171_v42, 1 }
 0x193   : > { %v15903_v58 = vmax.f32 %v13102_v47, 0.0  ;;  %v13110_v39 = vadd.f32 %v2237_v61, %v13013_v26  ;;  %v13144_v32 = vpop.f32.mrf.mxu1  ;;  %v2037_v61 = vadd.f32 %v12983_v8, %v1964_v6  ;;  %vm9136_vm1 = vmpackc.low %vm2716_vm10, %vm2715_vm7 }
 0x194   : > { %v2239_v14 = vpop.f32.mrf.mxu0  ;;  %v2747_v5 = vld [vmem:[#allocation2 + $0x1] sm:$0xff] }
 0x195   : > { %16044 = vst [vmem:[#allocation30_spill] sm:$0xff] %v13110_v39  ;;  %2633 = vst [vmem:[#allocation2 + $0x13] sm:$0xff] %v15903_v58  ;;  %v13127_v26 = vadd.f32 %v2239_v14, %v2167_v24  ;;  %v2639_v14 = vld [vmem:[#allocation2] sm:$0xff]  ;;  %v9920_v29 = vpop.f32.mrf.mxu1 }
 0x196   : > { %v13133_v51 = vpop.f32.mrf.mxu0 }
 0x197   : > { %16047 = vst [vmem:[#allocation31_spill] sm:$0xff] %v13133_v51  ;;  %v15909_v63 = vmax.f32 %v13127_v26, 0.0 }
 0x198   : > { %v2245_v24 = vpop.f32.mrf.mxu0  ;;  %v2748_v3 = vld [vmem:[#allocation2 + $0x9] sm:$0xff] }
 0x199   : > { %v2640_v58 = vld [vmem:[#allocation2 + $0x8] sm:$0xff]  ;;  %2634 = vst [vmem:[#allocation2 + $0x1b] sm:$0xff] %v15909_v63  ;;  %v13161_v27 = vadd.f32 %v2245_v24, %v2173_v21  ;;  %v9103_v8 = vpack.c.bf16 %v2748_v3, %v2747_v5  ;;  %v2177_v21 = vadd.f32 %v13041_v36, %v2104_v1  ;;  %v9921_v3 = vpop.f32.mrf.mxu1  ;;  %v10477_v1 = vld [vmem:[%s15887_s4 + $0x154] ss:$8 sps:$4 sm:$0xff]  }
 0x19a   : > { %v9131_v6 = vpack.c.bf16 %v2640_v58, %v2639_v14  ;;  %v2247_v19 = vpop.f32.mrf.mxu0  ;;  %v2110_v58 = vadd.f32 %v13045_v12, %v2037_v61  ;;  %v10469_v36 = vld [vmem:[%s15887_s4 + $0x160] ss:$8 sps:$4 sm:$0xff]  }
 0x19b   : > { %v15904_v5 = vmax.f32 %v13161_v27, 0.0  ;;  %v13177_v24 = vadd.f32 %v2247_v19, %v13037_v59  ;;  %9104 = vmatmul.mubr.msk.bf16.vlgmr.msra.gmra.mxu0 %vm13114_vm13, %v9103_v8  ;;  %v10472_v12 = vld [vmem:[%s15887_s4 + $0x1e0] ss:$8 sps:$4 sm:$0xff]   ;;  %v13189_v59 = vadd.f32 %v9921_v3, %v9920_v29  ;;  %v13210_v18 = vpop.f32.mrf.mxu1  ;;  %v10478_v8 = vld [vmem:[%s15887_s4 + $0x1d0] ss:$8 sps:$4 sm:$0xff]   ;;  %v13231_v19 = vpop.permute.xlu0 %3223  ;;  %vm2826_vm13 = vcmp.eq.s32.totalorder %v13027_v48, 1 }
 0x19c   : > { %9132 = vmatmul.mubr.msk.bf16.vlgmr.msra.gmra.mxu1 %vm13153_vm14, %v9131_v6  ;;  %v2249_v14 = vpop.f32.mrf.mxu0  ;;  %3352 = vmatpush1.bf16.msra.mxu0 %v10463_v38  ;;  %v2041_v38 = vadd.f32 %v12988_v37, %v1968_v52  ;;  %v13214_v37 = vpop.permute.xlu1 %3226  ;;  %v2749_v33 = vld [vmem:[#allocation2 + $0x11] sm:$0xff]  ;;  %v2183_v6 = vadd.f32 %v13054_v10, %v2110_v58  ;;  %vm3234_vm14 = vcmp.eq.s32.totalorder %v13067_v50, 1  ;;  %v10508_v50 = vld [vmem:[%s15887_s4 + $0x180] ss:$8 sps:$4 sm:$0xff]   ;;  %vm3238_vm10 = vcmp.eq.s32.totalorder %v13231_v19, 1 }
 0x19d   : > { %16050 = vst [vmem:[#allocation32_spill] sm:$0xff] %v13177_v24  ;;  %3550 = vmatpush1.bf16.msra.mxu1 %v10466_v4  ;;  %2635 = vst [vmem:[#allocation2 + $0x23] sm:$0xff] %v15904_v5  ;;  %v13202_v4 = vadd.f32 %v2249_v14, %v2177_v21  ;;  %3353 = vmatprep.subr.bf16.mxu0 %v10471_v45  ;;  %v10475_v52 = vld [vmem:[%s15887_s4 + $0x150] ss:$8 sps:$4 sm:$0xff]   ;;  %v13229_v29 = vpop.f32.mrf.mxu1  ;;  %v10540_v19 = vld [vmem:[%s15887_s4 + $0x2b4] ss:$8 sps:$4 sm:$0xff]  }
 0x19e   : > { %3551 = vmatprep.subr.bf16.mxu1 %v10474_v2  ;;  %v13216_v61 = vpop.f32.mrf.mxu0  ;;  %2978 = vmatprep.mubr.bf16.mxu0 %v15968_v28  ;;  %v2114_v45 = vadd.f32 %v13056_v0, %v2041_v38  ;;  %v2641_v14 = vld [vmem:[#allocation2 + $0x10] sm:$0xff]  ;;  %vm13391_vm15 = vmpackc.low %vm3235_vm0, %vm3234_vm14 }
 0x19f   : > { %16053 = vst [vmem:[#allocation33_spill] sm:$0xff] %v13216_v61  ;;  %3131 = vmatprep.mubr.bf16.mxu1 %v15968_v28  ;;  %v15908_v2 = vmax.f32 %v13202_v4, 0.0  ;;  %v9926_v23 = vpop.f32.mrf.mxu1  ;;  %v10487_v10 = vld [vmem:[%s15887_s4 + $0x130] ss:$8 sps:$4 sm:$0xff]  }
 0x1a0   : > { %v2255_v21 = vpop.f32.mrf.mxu0  ;;  %3354 = vmatpush1.bf16.msra.mxu0 %v10469_v36  ;;  %v2750_v3 = vld [vmem:[#allocation2 + $0x19] sm:$0xff]  ;;  %v10483_v36 = vld [vmem:[%s15887_s4 + $0x144] ss:$8 sps:$4 sm:$0xff]  }
 0x1a1   : > { %3552 = vmatpush1.bf16.msra.mxu1 %v10472_v12  ;;  %v2642_v5 = vld [vmem:[#allocation2 + $0x18] sm:$0xff]  ;;  %2636 = vst [vmem:[#allocation2 + $0x2b] sm:$0xff] %v15908_v2  ;;  %v13243_v0 = vadd.f32 %v2255_v21, %v2183_v6  ;;  %v9106_v58 = vpack.c.bf16 %v2750_v3, %v2749_v33  ;;  %3355 = vmatprep.subr.bf16.mxu0 %v10477_v1  ;;  %v13262_v33 = vpop.permute.xlu1 %2709  ;;  %v13294_v3 = vpop.permute.xlu0 %2706 }
 0x1a2   : > { %v9134_v38 = vpack.c.bf16 %v2642_v5, %v2641_v14  ;;  %3553 = vmatprep.subr.bf16.mxu1 %v10480_v46  ;;  %v2257_v12 = vpop.f32.mrf.mxu0  ;;  %v2187_v6 = vadd.f32 %v13074_v16, %v2114_v45  ;;  %v9927_v46 = vpop.f32.mrf.mxu1  ;;  %v10481_v16 = vld [vmem:[%s15887_s4 + $0x140] ss:$8 sps:$4 sm:$0xff]   ;;  %vm2718_vm9 = vcmp.eq.s32.totalorder %v13262_v33, 1  ;;  %vm2717_vm11 = vcmp.eq.s32.totalorder %v13294_v3, 1  ;;  %v10513_v33 = vld [vmem:[%s15887_s4 + $0x274] ss:$8 sps:$4 sm:$0xff]  }
 0x1a3   : > { %v15905_v5 = vmax.f32 %v13243_v0, 0.0  ;;  %v13256_v1 = vadd.f32 %v2257_v12, %v13061_v9  ;;  %9107 = vmatmul.mubr.msk.bf16.gmra.mxu0 %vm13195_vm8, %v9106_v58  ;;  %v10484_v9 = vld [vmem:[%s15887_s4 + $0x1c0] ss:$8 sps:$4 sm:$0xff]   ;;  %v13270_v45 = vadd.f32 %v9927_v46, %v9926_v23  ;;  %v10490_v58 = vld [vmem:[%s15887_s4 + $0x1b0] ss:$8 sps:$4 sm:$0xff]   ;;  %vm13375_vm8 = vmpackc.low %vm2826_vm13, %vm2825_vm2 }
 0x1a4   : > { %9135 = vmatmul.mubr.msk.bf16.gmra.mxu1 %vm13237_vm5, %v9134_v38  ;;  %v2259_v21 = vpop.f32.mrf.mxu0  ;;  %3356 = vmatpush1.bf16.msra.mxu0 %v10475_v52  ;;  %v13290_v35 = vpop.f32.mrf.mxu1  ;;  %v2751_v14 = vld [vmem:[#allocation2 + $0x21] sm:$0xff]  ;;  %v15906_v38 = vsub.s32 2, %v12893_v60  ;;  %vm9139_vm4 = vmpackc.low %vm2718_vm9, %vm2717_vm11  ;;  %v10516_v3 = vld [vmem:[%s15887_s4 + $0x2f4] ss:$8 sps:$4 sm:$0xff]   ;;  %vm3237_vm5 = vcmp.eq.s32.totalorder %v13104_v17, 1 }
 0x1a5   : > { %16056 = vst [vmem:[#allocation34_spill] sm:$0xff] %v13256_v1  ;;  %3554 = vmatpush1.bf16.msra.mxu1 %v10478_v8  ;;  %2637 = vst [vmem:[#allocation2 + $0x33] sm:$0xff] %v15905_v5  ;;  %v13282_v52 = vadd.f32 %v2259_v21, %v2187_v6  ;;  %3357 = vmatprep.subr.bf16.mxu0 %v10483_v36  ;;  %v10489_v8 = vld [vmem:[%s15887_s4 + $0x134] ss:$8 sps:$4 sm:$0xff]   ;;  %v2643_v12 = vld [vmem:[#allocation2 + $0x20] sm:$0xff]  ;;  %v13320_v42 = vpop.permute.xlu1 %3232  ;;  %v16065_v1 = vmax.f32 %v13086_v62, 0.0 }
 0x1a6   : > { %3555 = vmatprep.subr.bf16.mxu1 %v10486_v25  ;;  %2988 = vmatprep.mubr.bf16.mxu0 %v15968_v28  ;;  %v13306_v25 = vpop.f32.mrf.mxu1  ;;  %vm13450_vm12 = vmpackc.low %vm3237_vm5, %vm3236_vm6  ;;  %v10525_v17 = vld [vmem:[%s15887_s4 + $0x254] ss:$8 sps:$4 sm:$0xff]  }
 0x1a7   : > { %3141 = vmatprep.mubr.bf16.mxu1 %v15968_v28  ;;  %v15907_v36 = vmax.f32 %v13282_v52, 0.0 }
 0x1a8   : > { %3358 = vmatpush1.bf16.msra.mxu0 %v10481_v16  ;;  %v2752_v23 = vld [vmem:[#allocation2 + $0x29] sm:$0xff]  ;;  %v9932_v5 = vpop.f32.mrf.mxu1 }
 0x1a9   : > { %3556 = vmatpush1.bf16.msra.mxu1 %v10484_v9  ;;  %v2644_v6 = vld [vmem:[#allocation2 + $0x28] sm:$0xff]  ;;  %2638 = vst [vmem:[#allocation2 + $0x3b] sm:$0xff] %v15907_v36  ;;  %v9109_v46 = vpack.c.bf16 %v2752_v23, %v2751_v14  ;;  %3359 = vmatprep.subr.bf16.mxu0 %v10489_v8  ;;  %v13327_v14 = vrot.slane %v11105_v30, %v15906_v38  ;;  %v13329_v8 = vpop.f32.mrf.mxu0  ;;  %v13335_v23 = vpop.permute.xlu0 %3229 }
 0x1aa   : > { %v9137_v21 = vpack.c.bf16 %v2644_v6, %v2643_v12  ;;  %3557 = vmatprep.subr.bf16.mxu1 %v10492_v41  ;;  %v10495_v16 = vld [vmem:[%s15887_s4 + $0x124] ss:$8 sps:$4 sm:$0xff]   ;;  %16059 = vst [vmem:[#allocation35_spill] sm:$0xff] %v13329_v8  ;;  %v9933_v41 = vpop.f32.mrf.mxu1  ;;  %v10493_v12 = vld [vmem:[%s15887_s4 + $0x120] ss:$8 sps:$4 sm:$0xff]   ;;  %vm3240_vm13 = vcmp.eq.s32.totalorder %v13335_v23, 1 }
 0x1ab   : > { %v10498_v9 = vld [vmem:[%s15887_s4 + $0x1a4] ss:$8 sps:$4 sm:$0xff]   ;;  %9110 = vmatmul.mubr.msk.bf16.gmra.mxu0 %vm13276_vm3, %v9109_v46  ;;  %v10496_v6 = vld [vmem:[%s15887_s4 + $0x1a0] ss:$8 sps:$4 sm:$0xff]   ;;  %v13343_v22 = vadd.f32 %v9933_v41, %v9932_v5  ;;  %v2299_v30 = vadd.f32 %v13122_v55, %v13327_v14  ;;  %v9919_v41 = vadd.f32 %v13144_v32, %v13129_v54  ;;  %v13379_v54 = vpop.permute.xlu1 %3690  ;;  %v9925_v55 = vadd.f32 %v13229_v29, %v13210_v18  ;;  %v10552_v23 = vld [vmem:[%s15887_s4 + $0x294] ss:$8 sps:$4 sm:$0xff]  }
 0x1ac   : > { %9138 = vmatmul.mubr.msk.bf16.gmra.mxu1 %vm9136_vm1, %v9137_v21  ;;  %3360 = vmatpush1.bf16.msra.mxu0 %v10487_v10  ;;  %v10501_v10 = vld [vmem:[%s15887_s4 + $0x114] ss:$8 sps:$4 sm:$0xff]   ;;  %v13353_v46 = vpop.f32.mrf.mxu1  ;;  %v9954_v21 = vpop.f32.mrf.mxu0  ;;  %vm3239_vm3 = vcmp.eq.s32.totalorder %v13214_v37, 1  ;;  %vm3241_vm1 = vcmp.eq.s32.totalorder %v13320_v42, 1  ;;  %vm3711_vm0 = vcmp.eq.s32.totalorder %v13379_v54, 1 }
 0x1ad   : > { %3558 = vmatpush1.bf16.msra.mxu1 %v10490_v58  ;;  %3361 = vmatprep.subr.bf16.mxu0 %v10495_v16  ;;  %v10504_v58 = vld [vmem:[%s15887_s4 + $0x194] ss:$8 sps:$4 sm:$0xff]   ;;  %v10499_v16 = vld [vmem:[%s15887_s4 + $0x110] ss:$8 sps:$4 sm:$0xff]   ;;  %v2302_v34 = vadd.f32 %v9919_v41, %v13327_v14  ;;  %v2310_v62 = vadd.f32 %v9925_v55, %v13327_v14  ;;  %v9931_v55 = vadd.f32 %v13306_v25, %v13290_v35  ;;  %vm13505_vm7 = vmpackc.low %vm3239_vm3, %vm3238_vm10 }
 0x1ae   : > { %3559 = vmatprep.subr.bf16.mxu1 %v10498_v9  ;;  %2998 = vmatprep.mubr.bf16.mxu0 %v15968_v28  ;;  %v2753_v5 = vld [vmem:[#allocation2 + $0x31] sm:$0xff]  ;;  %v13369_v38 = vpop.f32.mrf.mxu1  ;;  %v9955_v36 = vpop.f32.mrf.mxu0  ;;  %vm13560_vm2 = vmpackc.low %vm3241_vm1, %vm3240_vm13 }
 0x1af   : > { %3151 = vmatprep.mubr.bf16.mxu1 %v15968_v28  ;;  %v10502_v9 = vld [vmem:[%s15887_s4 + $0x190] ss:$8 sps:$4 sm:$0xff]   ;;  %v9956_v15 = vadd.f32 %v9955_v36, %v9954_v21  ;;  %v10537_v37 = vld [vmem:[%s15887_s4 + $0x234] ss:$8 sps:$4 sm:$0xff]  }
 0x1b0   : > { %3362 = vmatpush1.bf16.msra.mxu0 %v10493_v12  ;;  %v2754_v2 = vld [vmem:[#allocation2 + $0x39] sm:$0xff]  ;;  %v2645_v63 = vld [vmem:[#allocation2 + $0x30] sm:$0xff]  ;;  %v10507_v12 = vld [vmem:[%s15887_s4 + $0x104] ss:$8 sps:$4 sm:$0xff]   ;;  %v9957_v36 = vpop.f32.mrf.mxu0 }
 0x1b1   : > { %3560 = vmatpush1.bf16.msra.mxu1 %v10496_v6  ;;  %v2646_v44 = vld [vmem:[#allocation2 + $0x38] sm:$0xff]  ;;  %v9112_v32 = vpack.c.bf16 %v2754_v2, %v2753_v5  ;;  %3363 = vmatprep.subr.bf16.mxu0 %v10501_v10  ;;  %v2364_v2 = vadd.f32 %v9956_v15, %v2299_v30  ;;  %v9994_v6 = vpop.f32.mrf.mxu1 }
 0x1b2   : > { %v9140_v60 = vpack.c.bf16 %v2646_v44, %v2645_v63  ;;  %3561 = vmatprep.subr.bf16.mxu1 %v10504_v58  ;;  %v13399_v44 = vpop.permute.xlu0 %3687  ;;  %v10505_v63 = vld [vmem:[%s15887_s4 + $0x100] ss:$8 sps:$4 sm:$0xff]   ;;  %v9958_v10 = vpop.f32.mrf.mxu0  ;;  %v10511_v41 = vld [vmem:[%s15887_s4 + $0x270] ss:$8 sps:$4 sm:$0xff]   ;;  %v10549_v42 = vld [vmem:[%s15887_s4 + $0x214] ss:$8 sps:$4 sm:$0xff]  }
 0x1b3   : > { %9113 = vmatmul.mubr.msk.bf16.gmra.mxu0 %vm13375_vm8, %v9112_v32  ;;  %v3163_v58 = vld [vmem:[#allocation2 + $0xa] sm:$0xff]  ;;  %v9959_v21 = vadd.f32 %v9958_v10, %v9957_v36  ;;  %v9995_v5 = vpop.f32.mrf.mxu1  ;;  %vm3710_vm14 = vcmp.eq.s32.totalorder %v13399_v44, 1 }
 0x1b4   : > { %9141 = vmatmul.mubr.msk.bf16.gmra.mxu1 %vm9139_vm4, %v9140_v60  ;;  %3364 = vmatpush1.bf16.msra.mxu0 %v10499_v16  ;;  %v9996_v15 = vadd.f32 %v9995_v5, %v9994_v6  ;;  %v9960_v30 = vpop.f32.mrf.mxu0  ;;  %v3162_v60 = vld [vmem:[#allocation2 + $0x2] sm:$0xff]  ;;  %v10514_v16 = vld [vmem:[%s15887_s4 + $0x2f0] ss:$8 sps:$4 sm:$0xff]   ;;  %v16064_v5 = vmax.f32 %v13072_v20, 0.0  ;;  %vm13611_vm8 = vmpackc.low %vm3711_vm0, %vm3710_vm14 }
 0x1b5   : > { %3562 = vmatpush1.bf16.msra.mxu1 %v10502_v9  ;;  %3365 = vmatprep.subr.bf16.mxu0 %v10507_v12  ;;  %v2307_v9 = vadd.f32 %v13189_v59, %v13327_v14  ;;  %v2367_v32 = vadd.f32 %v9959_v21, %v2302_v34  ;;  %v9997_v12 = vpop.f32.mrf.mxu1  ;;  %v10519_v36 = vld [vmem:[%s15887_s4 + $0x264] ss:$8 sps:$4 sm:$0xff]   ;;  %v9175_v21 = vpack.c.bf16 %v3163_v58, %v3162_v60  ;;  %v10520_v20 = vld [vmem:[%s15887_s4 + $0x2e0] ss:$8 sps:$4 sm:$0xff]  }
 0x1b6   : > { %3563 = vmatprep.subr.bf16.mxu1 %v10510_v31  ;;  %3383 = vmatprep.mubr.bf16.mxu0 %v15968_v28  ;;  %v13430_v31 = vpop.permute.xlu1 %3696  ;;  %v10522_v6 = vld [vmem:[%s15887_s4 + $0x2e4] ss:$8 sps:$4 sm:$0xff]   ;;  %v13438_v59 = vadd.f32 %v9996_v15, %v2364_v2  ;;  %v9961_v10 = vpop.f32.mrf.mxu0  ;;  %v3448_v8 = vpack.c.bf16 %v16065_v1, %v16064_v5  ;;  %v3165_v58 = vld [vmem:[#allocation2 + $0x1a] sm:$0xff] }
 0x1b7   : > { %3581 = vmatprep.mubr.bf16.mxu1 %v15968_v28  ;;  %v13440_v18 = vpop.permute.xlu0 %3693  ;;  %v9962_v29 = vadd.f32 %v9961_v10, %v9960_v30  ;;  %v9998_v34 = vpop.f32.mrf.mxu1  ;;  %vm3713_vm4 = vcmp.eq.s32.totalorder %v13430_v31, 1 }
 0x1b8   : > { %3366 = vmatpush1.bf16.msra.mxu0 %v10505_v63  ;;  %v9999_v24 = vadd.f32 %v9998_v34, %v9997_v12  ;;  %v9963_v49 = vpop.f32.mrf.mxu0  ;;  %v10517_v63 = vld [vmem:[%s15887_s4 + $0x260] ss:$8 sps:$4 sm:$0xff]   ;;  %v16068_v34 = vmax.f32 %v13102_v47, 0.0  ;;  %vm3712_vm5 = vcmp.eq.s32.totalorder %v13440_v18, 1 }
 0x1b9   : > { %3564 = vmatpush1.bf16.msra.mxu1 %v10508_v50  ;;  %3827 = vmatprep.subr.bf16.mxu0 %v10513_v33  ;;  %v2372_v1 = vadd.f32 %v9962_v29, %v2307_v9  ;;  %v10000_v50 = vpop.f32.mrf.mxu1  ;;  %v10532_v47 = vld [vmem:[%s15887_s4 + $0x2c0] ss:$8 sps:$4 sm:$0xff]   ;;  %vm9253_vm3 = vmpackc.low %vm3713_vm4, %vm3712_vm5 }
 0x1ba   : > { %4105 = vmatprep.subr.bf16.mxu1 %v10516_v3  ;;  %v13469_v33 = vadd.f32 %v9999_v24, %v2367_v32  ;;  %v9964_v3 = vpop.f32.mrf.mxu0  ;;  %v13471_v60 = vpop.permute.xlu1 %3702  ;;  %v3164_v24 = vld [vmem:[#allocation2 + $0x12] sm:$0xff] }
 0x1bb   : > { %9176 = vmatmul.mubr.msk.bf16.vlgmr.msra.gmra.mxu0 %vm13391_vm15, %v9175_v21  ;;  %v9965_v15 = vadd.f32 %v9964_v3, %v9963_v49  ;;  %v10001_v30 = vpop.f32.mrf.mxu1  ;;  %v13473_v9 = vpop.permute.xlu0 %3699  ;;  %v10526_v49 = vld [vmem:[%s15887_s4 + $0x2d0] ss:$8 sps:$4 sm:$0xff]   ;;  %v9178_v29 = vpack.c.bf16 %v3165_v58, %v3164_v24  ;;  %v16069_v21 = vmax.f32 %v13127_v26, 0.0  ;;  %v2318_v26 = vadd.f32 %v9931_v55, %v13327_v14 }
 0x1bc   : > { %3582 = vmatmul.mubr.bf16.vlgmr.msra.gmra.mxu1 %v3448_v8  ;;  %3828 = vmatpush1.bf16.msra.mxu0 %v10511_v41  ;;  %v10002_v8 = vadd.f32 %v10001_v30, %v10000_v50  ;;  %v9966_v48 = vpop.f32.mrf.mxu0  ;;  %v10523_v41 = vld [vmem:[%s15887_s4 + $0x250] ss:$8 sps:$4 sm:$0xff]   ;;  %vm3714_vm1 = vcmp.eq.s32.totalorder %v13473_v9, 1 }
 0x1bd   : > { %4106 = vmatpush1.bf16.msra.mxu1 %v10514_v16  ;;  %3829 = vmatprep.subr.bf16.mxu0 %v10519_v36  ;;  %v2315_v16 = vadd.f32 %v13270_v45, %v13327_v14  ;;  %v2375_v32 = vadd.f32 %v9965_v15, %v2310_v62  ;;  %v10003_v12 = vpop.f32.mrf.mxu1  ;;  %v10531_v36 = vld [vmem:[%s15887_s4 + $0x244] ss:$8 sps:$4 sm:$0xff]   ;;  %v3449_v5 = vpack.c.bf16 %v16069_v21, %v16068_v34  ;;  %v10535_v55 = vld [vmem:[%s15887_s4 + $0x230] ss:$8 sps:$4 sm:$0xff]   ;;  %v16072_v34 = vmax.f32 %v13161_v27, 0.0 }
 0x1be   : > { %4107 = vmatprep.subr.bf16.mxu1 %v10522_v6  ;;  %3393 = vmatprep.mubr.bf16.mxu0 %v15968_v28  ;;  %v10534_v6 = vld [vmem:[%s15887_s4 + $0x2c4] ss:$8 sps:$4 sm:$0xff]   ;;  %v13495_v10 = vadd.f32 %v10002_v8, %v2372_v1  ;;  %v9967_v45 = vpop.f32.mrf.mxu0  ;;  %v16073_v21 = vmax.f32 %v13202_v4, 0.0  ;;  %v10541_v27 = vld [vmem:[%s15887_s4 + $0x220] ss:$8 sps:$4 sm:$0xff]  }
 0x1bf   : > { %3591 = vmatprep.mubr.bf16.mxu1 %v15968_v28  ;;  %v9968_v35 = vadd.f32 %v9967_v45, %v9966_v48  ;;  %v10004_v25 = vpop.f32.mrf.mxu1  ;;  %v13528_v15 = vpop.permute.xlu0 %3705  ;;  %v3167_v30 = vld [vmem:[#allocation2 + $0x2a] sm:$0xff] }
 0x1c0   : > { %3830 = vmatpush1.bf16.msra.mxu0 %v10517_v63  ;;  %v10005_v62 = vadd.f32 %v10004_v25, %v10003_v12  ;;  %v9969_v50 = vpop.f32.mrf.mxu0  ;;  %v10529_v63 = vld [vmem:[%s15887_s4 + $0x240] ss:$8 sps:$4 sm:$0xff]   ;;  %v10546_v45 = vld [vmem:[%s15887_s4 + $0x2a4] ss:$8 sps:$4 sm:$0xff]  }
 0x1c1   : > { %4108 = vmatpush1.bf16.msra.mxu1 %v10520_v20  ;;  %3831 = vmatprep.subr.bf16.mxu0 %v10525_v17  ;;  %v2380_v20 = vadd.f32 %v9968_v35, %v2315_v16  ;;  %v10006_v17 = vpop.f32.mrf.mxu1  ;;  %v3166_v16 = vld [vmem:[#allocation2 + $0x22] sm:$0xff] }
 0x1c2   : > { %4109 = vmatprep.subr.bf16.mxu1 %v10528_v13  ;;  %v13516_v13 = vpop.permute.xlu1 %3708  ;;  %v13526_v3 = vadd.f32 %v10005_v62, %v2375_v32  ;;  %v9970_v58 = vpop.f32.mrf.mxu0  ;;  %v9937_v32 = vadd.f32 %v13369_v38, %v13353_v46  ;;  %v10544_v4 = vld [vmem:[%s15887_s4 + $0x2a0] ss:$8 sps:$4 sm:$0xff]  }
 0x1c3   : > { %9179 = vmatmul.mubr.msk.bf16.gmra.mxu0 %vm13450_vm12, %v9178_v29  ;;  %v9971_v8 = vadd.f32 %v9970_v58, %v9969_v50  ;;  %v10007_v2 = vpop.f32.mrf.mxu1  ;;  %v9181_v29 = vpack.c.bf16 %v3167_v30, %v3166_v16 }
 0x1c4   : > { %3592 = vmatmul.mubr.bf16.gmra.mxu1 %v3449_v5  ;;  %3832 = vmatpush1.bf16.msra.mxu0 %v10523_v41  ;;  %v10008_v48 = vadd.f32 %v10007_v2, %v10006_v17  ;;  %v9972_v24 = vpop.f32.mrf.mxu0  ;;  %v10538_v41 = vld [vmem:[%s15887_s4 + $0x2b0] ss:$8 sps:$4 sm:$0xff]   ;;  %v3450_v5 = vpack.c.bf16 %v16073_v21, %v16072_v34 }
 0x1c5   : > { %4110 = vmatpush1.bf16.msra.mxu1 %v10526_v49  ;;  %3833 = vmatprep.subr.bf16.mxu0 %v10531_v36  ;;  %v2323_v49 = vadd.f32 %v13343_v22, %v13327_v14  ;;  %v2383_v12 = vadd.f32 %v9971_v8, %v2318_v26  ;;  %v10009_v36 = vpop.f32.mrf.mxu1  ;;  %v2326_v26 = vadd.f32 %v9937_v32, %v13327_v14  ;;  %v3169_v14 = vld [vmem:[#allocation2 + $0x3a] sm:$0xff]  ;;  %v3168_v2 = vld [vmem:[#allocation2 + $0x32] sm:$0xff]  ;;  %v10558_v32 = vld [vmem:[%s15887_s4 + $0x284] ss:$8 sps:$4 sm:$0xff]  }
 0x1c6   : > { %4111 = vmatprep.subr.bf16.mxu1 %v10534_v6  ;;  %3403 = vmatprep.mubr.bf16.mxu0 %v15968_v28  ;;  %v10543_v6 = vld [vmem:[%s15887_s4 + $0x224] ss:$8 sps:$4 sm:$0xff]   ;;  %v13550_v35 = vadd.f32 %v10008_v48, %v2380_v20  ;;  %v9973_v22 = vpop.f32.mrf.mxu0  ;;  %v3969_v25 = vpop.permute.xlu1 %3968  ;;  %v10547_v48 = vld [vmem:[%s15887_s4 + $0x210] ss:$8 sps:$4 sm:$0xff]  }
 0x1c7   : > { %3601 = vmatprep.mubr.bf16.mxu1 %v15968_v28  ;;  %v9974_v38 = vadd.f32 %v9973_v22, %v9972_v24  ;;  %v10010_v46 = vpop.f32.mrf.mxu1  ;;  %v10550_v24 = vld [vmem:[%s15887_s4 + $0x290] ss:$8 sps:$4 sm:$0xff]   ;;  %vm3989_vm9 = vcmp.eq.s32.totalorder %v3969_v25, 1  ;;  %v10561_v25 = vld [vmem:[%s15887_s4 + $0x374] ss:$8 sps:$4 sm:$0xff]  }
 0x1c8   : > { %3834 = vmatpush1.bf16.msra.mxu0 %v10529_v63  ;;  %v10011_v62 = vadd.f32 %v10010_v46, %v10009_v36  ;;  %v9975_v50 = vpop.f32.mrf.mxu0  ;;  %v16076_v46 = vmax.f32 %v13243_v0, 0.0  ;;  %v10553_v0 = vld [vmem:[%s15887_s4 + $0x200] ss:$8 sps:$4 sm:$0xff]  }
 0x1c9   : > { %4112 = vmatpush1.bf16.msra.mxu1 %v10532_v47  ;;  %3835 = vmatprep.subr.bf16.mxu0 %v10537_v37  ;;  %v3966_v47 = vpop.permute.xlu0 %3965  ;;  %v2388_v20 = vadd.f32 %v9974_v38, %v2323_v49  ;;  %v10012_v17 = vpop.f32.mrf.mxu1  ;;  %v10555_v49 = vld [vmem:[%s15887_s4 + $0x204] ss:$8 sps:$4 sm:$0xff]   ;;  %v9184_v38 = vpack.c.bf16 %v3169_v14, %v3168_v2 }
 0x1ca   : > { %4113 = vmatprep.subr.bf16.mxu1 %v10540_v19  ;;  %v13579_v37 = vadd.f32 %v10011_v62, %v2383_v12  ;;  %v9976_v19 = vpop.f32.mrf.mxu0  ;;  %vm3988_vm11 = vcmp.eq.s32.totalorder %v3966_v47, 1  ;;  %v3916_v14 = vld [vmem:[#allocation2 + $0x5] sm:$0xff] }
 0x1cb   : > { %9182 = vmatmul.mubr.msk.bf16.gmra.mxu0 %vm13505_vm7, %v9181_v29  ;;  %v9977_v58 = vadd.f32 %v9976_v19, %v9975_v50  ;;  %v10013_v30 = vpop.f32.mrf.mxu1  ;;  %v16077_v29 = vmax.f32 %v13282_v52, 0.0  ;;  %vm13617_vm15 = vmpackc.low %vm3989_vm9, %vm3988_vm11  ;;  %v10556_v52 = vld [vmem:[%s15887_s4 + $0x280] ss:$8 sps:$4 sm:$0xff]   ;;  %vm3715_vm7 = vcmp.eq.s32.totalorder %v13471_v60, 1  ;;  %vm3717_vm9 = vcmp.eq.s32.totalorder %v13516_v13, 1 }
 0x1cc   : > { %3602 = vmatmul.mubr.bf16.gmra.mxu1 %v3450_v5  ;;  %3836 = vmatpush1.bf16.msra.mxu0 %v10535_v55  ;;  %v10014_v1 = vadd.f32 %v10013_v30, %v10012_v17  ;;  %v10034_v8 = vpop.f32.mrf.mxu0  ;;  %v3638_v19 = vld [vmem:[#allocation2 + $0x4] sm:$0xff]  ;;  %vm9256_vm0 = vmpackc.low %vm3715_vm7, %vm3714_vm1  ;;  %vm3716_vm11 = vcmp.eq.s32.totalorder %v13528_v15, 1 }
 0x1cd   : > { %4114 = vmatpush1.bf16.msra.mxu1 %v10538_v41  ;;  %3837 = vmatprep.subr.bf16.mxu0 %v10543_v6  ;;  %v2391_v16 = vadd.f32 %v9977_v58, %v2326_v26  ;;  %v10015_v55 = vpop.f32.mrf.mxu1  ;;  %v13591_v41 = vpop.permute.xlu1 %4246  ;;  %v3451_v34 = vpack.c.bf16 %v16077_v29, %v16076_v46  ;;  %v3917_v26 = vld [vmem:[#allocation2 + $0xd] sm:$0xff]  ;;  %v10574_v60 = vld [vmem:[%s15887_s4 + $0x320] ss:$8 sps:$4 sm:$0xff]   ;;  %vm9259_vm4 = vmpackc.low %vm3717_vm9, %vm3716_vm11 }
 0x1ce   : > { %4115 = vmatprep.subr.bf16.mxu1 %v10546_v45  ;;  %3413 = vmatprep.mubr.bf16.mxu0 %v15968_v28  ;;  %v13599_v12 = vadd.f32 %v10014_v1, %v2388_v20  ;;  %v10035_v36 = vpop.f32.mrf.mxu0  ;;  %v13601_v6 = vpop.permute.xlu0 %4243  ;;  %v10559_v58 = vld [vmem:[%s15887_s4 + $0x370] ss:$8 sps:$4 sm:$0xff]  }
 0x1cf   : > { %3611 = vmatprep.mubr.bf16.mxu1 %v15968_v28  ;;  %v10016_v45 = vpop.f32.mrf.mxu1  ;;  %v10036_v22 = vadd.f32 %v10035_v36, %v10034_v8  ;;  %v10564_v8 = vld [vmem:[%s15887_s4 + $0x364] ss:$8 sps:$4 sm:$0xff]  }
 0x1d0   : > { %3838 = vmatpush1.bf16.msra.mxu0 %v10541_v27  ;;  %v10017_v21 = vadd.f32 %v10016_v45, %v10015_v55  ;;  %v10037_v5 = vpop.f32.mrf.mxu0  ;;  %v9295_v55 = vpack.c.bf16 %v3917_v26, %v3916_v14  ;;  %v10562_v45 = vld [vmem:[%s15887_s4 + $0x360] ss:$8 sps:$4 sm:$0xff]   ;;  %v3918_v26 = vld [vmem:[#allocation2 + $0x15] sm:$0xff] }
 0x1d1   : > { %4116 = vmatpush1.bf16.msra.mxu1 %v10544_v4  ;;  %3839 = vmatprep.subr.bf16.mxu0 %v10549_v42  ;;  %v10076_v44 = vpop.f32.mrf.mxu1  ;;  %v2494_v54 = vadd.f32 %v10036_v22, %v13438_v59  ;;  %v3639_v4 = vld [vmem:[#allocation2 + $0xc] sm:$0xff]  ;;  %v13635_v42 = vpop.permute.xlu1 %3974 }
 0x1d2   : > { %4117 = vmatprep.subr.bf16.mxu1 %v10552_v23  ;;  %v13633_v47 = vadd.f32 %v10017_v21, %v2391_v16  ;;  %v10038_v27 = vpop.f32.mrf.mxu0  ;;  %v3972_v23 = vpop.permute.xlu0 %3971  ;;  %v9251_v16 = vpack.c.bf16 %v3639_v4, %v3638_v19  ;;  %vm3991_vm6 = vcmp.eq.s32.totalorder %v13635_v42, 1  ;;  %v3640_v4 = vld [vmem:[#allocation2 + $0x14] sm:$0xff] }
 0x1d3   : > { %9185 = vmatmul.mubr.msk.bf16.gmra.mxu0 %vm13560_vm2, %v9184_v38  ;;  %v10039_v20 = vadd.f32 %v10038_v27, %v10037_v5  ;;  %v2558_v17 = vpop.f32.mrf.mxu1  ;;  %v10567_v38 = vld [vmem:[%s15887_s4 + $0x354] ss:$8 sps:$4 sm:$0xff]   ;;  %vm3990_vm12 = vcmp.eq.s32.totalorder %v3972_v23, 1 }
 0x1d4   : > { %3612 = vmatmul.mubr.bf16.gmra.mxu1 %v3451_v34  ;;  %3840 = vmatpush1.bf16.msra.mxu0 %v10547_v48  ;;  %v2559_v59 = vadd.f32 %v2558_v17, %v2494_v54  ;;  %v10040_v63 = vpop.f32.mrf.mxu0  ;;  %v3919_v5 = vld [vmem:[#allocation2 + $0x1d] sm:$0xff]  ;;  %vm9297_vm10 = vmpackc.low %vm3991_vm6, %vm3990_vm12  ;;  %vm4267_vm6 = vcmp.eq.s32.totalorder %v13591_v41, 1  ;;  %vm4266_vm12 = vcmp.eq.s32.totalorder %v13601_v6, 1  ;;  %v4199_v41 = vld [vmem:[#allocation2 + $0x2e] sm:$0xff] }
 0x1d5   : > { %4118 = vmatpush1.bf16.msra.mxu1 %v10550_v24  ;;  %3841 = vmatprep.subr.bf16.mxu0 %v10555_v49  ;;  %v10077_v30 = vpop.f32.mrf.mxu1  ;;  %v2497_v1 = vadd.f32 %v10039_v20, %v13469_v33  ;;  %v13659_v34 = vpop.permute.xlu1 %4252  ;;  %v4198_v6 = vld [vmem:[#allocation2 + $0x26] sm:$0xff] }
 0x1d6   : > { %4119 = vmatprep.subr.bf16.mxu1 %v10558_v32  ;;  %3859 = vmatprep.mubr.bf16.mxu0 %v15968_v28  ;;  %v10041_v2 = vpop.f32.mrf.mxu0  ;;  %v2591_v49 = vmax.f32 %v2559_v59, 0.0  ;;  %v13661_v21 = vpop.permute.xlu0 %4249 }
 0x1d7   : > { %4137 = vmatprep.mubr.bf16.mxu1 %v15968_v28  ;;  %v10042_v48 = vadd.f32 %v10041_v2, %v10040_v63  ;;  %v2561_v24 = vpop.f32.mrf.mxu1  ;;  %v9298_v63 = vpack.c.bf16 %v3919_v5, %v3918_v26  ;;  %v10568_v2 = vld [vmem:[%s15887_s4 + $0x340] ss:$8 sps:$4 sm:$0xff]   ;;  %vm4268_vm7 = vcmp.eq.s32.totalorder %v13661_v21, 1 }
 0x1d8   : > { %3842 = vmatpush1.bf16.msra.mxu0 %v10553_v0  ;;  %v2562_v32 = vadd.f32 %v2561_v24, %v2497_v1  ;;  %v10043_v36 = vpop.f32.mrf.mxu0  ;;  %v4201_v21 = vld [vmem:[#allocation2 + $0x3e] sm:$0xff] }
 0x1d9   : > { %4120 = vmatpush1.bf16.msra.mxu1 %v10556_v52  ;;  %4383 = vmatprep.subr.bf16.mxu0 %v10561_v25  ;;  %v2502_v33 = vadd.f32 %v10042_v48, %v13495_v10  ;;  %v13650_v22 = vpop.f32.mrf.mxu1  ;;  %v3641_v10 = vld [vmem:[#allocation2 + $0x1c] sm:$0xff]  ;;  %v10565_v25 = vld [vmem:[%s15887_s4 + $0x350] ss:$8 sps:$4 sm:$0xff]  }
 0x1da   : > { %v2594_v46 = vmax.f32 %v2562_v32, 0.0  ;;  %v10044_v29 = vpop.f32.mrf.mxu0  ;;  %v9254_v18 = vpack.c.bf16 %v3641_v10, %v3640_v4 }
 0x1db   : > { %9252 = vmatmul.mubr.msk.bf16.vlgmr.msra.gmra.mxu0 %vm13611_vm8, %v9251_v16  ;;  %v2567_v62 = vadd.f32 %v10076_v44, %v2502_v33  ;;  %v10045_v0 = vadd.f32 %v10044_v29, %v10043_v36  ;;  %v2574_v54 = vpop.f32.mrf.mxu1  ;;  %v10571_v29 = vld [vmem:[%s15887_s4 + $0x330] ss:$8 sps:$4 sm:$0xff]  }
 0x1dc   : > { %9296 = vmatmul.mubr.msk.bf16.vlgmr.msra.gmra.mxu1 %vm13617_vm15, %v9295_v55  ;;  %4384 = vmatpush1.bf16.msra.mxu0 %v10559_v58  ;;  %v13666_v50 = vpack.c.bf16 %v2594_v46, %v2591_v49  ;;  %v10046_v52 = vpop.f32.mrf.mxu0  ;;  %v3981_v58 = vpop.permute.xlu1 %3980  ;;  %v3643_v55 = vld [vmem:[#allocation2 + $0x2c] sm:$0xff] }
 0x1dd   : > { %3869 = vmatprep.mubr.bf16.mxu0 %v15968_v28  ;;  %4385 = vmatprep.subr.bf16.mxu0 %v10564_v8  ;;  %v2505_v27 = vadd.f32 %v10045_v0, %v13526_v3  ;;  %v2597_v20 = vmax.f32 %v2567_v62, 0.0  ;;  %v10570_v3 = vld [vmem:[%s15887_s4 + $0x344] ss:$8 sps:$4 sm:$0xff]   ;;  %v13679_v14 = vpop.f32.mrf.mxu1  ;;  %vm3993_vm13 = vcmp.eq.s32.totalorder %v3981_v58, 1 }
 0x1de   : > { %4147 = vmatprep.mubr.bf16.mxu1 %v15968_v28  ;;  %16082 = vst [vmem:[#allocation36_spill] sm:$0xff] %v13666_v50  ;;  %v10047_v44 = vpop.f32.mrf.mxu0  ;;  %v3921_v49 = vld [vmem:[#allocation2 + $0x2d] sm:$0xff]  ;;  %v3920_v46 = vld [vmem:[#allocation2 + $0x25] sm:$0xff] }
 0x1df   : > { %v2570_v17 = vadd.f32 %v10077_v30, %v2505_v27  ;;  %v10048_v59 = vadd.f32 %v10047_v44, %v10046_v52  ;;  %v3978_v30 = vpop.permute.xlu0 %3977  ;;  %v2577_v16 = vpop.f32.mrf.mxu1  ;;  %v9301_v0 = vpack.c.bf16 %v3921_v49, %v3920_v46  ;;  %v10576_v52 = vld [vmem:[%s15887_s4 + $0x324] ss:$8 sps:$4 sm:$0xff]  }
 0x1e0   : > { %4386 = vmatpush1.bf16.msra.mxu0 %v10562_v45  ;;  %v10049_v19 = vpop.f32.mrf.mxu0  ;;  %vm3992_vm2 = vcmp.eq.s32.totalorder %v3978_v30, 1  ;;  %v13698_v45 = vpop.permute.xlu1 %4258  ;;  %v10591_v46 = vld [vmem:[%s15889_s6 + $0x104] ss:$8 sps:$4 sm:$0xff]  }
 0x1e1   : > { %4387 = vmatprep.subr.bf16.mxu0 %v10567_v38  ;;  %v2600_v1 = vmax.f32 %v2570_v17, 0.0  ;;  %v2510_v31 = vadd.f32 %v10048_v59, %v13550_v35  ;;  %v10573_v35 = vld [vmem:[%s15887_s4 + $0x334] ss:$8 sps:$4 sm:$0xff]   ;;  %v3642_v38 = vld [vmem:[#allocation2 + $0x24] sm:$0xff]  ;;  %vm9300_vm14 = vmpackc.low %vm3993_vm13, %vm3992_vm2  ;;  %vm4271_vm13 = vcmp.eq.s32.totalorder %v13698_v45, 1 }
 0x1e2   : > { %v10050_v8 = vpop.f32.mrf.mxu0  ;;  %v10588_v45 = vld [vmem:[%s15889_s6 + $0x74] ss:$8 sps:$4 sm:$0xff]  }
 0x1e3   : > { %9255 = vmatmul.mubr.msk.bf16.gmra.mxu0 %vm9253_vm3, %v9254_v18  ;;  %v13689_v48 = vpack.c.bf16 %v2600_v1, %v2597_v20  ;;  %v10051_v23 = vadd.f32 %v10050_v8, %v10049_v19  ;;  %v2575_v42 = vadd.f32 %v2574_v54, %v2510_v31  ;;  %v13700_v33 = vpop.permute.xlu0 %4255  ;;  %v10579_v20 = vld [vmem:[%s15887_s4 + $0x314] ss:$8 sps:$4 sm:$0xff]   ;;  %v10577_v19 = vld [vmem:[%s15887_s4 + $0x310] ss:$8 sps:$4 sm:$0xff]   ;;  %v10582_v1 = vld [vmem:[%s15887_s4 + $0x304] ss:$8 sps:$4 sm:$0xff]  }
 0x1e4   : > { %9299 = vmatmul.mubr.msk.bf16.gmra.mxu1 %vm9297_vm10, %v9298_v63  ;;  %4388 = vmatpush1.bf16.msra.mxu0 %v10565_v25  ;;  %v10052_v24 = vpop.f32.mrf.mxu0  ;;  %v3987_v17 = vpop.permute.xlu1 %3986  ;;  %v3645_v18 = vld [vmem:[#allocation2 + $0x3c] sm:$0xff]  ;;  %v4195_v8 = vld [vmem:[#allocation2 + $0xe] sm:$0xff]  ;;  %vm9338_vm3 = vmpackc.low %vm4267_vm6, %vm4266_vm12  ;;  %vm4269_vm10 = vcmp.eq.s32.totalorder %v13659_v34, 1  ;;  %vm4270_vm2 = vcmp.eq.s32.totalorder %v13700_v33, 1 }
 0x1e5   : > { %3879 = vmatprep.mubr.bf16.mxu0 %v15968_v28  ;;  %16083 = vst [vmem:[#allocation37_spill] sm:$0xff] %v13689_v48  ;;  %4389 = vmatprep.subr.bf16.mxu0 %v10570_v3  ;;  %v2513_v32 = vadd.f32 %v10051_v23, %v13579_v37  ;;  %v2603_v10 = vmax.f32 %v2575_v42, 0.0  ;;  %v9257_v37 = vpack.c.bf16 %v3643_v55, %v3642_v38  ;;  %v3922_v63 = vld [vmem:[#allocation2 + $0x35] sm:$0xff]  ;;  %vm3995_vm8 = vcmp.eq.s32.totalorder %v3987_v17, 1  ;;  %v10580_v31 = vld [vmem:[%s15887_s4 + $0x300] ss:$8 sps:$4 sm:$0xff]   ;;  %vm9341_vm1 = vmpackc.low %vm4269_vm10, %vm4268_vm7 }
 0x1e6   : > { %4157 = vmatprep.mubr.bf16.mxu1 %v15968_v28  ;;  %v10053_v36 = vpop.f32.mrf.mxu0  ;;  %v4197_v42 = vld [vmem:[#allocation2 + $0x1e] sm:$0xff]  ;;  %v4200_v34 = vld [vmem:[#allocation2 + $0x36] sm:$0xff] }
 0x1e7   : > { %v10054_v5 = vadd.f32 %v10053_v36, %v10052_v24  ;;  %v2578_v62 = vadd.f32 %v2577_v16, %v2513_v32  ;;  %v3984_v59 = vpop.permute.xlu0 %3983  ;;  %v9345_v16 = vpack.c.bf16 %v4199_v41, %v4198_v6  ;;  %v9348_v32 = vpack.c.bf16 %v4201_v21, %v4200_v34  ;;  %v10585_v36 = vld [vmem:[%s15889_s6 + $0x114] ss:$8 sps:$4 sm:$0xff]   ;;  %v10583_v33 = vld [vmem:[%s15889_s6 + $0x110] ss:$8 sps:$4 sm:$0xff]   ;;  %v10618_v17 = vld [vmem:[%s15889_s6 + $0x24] ss:$8 sps:$4 sm:$0xff]  }
 0x1e8   : > { %4390 = vmatpush1.bf16.msra.mxu0 %v10568_v2  ;;  %v10055_v54 = vpop.f32.mrf.mxu0  ;;  %vm3994_vm15 = vcmp.eq.s32.totalorder %v3984_v59, 1  ;;  %v4194_v2 = vld [vmem:[#allocation2 + $0x6] sm:$0xff]  ;;  %v4265_v55 = vpop.permute.xlu1 %4264  ;;  %v10586_v38 = vld [vmem:[%s15889_s6 + $0x70] ss:$8 sps:$4 sm:$0xff]   ;;  %4732 = vmatprep.subr.bf16.mxu1 %v10585_v36  ;;  %v10645_v21 = vld [vmem:[%s15889_s6 + $0x254] ss:$8 sps:$4 sm:$0xff]  }
 0x1e9   : > { %4391 = vmatprep.subr.bf16.mxu0 %v10573_v35  ;;  %v2518_v25 = vadd.f32 %v10054_v5, %v13599_v12  ;;  %v2606_v27 = vmax.f32 %v2578_v62, 0.0  ;;  %v3644_v12 = vld [vmem:[#allocation2 + $0x34] sm:$0xff]  ;;  %vm9303_vm5 = vmpackc.low %vm3995_vm8, %vm3994_vm15  ;;  %v9339_v23 = vpack.c.bf16 %v4195_v8, %v4194_v2  ;;  %4733 = vmatpush1.bf16.msra.mxu1 %v10583_v33  ;;  %v10592_v5 = vld [vmem:[%s15889_s6 + $0x60] ss:$8 sps:$4 sm:$0xff]   ;;  %vm4517_vm8 = vcmask 261120  }
 0x1ea   : > { %v10056_v9 = vpop.f32.mrf.mxu0  ;;  %v9260_v13 = vpack.c.bf16 %v3645_v18, %v3644_v12  ;;  %v4196_v35 = vld [vmem:[#allocation2 + $0x16] sm:$0xff]  ;;  %4734 = vmatprep.subr.bf16.mxu1 %v10591_v46  ;;  %v10613_v59 = vld [vmem:[%s15889_s6 + $0xc0] ss:$8 sps:$4 sm:$0xff]   ;;  %v10654_v46 = vld [vmem:[%s15889_s6 + $0x1a4] ss:$8 sps:$4 sm:$0xff]   ;;  %vm16206_vm15 = vcmask 523264  }
 0x1eb   : > { %9258 = vmatmul.mubr.msk.bf16.gmra.mxu0 %vm9256_vm0, %v9257_v37  ;;  %v2583_v44 = vadd.f32 %v13650_v22, %v2518_v25  ;;  %v13720_v4 = vpack.c.bf16 %v2606_v27, %v2603_v10  ;;  %v10057_v26 = vadd.f32 %v10056_v9, %v10055_v54  ;;  %v3923_v22 = vld [vmem:[#allocation2 + $0x3d] sm:$0xff]  ;;  %v9342_v24 = vpack.c.bf16 %v4197_v42, %v4196_v35  ;;  %vm9344_vm0 = vmpackc.low %vm4271_vm13, %vm4270_vm2  ;;  %v4262_v49 = vpop.permute.xlu0 %4261  ;;  %v10610_v12 = vld [vmem:[%s15889_s6 + $0x30] ss:$8 sps:$4 sm:$0xff]  }
 0x1ec   : > { %9302 = vmatmul.mubr.msk.bf16.gmra.mxu1 %vm9300_vm14, %v9301_v0  ;;  %4392 = vmatpush1.bf16.msra.mxu0 %v10571_v29  ;;  %v9304_v15 = vpack.c.bf16 %v3923_v22, %v3922_v63  ;;  %vm4273_vm14 = vcmp.eq.s32.totalorder %v4265_v55, 1  ;;  %vm4272_vm9 = vcmp.eq.s32.totalorder %v4262_v49, 1  ;;  %v10594_v29 = vld [vmem:[%s15889_s6 + $0x64] ss:$8 sps:$4 sm:$0xff]   ;;  %v10589_v10 = vld [vmem:[%s15889_s6 + $0x100] ss:$8 sps:$4 sm:$0xff]  }
 0x1ed   : > { %3889 = vmatprep.mubr.bf16.mxu0 %v15968_v28  ;;  %16084 = vst [vmem:[#allocation38_spill] sm:$0xff] %v13720_v4  ;;  %4393 = vmatprep.subr.bf16.mxu0 %v10576_v52  ;;  %v2521_v3 = vadd.f32 %v10057_v26, %v13633_v47  ;;  %v2609_v58 = vmax.f32 %v2583_v44, 0.0  ;;  %vm9347_vm11 = vmpackc.low %vm4273_vm14, %vm4272_vm9  ;;  %v10597_v62 = vld [vmem:[%s15889_s6 + $0xf4] ss:$8 sps:$4 sm:$0xff]   ;;  %v10595_v0 = vld [vmem:[%s15889_s6 + $0xf0] ss:$8 sps:$4 sm:$0xff]  }
 0x1ee   : > { %4167 = vmatprep.mubr.bf16.mxu1 %v15968_v28  ;;  %4735 = vmatpush1.bf16.msra.mxu1 %v10589_v10  ;;  %v10600_v37 = vld [vmem:[%s15889_s6 + $0x54] ss:$8 sps:$4 sm:$0xff]   ;;  %v10598_v52 = vld [vmem:[%s15889_s6 + $0x50] ss:$8 sps:$4 sm:$0xff]   ;;  %v10603_v54 = vld [vmem:[%s15889_s6 + $0xe4] ss:$8 sps:$4 sm:$0xff]  }
 0x1ef   : > { %v2586_v30 = vadd.f32 %v13679_v14, %v2521_v3  ;;  %4736 = vmatprep.subr.bf16.mxu1 %v10597_v62  ;;  %v10606_v25 = vld [vmem:[%s15889_s6 + $0x44] ss:$8 sps:$4 sm:$0xff]   ;;  %v10601_v27 = vld [vmem:[%s15889_s6 + $0xe0] ss:$8 sps:$4 sm:$0xff]   ;;  %v10612_v44 = vld [vmem:[%s15889_s6 + $0x34] ss:$8 sps:$4 sm:$0xff]  }
 0x1f0   : > { %4394 = vmatpush1.bf16.msra.mxu0 %v10574_v60  ;;  %v10604_v9 = vld [vmem:[%s15889_s6 + $0x40] ss:$8 sps:$4 sm:$0xff]   ;;  %v10609_v60 = vld [vmem:[%s15889_s6 + $0xd4] ss:$8 sps:$4 sm:$0xff]   ;;  %v10607_v26 = vld [vmem:[%s15889_s6 + $0xd0] ss:$8 sps:$4 sm:$0xff]  }
 0x1f1   : > { %4395 = vmatprep.subr.bf16.mxu0 %v10579_v20  ;;  %v2612_v47 = vmax.f32 %v2586_v30, 0.0  ;;  %v10615_v20 = vld [vmem:[%s15889_s6 + $0xc4] ss:$8 sps:$4 sm:$0xff]   ;;  %v10616_v18 = vld [vmem:[%s15889_s6 + $0x20] ss:$8 sps:$4 sm:$0xff]  }
 0x1f2   : > { %4737 = vmatpush1.bf16.msra.mxu1 %v10595_v0  ;;  %v10621_v63 = vld [vmem:[%s15889_s6 + $0xb4] ss:$8 sps:$4 sm:$0xff]   ;;  %v10619_v3 = vld [vmem:[%s15889_s6 + $0xb0] ss:$8 sps:$4 sm:$0xff]   ;;  %v10630_v30 = vld [vmem:[%s15889_s6 + $0x4] ss:$8 sps:$4 sm:$0xff]  }
 0x1f3   : > { %9261 = vmatmul.mubr.msk.bf16.gmra.mxu0 %vm9259_vm4, %v9260_v13  ;;  %v13740_v14 = vpack.c.bf16 %v2612_v47, %v2609_v58  ;;  %4738 = vmatprep.subr.bf16.mxu1 %v10603_v54  ;;  %v10624_v22 = vld [vmem:[%s15889_s6 + $0x14] ss:$8 sps:$4 sm:$0xff]   ;;  %v10627_v58 = vld [vmem:[%s15889_s6 + $0xa4] ss:$8 sps:$4 sm:$0xff]   ;;  %v10625_v13 = vld [vmem:[%s15889_s6 + $0xa0] ss:$8 sps:$4 sm:$0xff]  }
 0x1f4   : > { %9305 = vmatmul.mubr.msk.bf16.gmra.mxu1 %vm9303_vm5, %v9304_v15  ;;  %4396 = vmatpush1.bf16.msra.mxu0 %v10577_v19  ;;  %v10622_v19 = vld [vmem:[%s15889_s6 + $0x10] ss:$8 sps:$4 sm:$0xff]   ;;  %v10628_v15 = vld [vmem:[%s15889_s6] ss:$8 sps:$4 sm:$0xff]   ;;  %v10633_v47 = vld [vmem:[%s15889_s6 + $0x134] ss:$8 sps:$4 sm:$0xff]  }
 0x1f5   : > { %4415 = vmatprep.mubr.bf16.mxu0 %v15968_v28  ;;  %16085 = vst [vmem:[#allocation39_spill] sm:$0xff] %v13740_v14  ;;  %4397 = vmatprep.subr.bf16.mxu0 %v10582_v1  ;;  %v13847_v1 = vld [vmem:[#allocation3] sm:$0xff]  ;;  %v10631_v8 = vld [vmem:[%s15889_s6 + $0x130] ss:$8 sps:$4 sm:$0xff]   ;;  %v10648_v36 = vld [vmem:[%s15889_s6 + $0x1b4] ss:$8 sps:$4 sm:$0xff]  }
 0x1f6   : > { %4739 = vmatpush1.bf16.msra.mxu1 %v10601_v27  ;;  %16086 = vst [vmem:[#allocation40_spill] sm:$0xff] %v13847_v1  ;;  %4518 = vst.msk [vmem:[#allocation3 + $0x8] sm:$0xff] %vm4517_vm8, %v13847_v1  ;;  %v10634_v2 = vld [vmem:[%s15889_s6 + $0x90] ss:$8 sps:$4 sm:$0xff]   ;;  %v10642_v42 = vld [vmem:[%s15889_s6 + $0x84] ss:$8 sps:$4 sm:$0xff]   ;;  %v4591_v34 = vpack.c.bf16 %v13847_v1, %v13847_v1 }
 0x1f7   : > { %4740 = vmatprep.subr.bf16.mxu1 %v10609_v60  ;;  %4520 = vst.msk [vmem:[#allocation3 + $0x18] sm:$0xff] %vm4517_vm8, %v13847_v1  ;;  %4522 = vst.msk [vmem:[#allocation3 + $0x28] sm:$0xff] %vm4517_vm8, %v13847_v1  ;;  %v10637_v35 = vld [vmem:[%s15889_s6 + $0x120] ss:$8 sps:$4 sm:$0xff]   ;;  %v10646_v33 = vld [vmem:[%s15889_s6 + $0x1b0] ss:$8 sps:$4 sm:$0xff]  }
 0x1f8   : > { %4398 = vmatpush1.bf16.msra.mxu0 %v10580_v31  ;;  %4524 = vst.msk [vmem:[#allocation3 + $0xb8] sm:$0xff] %vm4517_vm8, %v13847_v1  ;;  %4526 = vst.msk [vmem:[#allocation3 + $0xc8] sm:$0xff] %vm4517_vm8, %v13847_v1  ;;  %v10636_v31 = vld [vmem:[%s15889_s6 + $0x94] ss:$8 sps:$4 sm:$0xff]   ;;  %v10652_v10 = vld [vmem:[%s15889_s6 + $0x1a0] ss:$8 sps:$4 sm:$0xff]  }
 0x1f9   : > { %4917 = vmatprep.subr.bf16.mxu0 %v10588_v45  ;;  %4528 = vst.msk [vmem:[#allocation3 + $0xd8] sm:$0xff] %vm4517_vm8, %v13847_v1  ;;  %v10651_v45 = vld [vmem:[%s15889_s6 + $0x244] ss:$8 sps:$4 sm:$0xff]   ;;  %v10660_v62 = vld [vmem:[%s15889_s6 + $0x194] ss:$8 sps:$4 sm:$0xff]   ;;  %vm16207_vm4 = vmmov %vm16206_vm15 }
 0x1fa   : > { %4741 = vmatpush1.bf16.msra.mxu1 %v10607_v26  ;;  %v10658_v0 = vld [vmem:[%s15889_s6 + $0x190] ss:$8 sps:$4 sm:$0xff]   ;;  %v10666_v54 = vld [vmem:[%s15889_s6 + $0x184] ss:$8 sps:$4 sm:$0xff]   ;;  %v10664_v27 = vld [vmem:[%s15889_s6 + $0x180] ss:$8 sps:$4 sm:$0xff]  }
 0x1fb   : > { %9340 = vmatmul.mubr.msk.bf16.vlgmr.msra.gmra.mxu0 %vm9338_vm3, %v9339_v23  ;;  %4742 = vmatprep.subr.bf16.mxu1 %v10615_v20  ;;  %v10639_v23 = vld [vmem:[%s15889_s6 + $0x124] ss:$8 sps:$4 sm:$0xff]   ;;  %v10672_v60 = vld [vmem:[%s15889_s6 + $0x174] ss:$8 sps:$4 sm:$0xff]   ;;  %v10670_v26 = vld [vmem:[%s15889_s6 + $0x170] ss:$8 sps:$4 sm:$0xff]  }
 0x1fc   : > { %4425 = vmatprep.mubr.bf16.mxu0 %v15968_v28  ;;  %4918 = vmatpush1.bf16.msra.mxu0 %v10586_v38  ;;  %v10649_v38 = vld [vmem:[%s15889_s6 + $0x240] ss:$8 sps:$4 sm:$0xff]   ;;  %v10678_v20 = vld [vmem:[%s15889_s6 + $0x164] ss:$8 sps:$4 sm:$0xff]   ;;  %vm16214_vm5 = vmmov %vm16207_vm4 }
 0x1fd   : > { %4919 = vmatprep.subr.bf16.mxu0 %v10594_v29  ;;  %v10657_v29 = vld [vmem:[%s15889_s6 + $0x234] ss:$8 sps:$4 sm:$0xff]   ;;  %vm16215_vm6 = vmmov %vm16207_vm4 }
 0x1fe   : > { %4743 = vmatpush1.bf16.msra.mxu1 %v10613_v59  ;;  %v4548_v41 = vld [vmem:[#allocation3 + $0x18] sm:$0xff]  ;;  %v13885_v6 = vld [vmem:[#allocation3 + $0x28] sm:$0xff]  ;;  %vm16216_vm12 = vmmov %vm16207_vm4 }
 0x1ff   : > { %4744 = vmatprep.subr.bf16.mxu1 %v10621_v63  ;;  %16087 = vst [vmem:[#allocation41_spill] sm:$0xff] %v13885_v6  ;;  %v4592_v55 = vpack.c.bf16 %v13885_v6, %v4548_v41  ;;  %v10676_v59 = vld [vmem:[%s15889_s6 + $0x160] ss:$8 sps:$4 sm:$0xff]   ;;  %v10684_v63 = vld [vmem:[%s15889_s6 + $0x154] ss:$8 sps:$4 sm:$0xff]   ;;  %vm16217_vm3 = vmmov %vm16207_vm4 }
 0x200   : > { %4920 = vmatpush1.bf16.msra.mxu0 %v10592_v5  ;;  %v10655_v5 = vld [vmem:[%s15889_s6 + $0x230] ss:$8 sps:$4 sm:$0xff]   ;;  %vm16218_vm10 = vmmov %vm16217_vm3 }
 0x201   : > { %4921 = vmatprep.subr.bf16.mxu0 %v10600_v37  ;;  %9390 = vmatprep.mubr.msk.bf16.mxu1 %vm4517_vm8, %v4592_v55  ;;  %v10663_v37 = vld [vmem:[%s15889_s6 + $0x224] ss:$8 sps:$4 sm:$0xff]   ;;  %v10697_v55 = vld [vmem:[%s15889_s6 + $0x260] ss:$8 sps:$4 sm:$0xff]   ;;  %vm16219_vm7 = vmmov %vm16217_vm3 }
 0x202   : > { %4745 = vmatpush1.bf16.msra.mxu1 %v10619_v3 }
 0x203   : > { %9343 = vmatmul.mubr.msk.bf16.gmra.mxu0 %vm9341_vm1, %v9342_v24  ;;  %4746 = vmatprep.subr.bf16.mxu1 %v10627_v58  ;;  %v10640_v24 = vld [vmem:[%s15889_s6 + $0x80] ss:$8 sps:$4 sm:$0xff]   ;;  %v10682_v58 = vld [vmem:[%s15889_s6 + $0x150] ss:$8 sps:$4 sm:$0xff]   ;;  %vm16220_vm1 = vmmov %vm16217_vm3 }
 0x204   : > { %4435 = vmatprep.mubr.bf16.mxu0 %v15968_v28  ;;  %4922 = vmatpush1.bf16.msra.mxu0 %v10598_v52  ;;  %v10661_v52 = vld [vmem:[%s15889_s6 + $0x220] ss:$8 sps:$4 sm:$0xff]   ;;  %vm16221_vm13 = vmmov %vm16220_vm1 }
 0x205   : > { %4923 = vmatprep.subr.bf16.mxu0 %v10606_v25  ;;  %v10669_v25 = vld [vmem:[%s15889_s6 + $0x214] ss:$8 sps:$4 sm:$0xff]   ;;  %vm16223_vm2 = vmmov %vm16220_vm1 }
 0x206   : > { %4747 = vmatpush1.bf16.msra.mxu1 %v10625_v13 }
 0x207   : > { %4760 = vmatprep.subr.bf16.mxu1 %v10633_v47  ;;  %v10690_v47 = vld [vmem:[%s15889_s6 + $0x144] ss:$8 sps:$4 sm:$0xff]  }
 0x208   : > { %4924 = vmatpush1.bf16.msra.mxu0 %v10604_v9  ;;  %v10667_v9 = vld [vmem:[%s15889_s6 + $0x210] ss:$8 sps:$4 sm:$0xff]  }
 0x209   : > { %4925 = vmatprep.subr.bf16.mxu0 %v10612_v44  ;;  %v10675_v44 = vld [vmem:[%s15889_s6 + $0x204] ss:$8 sps:$4 sm:$0xff]  }
 0x20a   : > { %4761 = vmatpush2.bf16.msra.mxu1 %v10631_v8 }
 0x20b   : > { %9346 = vmatmul.mubr.msk.bf16.gmra.mxu0 %vm9344_vm0, %v9345_v16  ;;  %4762 = vmatprep.subr.bf16.mxu1 %v10639_v23  ;;  %v4546_v16 = vld [vmem:[#allocation3 + $0x8] sm:$0xff]  ;;  %v10688_v23 = vld [vmem:[%s15889_s6 + $0x140] ss:$8 sps:$4 sm:$0xff]   ;;  %vm16224_vm0 = vmmov %vm16220_vm1 }
 0x20c   : > { %4445 = vmatprep.mubr.bf16.mxu0 %v15968_v28  ;;  %4926 = vmatpush1.bf16.msra.mxu0 %v10610_v12  ;;  %v4562_v49 = vpack.c.bf16 %v4548_v41, %v4546_v16  ;;  %v10673_v12 = vld [vmem:[%s15889_s6 + $0x200] ss:$8 sps:$4 sm:$0xff]   ;;  %v10694_v41 = vld [vmem:[%s15889_s6 + $0x1d0] ss:$8 sps:$4 sm:$0xff]   ;;  %v10696_v16 = vld [vmem:[%s15889_s6 + $0x1d4] ss:$8 sps:$4 sm:$0xff]  }
 0x20d   : > { %4927 = vmatprep.subr.bf16.mxu0 %v10618_v17  ;;  %v10681_v17 = vld [vmem:[%s15889_s6 + $0x1f4] ss:$8 sps:$4 sm:$0xff]   ;;  %vm16225_vm14 = vmmov %vm16224_vm0 }
 0x20e   : > { %4763 = vmatpush2.bf16.msra.mxu1 %v10637_v35  ;;  %vm16226_vm9 = vmmov %vm16224_vm0 }
 0x20f   : > { %5147 = vmatprep.subr.bf16.mxu1 %v10648_v36 }
 0x210   : > { %4928 = vmatpush1.bf16.msra.mxu0 %v10616_v18  ;;  %v10679_v18 = vld [vmem:[%s15889_s6 + $0x1f0] ss:$8 sps:$4 sm:$0xff]  }
 0x211   : > { %4929 = vmatprep.subr.bf16.mxu0 %v10624_v22  ;;  %4765 = vmatmul.mubr.bf16.vlgmr.msra.gmra.mxu1 %v4591_v34  ;;  %v10687_v22 = vld [vmem:[%s15889_s6 + $0x1e4] ss:$8 sps:$4 sm:$0xff]  }
 0x212   : > { %5148 = vmatpush1.bf16.msra.mxu1 %v10646_v33  ;;  %v10700_v33 = vld [vmem:[%s15889_s6 + $0x1c0] ss:$8 sps:$4 sm:$0xff]  }
 0x213   : > { %9349 = vmatmul.mubr.msk.bf16.gmra.mxu0 %vm9347_vm11, %v9348_v32  ;;  %v10643_v32 = vld [vmem:[%s15889_s6 + $0x250] ss:$8 sps:$4 sm:$0xff]   ;;  %5149 = vmatprep.subr.bf16.mxu1 %v10654_v46  ;;  %vm16227_vm11 = vmmov %vm16224_vm0 }
 0x214   : > { %4930 = vmatpush1.bf16.msra.mxu0 %v10622_v19  ;;  %9414 = vmatprep.mubr.msk.bf16.mxu0 %vm4517_vm8, %v4562_v49 }
 0x215   : > { %4931 = vmatprep.subr.bf16.mxu0 %v10630_v30  ;;  %v10685_v30 = vld [vmem:[%s15889_s6 + $0x1e0] ss:$8 sps:$4 sm:$0xff]  }
 0x216   : > { %5150 = vmatpush1.bf16.msra.mxu1 %v10652_v10  ;;  %v10708_v10 = vld [vmem:[%s15889_s6 + $0x2f4] ss:$8 sps:$4 sm:$0xff]  }
 0x217   : > { %5151 = vmatprep.subr.bf16.mxu1 %v10660_v62 }
 0x218   : > { %4932 = vmatpush1.bf16.msra.mxu0 %v10628_v15 }
 0x219   : > { %4945 = vmatprep.subr.bf16.mxu0 %v10636_v31  ;;  %v10693_v31 = vld [vmem:[%s15889_s6 + $0x274] ss:$8 sps:$4 sm:$0xff]  }
 0x21a   : > { %5152 = vmatpush1.bf16.msra.mxu1 %v10658_v0 }
 0x21b   : > { %5153 = vmatprep.subr.bf16.mxu1 %v10666_v54 }
 0x21c   : > { %4946 = vmatpush2.bf16.msra.mxu0 %v10634_v2 }
 0x21d   : > { %4947 = vmatprep.subr.bf16.mxu0 %v10642_v42  ;;  %v10691_v42 = vld [vmem:[%s15889_s6 + $0x270] ss:$8 sps:$4 sm:$0xff]  }
 0x21e   : > { %5154 = vmatpush1.bf16.msra.mxu1 %v10664_v27 }
 0x21f   : > { %5155 = vmatprep.subr.bf16.mxu1 %v10672_v60 }
 0x220   : > { %4948 = vmatpush2.bf16.msra.mxu0 %v10640_v24 }
 0x221   : > { %5393 = vmatprep.subr.bf16.mxu0 %v10645_v21  ;;  %v10699_v21 = vld [vmem:[%s15889_s6 + $0x264] ss:$8 sps:$4 sm:$0xff]  }
 0x222   : > { %5156 = vmatpush1.bf16.msra.mxu1 %v10670_v26 }
 0x223   : > { %4950 = vmatmul.mubr.bf16.vlgmr.msra.gmra.mxu0 %v4591_v34  ;;  %5157 = vmatprep.subr.bf16.mxu1 %v10678_v20 }
 0x224   : > { %5394 = vmatpush1.bf16.msra.mxu0 %v10643_v32  ;;  %v10702_v32 = vld [vmem:[%s15889_s6 + $0x1c4] ss:$8 sps:$4 sm:$0xff]  }
 0x225   : > { %5395 = vmatprep.subr.bf16.mxu0 %v10651_v45 }
 0x226   : > { %5158 = vmatpush1.bf16.msra.mxu1 %v10676_v59 }
 0x227   : > { %5159 = vmatprep.subr.bf16.mxu1 %v10684_v63 }
 0x228   : > { %5396 = vmatpush1.bf16.msra.mxu0 %v10649_v38  ;;  %v10705_v38 = vld [vmem:[%s15889_s6 + $0x394] ss:$8 sps:$4 sm:$0xff]  }
 0x229   : > { %5397 = vmatprep.subr.bf16.mxu0 %v10657_v29 }
 0x22a   : > { %5160 = vmatpush1.bf16.msra.mxu1 %v10682_v58 }
 0x22b   : > { %5161 = vmatprep.subr.bf16.mxu1 %v10690_v47 }
 0x22c   : > { %5398 = vmatpush1.bf16.msra.mxu0 %v10655_v5 }
 0x22d   : > { %5399 = vmatprep.subr.bf16.mxu0 %v10663_v37 }
 0x22e   : > { %5162 = vmatpush1.bf16.msra.mxu1 %v10688_v23 }
 0x22f   : > { %5175 = vmatprep.subr.bf16.mxu1 %v10696_v16 }
 0x230   : > { %5400 = vmatpush1.bf16.msra.mxu0 %v10661_v52 }
 0x231   : > { %5401 = vmatprep.subr.bf16.mxu0 %v10669_v25 }
 0x232   : > { %5176 = vmatpush2.bf16.msra.mxu1 %v10694_v41 }
 0x233   : > { %5177 = vmatprep.subr.bf16.mxu1 %v10702_v32 }
 0x234   : > { %5402 = vmatpush1.bf16.msra.mxu0 %v10667_v9 }
 0x235   : > { %5403 = vmatprep.subr.bf16.mxu0 %v10675_v44 }
 0x236   : > { %5178 = vmatpush2.bf16.msra.mxu1 %v10700_v33 }
 0x237   : > { %5639 = vmatprep.subr.bf16.mxu1 %v10708_v10 }
 0x238   : > { %5404 = vmatpush1.bf16.msra.mxu0 %v10673_v12 }
 0x239   : > { %5405 = vmatprep.subr.bf16.mxu0 %v10681_v17 }
 0x23c   : > { %5406 = vmatpush1.bf16.msra.mxu0 %v10679_v18 }
 0x23d   : > { %5407 = vmatprep.subr.bf16.mxu0 %v10687_v22 }
 0x240   : > { %5408 = vmatpush1.bf16.msra.mxu0 %v10685_v30 }
 0x241   : > { %5421 = vmatprep.subr.bf16.mxu0 %v10693_v31 }
 0x244   : > { %5422 = vmatpush2.bf16.msra.mxu0 %v10691_v42 }
 0x245   : > { %5423 = vmatprep.subr.bf16.mxu0 %v10699_v21 }
 0x248   : > { %5424 = vmatpush2.bf16.msra.mxu0 %v10697_v55 }
 0x249   : > { %5885 = vmatprep.subr.bf16.mxu0 %v10705_v38 }
 0x25b   : > { %v13976_v3 = vpop.f32.mrf.mxu0 }
 0x25c   : > { %v13978_v19 = vpop.f32.mrf.mxu1 }
 0x25d   : > { %v13986_v13 = vpop.f32.mrf.mxu0 }
 0x25e   : > { %v13988_v15 = vpop.f32.mrf.mxu1 }
 0x25f   : > { %v13996_v8 = vpop.f32.mrf.mxu0 }
 0x260   : > { %v13998_v2 = vpop.f32.mrf.mxu1 }
 0x261   : > { %v14006_v35 = vpop.f32.mrf.mxu0 }
 0x262   : > { %v14008_v24 = vpop.f32.mrf.mxu1 }
 0x263   : > { %v14019_v49 = vpop.f32.mrf.mxu0 }
 0x264   : > { %v14021_v34 = vpop.f32.mrf.mxu1 }
 0x265   : > { %v14029_v36 = vpop.f32.mrf.mxu0 }
 0x266   : > { %v14031_v45 = vpop.f32.mrf.mxu1 }
 0x267   : > { %v14039_v46 = vpop.f32.mrf.mxu0 }
 0x268   : > { %v14041_v29 = vpop.f32.mrf.mxu1 }
 0x269   : > { %v14046_v5 = vpop.f32.mrf.mxu0 }
 0x26a   : > { %v14048_v62 = vpop.f32.mrf.mxu1 }
 0x26b   : > { %v14050_v37 = vpop.f32.mrf.mxu0 }
 0x26c   : > { %v14052_v0 = vpop.f32.mrf.mxu1 }
 0x26d   : > { %v14054_v52 = vpop.f32.mrf.mxu0 }
 0x26e   : > { %v14056_v54 = vpop.f32.mrf.mxu1 }
 0x26f   : > { %v14058_v25 = vpop.f32.mrf.mxu0 }
 0x270   : > { %v14060_v27 = vpop.f32.mrf.mxu1 }
 0x271   : > { %v14062_v9 = vpop.f32.mrf.mxu0 }
 0x272   : > { %v14064_v60 = vpop.f32.mrf.mxu1 }
 0x273   : > { %v14066_v44 = vpop.f32.mrf.mxu0 }
 0x274   : > { %v14068_v26 = vpop.f32.mrf.mxu1 }
 0x275   : > { %v14070_v12 = vpop.f32.mrf.mxu0 }
 0x276   : > { %16088 = vst [vmem:[#allocation42_spill] sm:$0xff] %v14070_v12  ;;  %v14072_v20 = vpop.f32.mrf.mxu1  ;;  %v3126_v12 = vadd.f32 %v13988_v15, %v13986_v13  ;;  %v3134_v13 = vadd.f32 %v14021_v34, %v14019_v49 }
 0x277   : > { %16089 = vst [vmem:[#allocation43_spill] sm:$0xff] %v14072_v20  ;;  %v14074_v17 = vpop.f32.mrf.mxu0 }
 0x278   : > { %16090 = vst [vmem:[#allocation44_spill] sm:$0xff] %v14074_v17  ;;  %v14076_v59 = vpop.f32.mrf.mxu1 }
 0x279   : > { %16091 = vst [vmem:[#allocation45_spill] sm:$0xff] %v14076_v59  ;;  %v14078_v18 = vpop.f32.mrf.mxu0  ;;  %v3124_v59 = vadd.f32 %v13978_v19, %v13976_v3  ;;  %v3130_v3 = vadd.f32 %v14008_v24, %v14006_v35 }
 0x27a   : > { %16092 = vst [vmem:[#allocation46_spill] sm:$0xff] %v14078_v18  ;;  %v14080_v63 = vpop.f32.mrf.mxu1 }
 0x27b   : > { %16093 = vst [vmem:[#allocation47_spill] sm:$0xff] %v14080_v63  ;;  %v3385_v22 = vpop.f32.mrf.mxu0 }
 0x27c   : > { %v3583_v58 = vpop.f32.mrf.mxu1 }
 0x27d   : > { %v3387_v30 = vpop.f32.mrf.mxu0 }
 0x27e   : > { %v3585_v47 = vpop.f32.mrf.mxu1 }
 0x27f   : > { %v3389_v31 = vpop.f32.mrf.mxu0 }
 0x280   : > { %v14082_v23 = vpop.f32.mrf.mxu1 }
 0x281   : > { %v3391_v42 = vpop.f32.mrf.mxu0 }
 0x282   : > { %v14084_v41 = vpop.f32.mrf.mxu1 }
 0x283   : > { %v3395_v16 = vpop.f32.mrf.mxu0 }
 0x284   : > { %v14086_v55 = vpop.f32.mrf.mxu1 }
 0x285   : > { %v14088_v21 = vpop.f32.mrf.mxu0 }
 0x286   : > { %v14090_v32 = vpop.f32.mrf.mxu1 }
 0x287   : > { %v14092_v33 = vpop.f32.mrf.mxu0 }
 0x288   : > { %v14094_v38 = vpop.f32.mrf.mxu1 }
 0x289   : > { %v14096_v10 = vpop.f32.mrf.mxu0 }
 0x28a   : > { %v14098_v14 = vpop.f32.mrf.mxu1 }
 0x28b   : > { %16094 = vst [vmem:[#allocation48_spill] sm:$0xff] %v14098_v14  ;;  %v14100_v4 = vpop.f32.mrf.mxu0 }
 0x28c   : > { %v14102_v61 = vpop.f32.mrf.mxu1 }
 0x28d   : > { %16095 = vst [vmem:[#allocation49_spill] sm:$0xff] %v14102_v61  ;;  %v14104_v39 = vpop.f32.mrf.mxu0 }
 0x28e   : > { %v14106_v48 = vpop.f32.mrf.mxu1 }
 0x28f   : > { %16096 = vst [vmem:[#allocation50_spill] sm:$0xff] %v14106_v48  ;;  %v14108_v51 = vpop.f32.mrf.mxu0 }
 0x290   : > { %16097 = vst [vmem:[#allocation51_spill] sm:$0xff] %v14108_v51  ;;  %v14110_v11 = vpop.f32.mrf.mxu1 }
 0x291   : > { %16098 = vst [vmem:[#allocation52_spill] sm:$0xff] %v14110_v11  ;;  %v14112_v43 = vpop.f32.mrf.mxu0 }
 0x292   : > { %16099 = vst [vmem:[#allocation53_spill] sm:$0xff] %v14112_v43  ;;  %v14114_v57 = vpop.f32.mrf.mxu1 }
 0x293   : > { %16100 = vst [vmem:[#allocation54_spill] sm:$0xff] %v14114_v57  ;;  %v14116_v40 = vpop.f32.mrf.mxu0 }
 0x294   : > { %16101 = vst [vmem:[#allocation55_spill] sm:$0xff] %v14116_v40  ;;  %v14118_v53 = vpop.f32.mrf.mxu1 }
 0x295   : > { %16102 = vst [vmem:[#allocation56_spill] sm:$0xff] %v14118_v53  ;;  %v14120_v50 = vpop.f32.mrf.mxu0 }
 0x296   : > { %16103 = vst [vmem:[#allocation57_spill] sm:$0xff] %v14120_v50  ;;  %v14122_v28 = vpop.f32.mrf.mxu1 }
 0x297   : > { %16104 = vst [vmem:[#allocation58_spill] sm:$0xff] %v14122_v28  ;;  %v14124_v1 = vpop.f32.mrf.mxu0 }
 0x298   : > { %16105 = vst [vmem:[#allocation59_spill] sm:$0xff] %v14124_v1  ;;  %v14126_v6 = vpop.f32.mrf.mxu1 }
 0x299   : > { %16106 = vst [vmem:[#allocation60_spill] sm:$0xff] %v14126_v6  ;;  %v14128_v63 = vpop.f32.mrf.mxu0 }
 0x29a   : > { %16107 = vst [vmem:[#allocation61_spill] sm:$0xff] %v14128_v63  ;;  %v14130_v18 = vpop.f32.mrf.mxu1 }
 0x29b   : > { %16108 = vst [vmem:[#allocation62_spill] sm:$0xff] %v14130_v18  ;;  %v3861_v11 = vpop.f32.mrf.mxu0 }
 0x29c   : > { %v4139_v43 = vpop.f32.mrf.mxu1 }
 0x29d   : > { %v3863_v51 = vpop.f32.mrf.mxu0 }
 0x29e   : > { %v4141_v57 = vpop.f32.mrf.mxu1 }
 0x29f   : > { %v3865_v48 = vpop.f32.mrf.mxu0 }
 0x2a0   : > { %v4143_v61 = vpop.f32.mrf.mxu1 }
 0x2a1   : > { %v3867_v40 = vpop.f32.mrf.mxu0 }
 0x2a2   : > { %v14134_v50 = vpop.f32.mrf.mxu1 }
 0x2a3   : > { %v3871_v53 = vpop.f32.mrf.mxu0  ;;  %16109 = vst [vmem:[#allocation63_spill] sm:$0xff] %v14134_v50  ;;  %v3424_v50 = vadd.f32 %v3385_v22, %v3124_v59  ;;  %v3427_v59 = vadd.f32 %v3391_v42, %v3130_v3  ;;  %v16121_v3 = vld [vmem:[#allocation44_spill] sm:$0xff] }
 0x2a4   : > { %v14140_v6 = vpop.f32.mrf.mxu1 }
 0x2a5   : > { %v14132_v14 = vpop.f32.mrf.mxu0  ;;  %16112 = vst [vmem:[#allocation66_spill] sm:$0xff] %v14140_v6  ;;  %v3425_v6 = vadd.f32 %v3387_v30, %v3126_v12  ;;  %v3622_v19 = vadd.f32 %v3583_v58, %v3424_v50  ;;  %v3148_v30 = vadd.f32 %v14060_v27, %v14058_v25 }
 0x2a6   : > { %v14148_v17 = vpop.f32.mrf.mxu1 }
 0x2a7   : > { %v14136_v28 = vpop.f32.mrf.mxu0  ;;  %16115 = vst [vmem:[#allocation69_spill] sm:$0xff] %v14148_v17  ;;  %v3623_v15 = vadd.f32 %v3585_v47, %v3425_v6  ;;  %v3900_v22 = vadd.f32 %v3861_v11, %v3622_v19  ;;  %v3138_v6 = vadd.f32 %v14041_v29, %v14039_v46  ;;  %v3144_v46 = vadd.f32 %v14052_v0, %v14050_v37  ;;  %v16122_v19 = vld [vmem:[#allocation45_spill] sm:$0xff] }
 0x2a8   : > { %16110 = vst [vmem:[#allocation64_spill] sm:$0xff] %v14136_v28  ;;  %v3146_v29 = vadd.f32 %v14056_v54, %v14054_v52  ;;  %v3154_v37 = vadd.f32 %v14068_v26, %v14066_v44 }
 0x2a9   : > { %v14138_v1 = vpop.f32.mrf.mxu0  ;;  %v3901_v24 = vadd.f32 %v3863_v51, %v3623_v15  ;;  %v3430_v47 = vadd.f32 %v14092_v33, %v3138_v6  ;;  %v16120_v33 = vld [vmem:[#allocation43_spill] sm:$0xff] }
 0x2aa   : > { %16111 = vst [vmem:[#allocation65_spill] sm:$0xff] %v14138_v1  ;;  %v3128_v1 = vadd.f32 %v13998_v2, %v13996_v8  ;;  %v4472_v8 = vld [vmem:[%s15888_s5] sm:$0x3]  ;;  %v3136_v2 = vadd.f32 %v14031_v45, %v14029_v36  ;;  %v3140_v36 = vadd.f32 %v14048_v62, %v14046_v5  ;;  %v3625_v45 = vadd.f32 %v14084_v41, %v3427_v59 }
 0x2ab   : > { %v14142_v63 = vpop.f32.mrf.mxu0  ;;  %v14184_v34 = vrot.slane %v4472_v8, %v13009_v7  ;;  %v14187_v12 = vrot.slane %v4472_v8, %v12913_v56  ;;  %v4179_v62 = vadd.f32 %v4141_v57, %v3901_v24  ;;  %v3628_v57 = vadd.f32 %v14094_v38, %v3430_v47  ;;  %v16126_v24 = vld [vmem:[#allocation49_spill] sm:$0xff] }
 0x2ac   : > { %16113 = vst [vmem:[#allocation67_spill] sm:$0xff] %v14142_v63  ;;  %v14158_v63 = vpop.f32.mrf.mxu1  ;;  %v3426_v17 = vadd.f32 %v3389_v31, %v3128_v1  ;;  %v3428_v1 = vadd.f32 %v3395_v16, %v3134_v13  ;;  %v3429_v11 = vadd.f32 %v14088_v21, %v3136_v2  ;;  %v3431_v52 = vadd.f32 %v14096_v10, %v3140_v36  ;;  %v16118_v16 = vld [vmem:[#allocation63_spill] sm:$0xff]  ;;  %v16123_v13 = vld [vmem:[#allocation48_spill] sm:$0xff] }
 0x2ad   : > { %v14144_v18 = vpop.f32.mrf.mxu0  ;;  %v3158_v38 = vadd.f32 %v16122_v19, %v16121_v3 }
 0x2ae   : > { %16114 = vst [vmem:[#allocation68_spill] sm:$0xff] %v14144_v18  ;;  %v3624_v50 = vadd.f32 %v14082_v23, %v3426_v17  ;;  %v4178_v17 = vadd.f32 %v4139_v43, %v3900_v22  ;;  %v3626_v5 = vadd.f32 %v14086_v55, %v3428_v1  ;;  %v3903_v23 = vadd.f32 %v3867_v40, %v3625_v45  ;;  %v16128_v45 = vld [vmem:[#allocation51_spill] sm:$0xff] }
 0x2af   : > { %v14150_v20 = vpop.f32.mrf.mxu0  ;;  %v3627_v0 = vadd.f32 %v14090_v32, %v3429_v11  ;;  %v16119_v32 = vld [vmem:[#allocation42_spill] sm:$0xff]  ;;  %v16124_v15 = vld [vmem:[#allocation64_spill] sm:$0xff] }
 0x2b0   : > { %16116 = vst [vmem:[#allocation70_spill] sm:$0xff] %v14150_v20  ;;  %v3902_v51 = vadd.f32 %v3865_v48, %v3624_v50  ;;  %v3150_v48 = vadd.f32 %v14064_v60, %v14062_v9  ;;  %v3904_v27 = vadd.f32 %v3871_v53, %v3626_v5  ;;  %v3432_v9 = vadd.f32 %v14100_v4, %v3144_v46  ;;  %v16127_v11 = vld [vmem:[#allocation50_spill] sm:$0xff] }
 0x2b1   : > { %v14154_v28 = vpop.f32.mrf.mxu0  ;;  %v3433_v60 = vadd.f32 %v14104_v39, %v3146_v29  ;;  %v3905_v44 = vadd.f32 %v14132_v14, %v3627_v0  ;;  %v4181_v55 = vadd.f32 %v16118_v16, %v3903_v23  ;;  %v3156_v10 = vadd.f32 %v16120_v33, %v16119_v32  ;;  %v16125_v14 = vld [vmem:[#allocation66_spill] sm:$0xff]  ;;  %v16130_v47 = vld [vmem:[#allocation65_spill] sm:$0xff] }
 0x2b2   : > { %16117 = vst [vmem:[#allocation71_spill] sm:$0xff] %v14154_v28  ;;  %v14168_v28 = vpop.f32.mrf.mxu1  ;;  %v4180_v25 = vadd.f32 %v4143_v61, %v3902_v51  ;;  %v3629_v4 = vadd.f32 %v16123_v13, %v3431_v52  ;;  %v3906_v39 = vadd.f32 %v16124_v15, %v3628_v57  ;;  %v4182_v22 = vadd.f32 %v16125_v14, %v3904_v27  ;;  %v16129_v51 = vld [vmem:[#allocation69_spill] sm:$0xff]  ;;  %v16132_v52 = vld [vmem:[#allocation55_spill] sm:$0xff]  ;;  %v16134_v16 = vld [vmem:[#allocation46_spill] sm:$0xff] }
 0x2b3   : > { %v14160_v18 = vpop.f32.mrf.mxu0  ;;  %v3630_v6 = vadd.f32 %v16126_v24, %v3432_v9  ;;  %v3631_v36 = vadd.f32 %v16127_v11, %v3433_v60  ;;  %v4183_v46 = vadd.f32 %v16129_v51, %v3905_v44  ;;  %v16133_v27 = vld [vmem:[#allocation67_spill] sm:$0xff]  ;;  %v16140_v14 = vld [vmem:[#allocation56_spill] sm:$0xff] }
 0x2b4   : > { %v14192_v58 = vpop.f32.mrf.mxu1  ;;  %v16143_v51 = vld [vmem:[#allocation59_spill] sm:$0xff] }
 0x2b5   : > { %v14164_v20 = vpop.f32.mrf.mxu0 }
 0x2b6   : > { %v14208_v42 = vpop.f32.mrf.mxu1 }
 0x2b7   : > { %v14175_v35 = vpop.f32.mrf.mxu0 }
 0x2b8   : > { %v4163_v8 = vpop.f32.mrf.mxu1 }
 0x2b9   : > { %v14181_v49 = vpop.f32.mrf.mxu0 }
 0x2ba   : > { %v4165_v57 = vpop.f32.mrf.mxu1 }
 0x2bb   : > { %v4417_v31 = vpop.f32.mrf.mxu0 }
 0x2bc   : > { %v4456_v43 = vadd.f32 %v4417_v31, %v4178_v17  ;;  %v3434_v17 = vadd.f32 %v16128_v45, %v3148_v30  ;;  %v3907_v31 = vadd.f32 %v16130_v47, %v3629_v4  ;;  %v4169_v24 = vpop.f32.mrf.mxu1  ;;  %v16142_v45 = vld [vmem:[#allocation58_spill] sm:$0xff]  ;;  %v16144_v47 = vld [vmem:[#allocation71_spill] sm:$0xff] }
 0x2bd   : > { %v4419_v54 = vpop.f32.mrf.mxu0 }
 0x2be   : > { %v14211_v41 = vadd.f32 %v14184_v34, %v4456_v43  ;;  %v4457_v40 = vadd.f32 %v4419_v54, %v4179_v62  ;;  %v16131_v43 = vld [vmem:[#allocation53_spill] sm:$0xff]  ;;  %v3436_v54 = vadd.f32 %v16132_v52, %v3154_v37  ;;  %v4185_v19 = vadd.f32 %v14168_v28, %v3907_v31 }
 0x2bf   : > { %v4421_v26 = vpop.f32.mrf.mxu0  ;;  %v3435_v0 = vadd.f32 %v16131_v43, %v3150_v48  ;;  %v16136_v48 = vld [vmem:[#allocation52_spill] sm:$0xff]  ;;  %v16137_v37 = vld [vmem:[#allocation57_spill] sm:$0xff] }
 0x2c0   : > { %v4500_v61 = vmax.f32 %v14211_v41, 0.0  ;;  %v4485_v53 = vadd.f32 %v14187_v12, %v4457_v40  ;;  %v4458_v21 = vadd.f32 %v4421_v26, %v4180_v25  ;;  %v4184_v25 = vadd.f32 %v14158_v63, %v3906_v39  ;;  %v16138_v63 = vld [vmem:[#allocation68_spill] sm:$0xff]  ;;  %v16139_v39 = vld [vmem:[#allocation54_spill] sm:$0xff]  ;;  %v16145_v52 = vld [vmem:[#allocation41_spill] sm:$0xff] }
 0x2c1   : > { %v4423_v59 = vpop.f32.mrf.mxu0  ;;  %v3908_v40 = vadd.f32 %v16133_v27, %v3630_v6  ;;  %v3437_v32 = vadd.f32 %v16137_v37, %v3156_v10  ;;  %v3909_v33 = vadd.f32 %v16138_v63, %v3631_v36 }
 0x2c2   : > { %v4501_v2 = vmax.f32 %v4485_v53, 0.0  ;;  %v4486_v50 = vadd.f32 %v14184_v34, %v4458_v21  ;;  %v4459_v1 = vadd.f32 %v4423_v59, %v4181_v55  ;;  %v16135_v55 = vld [vmem:[#allocation47_spill] sm:$0xff]  ;;  %v3632_v21 = vadd.f32 %v16136_v48, %v3434_v17 }
 0x2c3   : > { %v4427_v29 = vpop.f32.mrf.mxu0  ;;  %v3160_v53 = vadd.f32 %v16135_v55, %v16134_v16  ;;  %v3633_v59 = vadd.f32 %v16139_v39, %v3435_v0  ;;  %v3635_v17 = vadd.f32 %v16142_v45, %v3437_v32 }
 0x2c4   : > { %4530 = vst.msk [vmem:[#allocation3 + $0x38] sm:$0xff] %vm4517_vm8, %v4501_v2  ;;  %v4502_v5 = vmax.f32 %v4486_v50, 0.0  ;;  %v4487_v62 = vadd.f32 %v14187_v12, %v4459_v1  ;;  %v4460_v23 = vadd.f32 %v4427_v29, %v4182_v22  ;;  %v3634_v22 = vadd.f32 %v16140_v14, %v3436_v54  ;;  %v16141_v50 = vld [vmem:[#allocation70_spill] sm:$0xff] }
 0x2c5   : > { %v4429_v30 = vpop.f32.mrf.mxu0  ;;  %v4186_v2 = vadd.f32 %v14192_v58, %v3908_v40  ;;  %v3910_v1 = vadd.f32 %v16141_v50, %v3632_v21  ;;  %v4187_v29 = vadd.f32 %v14208_v42, %v3909_v33  ;;  %v3911_v31 = vadd.f32 %v16144_v47, %v3633_v59  ;;  %v16147_v42 = vld [vmem:[#allocation40_spill] sm:$0xff]  ;;  %v16149_v33 = vld [vmem:[#allocation62_spill] sm:$0xff] }
 0x2c6   : > { %v4503_v9 = vmax.f32 %v4487_v62, 0.0  ;;  %v4488_v60 = vadd.f32 %v14184_v34, %v4460_v23  ;;  %v4461_v44 = vadd.f32 %v4429_v30, %v4183_v46  ;;  %v14242_v26 = vpack.c.bf16 %v4502_v5, %v4500_v61 }
 0x2c7   : > { %v4431_v3 = vpop.f32.mrf.mxu0  ;;  %v3438_v46 = vadd.f32 %v16143_v51, %v3158_v38  ;;  %v4188_v27 = vadd.f32 %v4163_v8, %v3910_v1  ;;  %v3912_v38 = vadd.f32 %v14160_v18, %v3634_v22  ;;  %v14273_v30 = vpack.c.bf16 %v4500_v61, %v16147_v42 }
 0x2c8   : > { %4532 = vst.msk [vmem:[#allocation3 + $0x48] sm:$0xff] %vm4517_vm8, %v4503_v9  ;;  %v4504_v13 = vmax.f32 %v4488_v60, 0.0  ;;  %v4489_v4 = vadd.f32 %v14187_v12, %v4461_v44  ;;  %v4462_v15 = vadd.f32 %v4431_v3, %v4184_v25  ;;  %v4171_v9 = vpop.f32.mrf.mxu1  ;;  %v4189_v48 = vadd.f32 %v4165_v57, %v3911_v31 }
 0x2c9   : > { %v4433_v10 = vpop.f32.mrf.mxu0  ;;  %v3913_v18 = vadd.f32 %v14164_v20, %v3635_v17 }
 0x2ca   : > { %v4505_v6 = vmax.f32 %v4489_v4, 0.0  ;;  %v4490_v11 = vadd.f32 %v14184_v34, %v4462_v15  ;;  %v4463_v28 = vadd.f32 %v4433_v10, %v4185_v19  ;;  %v14257_v36 = vpack.c.bf16 %v4504_v13, %v4502_v5  ;;  %v16146_v5 = vld [vmem:[#allocation61_spill] sm:$0xff]  ;;  %v4173_v57 = vpop.f32.mrf.mxu1 }
 0x2cb   : > { %v4437_v62 = vpop.f32.mrf.mxu0  ;;  %v4552_v58 = vld [vmem:[#allocation3 + $0x38] sm:$0xff]  ;;  %v3439_v25 = vadd.f32 %v16146_v5, %v3160_v53  ;;  %v16148_v53 = vld [vmem:[#allocation60_spill] sm:$0xff]  ;;  %v4190_v19 = vadd.f32 %v4169_v24, %v3912_v38  ;;  %v4191_v14 = vadd.f32 %v4171_v9, %v3913_v18 }
 0x2cc   : > { %4534 = vst.msk [vmem:[#allocation3 + $0x58] sm:$0xff] %vm4517_vm8, %v4505_v6  ;;  %v4506_v23 = vmax.f32 %v4490_v11, 0.0  ;;  %v4491_v43 = vadd.f32 %v14187_v12, %v4463_v28  ;;  %v4464_v0 = vadd.f32 %v4437_v62, %v4186_v2  ;;  %v14266_v54 = vpack.c.bf16 %v4552_v58, %v16145_v52  ;;  %v4175_v28 = vpop.f32.mrf.mxu1  ;;  %v10715_v18 = vld [vmem:[%s15889_s6 + $0x370] ss:$8 sps:$4 sm:$0xff]  }
 0x2cd   : > { %v4439_v40 = vpop.f32.mrf.mxu0  ;;  %v3636_v8 = vadd.f32 %v16148_v53, %v3438_v46  ;;  %v3637_v3 = vadd.f32 %v16149_v33, %v3439_v25  ;;  %v10706_v53 = vld [vmem:[%s15889_s6 + $0x2f0] ss:$8 sps:$4 sm:$0xff]  }
 0x2ce   : > { %v4507_v60 = vmax.f32 %v4491_v43, 0.0  ;;  %v4492_v44 = vadd.f32 %v14184_v34, %v4464_v0  ;;  %v4465_v16 = vadd.f32 %v4439_v40, %v4187_v29  ;;  %9415 = vmatprep.mubr.msk.bf16.mxu0 %vm4517_vm8, %v14266_v54  ;;  %v14278_v55 = vpack.c.bf16 %v4506_v23, %v4504_v13  ;;  %v10727_v33 = vld [vmem:[%s15889_s6 + $0x350] ss:$8 sps:$4 sm:$0xff]  }
 0x2cf   : > { %v4441_v21 = vpop.f32.mrf.mxu0  ;;  %4960 = vmatmul.mubr.bf16.gmra.mxu0 %v14273_v30  ;;  %v4554_v41 = vld [vmem:[#allocation3 + $0x48] sm:$0xff]  ;;  %v3914_v13 = vadd.f32 %v14175_v35, %v3636_v8  ;;  %v3915_v22 = vadd.f32 %v14181_v49, %v3637_v3  ;;  %v10714_v8 = vld [vmem:[%s15889_s6 + $0x2e4] ss:$8 sps:$4 sm:$0xff]  }
 0x2d0   : > { %4536 = vst.msk [vmem:[#allocation3 + $0x68] sm:$0xff] %vm4517_vm8, %v4507_v60  ;;  %v4508_v61 = vmax.f32 %v4492_v44, 0.0  ;;  %v4493_v37 = vadd.f32 %v14187_v12, %v4465_v16  ;;  %v4466_v32 = vadd.f32 %v4441_v21, %v4188_v27  ;;  %v4594_v63 = vpack.c.bf16 %v4554_v41, %v4552_v58  ;;  %v10711_v16 = vld [vmem:[%s15889_s6 + $0x384] ss:$8 sps:$4 sm:$0xff]   ;;  %v10720_v21 = vld [vmem:[%s15889_s6 + $0x2d4] ss:$8 sps:$4 sm:$0xff]  }
 0x2d1   : > { %v4443_v4 = vpop.f32.mrf.mxu0  ;;  %v4192_v6 = vadd.f32 %v4173_v57, %v3914_v13  ;;  %v4193_v46 = vadd.f32 %v4175_v28, %v3915_v22  ;;  %v10753_v28 = vld [vmem:[%s15889_s6 + $0x3b4] ss:$8 sps:$4 sm:$0xff]  }
 0x2d2   : > { %v4509_v15 = vmax.f32 %v4493_v37, 0.0  ;;  %v4494_v20 = vadd.f32 %v14184_v34, %v4466_v32  ;;  %v4467_v39 = vadd.f32 %v4443_v4, %v4189_v48  ;;  %9391 = vmatprep.mubr.msk.bf16.mxu1 %vm4517_vm8, %v4594_v63  ;;  %v14289_v59 = vpack.c.bf16 %v4508_v61, %v4506_v23  ;;  %v10712_v48 = vld [vmem:[%s15889_s6 + $0x2e0] ss:$8 sps:$4 sm:$0xff]   ;;  %v10726_v37 = vld [vmem:[%s15889_s6 + $0x2c4] ss:$8 sps:$4 sm:$0xff]  }
 0x2d3   : > { %v4447_v2 = vpop.f32.mrf.mxu0  ;;  %4775 = vmatmul.mubr.bf16.gmra.mxu1 %v14242_v26  ;;  %v4556_v50 = vld [vmem:[#allocation3 + $0x58] sm:$0xff]  ;;  %v10729_v32 = vld [vmem:[%s15889_s6 + $0x354] ss:$8 sps:$4 sm:$0xff]  }
 0x2d4   : > { %4538 = vst.msk [vmem:[#allocation3 + $0x78] sm:$0xff] %vm4517_vm8, %v4509_v15  ;;  %v4510_v35 = vmax.f32 %v4494_v20, 0.0  ;;  %v4495_v1 = vadd.f32 %v14187_v12, %v4467_v39  ;;  %v4468_v10 = vadd.f32 %v4447_v2, %v4190_v19  ;;  %v14295_v24 = vpack.c.bf16 %v4556_v50, %v4554_v41  ;;  %v10718_v41 = vld [vmem:[%s15889_s6 + $0x2d0] ss:$8 sps:$4 sm:$0xff]   ;;  %v10732_v19 = vld [vmem:[%s15889_s6 + $0x2b4] ss:$8 sps:$4 sm:$0xff]  }
 0x2d5   : > { %v4449_v11 = vpop.f32.mrf.mxu0  ;;  %v10735_v4 = vld [vmem:[%s15889_s6 + $0x344] ss:$8 sps:$4 sm:$0xff]   ;;  %v10730_v15 = vld [vmem:[%s15889_s6 + $0x2b0] ss:$8 sps:$4 sm:$0xff]   ;;  %v10733_v20 = vld [vmem:[%s15889_s6 + $0x340] ss:$8 sps:$4 sm:$0xff]  }
 0x2d6   : > { %v4511_v45 = vmax.f32 %v4495_v1, 0.0  ;;  %v4496_v17 = vadd.f32 %v14184_v34, %v4468_v10  ;;  %v4469_v51 = vadd.f32 %v4449_v11, %v4191_v14  ;;  %9416 = vmatprep.mubr.msk.bf16.mxu0 %vm4517_vm8, %v14295_v24  ;;  %v14300_v49 = vpack.c.bf16 %v4510_v35, %v4508_v61  ;;  %v10721_v61 = vld [vmem:[%s15889_s6 + $0x360] ss:$8 sps:$4 sm:$0xff]   ;;  %v10738_v39 = vld [vmem:[%s15889_s6 + $0x2a4] ss:$8 sps:$4 sm:$0xff]  }
 0x2d7   : > { %v4451_v29 = vpop.f32.mrf.mxu0  ;;  %4970 = vmatmul.mubr.bf16.gmra.mxu0 %v14257_v36  ;;  %v4558_v47 = vld [vmem:[#allocation3 + $0x68] sm:$0xff]  ;;  %v10736_v2 = vld [vmem:[%s15889_s6 + $0x2a0] ss:$8 sps:$4 sm:$0xff]   ;;  %v10747_v1 = vld [vmem:[%s15889_s6 + $0x324] ss:$8 sps:$4 sm:$0xff]  }
 0x2d8   : > { %4540 = vst.msk [vmem:[#allocation3 + $0x88] sm:$0xff] %vm4517_vm8, %v4511_v45  ;;  %v4512_v31 = vmax.f32 %v4496_v17, 0.0  ;;  %v4497_v62 = vadd.f32 %v14187_v12, %v4469_v51  ;;  %v4470_v58 = vadd.f32 %v4451_v29, %v4192_v6  ;;  %v14305_v23 = vpack.c.bf16 %v4558_v47, %v4556_v50  ;;  %v10741_v14 = vld [vmem:[%s15889_s6 + $0x334] ss:$8 sps:$4 sm:$0xff]   ;;  %v10739_v50 = vld [vmem:[%s15889_s6 + $0x330] ss:$8 sps:$4 sm:$0xff]  }
 0x2d9   : > { %v4453_v43 = vpop.f32.mrf.mxu0  ;;  %v10742_v10 = vld [vmem:[%s15889_s6 + $0x290] ss:$8 sps:$4 sm:$0xff]   ;;  %v10745_v6 = vld [vmem:[%s15889_s6 + $0x320] ss:$8 sps:$4 sm:$0xff]   ;;  %v10750_v11 = vld [vmem:[%s15889_s6 + $0x284] ss:$8 sps:$4 sm:$0xff]  }
 0x2da   : > { %v4513_v0 = vmax.f32 %v4497_v62, 0.0  ;;  %v14308_v52 = vadd.f32 %v14184_v34, %v4470_v58  ;;  %v4471_v5 = vadd.f32 %v4453_v43, %v4193_v46  ;;  %9392 = vmatprep.mubr.msk.bf16.mxu1 %vm4517_vm8, %v14305_v23  ;;  %v14312_v25 = vpack.c.bf16 %v4512_v31, %v4510_v35  ;;  %v10744_v35 = vld [vmem:[%s15889_s6 + $0x294] ss:$8 sps:$4 sm:$0xff]   ;;  %v10748_v45 = vld [vmem:[%s15889_s6 + $0x280] ss:$8 sps:$4 sm:$0xff]  }
 0x2db   : > { %4785 = vmatmul.mubr.bf16.gmra.mxu1 %v14278_v55  ;;  %v4560_v27 = vld [vmem:[#allocation3 + $0x78] sm:$0xff]  ;;  %v10751_v17 = vld [vmem:[%s15889_s6 + $0x3b0] ss:$8 sps:$4 sm:$0xff]   ;;  %v10756_v51 = vld [vmem:[%s15889_s6 + $0x314] ss:$8 sps:$4 sm:$0xff]  }
 0x2dc   : > { %4542 = vst.msk [vmem:[#allocation3 + $0x98] sm:$0xff] %vm4517_vm8, %v4513_v0  ;;  %v4514_v38 = vmax.f32 %v14308_v52, 0.0  ;;  %v4499_v40 = vadd.f32 %v14187_v12, %v4471_v5  ;;  %v14318_v42 = vpack.c.bf16 %v4560_v27, %v4558_v47  ;;  %v10703_v12 = vld [vmem:[%s15889_s6 + $0x390] ss:$8 sps:$4 sm:$0xff]   ;;  %v10759_v46 = vld [vmem:[%s15889_s6 + $0x3a4] ss:$8 sps:$4 sm:$0xff]  }
 0x2dd   : > { %v10754_v29 = vld [vmem:[%s15889_s6 + $0x310] ss:$8 sps:$4 sm:$0xff]   ;;  %v10762_v47 = vld [vmem:[%s15889_s6 + $0x304] ss:$8 sps:$4 sm:$0xff]   ;;  %v10765_v62 = vld [vmem:[%s15889_s6 + $0x434] ss:$8 sps:$4 sm:$0xff]  }
 0x2de   : > { %v4515_v9 = vmax.f32 %v4499_v40, 0.0  ;;  %9417 = vmatprep.mubr.msk.bf16.mxu0 %vm4517_vm8, %v14318_v42  ;;  %v14324_v34 = vpack.c.bf16 %v4514_v38, %v4512_v31  ;;  %v10760_v31 = vld [vmem:[%s15889_s6 + $0x300] ss:$8 sps:$4 sm:$0xff]   ;;  %v10763_v58 = vld [vmem:[%s15889_s6 + $0x430] ss:$8 sps:$4 sm:$0xff]  }
 0x2df   : > { %4980 = vmatmul.mubr.bf16.gmra.mxu0 %v14289_v59  ;;  %v4590_v60 = vld [vmem:[#allocation3 + $0x88] sm:$0xff]  ;;  %v10774_v0 = vld [vmem:[%s15889_s6 + $0x404] ss:$8 sps:$4 sm:$0xff]  }
 0x2e0   : > { %4544 = vst.msk [vmem:[#allocation3 + $0xa8] sm:$0xff] %vm4517_vm8, %v4515_v9  ;;  %9502 = vmatprep.mubr.msk.bf16.mxu0 %vm4517_vm8, %v4594_v63  ;;  %v14329_v44 = vpack.c.bf16 %v4590_v60, %v4560_v27  ;;  %v10724_v63 = vld [vmem:[%s15889_s6 + $0x2c0] ss:$8 sps:$4 sm:$0xff]   ;;  %v10771_v43 = vld [vmem:[%s15889_s6 + $0x414] ss:$8 sps:$4 sm:$0xff]  }
 0x2e1   : > { %v5743_v5 = vld [vmem:[#allocation3 + $0xc8] sm:$0xff]  ;;  %v5497_v27 = vld [vmem:[#allocation3 + $0xb8] sm:$0xff] }
 0x2e2   : > { %9393 = vmatprep.mubr.msk.bf16.mxu1 %vm4517_vm8, %v14329_v44  ;;  %v5751_v40 = vpack.c.bf16 %v5743_v5, %v5497_v27  ;;  %v10777_v9 = vld [vmem:[%s15889_s6 + $0x3f4] ss:$8 sps:$4 sm:$0xff]  }
 0x2e3   : > { %4795 = vmatmul.mubr.bf16.gmra.mxu1 %v14300_v49  ;;  %v5249_v13 = vld [vmem:[#allocation3 + $0x98] sm:$0xff]  ;;  %v10789_v52 = vld [vmem:[%s15889_s6 + $0x454] ss:$8 sps:$4 sm:$0xff]  }
 0x2e4   : > { %9458 = vmatprep.mubr.msk.bf16.mxu1 %vm4517_vm8, %v14266_v54  ;;  %v10709_v54 = vld [vmem:[%s15889_s6 + $0x380] ss:$8 sps:$4 sm:$0xff]   ;;  %v14423_v22 = vpack.c.bf16 %v5249_v13, %v4590_v60  ;;  %v10775_v60 = vld [vmem:[%s15889_s6 + $0x3f0] ss:$8 sps:$4 sm:$0xff]  }
 0x2e7   : > { %5426 = vmatmul.mubr.bf16.vlgmr.msra.gmra.mxu0 %v14242_v26  ;;  %v10717_v26 = vld [vmem:[%s15889_s6 + $0x374] ss:$8 sps:$4 sm:$0xff]  }
 0x2e8   : > { %5886 = vmatpush1.bf16.msra.mxu0 %v10703_v12  ;;  %9503 = vmatprep.mubr.msk.bf16.mxu0 %vm4517_vm8, %v14305_v23  ;;  %v14394_v3 = vld [vmem:[#allocation3 + $0xa8] sm:$0xff] }
 0x2e9   : > { %5887 = vmatprep.subr.bf16.mxu0 %v10711_v16  ;;  %v14406_v57 = vpack.c.bf16 %v14394_v3, %v5249_v13  ;;  %v5505_v12 = vpack.c.bf16 %v5497_v27, %v14394_v3  ;;  %v11107_v16 = vld [vmem:[#allocation3] sm:$0xff]  ;;  %v10799_v3 = vld [vmem:[#allocation4 + $0x1b0] ss:$36 sps:$4 sm:$0xff]  }
 0x2ea   : > { %v10810_v13 = vld [vmem:[#allocation4 + $0x174] ss:$36 sps:$4 sm:$0xff]   ;;  %v10855_v27 = vld [vmem:[#allocation4 + $0x28c] ss:$36 sps:$4 sm:$0xff]  }
 0x2eb   : > { %5180 = vmatmul.mubr.bf16.vlgmr.msra.gmra.mxu1 %v14273_v30  ;;  %v10723_v30 = vld [vmem:[%s15889_s6 + $0x364] ss:$8 sps:$4 sm:$0xff]  }
 0x2ec   : > { %5640 = vmatpush1.bf16.msra.mxu1 %v10706_v53  ;;  %5888 = vmatpush1.bf16.msra.mxu0 %v10709_v54  ;;  %v5750_v53 = vpack.c.bf16 %v11107_v16, %v11107_v16  ;;  %v10783_v54 = vld [vmem:[%s15889_s6 + $0x3d4] ss:$8 sps:$4 sm:$0xff]  }
 0x2ed   : > { %9459 = vmatprep.mubr.msk.bf16.mxu1 %vm4517_vm8, %v14295_v24  ;;  %5641 = vmatprep.subr.bf16.mxu1 %v10714_v8  ;;  %v10781_v8 = vld [vmem:[%s15889_s6 + $0x3d0] ss:$8 sps:$4 sm:$0xff]  }
 0x2ee   : > { %5889 = vmatprep.subr.bf16.mxu0 %v10717_v26  ;;  %v5504_v26 = vpack.c.bf16 %v11107_v16, %v4514_v38  ;;  %v10787_v38 = vld [vmem:[%s15889_s6 + $0x450] ss:$8 sps:$4 sm:$0xff]  }
 0x2ef   : > { %5436 = vmatmul.mubr.bf16.gmra.mxu0 %v14278_v55  ;;  %v10864_v16 = vld [vmem:[#allocation4 + $0x24c] ss:$36 sps:$4 sm:$0xff]  }
 0x2f0   : > { %5642 = vmatpush1.bf16.msra.mxu1 %v10712_v48  ;;  %5890 = vmatpush1.bf16.msra.mxu0 %v10715_v18  ;;  %v10786_v48 = vld [vmem:[%s15889_s6 + $0x3c4] ss:$8 sps:$4 sm:$0xff]   ;;  %v10784_v18 = vld [vmem:[%s15889_s6 + $0x3c0] ss:$8 sps:$4 sm:$0xff]  }
 0x2f1   : > { %9504 = vmatprep.mubr.msk.bf16.mxu0 %vm4517_vm8, %v14329_v44  ;;  %5643 = vmatprep.subr.bf16.mxu1 %v10720_v21  ;;  %v10792_v21 = vld [vmem:[%s15889_s6 + $0x444] ss:$8 sps:$4 sm:$0xff]  }
 0x2f2   : > { %5891 = vmatprep.subr.bf16.mxu0 %v10723_v30  ;;  %v5989_v30 = vld [vmem:[#allocation3 + $0xd8] sm:$0xff] }
 0x2f3   : > { %5190 = vmatmul.mubr.bf16.gmra.mxu1 %v14257_v36 }
 0x2f4   : > { %5644 = vmatpush1.bf16.msra.mxu1 %v10718_v41  ;;  %5892 = vmatpush1.bf16.msra.mxu0 %v10721_v61  ;;  %v5997_v41 = vpack.c.bf16 %v5989_v30, %v5743_v5  ;;  %v10795_v61 = vld [vmem:[#allocation4 + $0x1fc] ss:$36 sps:$4 sm:$0xff]   ;;  %v14568_v5 = vpop.f32.mrf.mxu0 }
 0x2f5   : > { %9460 = vmatprep.mubr.msk.bf16.mxu1 %vm4517_vm8, %v14318_v42  ;;  %5645 = vmatprep.subr.bf16.mxu1 %v10726_v37  ;;  %v10798_v37 = vld [vmem:[#allocation4 + $0x204] ss:$36 sps:$4 sm:$0xff]  }
 0x2f6   : > { %5893 = vmatprep.subr.bf16.mxu0 %v10729_v32  ;;  %v10793_v32 = vld [vmem:[#allocation4 + $0x1f8] ss:$36 sps:$4 sm:$0xff]  }
 0x2f7   : > { %5446 = vmatmul.mubr.bf16.gmra.mxu0 %v14300_v49 }
 0x2f8   : > { %5646 = vmatpush1.bf16.msra.mxu1 %v10724_v63  ;;  %5894 = vmatpush1.bf16.msra.mxu0 %v10727_v33  ;;  %v10796_v63 = vld [vmem:[#allocation4 + $0x200] ss:$36 sps:$4 sm:$0xff]  }
 0x2f9   : > { %9505 = vmatprep.mubr.msk.bf16.mxu0 %vm4517_vm8, %v14406_v57  ;;  %5647 = vmatprep.subr.bf16.mxu1 %v10732_v19  ;;  %v10804_v33 = vld [vmem:[#allocation4 + $0x1bc] ss:$36 sps:$4 sm:$0xff]   ;;  %v10807_v19 = vld [vmem:[#allocation4 + $0x16c] ss:$36 sps:$4 sm:$0xff]  }
 0x2fa   : > { %5895 = vmatprep.subr.bf16.mxu0 %v10735_v4  ;;  %v10805_v4 = vld [vmem:[#allocation4 + $0x168] ss:$36 sps:$4 sm:$0xff]  }
 0x2fb   : > { %5200 = vmatmul.mubr.bf16.gmra.mxu1 %v14289_v59 }
 0x2fc   : > { %5648 = vmatpush1.bf16.msra.mxu1 %v10730_v15  ;;  %5896 = vmatpush1.bf16.msra.mxu0 %v10733_v20  ;;  %v10813_v15 = vld [vmem:[#allocation4 + $0x124] ss:$36 sps:$4 sm:$0xff]   ;;  %v10816_v20 = vld [vmem:[#allocation4 + $0x12c] ss:$36 sps:$4 sm:$0xff]  }
 0x2fd   : > { %9461 = vmatprep.mubr.msk.bf16.mxu1 %vm4517_vm8, %v14423_v22  ;;  %5649 = vmatprep.subr.bf16.mxu1 %v10738_v39  ;;  %v10811_v39 = vld [vmem:[#allocation4 + $0x120] ss:$36 sps:$4 sm:$0xff]  }
 0x2fe   : > { %5897 = vmatprep.subr.bf16.mxu0 %v10741_v14  ;;  %v10814_v14 = vld [vmem:[#allocation4 + $0x128] ss:$36 sps:$4 sm:$0xff]  }
 0x2ff   : > { %5456 = vmatmul.mubr.bf16.gmra.mxu0 %v14324_v34 }
 0x300   : > { %5650 = vmatpush1.bf16.msra.mxu1 %v10736_v2  ;;  %5898 = vmatpush1.bf16.msra.mxu0 %v10739_v50  ;;  %v10822_v2 = vld [vmem:[#allocation4 + $0xe4] ss:$36 sps:$4 sm:$0xff]   ;;  %v10817_v50 = vld [vmem:[#allocation4 + $0xd8] ss:$36 sps:$4 sm:$0xff]  }
 0x301   : > { %9590 = vmatprep.mubr.msk.bf16.mxu0 %vm4517_vm8, %v14305_v23  ;;  %5651 = vmatprep.subr.bf16.mxu1 %v10744_v35  ;;  %v10768_v23 = vld [vmem:[%s15889_s6 + $0x424] ss:$8 sps:$4 sm:$0xff]  }
 0x302   : > { %5899 = vmatprep.subr.bf16.mxu0 %v10747_v1  ;;  %v10820_v35 = vld [vmem:[#allocation4 + $0xe0] ss:$36 sps:$4 sm:$0xff]   ;;  %v10825_v1 = vld [vmem:[#allocation4 + $0x94] ss:$36 sps:$4 sm:$0xff]  }
 0x303   : > { %5210 = vmatmul.mubr.bf16.gmra.mxu1 %v14312_v25 }
 0x304   : > { %5652 = vmatpush1.bf16.msra.mxu1 %v10742_v10  ;;  %5900 = vmatpush1.bf16.msra.mxu0 %v10745_v6  ;;  %v10828_v10 = vld [vmem:[#allocation4 + $0x9c] ss:$36 sps:$4 sm:$0xff]   ;;  %v10823_v6 = vld [vmem:[#allocation4 + $0x90] ss:$36 sps:$4 sm:$0xff]  }
 0x305   : > { %9546 = vmatprep.mubr.msk.bf16.mxu1 %vm4517_vm8, %v14295_v24  ;;  %5653 = vmatprep.subr.bf16.mxu1 %v10750_v11  ;;  %v10757_v24 = vld [vmem:[%s15889_s6 + $0x3a0] ss:$8 sps:$4 sm:$0xff]  }
 0x306   : > { %5913 = vmatprep.subr.bf16.mxu0 %v10753_v28  ;;  %v10826_v11 = vld [vmem:[#allocation4 + $0x98] ss:$36 sps:$4 sm:$0xff]   ;;  %v10831_v28 = vld [vmem:[#allocation4 + $0x4c] ss:$36 sps:$4 sm:$0xff]  }
 0x308   : > { %5654 = vmatpush1.bf16.msra.mxu1 %v10748_v45  ;;  %5914 = vmatpush2.bf16.msra.mxu0 %v10751_v17  ;;  %v10834_v45 = vld [vmem:[#allocation4 + $0x54] ss:$36 sps:$4 sm:$0xff]   ;;  %v10829_v17 = vld [vmem:[#allocation4 + $0x48] ss:$36 sps:$4 sm:$0xff]  }
 0x309   : > { %5667 = vmatprep.subr.bf16.mxu1 %v10756_v51  ;;  %5915 = vmatprep.subr.bf16.mxu0 %v10759_v46  ;;  %v10832_v51 = vld [vmem:[#allocation4 + $0x50] ss:$36 sps:$4 sm:$0xff]   ;;  %v10835_v46 = vld [vmem:[#allocation4] ss:$36 sps:$4 sm:$0xff]  }
 0x30c   : > { %5668 = vmatpush2.bf16.msra.mxu1 %v10754_v29  ;;  %5916 = vmatpush2.bf16.msra.mxu0 %v10757_v24  ;;  %v10837_v29 = vld [vmem:[#allocation4 + $0x4] ss:$36 sps:$4 sm:$0xff]  }
 0x30d   : > { %5669 = vmatprep.subr.bf16.mxu1 %v10762_v47  ;;  %7076 = vmatprep.subr.bf16.mxu0 %v10795_v61  ;;  %v10838_v24 = vld [vmem:[#allocation4 + $0x8] ss:$36 sps:$4 sm:$0xff]  }
 0x30e   : > { %v10840_v47 = vld [vmem:[#allocation4 + $0xc] ss:$36 sps:$4 sm:$0xff]  }
 0x30f   : > { %5918 = vmatmul.mubr.bf16.vlgmr.msra.gmra.mxu0 %v14278_v55  ;;  %v10766_v55 = vld [vmem:[%s15889_s6 + $0x420] ss:$8 sps:$4 sm:$0xff]  }
 0x310   : > { %5670 = vmatpush2.bf16.msra.mxu1 %v10760_v31  ;;  %9591 = vmatprep.mubr.msk.bf16.mxu0 %vm4517_vm8, %v14329_v44  ;;  %v10780_v44 = vld [vmem:[%s15889_s6 + $0x3e4] ss:$8 sps:$4 sm:$0xff]  }
 0x311   : > { %6131 = vmatprep.subr.bf16.mxu1 %v10765_v62  ;;  %7077 = vmatpush1.bf16.msra.mxu0 %v10793_v32  ;;  %v10843_v31 = vld [vmem:[#allocation4 + $0x31c] ss:$36 sps:$4 sm:$0xff]   ;;  %v10846_v62 = vld [vmem:[#allocation4 + $0x324] ss:$36 sps:$4 sm:$0xff]  }
 0x313   : > { %5672 = vmatmul.mubr.bf16.vlgmr.msra.gmra.mxu1 %v14257_v36  ;;  %v10769_v36 = vld [vmem:[%s15889_s6 + $0x410] ss:$8 sps:$4 sm:$0xff]  }
 0x314   : > { %9547 = vmatprep.mubr.msk.bf16.mxu1 %vm4517_vm8, %v14318_v42  ;;  %6132 = vmatpush1.bf16.msra.mxu1 %v10763_v58  ;;  %v10841_v58 = vld [vmem:[#allocation4 + $0x318] ss:$36 sps:$4 sm:$0xff]  }
 0x315   : > { %6133 = vmatprep.subr.bf16.mxu1 %v10768_v23  ;;  %v10844_v23 = vld [vmem:[#allocation4 + $0x320] ss:$36 sps:$4 sm:$0xff]  }
 0x317   : > { %5928 = vmatmul.mubr.bf16.gmra.mxu0 %v14300_v49  ;;  %v10772_v49 = vld [vmem:[%s15889_s6 + $0x400] ss:$8 sps:$4 sm:$0xff]  }
 0x318   : > { %9592 = vmatprep.mubr.msk.bf16.mxu0 %vm4517_vm8, %v14406_v57  ;;  %6134 = vmatpush1.bf16.msra.mxu1 %v10766_v55  ;;  %v10808_v57 = vld [vmem:[#allocation4 + $0x170] ss:$36 sps:$4 sm:$0xff]  }
 0x319   : > { %6135 = vmatprep.subr.bf16.mxu1 %v10771_v43  ;;  %v10849_v55 = vld [vmem:[#allocation4 + $0x2d4] ss:$36 sps:$4 sm:$0xff]   ;;  %v10852_v43 = vld [vmem:[#allocation4 + $0x2dc] ss:$36 sps:$4 sm:$0xff]  }
 0x31b   : > { %5682 = vmatmul.mubr.bf16.gmra.mxu1 %v14289_v59 }
 0x31c   : > { %9548 = vmatprep.mubr.msk.bf16.mxu1 %vm4517_vm8, %v14423_v22  ;;  %6136 = vmatpush1.bf16.msra.mxu1 %v10769_v36  ;;  %v10847_v36 = vld [vmem:[#allocation4 + $0x2d0] ss:$36 sps:$4 sm:$0xff]  }
 0x31d   : > { %6137 = vmatprep.subr.bf16.mxu1 %v10774_v0  ;;  %v10850_v0 = vld [vmem:[#allocation4 + $0x2d8] ss:$36 sps:$4 sm:$0xff]  }
 0x31f   : > { %5938 = vmatmul.mubr.bf16.gmra.mxu0 %v14324_v34  ;;  %v10778_v34 = vld [vmem:[%s15889_s6 + $0x3e0] ss:$8 sps:$4 sm:$0xff]  }
 0x320   : > { %6138 = vmatpush1.bf16.msra.mxu1 %v10772_v49  ;;  %9593 = vmatprep.mubr.msk.bf16.mxu0 %vm4517_vm8, %v5751_v40  ;;  %v10858_v49 = vld [vmem:[#allocation4 + $0x294] ss:$36 sps:$4 sm:$0xff]   ;;  %v10853_v40 = vld [vmem:[#allocation4 + $0x288] ss:$36 sps:$4 sm:$0xff]  }
 0x321   : > { %6139 = vmatprep.subr.bf16.mxu1 %v10777_v9  ;;  %v10856_v9 = vld [vmem:[#allocation4 + $0x290] ss:$36 sps:$4 sm:$0xff]  }
 0x323   : > { %5692 = vmatmul.mubr.bf16.gmra.mxu1 %v14312_v25 }
 0x324   : > { %9549 = vmatprep.mubr.msk.bf16.mxu1 %vm4517_vm8, %v5505_v12  ;;  %6140 = vmatpush1.bf16.msra.mxu1 %v10775_v60  ;;  %v14570_v60 = vpop.f32.mrf.mxu1 }
 0x325   : > { %6141 = vmatprep.subr.bf16.mxu1 %v10780_v44  ;;  %v14572_v44 = vpop.f32.mrf.mxu0 }
 0x327   : > { %5948 = vmatmul.mubr.bf16.gmra.mxu0 %v5750_v53 }
 0x328   : > { %6142 = vmatpush1.bf16.msra.mxu1 %v10778_v34  ;;  %v10862_v34 = vld [vmem:[#allocation4 + $0x248] ss:$36 sps:$4 sm:$0xff]  }
 0x329   : > { %6143 = vmatprep.subr.bf16.mxu1 %v10783_v54  ;;  %v14574_v54 = vpop.f32.mrf.mxu1 }
 0x32b   : > { %5702 = vmatmul.mubr.bf16.gmra.mxu1 %v5504_v26 }
 0x32c   : > { %6144 = vmatpush1.bf16.msra.mxu1 %v10781_v8  ;;  %9634 = vmatprep.mubr.msk.bf16.mxu1 %vm4517_vm8, %v14318_v42  ;;  %v10790_v42 = vld [vmem:[%s15889_s6 + $0x440] ss:$8 sps:$4 sm:$0xff]   ;;  %v14576_v8 = vpop.f32.mrf.mxu0 }
 0x32d   : > { %6145 = vmatprep.subr.bf16.mxu1 %v10786_v48  ;;  %v10870_v48 = vld [vmem:[#allocation4 + $0x214] ss:$36 sps:$4 sm:$0xff]  }
 0x330   : > { %6146 = vmatpush1.bf16.msra.mxu1 %v10784_v18  ;;  %v14578_v18 = vpop.f32.mrf.mxu1 }
 0x331   : > { %6159 = vmatprep.subr.bf16.mxu1 %v10789_v52  ;;  %v14580_v52 = vpop.f32.mrf.mxu0 }
 0x334   : > { %6160 = vmatpush2.bf16.msra.mxu1 %v10787_v38 }
 0x335   : > { %6161 = vmatprep.subr.bf16.mxu1 %v10792_v21  ;;  %v14584_v21 = vpop.f32.mrf.mxu1 }
 0x338   : > { %6162 = vmatpush2.bf16.msra.mxu1 %v10790_v42 }
 0x339   : > { %7149 = vmatprep.subr.bf16.mxu1 %v10798_v37 }
 0x33b   : > { %6164 = vmatmul.mubr.bf16.vlgmr.msra.gmra.mxu1 %v14289_v59  ;;  %v10801_v59 = vld [vmem:[#allocation4 + $0x1b4] ss:$36 sps:$4 sm:$0xff]  }
 0x33c   : > { %9635 = vmatprep.mubr.msk.bf16.mxu1 %vm4517_vm8, %v14423_v22  ;;  %7150 = vmatpush1.bf16.msra.mxu1 %v10796_v63  ;;  %v10819_v22 = vld [vmem:[#allocation4 + $0xdc] ss:$36 sps:$4 sm:$0xff]  }
 0x33d   : > { %7078 = vmatprep.subr.bf16.mxu0 %v10801_v59  ;;  %7151 = vmatprep.subr.bf16.mxu1 %v10804_v33 }
 0x33e   : > { %7079 = vmatpush1.bf16.msra.mxu0 %v10799_v3 }
 0x33f   : > { %7080 = vmatprep.subr.bf16.mxu0 %v10807_v19 }
 0x342   : > { %7081 = vmatpush1.bf16.msra.mxu0 %v10805_v4 }
 0x343   : > { %6174 = vmatmul.mubr.bf16.gmra.mxu1 %v14312_v25  ;;  %v10802_v25 = vld [vmem:[#allocation4 + $0x1b8] ss:$36 sps:$4 sm:$0xff]   ;;  %7082 = vmatprep.subr.bf16.mxu0 %v10813_v15 }
 0x344   : > { %9636 = vmatprep.mubr.msk.bf16.mxu1 %vm4517_vm8, %v5505_v12  ;;  %7152 = vmatpush1.bf16.msra.mxu1 %v10802_v25  ;;  %v10861_v12 = vld [vmem:[#allocation4 + $0x244] ss:$36 sps:$4 sm:$0xff]  }
 0x345   : > { %7153 = vmatprep.subr.bf16.mxu1 %v10810_v13 }
 0x346   : > { %7083 = vmatpush1.bf16.msra.mxu0 %v10811_v39 }
 0x347   : > { %7084 = vmatprep.subr.bf16.mxu0 %v10819_v22 }
 0x348   : > { %7154 = vmatpush1.bf16.msra.mxu1 %v10808_v57 }
 0x349   : > { %7155 = vmatprep.subr.bf16.mxu1 %v10816_v20 }
 0x34a   : > { %7085 = vmatpush1.bf16.msra.mxu0 %v10817_v50 }
 0x34b   : > { %6184 = vmatmul.mubr.bf16.gmra.mxu1 %v5504_v26  ;;  %7086 = vmatprep.subr.bf16.mxu0 %v10825_v1  ;;  %v10867_v26 = vld [vmem:[#allocation4 + $0x20c] ss:$36 sps:$4 sm:$0xff]  }
 0x34c   : > { %9637 = vmatprep.mubr.msk.bf16.mxu1 %vm4517_vm8, %v5997_v41  ;;  %7156 = vmatpush1.bf16.msra.mxu1 %v10814_v14  ;;  %vm16228_vm8 = vmmov %vm16224_vm0 }
 0x34d   : > { %7157 = vmatprep.subr.bf16.mxu1 %v10822_v2 }
 0x34e   : > { %7087 = vmatpush1.bf16.msra.mxu0 %v10823_v6 }
 0x34f   : > { %7088 = vmatprep.subr.bf16.mxu0 %v10831_v28 }
 0x350   : > { %7158 = vmatpush1.bf16.msra.mxu1 %v10820_v35 }
 0x351   : > { %7159 = vmatprep.subr.bf16.mxu1 %v10828_v10 }
 0x352   : > { %7089 = vmatpush1.bf16.msra.mxu0 %v10829_v17 }
 0x353   : > { %6194 = vmatmul.mubr.bf16.gmra.mxu1 %v5750_v53  ;;  %7090 = vmatprep.subr.bf16.mxu0 %v10837_v29  ;;  %v10859_v53 = vld [vmem:[#allocation4 + $0x240] ss:$36 sps:$4 sm:$0xff]  }
 0x354   : > { %7160 = vmatpush1.bf16.msra.mxu1 %v10826_v11 }
 0x355   : > { %7161 = vmatprep.subr.bf16.mxu1 %v10834_v45 }
 0x356   : > { %7091 = vmatpush1.bf16.msra.mxu0 %v10835_v46 }
 0x357   : > { %7100 = vmatprep.subr.bf16.mxu0 %v10843_v31 }
 0x358   : > { %7162 = vmatpush1.bf16.msra.mxu1 %v10832_v51 }
 0x359   : > { %7163 = vmatprep.subr.bf16.mxu1 %v10840_v47 }
 0x35a   : > { %7101 = vmatpush2.bf16.msra.mxu0 %v10841_v58 }
 0x35b   : > { %7102 = vmatprep.subr.bf16.mxu0 %v10849_v55 }
 0x35c   : > { %7164 = vmatpush1.bf16.msra.mxu1 %v10838_v24 }
 0x35d   : > { %7173 = vmatprep.subr.bf16.mxu1 %v10846_v62 }
 0x35e   : > { %7103 = vmatpush2.bf16.msra.mxu0 %v10847_v36 }
 0x35f   : > { %7104 = vmatprep.subr.bf16.mxu0 %v10855_v27 }
 0x360   : > { %7174 = vmatpush2.bf16.msra.mxu1 %v10844_v23 }
 0x361   : > { %7175 = vmatprep.subr.bf16.mxu1 %v10852_v43 }
 0x362   : > { %7105 = vmatpush2.bf16.msra.mxu0 %v10853_v40 }
 0x363   : > { %7106 = vmatprep.subr.bf16.mxu0 %v10861_v12 }
 0x364   : > { %7176 = vmatpush2.bf16.msra.mxu1 %v10850_v0 }
 0x365   : > { %7177 = vmatprep.subr.bf16.mxu1 %v10858_v49 }
 0x366   : > { %7107 = vmatpush2.bf16.msra.mxu0 %v10859_v53 }
 0x367   : > { %7222 = vmatprep.subr.bf16.mxu0 %v10867_v26 }
 0x368   : > { %7178 = vmatpush2.bf16.msra.mxu1 %v10856_v9 }
 0x369   : > { %7179 = vmatprep.subr.bf16.mxu1 %v10864_v16 }
 0x36c   : > { %7180 = vmatpush2.bf16.msra.mxu1 %v10862_v34 }
 0x36d   : > { %7295 = vmatprep.subr.bf16.mxu1 %v10870_v48 }
 0x38f   : > { %v14582_v38 = vpop.f32.mrf.mxu0 }
 0x391   : > { %v14586_v42 = vpop.f32.mrf.mxu0 }
 0x393   : > { %v14588_v30 = vpop.f32.mrf.mxu1  ;;  %v14590_v41 = vpop.f32.mrf.mxu0 }
 0x395   : > { %v14592_v61 = vpop.f32.mrf.mxu1  ;;  %v14594_v37 = vpop.f32.mrf.mxu0 }
 0x397   : > { %v14596_v32 = vpop.f32.mrf.mxu1  ;;  %v14598_v63 = vpop.f32.mrf.mxu0 }
 0x399   : > { %v14600_v59 = vpop.f32.mrf.mxu1  ;;  %v14602_v33 = vpop.f32.mrf.mxu0 }
 0x39b   : > { %v14604_v3 = vpop.f32.mrf.mxu1  ;;  %v14606_v25 = vpop.f32.mrf.mxu0 }
 0x39d   : > { %v14608_v19 = vpop.f32.mrf.mxu1  ;;  %v14610_v13 = vpop.f32.mrf.mxu0 }
 0x39f   : > { %v14612_v4 = vpop.f32.mrf.mxu1  ;;  %v14614_v57 = vpop.f32.mrf.mxu0 }
 0x3a1   : > { %v14616_v15 = vpop.f32.mrf.mxu1  ;;  %v14618_v20 = vpop.f32.mrf.mxu0 }
 0x3a3   : > { %v14620_v39 = vpop.f32.mrf.mxu1  ;;  %v14622_v14 = vpop.f32.mrf.mxu0 }
 0x3a4   : > { %16150 = vst [vmem:[#allocation63_spill] sm:$0xff] %v14622_v14 }
 0x3a5   : > { %v14624_v22 = vpop.f32.mrf.mxu1  ;;  %v14626_v2 = vpop.f32.mrf.mxu0 }
 0x3a6   : > { %16151 = vst [vmem:[#allocation42_spill] sm:$0xff] %v14626_v2 }
 0x3a7   : > { %v14628_v50 = vpop.f32.mrf.mxu1  ;;  %v5427_v35 = vpop.f32.mrf.mxu0 }
 0x3a8   : > { %16152 = vst [vmem:[#allocation43_spill] sm:$0xff] %v14628_v50 }
 0x3a9   : > { %v14630_v1 = vpop.f32.mrf.mxu1  ;;  %v14632_v10 = vpop.f32.mrf.mxu0 }
 0x3aa   : > { %16153 = vst [vmem:[#allocation44_spill] sm:$0xff] %v14630_v1 }
 0x3ab   : > { %v5181_v6 = vpop.f32.mrf.mxu1  ;;  %v14634_v11 = vpop.f32.mrf.mxu0 }
 0x3ad   : > { %v5183_v28 = vpop.f32.mrf.mxu1  ;;  %v14636_v45 = vpop.f32.mrf.mxu0 }
 0x3af   : > { %v5185_v17 = vpop.f32.mrf.mxu1  ;;  %v14638_v51 = vpop.f32.mrf.mxu0 }
 0x3b1   : > { %v5187_v46 = vpop.f32.mrf.mxu1  ;;  %v14640_v29 = vpop.f32.mrf.mxu0 }
 0x3b3   : > { %v5191_v24 = vpop.f32.mrf.mxu1  ;;  %v14642_v47 = vpop.f32.mrf.mxu0 }
 0x3b4   : > { %16154 = vst [vmem:[#allocation45_spill] sm:$0xff] %v14642_v47 }
 0x3b5   : > { %v5193_v31 = vpop.f32.mrf.mxu1  ;;  %v14646_v58 = vpop.f32.mrf.mxu0 }
 0x3b6   : > { %16155 = vst [vmem:[#allocation48_spill] sm:$0xff] %v14646_v58 }
 0x3b7   : > { %v14644_v62 = vpop.f32.mrf.mxu1  ;;  %v14652_v43 = vpop.f32.mrf.mxu0 }
 0x3b8   : > { %16156 = vst [vmem:[#allocation64_spill] sm:$0xff] %v14652_v43 }
 0x3b9   : > { %v14648_v23 = vpop.f32.mrf.mxu1  ;;  %v14658_v27 = vpop.f32.mrf.mxu0 }
 0x3ba   : > { %16159 = vst [vmem:[#allocation50_spill] sm:$0xff] %v14658_v27 }
 0x3bb   : > { %v14650_v55 = vpop.f32.mrf.mxu1  ;;  %v14662_v40 = vpop.f32.mrf.mxu0 }
 0x3bc   : > { %16161 = vst [vmem:[#allocation69_spill] sm:$0xff] %v14662_v40 }
 0x3bd   : > { %v14654_v36 = vpop.f32.mrf.mxu1  ;;  %v14666_v12 = vpop.f32.mrf.mxu0 }
 0x3be   : > { %16157 = vst [vmem:[#allocation66_spill] sm:$0xff] %v14654_v36  ;;  %16163 = vst [vmem:[#allocation53_spill] sm:$0xff] %v14666_v12 }
 0x3bf   : > { %v14656_v0 = vpop.f32.mrf.mxu1  ;;  %v14670_v53 = vpop.f32.mrf.mxu0 }
 0x3c0   : > { %16158 = vst [vmem:[#allocation49_spill] sm:$0xff] %v14656_v0  ;;  %16165 = vst [vmem:[#allocation67_spill] sm:$0xff] %v14670_v53 }
 0x3c1   : > { %v14660_v49 = vpop.f32.mrf.mxu1  ;;  %v14674_v26 = vpop.f32.mrf.mxu0 }
 0x3c2   : > { %16160 = vst [vmem:[#allocation51_spill] sm:$0xff] %v14660_v49  ;;  %16167 = vst [vmem:[#allocation47_spill] sm:$0xff] %v14674_v26 }
 0x3c3   : > { %v14664_v9 = vpop.f32.mrf.mxu1  ;;  %v14678_v27 = vpop.f32.mrf.mxu0 }
 0x3c4   : > { %16162 = vst [vmem:[#allocation65_spill] sm:$0xff] %v14664_v9  ;;  %16169 = vst [vmem:[#allocation57_spill] sm:$0xff] %v14678_v27 }
 0x3c5   : > { %v14668_v16 = vpop.f32.mrf.mxu1  ;;  %v14680_v40 = vpop.f32.mrf.mxu0 }
 0x3c6   : > { %16164 = vst [vmem:[#allocation55_spill] sm:$0xff] %v14668_v16  ;;  %16170 = vst [vmem:[#allocation68_spill] sm:$0xff] %v14680_v40 }
 0x3c7   : > { %v14672_v34 = vpop.f32.mrf.mxu1 }
 0x3c8   : > { %16166 = vst [vmem:[#allocation46_spill] sm:$0xff] %v14672_v34 }
 0x3c9   : > { %v14676_v48 = vpop.f32.mrf.mxu1 }
 0x3ca   : > { %16168 = vst [vmem:[#allocation52_spill] sm:$0xff] %v14676_v48 }
 0x3cf   : > { %v5919_v58 = vpop.f32.mrf.mxu0 }
 0x3d1   : > { %v5921_v16 = vpop.f32.mrf.mxu0 }
 0x3d3   : > { %v5673_v0 = vpop.f32.mrf.mxu1  ;;  %v5923_v26 = vpop.f32.mrf.mxu0 }
 0x3d5   : > { %v5675_v49 = vpop.f32.mrf.mxu1  ;;  %v14692_v27 = vpop.f32.mrf.mxu0 }
 0x3d6   : > { %16176 = vst [vmem:[#allocation71_spill] sm:$0xff] %v14692_v27 }
 0x3d7   : > { %v5677_v43 = vpop.f32.mrf.mxu1  ;;  %v14698_v47 = vpop.f32.mrf.mxu0 }
 0x3d8   : > { %16179 = vst [vmem:[#allocation40_spill] sm:$0xff] %v14698_v47 }
 0x3d9   : > { %v5679_v9 = vpop.f32.mrf.mxu1 }
 0x3db   : > { %v5683_v12 = vpop.f32.mrf.mxu1 }
 0x3dd   : > { %v14682_v36 = vpop.f32.mrf.mxu1 }
 0x3de   : > { %16171 = vst [vmem:[#allocation54_spill] sm:$0xff] %v14682_v36  ;;  %v14704_v36 = vpop.f32.mrf.mxu0 }
 0x3df   : > { %v14684_v53 = vpop.f32.mrf.mxu1 }
 0x3e0   : > { %16172 = vst [vmem:[#allocation56_spill] sm:$0xff] %v14684_v53  ;;  %v4952_v53 = vadd.f32 %v14568_v5, %v14570_v60  ;;  %v4962_v60 = vadd.f32 %v14582_v38, %v14588_v30  ;;  %v4966_v38 = vadd.f32 %v14590_v41, %v14596_v32  ;;  %v4972_v41 = vadd.f32 %v14598_v63, %v14604_v3 }
 0x3e1   : > { %v14686_v34 = vpop.f32.mrf.mxu1  ;;  %v4974_v32 = vadd.f32 %v14602_v33, %v14608_v19 }
 0x3e2   : > { %16173 = vst [vmem:[#allocation70_spill] sm:$0xff] %v14686_v34  ;;  %v5220_v34 = vadd.f32 %v5181_v6, %v4952_v53  ;;  %v5228_v63 = vadd.f32 %v14650_v55, %v4972_v41  ;;  %v16184_v55 = vld [vmem:[#allocation45_spill] sm:$0xff] }
 0x3e3   : > { %v14688_v2 = vpop.f32.mrf.mxu1 }
 0x3e4   : > { %16174 = vst [vmem:[#allocation58_spill] sm:$0xff] %v14688_v2  ;;  %v4954_v2 = vadd.f32 %v14572_v44, %v14574_v54  ;;  %v5466_v50 = vadd.f32 %v5427_v35, %v5220_v34 }
 0x3e5   : > { %v14690_v48 = vpop.f32.mrf.mxu1 }
 0x3e6   : > { %16175 = vst [vmem:[#allocation59_spill] sm:$0xff] %v14690_v48  ;;  %v5221_v27 = vadd.f32 %v5183_v28, %v4954_v2  ;;  %v5712_v54 = vadd.f32 %v5673_v0, %v5466_v50  ;;  %v4976_v28 = vadd.f32 %v14606_v25, %v14612_v4  ;;  %v4982_v25 = vadd.f32 %v14614_v57, %v14620_v39 }
 0x3e7   : > { %v14694_v1 = vpop.f32.mrf.mxu1 }
 0x3e8   : > { %16177 = vst [vmem:[#allocation41_spill] sm:$0xff] %v14694_v1  ;;  %v4956_v1 = vadd.f32 %v14576_v8, %v14578_v18  ;;  %v5467_v6 = vadd.f32 %v14632_v10, %v5221_v27  ;;  %v6220_v8 = vld [vmem:[%s15890_s7] sm:$0x3]  ;;  %v4964_v18 = vadd.f32 %v14586_v42, %v14592_v61 }
 0x3e9   : > { %v14696_v40 = vpop.f32.mrf.mxu1  ;;  %v14734_v50 = vrot.slane %v6220_v8, %v13009_v7  ;;  %v14737_v35 = vrot.slane %v6220_v8, %v12913_v56 }
 0x3ea   : > { %16178 = vst [vmem:[#allocation61_spill] sm:$0xff] %v14696_v40  ;;  %v14712_v40 = vpop.f32.mrf.mxu0  ;;  %v5222_v47 = vadd.f32 %v5185_v17, %v4956_v1  ;;  %v5225_v30 = vadd.f32 %v5193_v31, %v4964_v18  ;;  %v4968_v1 = vadd.f32 %v14594_v37, %v14600_v59  ;;  %v5226_v17 = vadd.f32 %v14644_v62, %v4966_v38 }
 0x3eb   : > { %v14700_v14 = vpop.f32.mrf.mxu1 }
 0x3ec   : > { %16180 = vst [vmem:[#allocation60_spill] sm:$0xff] %v14700_v14  ;;  %v4958_v14 = vadd.f32 %v14580_v52, %v14584_v21  ;;  %v14721_v53 = vpop.f32.mrf.mxu0  ;;  %v5224_v52 = vadd.f32 %v5191_v24, %v4962_v60  ;;  %v5713_v21 = vadd.f32 %v5675_v49, %v5467_v6  ;;  %v5468_v2 = vadd.f32 %v14634_v11, %v5222_v47  ;;  %v16185_v49 = vld [vmem:[#allocation44_spill] sm:$0xff] }
 0x3ed   : > { %v14708_v48 = vpop.f32.mrf.mxu1  ;;  %v5958_v11 = vadd.f32 %v5919_v58, %v5712_v54  ;;  %v4978_v47 = vadd.f32 %v14610_v13, %v14616_v15  ;;  %v5227_v31 = vadd.f32 %v14648_v23, %v4968_v1  ;;  %v5471_v33 = vadd.f32 %v14640_v29, %v5225_v30  ;;  %v16182_v13 = vld [vmem:[#allocation63_spill] sm:$0xff]  ;;  %v16183_v23 = vld [vmem:[#allocation54_spill] sm:$0xff]  ;;  %v16191_v6 = vld [vmem:[#allocation64_spill] sm:$0xff] }
 0x3ee   : > { %v5223_v44 = vadd.f32 %v5187_v46, %v4958_v14  ;;  %v5714_v42 = vadd.f32 %v5677_v43, %v5468_v2  ;;  %v14742_v10 = vpop.f32.mrf.mxu0  ;;  %v5470_v37 = vadd.f32 %v14638_v51, %v5224_v52  ;;  %v4984_v58 = vadd.f32 %v14618_v20, %v14624_v22  ;;  %v16181_v43 = vld [vmem:[#allocation43_spill] sm:$0xff]  ;;  %v16189_v20 = vld [vmem:[#allocation56_spill] sm:$0xff] }
 0x3ef   : > { %v14716_v5 = vpop.f32.mrf.mxu1  ;;  %v4986_v15 = vadd.f32 %v16182_v13, %v16181_v43  ;;  %v5717_v0 = vadd.f32 %v16183_v23, %v5471_v33  ;;  %v5472_v27 = vadd.f32 %v16184_v55, %v5226_v17  ;;  %v5474_v8 = vadd.f32 %v16191_v6, %v5228_v63  ;;  %v16192_v30 = vld [vmem:[#allocation40_spill] sm:$0xff]  ;;  %v16196_v63 = vld [vmem:[#allocation65_spill] sm:$0xff] }
 0x3f0   : > { %v5469_v61 = vadd.f32 %v14636_v45, %v5223_v44  ;;  %v5959_v45 = vadd.f32 %v5921_v16, %v5713_v21  ;;  %v5716_v19 = vadd.f32 %v5683_v12, %v5470_v37  ;;  %v14759_v4 = vpop.f32.mrf.mxu0  ;;  %v5960_v51 = vadd.f32 %v5923_v26, %v5714_v42  ;;  %v16187_v12 = vld [vmem:[#allocation71_spill] sm:$0xff]  ;;  %v16188_v26 = vld [vmem:[#allocation66_spill] sm:$0xff]  ;;  %v16190_v44 = vld [vmem:[#allocation48_spill] sm:$0xff] }
 0x3f1   : > { %v14731_v14 = vpop.f32.mrf.mxu1  ;;  %v5229_v60 = vadd.f32 %v16188_v26, %v4974_v32  ;;  %v5718_v22 = vadd.f32 %v16189_v20, %v5472_v27  ;;  %v5473_v54 = vadd.f32 %v16190_v44, %v5227_v31  ;;  %v16193_v42 = vld [vmem:[#allocation49_spill] sm:$0xff]  ;;  %v16195_v32 = vld [vmem:[#allocation70_spill] sm:$0xff]  ;;  %v5232_v33 = vadd.f32 %v16196_v63, %v4982_v25  ;;  %v10868_v44 = vld [vmem:[#allocation4 + $0x210] ss:$36 sps:$4 sm:$0xff]  }
 0x3f2   : > { %v5715_v24 = vadd.f32 %v5679_v9, %v5469_v61  ;;  %v16186_v9 = vld [vmem:[#allocation42_spill] sm:$0xff]  ;;  %v14777_v52 = vpop.f32.mrf.mxu0  ;;  %v5962_v1 = vadd.f32 %v16192_v30, %v5716_v19  ;;  %v5230_v61 = vadd.f32 %v16193_v42, %v4976_v28  ;;  %v16202_v25 = vld [vmem:[#allocation53_spill] sm:$0xff]  ;;  %v10874_v63 = vld [vmem:[#allocation4 + $0x1c8] ss:$36 sps:$4 sm:$0xff]  }
 0x3f3   : > { %v14769_v16 = vadd.f32 %v16186_v9, %v16185_v49  ;;  %v5719_v17 = vadd.f32 %v16195_v32, %v5473_v54  ;;  %v5964_v28 = vadd.f32 %v14712_v40, %v5718_v22  ;;  %v16201_v9 = vld [vmem:[#allocation69_spill] sm:$0xff]  ;;  %v10865_v22 = vld [vmem:[#allocation4 + $0x208] ss:$36 sps:$4 sm:$0xff]   ;;  %v16203_v54 = vld [vmem:[#allocation46_spill] sm:$0xff] }
 0x3f4   : > { %v5961_v34 = vadd.f32 %v16187_v12, %v5715_v24  ;;  %v5963_v24 = vadd.f32 %v14704_v36, %v5717_v0  ;;  %v16199_v0 = vld [vmem:[#allocation55_spill] sm:$0xff]  ;;  %v5234_v6 = vadd.f32 %v16203_v54, %v4986_v15  ;;  %v10885_v54 = vld [vmem:[#allocation4 + $0x134] ss:$36 sps:$4 sm:$0xff]  }
 0x3f5   : > { %v5233_v27 = vadd.f32 %v16199_v0, %v4984_v58  ;;  %v5965_v20 = vadd.f32 %v14721_v53, %v5719_v17  ;;  %v16204_v58 = vld [vmem:[#allocation41_spill] sm:$0xff]  ;;  %v10873_v30 = vld [vmem:[#allocation4 + $0x1c4] ss:$36 sps:$4 sm:$0xff]  }
 0x3f6   : > { %v16208_v53 = vld [vmem:[#allocation61_spill] sm:$0xff] }
 0x3fb   : > { %v6165_v46 = vpop.f32.mrf.mxu1 }
 0x3fc   : > { %v6204_v59 = vadd.f32 %v6165_v46, %v5958_v11  ;;  %v16194_v11 = vld [vmem:[#allocation51_spill] sm:$0xff] }
 0x3fd   : > { %v6167_v3 = vpop.f32.mrf.mxu1  ;;  %v5231_v41 = vadd.f32 %v16194_v11, %v4978_v47  ;;  %v5945_v47 = vpop.f32.mrf.mxu0 }
 0x3fe   : > { %v6205_v62 = vadd.f32 %v6167_v3, %v5959_v45  ;;  %v6232_v57 = vadd.f32 %v14734_v50, %v6204_v59  ;;  %v16197_v3 = vld [vmem:[#allocation58_spill] sm:$0xff] }
 0x3ff   : > { %v6169_v29 = vpop.f32.mrf.mxu1 }
 0x400   : > { %v6206_v39 = vadd.f32 %v6169_v29, %v5960_v51  ;;  %v6233_v21 = vadd.f32 %v14737_v35, %v6205_v62  ;;  %v6248_v37 = vmax.f32 %v6232_v57, 0.0  ;;  %v5720_v62 = vadd.f32 %v16197_v3, %v5474_v8  ;;  %v16198_v51 = vld [vmem:[#allocation50_spill] sm:$0xff]  ;;  %v16200_v29 = vld [vmem:[#allocation59_spill] sm:$0xff] }
 0x401   : > { %v6171_v18 = vpop.f32.mrf.mxu1  ;;  %v5475_v19 = vadd.f32 %v16198_v51, %v5229_v60  ;;  %v5476_v57 = vadd.f32 %v16201_v9, %v5230_v61 }
 0x402   : > { %v6234_v2 = vadd.f32 %v14734_v50, %v6206_v39  ;;  %v6207_v38 = vadd.f32 %v6171_v18, %v5961_v34  ;;  %v6249_v13 = vmax.f32 %v6233_v21, 0.0  ;;  %v5477_v39 = vadd.f32 %v16202_v25, %v5231_v41  ;;  %v5949_v34 = vpop.f32.mrf.mxu0  ;;  %v16205_v18 = vld [vmem:[#allocation67_spill] sm:$0xff] }
 0x403   : > { %v6175_v46 = vpop.f32.mrf.mxu1  ;;  %v5721_v49 = vadd.f32 %v16200_v29, %v5475_v19  ;;  %v5722_v8 = vadd.f32 %v16204_v58, %v5476_v57  ;;  %v5478_v21 = vadd.f32 %v16205_v18, %v5232_v33  ;;  %v16209_v41 = vld [vmem:[#allocation47_spill] sm:$0xff]  ;;  %v16210_v33 = vld [vmem:[#allocation52_spill] sm:$0xff]  ;;  %v16212_v29 = vld [vmem:[#allocation57_spill] sm:$0xff] }
 0x404   : > { %v6250_v59 = vmax.f32 %v6234_v2, 0.0  ;;  %v6235_v45 = vadd.f32 %v14737_v35, %v6207_v38  ;;  %v6208_v31 = vadd.f32 %v6175_v46, %v5962_v1  ;;  %v5966_v38 = vadd.f32 %v14742_v10, %v5720_v62  ;;  %v10876_v1 = vld [vmem:[#allocation4 + $0x1cc] ss:$36 sps:$4 sm:$0xff]   ;;  %v5951_v46 = vpop.f32.mrf.mxu0 }
 0x405   : > { %v6177_v43 = vpop.f32.mrf.mxu1  ;;  %v5723_v15 = vadd.f32 %v16208_v53, %v5477_v39  ;;  %v5479_v32 = vadd.f32 %v16209_v41, %v5233_v27  ;;  %v5967_v10 = vadd.f32 %v14759_v4, %v5721_v49  ;;  %v5235_v3 = vadd.f32 %v16210_v33, %v14769_v16  ;;  %v16211_v62 = vld [vmem:[#allocation60_spill] sm:$0xff] }
 0x406   : > { %v14791_v23 = vpack.c.bf16 %v6250_v59, %v6248_v37  ;;  %v6251_v55 = vmax.f32 %v6235_v45, 0.0  ;;  %v6209_v36 = vadd.f32 %v6177_v43, %v5963_v24  ;;  %v6236_v40 = vadd.f32 %v14734_v50, %v6208_v31  ;;  %v10871_v31 = vld [vmem:[#allocation4 + $0x1c0] ss:$36 sps:$4 sm:$0xff]   ;;  %v5953_v57 = vpop.f32.mrf.mxu0 }
 0x407   : > { %v6179_v12 = vpop.f32.mrf.mxu1  ;;  %v5724_v51 = vadd.f32 %v16211_v62, %v5478_v21  ;;  %v5968_v4 = vadd.f32 %v14777_v52, %v5722_v8  ;;  %v10879_v43 = vld [vmem:[#allocation4 + $0x17c] ss:$36 sps:$4 sm:$0xff]   ;;  %v5725_v27 = vadd.f32 %v14708_v48, %v5479_v32  ;;  %v5480_v49 = vadd.f32 %v16212_v29, %v5234_v6  ;;  %v10900_v62 = vld [vmem:[#allocation4 + $0xac] ss:$36 sps:$4 sm:$0xff]  }
 0x408   : > { %v14797_v26 = vpack.c.bf16 %v6251_v55, %v6249_v13  ;;  %v6210_v60 = vadd.f32 %v6179_v12, %v5964_v28  ;;  %v6237_v42 = vadd.f32 %v14737_v35, %v6209_v36  ;;  %v6252_v24 = vmax.f32 %v6236_v40, 0.0  ;;  %v10882_v28 = vld [vmem:[#allocation4 + $0x184] ss:$36 sps:$4 sm:$0xff]   ;;  %v10877_v52 = vld [vmem:[#allocation4 + $0x178] ss:$36 sps:$4 sm:$0xff]   ;;  %v5955_v21 = vpop.f32.mrf.mxu0 }
 0x409   : > { %v6181_v2 = vpop.f32.mrf.mxu1  ;;  %v5969_v16 = vadd.f32 %v5945_v47, %v5723_v15  ;;  %v10880_v40 = vld [vmem:[#allocation4 + $0x180] ss:$36 sps:$4 sm:$0xff]   ;;  %v10894_v15 = vld [vmem:[#allocation4 + $0xf4] ss:$36 sps:$4 sm:$0xff]  }
 0x40a   : > { %v6238_v61 = vadd.f32 %v14734_v50, %v6210_v60  ;;  %v6211_v11 = vadd.f32 %v6181_v2, %v5965_v20  ;;  %9746 = vmatprep.mubr.msk.bf16.mxu0 %vm16206_vm15, %v14797_v26  ;;  %9750 = vmatprep.mubr.msk.bf16.mxu1 %vm16207_vm4, %v14797_v26  ;;  %v6253_v13 = vmax.f32 %v6237_v42, 0.0  ;;  %v5970_v60 = vadd.f32 %v5949_v34, %v5724_v51  ;;  %v10888_v47 = vld [vmem:[#allocation4 + $0x13c] ss:$36 sps:$4 sm:$0xff]   ;;  %v10883_v42 = vld [vmem:[#allocation4 + $0x130] ss:$36 sps:$4 sm:$0xff]   ;;  %vm16229_vm15 = vmmov %vm16224_vm0 }
 0x40b   : > { %v6185_v17 = vpop.f32.mrf.mxu1  ;;  %7109 = vmatmul.mubr.bf16.vlgmr.msra.gmra.mxu0 %v14791_v23  ;;  %7182 = vmatmul.mubr.bf16.vlgmr.msra.gmra.mxu1 %v14791_v23  ;;  %v5726_v20 = vadd.f32 %v14716_v5, %v5480_v49  ;;  %v5971_v34 = vadd.f32 %v5951_v46, %v5725_v27  ;;  %v10906_v27 = vld [vmem:[#allocation4 + $0x64] ss:$36 sps:$4 sm:$0xff]   ;;  %vm16231_vm4 = vmmov %vm16224_vm0 }
 0x40c   : > { %v6254_v37 = vmax.f32 %v6238_v61, 0.0  ;;  %v6239_v59 = vadd.f32 %v14737_v35, %v6211_v11  ;;  %v6212_v45 = vadd.f32 %v6185_v17, %v5966_v38  ;;  %7223 = vmatpush1.bf16.msra.mxu0 %v10865_v22  ;;  %7296 = vmatpush1.bf16.msra.mxu1 %v10868_v44  ;;  %v16213_v22 = vld [vmem:[#allocation68_spill] sm:$0xff]  ;;  %v10886_v61 = vld [vmem:[#allocation4 + $0x138] ss:$36 sps:$4 sm:$0xff]  }
 0x40d   : > { %v6187_v19 = vpop.f32.mrf.mxu1  ;;  %7224 = vmatprep.subr.bf16.mxu0 %v10873_v30  ;;  %7297 = vmatprep.subr.bf16.mxu1 %v10876_v1  ;;  %v5481_v44 = vadd.f32 %v16213_v22, %v5235_v3  ;;  %v5972_v11 = vadd.f32 %v5953_v57, %v5726_v20  ;;  %v10897_v3 = vld [vmem:[#allocation4 + $0xa4] ss:$36 sps:$4 sm:$0xff]   ;;  %v10901_v57 = vld [vmem:[#allocation4 + $0x58] ss:$36 sps:$4 sm:$0xff]  }
 0x40e   : > { %v14821_v55 = vpack.c.bf16 %v6254_v37, %v6252_v24  ;;  %v6255_v36 = vmax.f32 %v6239_v59, 0.0  ;;  %v6213_v0 = vadd.f32 %v6187_v19, %v5967_v10  ;;  %v6240_v39 = vadd.f32 %v14734_v50, %v6212_v45  ;;  %v10918_v20 = vld [vmem:[#allocation4 + $0x334] ss:$36 sps:$4 sm:$0xff]   ;;  %v10913_v22 = vld [vmem:[#allocation4 + $0x328] ss:$36 sps:$4 sm:$0xff]  }
 0x40f   : > { %v6189_v9 = vpop.f32.mrf.mxu1  ;;  %v5727_v5 = vadd.f32 %v14731_v14, %v5481_v44  ;;  %v10891_v14 = vld [vmem:[#allocation4 + $0xec] ss:$36 sps:$4 sm:$0xff]  }
 0x410   : > { %v14825_v25 = vpack.c.bf16 %v6255_v36, %v6253_v13  ;;  %v6214_v12 = vadd.f32 %v6189_v9, %v5968_v4  ;;  %7225 = vmatpush1.bf16.msra.mxu0 %v10871_v31  ;;  %7298 = vmatpush1.bf16.msra.mxu1 %v10874_v63  ;;  %v6241_v6 = vadd.f32 %v14737_v35, %v6213_v0  ;;  %v6256_v2 = vmax.f32 %v6240_v39, 0.0  ;;  %v10889_v31 = vld [vmem:[#allocation4 + $0xe8] ss:$36 sps:$4 sm:$0xff]   ;;  %v10892_v63 = vld [vmem:[#allocation4 + $0xf0] ss:$36 sps:$4 sm:$0xff]  }
 0x411   : > { %v6191_v48 = vpop.f32.mrf.mxu1  ;;  %7226 = vmatprep.subr.bf16.mxu0 %v10879_v43  ;;  %7299 = vmatprep.subr.bf16.mxu1 %v10882_v28  ;;  %v5973_v46 = vadd.f32 %v5955_v21, %v5727_v5  ;;  %v10895_v36 = vld [vmem:[#allocation4 + $0xa0] ss:$36 sps:$4 sm:$0xff]   ;;  %v10898_v0 = vld [vmem:[#allocation4 + $0xa8] ss:$36 sps:$4 sm:$0xff]   ;;  %v10916_v44 = vld [vmem:[#allocation4 + $0x330] ss:$36 sps:$4 sm:$0xff]  }
 0x412   : > { %v6242_v58 = vadd.f32 %v14734_v50, %v6214_v12  ;;  %v6215_v8 = vadd.f32 %v6191_v48, %v5969_v16  ;;  %9747 = vmatprep.mubr.msk.bf16.mxu0 %vm16214_vm5, %v14825_v25  ;;  %9751 = vmatprep.mubr.msk.bf16.mxu1 %vm16215_vm6, %v14825_v25  ;;  %v6257_v41 = vmax.f32 %v6241_v6, 0.0  ;;  %v10904_v39 = vld [vmem:[#allocation4 + $0x60] ss:$36 sps:$4 sm:$0xff]   ;;  %v10922_v6 = vld [vmem:[#allocation4 + $0x2e8] ss:$36 sps:$4 sm:$0xff]   ;;  %vm16247_vm5 = vmmov %vm16224_vm0 }
 0x413   : > { %v6195_v18 = vpop.f32.mrf.mxu1  ;;  %7119 = vmatmul.mubr.bf16.gmra.mxu0 %v14821_v55  ;;  %7192 = vmatmul.mubr.bf16.gmra.mxu1 %v14821_v55  ;;  %v10912_v12 = vld [vmem:[#allocation4 + $0x1c] ss:$36 sps:$4 sm:$0xff]   ;;  %v10921_v48 = vld [vmem:[#allocation4 + $0x2e4] ss:$36 sps:$4 sm:$0xff]   ;;  %vm16249_vm6 = vmmov %vm16224_vm0 }
 0x414   : > { %v6258_v38 = vmax.f32 %v6242_v58, 0.0  ;;  %v6243_v30 = vadd.f32 %v14737_v35, %v6215_v8  ;;  %v6216_v1 = vadd.f32 %v6195_v18, %v5970_v60  ;;  %7227 = vmatpush1.bf16.msra.mxu0 %v10877_v52  ;;  %7300 = vmatpush1.bf16.msra.mxu1 %v10880_v40  ;;  %v10907_v52 = vld [vmem:[#allocation4 + $0x10] ss:$36 sps:$4 sm:$0xff]   ;;  %v10910_v40 = vld [vmem:[#allocation4 + $0x18] ss:$36 sps:$4 sm:$0xff]  }
 0x415   : > { %v6197_v53 = vpop.f32.mrf.mxu1  ;;  %7228 = vmatprep.subr.bf16.mxu0 %v10885_v54  ;;  %7301 = vmatprep.subr.bf16.mxu1 %v10888_v47  ;;  %v10915_v60 = vld [vmem:[#allocation4 + $0x32c] ss:$36 sps:$4 sm:$0xff]   ;;  %v10919_v47 = vld [vmem:[#allocation4 + $0x2e0] ss:$36 sps:$4 sm:$0xff]   ;;  %v10933_v18 = vld [vmem:[#allocation4 + $0x254] ss:$36 sps:$4 sm:$0xff]  }
 0x416   : > { %v14840_v32 = vpack.c.bf16 %v6258_v38, %v6256_v2  ;;  %v6259_v17 = vmax.f32 %v6243_v30, 0.0  ;;  %v6217_v10 = vadd.f32 %v6197_v53, %v5971_v34  ;;  %v6244_v59 = vadd.f32 %v14734_v50, %v6216_v1  ;;  %v10924_v54 = vld [vmem:[#allocation4 + $0x2ec] ss:$36 sps:$4 sm:$0xff]   ;;  %v10927_v58 = vld [vmem:[#allocation4 + $0x29c] ss:$36 sps:$4 sm:$0xff]  }
 0x417   : > { %v6199_v24 = vpop.f32.mrf.mxu1  ;;  %v10930_v8 = vld [vmem:[#allocation4 + $0x2a4] ss:$36 sps:$4 sm:$0xff]   ;;  %v10925_v34 = vld [vmem:[#allocation4 + $0x298] ss:$36 sps:$4 sm:$0xff]   ;;  %v10931_v2 = vld [vmem:[#allocation4 + $0x250] ss:$36 sps:$4 sm:$0xff]  }
 0x418   : > { %v14842_v37 = vpack.c.bf16 %v6259_v17, %v6257_v41  ;;  %v6218_v45 = vadd.f32 %v6199_v24, %v5972_v11  ;;  %7229 = vmatpush1.bf16.msra.mxu0 %v10883_v42  ;;  %7302 = vmatpush1.bf16.msra.mxu1 %v10886_v61  ;;  %v6245_v51 = vadd.f32 %v14737_v35, %v6217_v10  ;;  %v6260_v43 = vmax.f32 %v6244_v59, 0.0  ;;  %v10928_v5 = vld [vmem:[#allocation4 + $0x2a0] ss:$36 sps:$4 sm:$0xff]   ;;  %v10934_v38 = vld [vmem:[#allocation4 + $0x258] ss:$36 sps:$4 sm:$0xff]  }
 0x419   : > { %v6201_v33 = vpop.f32.mrf.mxu1  ;;  %7230 = vmatprep.subr.bf16.mxu0 %v10891_v14  ;;  %7303 = vmatprep.subr.bf16.mxu1 %v10894_v15  ;;  %v10936_v21 = vld [vmem:[#allocation4 + $0x25c] ss:$36 sps:$4 sm:$0xff]   ;;  %v10939_v30 = vld [vmem:[%s15891_s8 + $0x1fc] ss:$36 sps:$4 sm:$0xff]   ;;  %v16222_v1 = vmov 0  }
 0x41a   : > { %v6246_v19 = vadd.f32 %v14734_v50, %v6218_v45  ;;  %v6219_v4 = vadd.f32 %v6201_v33, %v5973_v46  ;;  %9748 = vmatprep.mubr.msk.bf16.mxu0 %vm16216_vm12, %v14842_v37  ;;  %9752 = vmatprep.mubr.msk.bf16.mxu1 %vm16217_vm3, %v14842_v37  ;;  %v10903_v50 = vld [vmem:[#allocation4 + $0x5c] ss:$36 sps:$4 sm:$0xff]   ;;  %v6261_v29 = vmax.f32 %v6245_v51, 0.0  ;;  %v10937_v42 = vld [vmem:[%s15891_s8 + $0x1f8] ss:$36 sps:$4 sm:$0xff]   ;;  %vm16256_vm12 = vmmov %vm16224_vm0 }
 0x41b   : > { %7129 = vmatmul.mubr.bf16.gmra.mxu0 %v14840_v32  ;;  %7202 = vmatmul.mubr.bf16.gmra.mxu1 %v14840_v32  ;;  %v10940_v61 = vld [vmem:[#allocation4 + $0x218] ss:$36 sps:$4 sm:$0xff]   ;;  %v10943_v11 = vld [vmem:[%s15891_s8 + $0x1b4] ss:$36 sps:$4 sm:$0xff]   ;;  %v10947_v15 = vld [vmem:[%s15891_s8 + $0x16c] ss:$36 sps:$4 sm:$0xff]  }
 0x41c   : > { %v6262_v28 = vmax.f32 %v6246_v19, 0.0  ;;  %v6247_v13 = vadd.f32 %v14737_v35, %v6219_v4  ;;  %7231 = vmatpush1.bf16.msra.mxu0 %v10889_v31  ;;  %7304 = vmatpush1.bf16.msra.mxu1 %v10892_v63  ;;  %v10909_v35 = vld [vmem:[#allocation4 + $0x14] ss:$36 sps:$4 sm:$0xff]   ;;  %v10941_v53 = vld [vmem:[%s15891_s8 + $0x1b0] ss:$36 sps:$4 sm:$0xff]   ;;  %vm16258_vm3 = vmmov %vm16224_vm0 }
 0x41d   : > { %7232 = vmatprep.subr.bf16.mxu0 %v10897_v3  ;;  %7305 = vmatprep.subr.bf16.mxu1 %v10900_v62  ;;  %v10944_v14 = vld [vmem:[#allocation4 + $0x1d0] ss:$36 sps:$4 sm:$0xff]   ;;  %v10945_v41 = vld [vmem:[%s15891_s8 + $0x168] ss:$36 sps:$4 sm:$0xff]   ;;  %v10948_v17 = vld [vmem:[#allocation4 + $0x188] ss:$36 sps:$4 sm:$0xff]  }
 0x41e   : > { %v14854_v49 = vpack.c.bf16 %v6262_v28, %v6260_v43  ;;  %v6263_v9 = vmax.f32 %v6247_v13, 0.0  ;;  %v10951_v10 = vld [vmem:[%s15891_s8 + $0x124] ss:$36 sps:$4 sm:$0xff]   ;;  %v10955_v59 = vld [vmem:[%s15891_s8 + $0xdc] ss:$36 sps:$4 sm:$0xff]  }
 0x41f   : > { %v10949_v46 = vld [vmem:[%s15891_s8 + $0x120] ss:$36 sps:$4 sm:$0xff]   ;;  %v10952_v24 = vld [vmem:[#allocation4 + $0x140] ss:$36 sps:$4 sm:$0xff]   ;;  %v10953_v45 = vld [vmem:[%s15891_s8 + $0xd8] ss:$36 sps:$4 sm:$0xff]  }
 0x420   : > { %v14856_v16 = vpack.c.bf16 %v6263_v9, %v6261_v29  ;;  %7233 = vmatpush1.bf16.msra.mxu0 %v10895_v36  ;;  %7306 = vmatpush1.bf16.msra.mxu1 %v10898_v0  ;;  %v10956_v31 = vld [vmem:[#allocation4 + $0xf8] ss:$36 sps:$4 sm:$0xff]   ;;  %v10959_v63 = vld [vmem:[%s15891_s8 + $0x94] ss:$36 sps:$4 sm:$0xff]   ;;  %v10963_v62 = vld [vmem:[%s15891_s8 + $0x4c] ss:$36 sps:$4 sm:$0xff]  }
 0x421   : > { %7234 = vmatprep.subr.bf16.mxu0 %v10903_v50  ;;  %7307 = vmatprep.subr.bf16.mxu1 %v10906_v27  ;;  %v10957_v33 = vld [vmem:[%s15891_s8 + $0x90] ss:$36 sps:$4 sm:$0xff]   ;;  %v10960_v3 = vld [vmem:[#allocation4 + $0xb0] ss:$36 sps:$4 sm:$0xff]   ;;  %v10961_v51 = vld [vmem:[%s15891_s8 + $0x48] ss:$36 sps:$4 sm:$0xff]  }
 0x422   : > { %9749 = vmatprep.mubr.msk.bf16.mxu0 %vm16218_vm10, %v14856_v16  ;;  %9753 = vmatprep.mubr.msk.bf16.mxu1 %vm16219_vm7, %v14856_v16  ;;  %v10964_v19 = vld [vmem:[#allocation4 + $0x68] ss:$36 sps:$4 sm:$0xff]   ;;  %v10967_v4 = vld [vmem:[%s15891_s8 + $0x4] ss:$36 sps:$4 sm:$0xff]   ;;  %v16230_v43 = vld [vmem:[#allocation36_spill] sm:$0xff] }
 0x423   : > { %7139 = vmatmul.mubr.bf16.gmra.mxu0 %v14854_v49  ;;  %7212 = vmatmul.mubr.bf16.gmra.mxu1 %v14854_v49  ;;  %v10965_v28 = vld [vmem:[%s15891_s8] ss:$36 sps:$4 sm:$0xff]   ;;  %v10968_v13 = vld [vmem:[#allocation4 + $0x20] ss:$36 sps:$4 sm:$0xff]   ;;  %v16232_v36 = vld [vmem:[#allocation11_spill] sm:$0xff] }
 0x424   : > { %7235 = vmatpush1.bf16.msra.mxu0 %v10901_v57  ;;  %7308 = vmatpush1.bf16.msra.mxu1 %v10904_v39  ;;  %v16233_v0 = vld [vmem:[#allocation12_spill] sm:$0xff]  ;;  %v10972_v29 = vld [vmem:[#allocation4 + $0x338] ss:$36 sps:$4 sm:$0xff]   ;;  %vm16262_vm10 = vmmov %vm16224_vm0 }
 0x425   : > { %9754 = vmatprep.mubr.msk.bf16.mxu0 %vm16220_vm1, %v14797_v26  ;;  %9758 = vmatprep.mubr.msk.bf16.mxu1 %vm16221_vm13, %v14797_v26  ;;  %v1940_v50 = vadd.f32 %v16233_v0, %v16232_v36  ;;  %v10969_v27 = vld [vmem:[%s15891_s8 + $0x318] ss:$36 sps:$4 sm:$0xff]   ;;  %v16234_v9 = vld [vmem:[#allocation13_spill] sm:$0xff]  ;;  %vm16264_vm7 = vmmov %vm16224_vm0 }
 0x426   : > { %7236 = vmatprep.subr.bf16.mxu0 %v10909_v35  ;;  %7309 = vmatprep.subr.bf16.mxu1 %v10912_v12  ;;  %v10975_v39 = vld [vmem:[%s15891_s8 + $0x2d4] ss:$36 sps:$4 sm:$0xff]   ;;  %vm16266_vm1 = vmmov %vm16224_vm0 }
 0x427   : > { %v2013_v57 = vadd.f32 %v16234_v9, %v1940_v50  ;;  %v16235_v35 = vld [vmem:[#allocation20_spill] sm:$0xff]  ;;  %v16251_v50 = vld [vmem:[#allocation25_spill] sm:$0xff]  ;;  %v16253_v9 = vld [vmem:[#allocation19_spill] sm:$0xff] }
 0x428   : > { %7237 = vmatpush1.bf16.msra.mxu0 %v10907_v52  ;;  %7310 = vmatpush1.bf16.msra.mxu1 %v10910_v40  ;;  %v10973_v52 = vld [vmem:[%s15891_s8 + $0x2d0] ss:$36 sps:$4 sm:$0xff]   ;;  %v10976_v40 = vld [vmem:[#allocation4 + $0x2f0] ss:$36 sps:$4 sm:$0xff]   ;;  %vm16267_vm13 = vmmov %vm16224_vm0 }
 0x429   : > { %7246 = vmatprep.subr.bf16.mxu0 %v10915_v60  ;;  %7319 = vmatprep.subr.bf16.mxu1 %v10918_v20  ;;  %v2086_v12 = vadd.f32 %v16235_v35, %v2013_v57  ;;  %v16236_v60 = vld [vmem:[#allocation14_spill] sm:$0xff]  ;;  %v10991_v0 = vld [vmem:[%s15891_s8 + $0x1b8] ss:$36 sps:$4 sm:$0xff]   ;;  %v16254_v35 = vld [vmem:[#allocation33_spill] sm:$0xff] }
 0x42a   : > { %v1950_v20 = vadd.f32 %v16236_v60, %v16232_v36  ;;  %v11005_v60 = vld [vmem:[%s15891_s8 + $0x12c] ss:$36 sps:$4 sm:$0xff]  }
 0x42c   : > { %7247 = vmatpush2.bf16.msra.mxu0 %v10913_v22  ;;  %7320 = vmatpush2.bf16.msra.mxu1 %v10916_v44  ;;  %v10979_v22 = vld [vmem:[%s15891_s8 + $0x28c] ss:$36 sps:$4 sm:$0xff]   ;;  %v16237_v44 = vld [vmem:[#allocation21_spill] sm:$0xff] }
 0x42d   : > { %7248 = vmatprep.subr.bf16.mxu0 %v10921_v48  ;;  %7321 = vmatprep.subr.bf16.mxu1 %v10924_v54  ;;  %v2159_v48 = vadd.f32 %v16237_v44, %v2086_v12  ;;  %v10977_v54 = vld [vmem:[%s15891_s8 + $0x288] ss:$36 sps:$4 sm:$0xff]  }
 0x430   : > { %7249 = vmatpush2.bf16.msra.mxu0 %v10919_v47  ;;  %7322 = vmatpush2.bf16.msra.mxu1 %v10922_v6  ;;  %v10980_v47 = vld [vmem:[#allocation4 + $0x2a8] ss:$36 sps:$4 sm:$0xff]  }
 0x431   : > { %7250 = vmatprep.subr.bf16.mxu0 %v10927_v58  ;;  %7323 = vmatprep.subr.bf16.mxu1 %v10930_v8  ;;  %v16238_v6 = vld [vmem:[#allocation15_spill] sm:$0xff]  ;;  %v16239_v8 = vld [vmem:[#allocation28_spill] sm:$0xff] }
 0x432   : > { %v2023_v58 = vadd.f32 %v16238_v6, %v1950_v20  ;;  %v11008_v20 = vld [vmem:[%s15891_s8 + $0x134] ss:$36 sps:$4 sm:$0xff]  }
 0x433   : > { %v11006_v6 = vld [vmem:[%s15891_s8 + $0x130] ss:$36 sps:$4 sm:$0xff]  }
 0x434   : > { %7251 = vmatpush2.bf16.msra.mxu0 %v10925_v34  ;;  %7324 = vmatpush2.bf16.msra.mxu1 %v10928_v5  ;;  %v2232_v34 = vadd.f32 %v16239_v8, %v2159_v48  ;;  %v10983_v5 = vld [vmem:[%s15891_s8 + $0x244] ss:$36 sps:$4 sm:$0xff]  }
 0x435   : > { %7252 = vmatprep.subr.bf16.mxu0 %v10933_v18  ;;  %7325 = vmatprep.subr.bf16.mxu1 %v10936_v21  ;;  %v16240_v18 = vld [vmem:[#allocation22_spill] sm:$0xff] }
 0x436   : > { %v2096_v21 = vadd.f32 %v16240_v18, %v2023_v58  ;;  %v16257_v48 = vld [vmem:[#allocation38_spill] sm:$0xff]  ;;  %v16259_v58 = vld [vmem:[#allocation29_spill] sm:$0xff] }
 0x438   : > { %7253 = vmatpush2.bf16.msra.mxu0 %v10931_v2  ;;  %7326 = vmatpush2.bf16.msra.mxu1 %v10934_v38  ;;  %v10981_v2 = vld [vmem:[%s15891_s8 + $0x240] ss:$36 sps:$4 sm:$0xff]   ;;  %v10984_v38 = vld [vmem:[#allocation4 + $0x260] ss:$36 sps:$4 sm:$0xff]  }
 0x439   : > { %7368 = vmatprep.subr.bf16.mxu0 %v16222_v1  ;;  %7997 = vmatprep.subr.bf16.mxu1 %v10939_v30  ;;  %v16241_v30 = vld [vmem:[#allocation16_spill] sm:$0xff] }
 0x43b   : > { %7255 = vmatmul.mubr.bf16.vlgmr.msra.gmra.mxu0 %v14791_v23  ;;  %7328 = vmatmul.mubr.bf16.vlgmr.msra.gmra.mxu1 %v14791_v23 }
 0x43c   : > { %9755 = vmatprep.mubr.msk.bf16.mxu0 %vm16223_vm2, %v14825_v25  ;;  %9759 = vmatprep.mubr.msk.bf16.mxu1 %vm16224_vm0, %v14825_v25  ;;  %vm16268_vm2 = vmmov %vm16224_vm0 }
 0x43d   : > { %7369 = vmatpush1.bf16.msra.mxu0 %v10940_v61  ;;  %7998 = vmatpush1.bf16.msra.mxu1 %v10937_v42  ;;  %v1960_v42 = vadd.f32 %v16241_v30, %v16232_v36  ;;  %v2593_v61 = vmax.f32 %v2232_v34, 0.0  ;;  %v16260_v34 = vld [vmem:[#allocation32_spill] sm:$0xff]  ;;  %v11012_v30 = vld [vmem:[%s15891_s8 + $0xe8] ss:$36 sps:$4 sm:$0xff]  }
 0x43e   : > { %7370 = vmatprep.subr.bf16.mxu0 %v16222_v1  ;;  %7999 = vmatprep.subr.bf16.mxu1 %v10943_v11  ;;  %v10987_v11 = vld [vmem:[%s15891_s8 + $0x204] ss:$36 sps:$4 sm:$0xff]  }
 0x441   : > { %7371 = vmatpush1.bf16.msra.mxu0 %v10944_v14  ;;  %8000 = vmatpush1.bf16.msra.mxu1 %v10941_v53  ;;  %v10990_v53 = vld [vmem:[%s15891_s8 + $0x20c] ss:$36 sps:$4 sm:$0xff]  }
 0x442   : > { %7372 = vmatprep.subr.bf16.mxu0 %v16222_v1  ;;  %8001 = vmatprep.subr.bf16.mxu1 %v10947_v15  ;;  %v16242_v14 = vld [vmem:[#allocation23_spill] sm:$0xff] }
 0x443   : > { %7265 = vmatmul.mubr.bf16.gmra.mxu0 %v14821_v55  ;;  %7338 = vmatmul.mubr.bf16.gmra.mxu1 %v14821_v55  ;;  %v2169_v15 = vadd.f32 %v16242_v14, %v2096_v21  ;;  %v16261_v21 = vld [vmem:[#allocation35_spill] sm:$0xff]  ;;  %v11015_v14 = vld [vmem:[%s15891_s8 + $0x98] ss:$36 sps:$4 sm:$0xff]  }
 0x444   : > { %9756 = vmatprep.mubr.msk.bf16.mxu0 %vm16225_vm14, %v14842_v37  ;;  %9760 = vmatprep.mubr.msk.bf16.mxu1 %vm16226_vm9, %v14842_v37  ;;  %vm16269_vm14 = vmmov %vm16224_vm0 }
 0x445   : > { %7373 = vmatpush1.bf16.msra.mxu0 %v10948_v17  ;;  %8002 = vmatpush1.bf16.msra.mxu1 %v10945_v41  ;;  %v16243_v41 = vld [vmem:[#allocation27_spill] sm:$0xff]  ;;  %vm16270_vm9 = vmmov %vm16224_vm0 }
 0x446   : > { %7374 = vmatprep.subr.bf16.mxu0 %v16222_v1  ;;  %8003 = vmatprep.subr.bf16.mxu1 %v10951_v10  ;;  %v2590_v17 = vmax.f32 %v16243_v41, 0.0  ;;  %v16244_v10 = vld [vmem:[#allocation17_spill] sm:$0xff]  ;;  %v16265_v41 = vld [vmem:[#allocation34_spill] sm:$0xff] }
 0x449   : > { %7375 = vmatpush1.bf16.msra.mxu0 %v10952_v24  ;;  %8004 = vmatpush1.bf16.msra.mxu1 %v10949_v46  ;;  %v2033_v46 = vadd.f32 %v16244_v10, %v1960_v42  ;;  %v14997_v24 = vpack.c.bf16 %v2593_v61, %v2590_v17  ;;  %v11017_v42 = vld [vmem:[%s15891_s8 + $0x9c] ss:$36 sps:$4 sm:$0xff]   ;;  %v11020_v61 = vld [vmem:[%s15891_s8 + $0xa4] ss:$36 sps:$4 sm:$0xff]   ;;  %v2608_v17 = vmax.f32 %v16265_v41, 0.0 }
 0x44a   : > { %7376 = vmatprep.subr.bf16.mxu0 %v16222_v1  ;;  %8005 = vmatprep.subr.bf16.mxu1 %v10955_v59  ;;  %v16245_v59 = vld [vmem:[#allocation31_spill] sm:$0xff]  ;;  %v11099_v41 = vld [vmem:[%s15891_s8 + $0x2a4] ss:$36 sps:$4 sm:$0xff]  }
 0x44b   : > { %7275 = vmatmul.mubr.bf16.gmra.mxu0 %v14840_v32  ;;  %7348 = vmatmul.mubr.bf16.gmra.mxu1 %v14840_v32 }
 0x44c   : > { %9757 = vmatprep.mubr.msk.bf16.mxu0 %vm16227_vm11, %v14856_v16  ;;  %9761 = vmatprep.mubr.msk.bf16.mxu1 %vm16228_vm8, %v14856_v16  ;;  %vm16271_vm11 = vmmov %vm16224_vm0 }
 0x44d   : > { %7377 = vmatpush1.bf16.msra.mxu0 %v10956_v31  ;;  %8006 = vmatpush1.bf16.msra.mxu1 %v10953_v45  ;;  %v2242_v45 = vadd.f32 %v16245_v59, %v2169_v15  ;;  %v10985_v31 = vld [vmem:[%s15891_s8 + $0x200] ss:$36 sps:$4 sm:$0xff]   ;;  %v11024_v59 = vld [vmem:[%s15891_s8 + $0x58] ss:$36 sps:$4 sm:$0xff]   ;;  %vm16272_vm8 = vmmov %vm16224_vm0 }
 0x44e   : > { %7378 = vmatprep.subr.bf16.mxu0 %v16222_v1  ;;  %8007 = vmatprep.subr.bf16.mxu1 %v10959_v63  ;;  %v10988_v63 = vld [vmem:[%s15891_s8 + $0x208] ss:$36 sps:$4 sm:$0xff]   ;;  %v11018_v15 = vld [vmem:[%s15891_s8 + $0xa0] ss:$36 sps:$4 sm:$0xff]  }
 0x451   : > { %7379 = vmatpush1.bf16.msra.mxu0 %v10960_v3  ;;  %8008 = vmatpush1.bf16.msra.mxu1 %v10957_v33  ;;  %v10993_v33 = vld [vmem:[%s15891_s8 + $0x1bc] ss:$36 sps:$4 sm:$0xff]   ;;  %v10996_v3 = vld [vmem:[%s15891_s8 + $0x1c4] ss:$36 sps:$4 sm:$0xff]  }
 0x452   : > { %7380 = vmatprep.subr.bf16.mxu0 %v16222_v1  ;;  %8009 = vmatprep.subr.bf16.mxu1 %v10963_v62  ;;  %v16246_v62 = vld [vmem:[#allocation24_spill] sm:$0xff] }
 0x453   : > { %7285 = vmatmul.mubr.bf16.gmra.mxu0 %v14854_v49  ;;  %7358 = vmatmul.mubr.bf16.gmra.mxu1 %v14854_v49 }
 0x454   : > { %9762 = vmatprep.mubr.msk.bf16.mxu0 %vm16229_vm15, %v14797_v26  ;;  %9874 = vmatprep.mubr.msk.bf16.mxu1 %vm16231_vm4, %v16230_v43  ;;  %v10971_v26 = vld [vmem:[%s15891_s8 + $0x31c] ss:$36 sps:$4 sm:$0xff]   ;;  %vm16273_vm15 = vmmov %vm16224_vm0 }
 0x455   : > { %7381 = vmatpush1.bf16.msra.mxu0 %v10964_v19  ;;  %8010 = vmatpush1.bf16.msra.mxu1 %v10961_v51  ;;  %v2106_v51 = vadd.f32 %v16246_v62, %v2033_v46  ;;  %v16248_v19 = vld [vmem:[#allocation37_spill] sm:$0xff]  ;;  %v11021_v46 = vld [vmem:[%s15891_s8 + $0x50] ss:$36 sps:$4 sm:$0xff]   ;;  %vm16274_vm4 = vmmov %vm16224_vm0 }
 0x456   : > { %7382 = vmatprep.subr.bf16.mxu0 %v16222_v1  ;;  %8011 = vmatprep.subr.bf16.mxu1 %v10967_v4  ;;  %v16250_v4 = vld [vmem:[#allocation18_spill] sm:$0xff]  ;;  %v11033_v62 = vld [vmem:[%s15891_s8 + $0x320] ss:$36 sps:$4 sm:$0xff]  }
 0x459   : > { %7383 = vmatpush1.bf16.msra.mxu0 %v10968_v13  ;;  %8012 = vmatpush1.bf16.msra.mxu1 %v10965_v28  ;;  %v1970_v28 = vadd.f32 %v16250_v4, %v16232_v36  ;;  %v2599_v13 = vmax.f32 %v2242_v45, 0.0  ;;  %v11002_v36 = vld [vmem:[%s15891_s8 + $0x17c] ss:$36 sps:$4 sm:$0xff]   ;;  %v11029_v45 = vld [vmem:[%s15891_s8 + $0xc] ss:$36 sps:$4 sm:$0xff]  }
 0x45a   : > { %7392 = vmatprep.subr.bf16.mxu0 %v16222_v1  ;;  %8021 = vmatprep.subr.bf16.mxu1 %v10971_v26  ;;  %v2179_v26 = vadd.f32 %v16251_v50, %v2106_v51  ;;  %v11036_v51 = vld [vmem:[%s15891_s8 + $0x328] ss:$36 sps:$4 sm:$0xff]   ;;  %v11041_v4 = vld [vmem:[%s15891_s8 + $0x2dc] ss:$36 sps:$4 sm:$0xff]  }
 0x45b   : > { %v2043_v57 = vadd.f32 %v16253_v9, %v1970_v28  ;;  %v11044_v28 = vld [vmem:[%s15891_s8 + $0x2e4] ss:$36 sps:$4 sm:$0xff]   ;;  %v11048_v50 = vld [vmem:[%s15891_s8 + $0x298] ss:$36 sps:$4 sm:$0xff]   ;;  %v11054_v9 = vld [vmem:[%s15891_s8 + $0x250] ss:$36 sps:$4 sm:$0xff]  }
 0x45c   : > { %v2252_v12 = vadd.f32 %v16254_v35, %v2179_v26  ;;  %v11053_v26 = vld [vmem:[%s15891_s8 + $0x24c] ss:$36 sps:$4 sm:$0xff]  }
 0x45d   : > { %7393 = vmatpush2.bf16.msra.mxu0 %v10972_v29  ;;  %8022 = vmatpush2.bf16.msra.mxu1 %v10969_v27  ;;  %v16252_v27 = vld [vmem:[#allocation30_spill] sm:$0xff]  ;;  %v11057_v35 = vld [vmem:[%s15891_s8 + $0x210] ss:$36 sps:$4 sm:$0xff]  }
 0x45e   : > { %7394 = vmatprep.subr.bf16.mxu0 %v16222_v1  ;;  %8023 = vmatprep.subr.bf16.mxu1 %v10975_v39  ;;  %v2596_v29 = vmax.f32 %v16252_v27, 0.0  ;;  %v11056_v27 = vld [vmem:[%s15891_s8 + $0x254] ss:$36 sps:$4 sm:$0xff]  }
 0x460   : > { %v15036_v39 = vpack.c.bf16 %v2599_v13, %v2596_v29  ;;  %v11039_v13 = vld [vmem:[%s15891_s8 + $0x2d8] ss:$36 sps:$4 sm:$0xff]   ;;  %v11051_v29 = vld [vmem:[%s15891_s8 + $0x248] ss:$36 sps:$4 sm:$0xff]  }
 0x461   : > { %7395 = vmatpush2.bf16.msra.mxu0 %v10976_v40  ;;  %8024 = vmatpush2.bf16.msra.mxu1 %v10973_v52  ;;  %v10997_v52 = vld [vmem:[%s15891_s8 + $0x170] ss:$36 sps:$4 sm:$0xff]   ;;  %v11000_v40 = vld [vmem:[%s15891_s8 + $0x178] ss:$36 sps:$4 sm:$0xff]  }
 0x462   : > { %7396 = vmatprep.subr.bf16.mxu0 %v16222_v1  ;;  %8025 = vmatprep.subr.bf16.mxu1 %v10979_v22  ;;  %v16255_v22 = vld [vmem:[#allocation26_spill] sm:$0xff] }
 0x463   : > { %v2116_v44 = vadd.f32 %v16255_v22, %v2043_v57  ;;  %v11059_v57 = vld [vmem:[%s15891_s8 + $0x214] ss:$36 sps:$4 sm:$0xff]   ;;  %v11065_v22 = vld [vmem:[%s15891_s8 + $0x180] ss:$36 sps:$4 sm:$0xff]  }
 0x465   : > { %7397 = vmatpush2.bf16.msra.mxu0 %v10980_v47  ;;  %8026 = vmatpush2.bf16.msra.mxu1 %v10977_v54  ;;  %v2605_v54 = vmax.f32 %v2252_v12, 0.0  ;;  %v11003_v47 = vld [vmem:[%s15891_s8 + $0x128] ss:$36 sps:$4 sm:$0xff]   ;;  %v2189_v8 = vadd.f32 %v16259_v58, %v2116_v44  ;;  %v11060_v12 = vld [vmem:[%s15891_s8 + $0x218] ss:$36 sps:$4 sm:$0xff]  }
 0x466   : > { %7398 = vmatprep.subr.bf16.mxu0 %v16222_v1  ;;  %8027 = vmatprep.subr.bf16.mxu1 %v10983_v5  ;;  %v2602_v5 = vmax.f32 %v16260_v34, 0.0  ;;  %v11068_v44 = vld [vmem:[%s15891_s8 + $0x188] ss:$36 sps:$4 sm:$0xff]   ;;  %v11076_v58 = vld [vmem:[%s15891_s8 + $0xf8] ss:$36 sps:$4 sm:$0xff]  }
 0x467   : > { %v11077_v34 = vld [vmem:[%s15891_s8 + $0xa8] ss:$36 sps:$4 sm:$0xff]  }
 0x468   : > { %v15072_v18 = vpack.c.bf16 %v2605_v54, %v2602_v5  ;;  %v11071_v54 = vld [vmem:[%s15891_s8 + $0x13c] ss:$36 sps:$4 sm:$0xff]   ;;  %v11080_v5 = vld [vmem:[%s15891_s8 + $0xb0] ss:$36 sps:$4 sm:$0xff]  }
 0x469   : > { %7399 = vmatpush2.bf16.msra.mxu0 %v10984_v38  ;;  %8028 = vmatpush2.bf16.msra.mxu1 %v10981_v2  ;;  %v2262_v2 = vadd.f32 %v16261_v21, %v2189_v8  ;;  %v11009_v38 = vld [vmem:[%s15891_s8 + $0xe0] ss:$36 sps:$4 sm:$0xff]   ;;  %v11079_v8 = vld [vmem:[%s15891_s8 + $0xac] ss:$36 sps:$4 sm:$0xff]  }
 0x46a   : > { %8070 = vmatprep.subr.bf16.mxu0 %v10987_v11  ;;  %8143 = vmatprep.subr.bf16.mxu1 %v10990_v53  ;;  %v16263_v11 = vld [vmem:[#allocation39_spill] sm:$0xff]  ;;  %v11083_v21 = vld [vmem:[%s15891_s8 + $0x64] ss:$36 sps:$4 sm:$0xff]  }
 0x46b   : > { %v2611_v53 = vmax.f32 %v2262_v2, 0.0  ;;  %v11081_v2 = vld [vmem:[%s15891_s8 + $0x60] ss:$36 sps:$4 sm:$0xff]  }
 0x46c   : > { %7401 = vmatmul.mubr.bf16.vlgmr.msra.gmra.mxu0 %v14791_v23  ;;  %8030 = vmatmul.mubr.bf16.vlgmr.msra.gmra.mxu1 %v14997_v24  ;;  %v10994_v23 = vld [vmem:[%s15891_s8 + $0x1c0] ss:$36 sps:$4 sm:$0xff]  }
 0x46d   : > { %9763 = vmatprep.mubr.msk.bf16.mxu0 %vm16247_vm5, %v14825_v25  ;;  %9875 = vmatprep.mubr.msk.bf16.mxu1 %vm16249_vm6, %v16248_v19  ;;  %v10999_v25 = vld [vmem:[%s15891_s8 + $0x174] ss:$36 sps:$4 sm:$0xff]   ;;  %v15106_v10 = vpack.c.bf16 %v2611_v53, %v2608_v17  ;;  %v11097_v17 = vld [vmem:[%s15891_s8 + $0x2a0] ss:$36 sps:$4 sm:$0xff]   ;;  %vm16275_vm5 = vmmov %vm16224_vm0 }
 0x46e   : > { %8071 = vmatpush1.bf16.msra.mxu0 %v10985_v31  ;;  %8144 = vmatpush1.bf16.msra.mxu1 %v10988_v63  ;;  %v11032_v31 = vld [vmem:[%s15891_s8 + $0x14] ss:$36 sps:$4 sm:$0xff]   ;;  %v11027_v63 = vld [vmem:[%s15891_s8 + $0x8] ss:$36 sps:$4 sm:$0xff]   ;;  %vm16276_vm6 = vmmov %vm16224_vm0 }
 0x46f   : > { %8072 = vmatprep.subr.bf16.mxu0 %v10993_v33  ;;  %8145 = vmatprep.subr.bf16.mxu1 %v10996_v3  ;;  %v11030_v33 = vld [vmem:[%s15891_s8 + $0x10] ss:$36 sps:$4 sm:$0xff]  }
 0x470   : > { %v11038_v3 = vld [vmem:[%s15891_s8 + $0x32c] ss:$36 sps:$4 sm:$0xff]   ;;  %v11091_v53 = vld [vmem:[%s15891_s8 + $0x334] ss:$36 sps:$4 sm:$0xff]  }
 0x472   : > { %8073 = vmatpush1.bf16.msra.mxu0 %v10991_v0  ;;  %8146 = vmatpush1.bf16.msra.mxu1 %v10994_v23  ;;  %v11042_v0 = vld [vmem:[%s15891_s8 + $0x2e0] ss:$36 sps:$4 sm:$0xff]   ;;  %v11047_v23 = vld [vmem:[%s15891_s8 + $0x294] ss:$36 sps:$4 sm:$0xff]  }
 0x473   : > { %8074 = vmatprep.subr.bf16.mxu0 %v10999_v25  ;;  %8147 = vmatprep.subr.bf16.mxu1 %v11002_v36  ;;  %v11050_v25 = vld [vmem:[%s15891_s8 + $0x29c] ss:$36 sps:$4 sm:$0xff]   ;;  %v11045_v36 = vld [vmem:[%s15891_s8 + $0x290] ss:$36 sps:$4 sm:$0xff]  }
 0x474   : > { %7409 = vmatmul.mubr.bf16.gmra.mxu0 %v14821_v55  ;;  %8040 = vmatmul.mubr.bf16.gmra.mxu1 %v15036_v39  ;;  %v11011_v55 = vld [vmem:[%s15891_s8 + $0xe4] ss:$36 sps:$4 sm:$0xff]  }
 0x475   : > { %9764 = vmatprep.mubr.msk.bf16.mxu0 %vm16256_vm12, %v14842_v37  ;;  %9876 = vmatprep.mubr.msk.bf16.mxu1 %vm16258_vm3, %v16257_v48  ;;  %v11014_v37 = vld [vmem:[%s15891_s8 + $0xec] ss:$36 sps:$4 sm:$0xff]   ;;  %vm16277_vm12 = vmmov %vm16224_vm0 }
 0x476   : > { %8075 = vmatpush1.bf16.msra.mxu0 %v10997_v52  ;;  %8148 = vmatpush1.bf16.msra.mxu1 %v11000_v40  ;;  %v11063_v52 = vld [vmem:[%s15891_s8 + $0x1cc] ss:$36 sps:$4 sm:$0xff]   ;;  %vm16278_vm3 = vmmov %vm16224_vm0 }
 0x477   : > { %8076 = vmatprep.subr.bf16.mxu0 %v11005_v60  ;;  %8149 = vmatprep.subr.bf16.mxu1 %v11008_v20  ;;  %v11061_v40 = vld [vmem:[%s15891_s8 + $0x1c8] ss:$36 sps:$4 sm:$0xff]   ;;  %v11064_v60 = vld [vmem:[%s15891_s8 + $0x1d0] ss:$36 sps:$4 sm:$0xff]  }
 0x478   : > { %v11067_v20 = vld [vmem:[%s15891_s8 + $0x184] ss:$36 sps:$4 sm:$0xff]  }
 0x47a   : > { %8077 = vmatpush1.bf16.msra.mxu0 %v11003_v47  ;;  %8150 = vmatpush1.bf16.msra.mxu1 %v11006_v6  ;;  %v11069_v47 = vld [vmem:[%s15891_s8 + $0x138] ss:$36 sps:$4 sm:$0xff]   ;;  %v11072_v6 = vld [vmem:[%s15891_s8 + $0x140] ss:$36 sps:$4 sm:$0xff]  }
 0x47b   : > { %8078 = vmatprep.subr.bf16.mxu0 %v11011_v55  ;;  %8151 = vmatprep.subr.bf16.mxu1 %v11014_v37  ;;  %v11075_v55 = vld [vmem:[%s15891_s8 + $0xf4] ss:$36 sps:$4 sm:$0xff]  }
 0x47c   : > { %7417 = vmatmul.mubr.bf16.gmra.mxu0 %v14840_v32  ;;  %8050 = vmatmul.mubr.bf16.gmra.mxu1 %v15072_v18  ;;  %v11023_v32 = vld [vmem:[%s15891_s8 + $0x54] ss:$36 sps:$4 sm:$0xff]  }
 0x47d   : > { %9765 = vmatprep.mubr.msk.bf16.mxu0 %vm16262_vm10, %v14856_v16  ;;  %9877 = vmatprep.mubr.msk.bf16.mxu1 %vm16264_vm7, %v16263_v11  ;;  %v11026_v16 = vld [vmem:[%s15891_s8 + $0x5c] ss:$36 sps:$4 sm:$0xff]   ;;  %v11073_v37 = vld [vmem:[%s15891_s8 + $0xf0] ss:$36 sps:$4 sm:$0xff]   ;;  %vm16279_vm10 = vmmov %vm16224_vm0 }
 0x47e   : > { %8079 = vmatpush1.bf16.msra.mxu0 %v11009_v38  ;;  %8152 = vmatpush1.bf16.msra.mxu1 %v11012_v30  ;;  %v11084_v38 = vld [vmem:[%s15891_s8 + $0x68] ss:$36 sps:$4 sm:$0xff]   ;;  %v11087_v30 = vld [vmem:[%s15891_s8 + $0x1c] ss:$36 sps:$4 sm:$0xff]   ;;  %vm16280_vm7 = vmmov %vm16224_vm0 }
 0x47f   : > { %8080 = vmatprep.subr.bf16.mxu0 %v11017_v42  ;;  %8153 = vmatprep.subr.bf16.mxu1 %v11020_v61  ;;  %v11085_v42 = vld [vmem:[%s15891_s8 + $0x18] ss:$36 sps:$4 sm:$0xff]   ;;  %v11088_v61 = vld [vmem:[%s15891_s8 + $0x20] ss:$36 sps:$4 sm:$0xff]  }
 0x482   : > { %8081 = vmatpush1.bf16.msra.mxu0 %v11015_v14  ;;  %8154 = vmatpush1.bf16.msra.mxu1 %v11018_v15  ;;  %v11092_v14 = vld [vmem:[%s15891_s8 + $0x338] ss:$36 sps:$4 sm:$0xff]   ;;  %v11095_v15 = vld [vmem:[%s15891_s8 + $0x2ec] ss:$36 sps:$4 sm:$0xff]  }
 0x483   : > { %8082 = vmatprep.subr.bf16.mxu0 %v11023_v32  ;;  %8155 = vmatprep.subr.bf16.mxu1 %v11026_v16  ;;  %v11093_v32 = vld [vmem:[%s15891_s8 + $0x2e8] ss:$36 sps:$4 sm:$0xff]   ;;  %v11096_v16 = vld [vmem:[%s15891_s8 + $0x2f0] ss:$36 sps:$4 sm:$0xff]  }
 0x484   : > { %7425 = vmatmul.mubr.bf16.gmra.mxu0 %v14854_v49  ;;  %8060 = vmatmul.mubr.bf16.gmra.mxu1 %v15106_v10  ;;  %v11035_v49 = vld [vmem:[%s15891_s8 + $0x324] ss:$36 sps:$4 sm:$0xff]  }
 0x485   : > { %9878 = vmatprep.mubr.msk.bf16.mxu0 %vm16266_vm1, %v16230_v43  ;;  %9882 = vmatprep.mubr.msk.bf16.mxu1 %vm16267_vm13, %v16230_v43  ;;  %vm16314_vm1 = vmmov %vm16224_vm0 }
 0x486   : > { %8083 = vmatpush1.bf16.msra.mxu0 %v11021_v46  ;;  %8156 = vmatpush1.bf16.msra.mxu1 %v11024_v59  ;;  %v11100_v46 = vld [vmem:[%s15891_s8 + $0x2a8] ss:$36 sps:$4 sm:$0xff]   ;;  %v11103_v59 = vld [vmem:[%s15891_s8 + $0x25c] ss:$36 sps:$4 sm:$0xff]   ;;  %vm16318_vm13 = vmmov %vm16224_vm0 }
 0x487   : > { %8084 = vmatprep.subr.bf16.mxu0 %v11029_v45  ;;  %8157 = vmatprep.subr.bf16.mxu1 %v11032_v31  ;;  %v11101_v45 = vld [vmem:[%s15891_s8 + $0x258] ss:$36 sps:$4 sm:$0xff]   ;;  %v11104_v31 = vld [vmem:[%s15891_s8 + $0x260] ss:$36 sps:$4 sm:$0xff]  }
 0x48a   : > { %8085 = vmatpush1.bf16.msra.mxu0 %v11027_v63  ;;  %8158 = vmatpush1.bf16.msra.mxu1 %v11030_v33 }
 0x48b   : > { %8094 = vmatprep.subr.bf16.mxu0 %v11035_v49  ;;  %8167 = vmatprep.subr.bf16.mxu1 %v11038_v3 }
 0x48e   : > { %8095 = vmatpush2.bf16.msra.mxu0 %v11033_v62  ;;  %8168 = vmatpush2.bf16.msra.mxu1 %v11036_v51 }
 0x48f   : > { %8096 = vmatprep.subr.bf16.mxu0 %v11041_v4  ;;  %8169 = vmatprep.subr.bf16.mxu1 %v11044_v28 }
 0x492   : > { %8097 = vmatpush2.bf16.msra.mxu0 %v11039_v13  ;;  %8170 = vmatpush2.bf16.msra.mxu1 %v11042_v0 }
 0x493   : > { %8098 = vmatprep.subr.bf16.mxu0 %v11047_v23  ;;  %8171 = vmatprep.subr.bf16.mxu1 %v11050_v25 }
 0x496   : > { %8099 = vmatpush2.bf16.msra.mxu0 %v11045_v36  ;;  %8172 = vmatpush2.bf16.msra.mxu1 %v11048_v50 }
 0x497   : > { %8100 = vmatprep.subr.bf16.mxu0 %v11053_v26  ;;  %8173 = vmatprep.subr.bf16.mxu1 %v11056_v27 }
 0x49a   : > { %8101 = vmatpush2.bf16.msra.mxu0 %v11051_v29  ;;  %8174 = vmatpush2.bf16.msra.mxu1 %v11054_v9 }
 0x49b   : > { %8216 = vmatprep.subr.bf16.mxu0 %v11059_v57  ;;  %8289 = vmatprep.subr.bf16.mxu1 %v16222_v1 }
 0x49d   : > { %8103 = vmatmul.mubr.bf16.vlgmr.msra.gmra.mxu0 %v14997_v24  ;;  %8176 = vmatmul.mubr.bf16.vlgmr.msra.gmra.mxu1 %v14997_v24 }
 0x49e   : > { %9879 = vmatprep.mubr.msk.bf16.mxu0 %vm16268_vm2, %v16248_v19  ;;  %9883 = vmatprep.mubr.msk.bf16.mxu1 %vm16224_vm0, %v16248_v19  ;;  %vm16320_vm2 = vmmov %vm16224_vm0 }
 0x49f   : > { %8217 = vmatpush1.bf16.msra.mxu0 %v11057_v35  ;;  %8290 = vmatpush1.bf16.msra.mxu1 %v11060_v12 }
 0x4a0   : > { %8218 = vmatprep.subr.bf16.mxu0 %v11063_v52  ;;  %8291 = vmatprep.subr.bf16.mxu1 %v16222_v1 }
 0x4a3   : > { %8219 = vmatpush1.bf16.msra.mxu0 %v11061_v40  ;;  %8292 = vmatpush1.bf16.msra.mxu1 %v11064_v60 }
 0x4a4   : > { %8220 = vmatprep.subr.bf16.mxu0 %v11067_v20  ;;  %8293 = vmatprep.subr.bf16.mxu1 %v16222_v1 }
 0x4a5   : > { %8113 = vmatmul.mubr.bf16.gmra.mxu0 %v15036_v39  ;;  %8186 = vmatmul.mubr.bf16.gmra.mxu1 %v15036_v39 }
 0x4a6   : > { %9880 = vmatprep.mubr.msk.bf16.mxu0 %vm16269_vm14, %v16257_v48  ;;  %9884 = vmatprep.mubr.msk.bf16.mxu1 %vm16270_vm9, %v16257_v48  ;;  %vm16325_vm14 = vmmov %vm16224_vm0 }
 0x4a7   : > { %8221 = vmatpush1.bf16.msra.mxu0 %v11065_v22  ;;  %8294 = vmatpush1.bf16.msra.mxu1 %v11068_v44  ;;  %vm16329_vm9 = vmmov %vm16224_vm0 }
 0x4a8   : > { %8222 = vmatprep.subr.bf16.mxu0 %v11071_v54  ;;  %8295 = vmatprep.subr.bf16.mxu1 %v16222_v1 }
 0x4ab   : > { %8223 = vmatpush1.bf16.msra.mxu0 %v11069_v47  ;;  %8296 = vmatpush1.bf16.msra.mxu1 %v11072_v6 }
 0x4ac   : > { %8224 = vmatprep.subr.bf16.mxu0 %v11075_v55  ;;  %8297 = vmatprep.subr.bf16.mxu1 %v16222_v1 }
 0x4ad   : > { %8123 = vmatmul.mubr.bf16.gmra.mxu0 %v15072_v18  ;;  %8196 = vmatmul.mubr.bf16.gmra.mxu1 %v15072_v18 }
 0x4ae   : > { %9881 = vmatprep.mubr.msk.bf16.mxu0 %vm16271_vm11, %v16263_v11  ;;  %9885 = vmatprep.mubr.msk.bf16.mxu1 %vm16272_vm8, %v16263_v11  ;;  %vm16330_vm11 = vmmov %vm16224_vm0 }
 0x4af   : > { %8225 = vmatpush1.bf16.msra.mxu0 %v11073_v37  ;;  %8298 = vmatpush1.bf16.msra.mxu1 %v11076_v58  ;;  %vm16331_vm8 = vmmov %vm16224_vm0 }
 0x4b0   : > { %8226 = vmatprep.subr.bf16.mxu0 %v11079_v8  ;;  %8299 = vmatprep.subr.bf16.mxu1 %v16222_v1 }
 0x4b3   : > { %8227 = vmatpush1.bf16.msra.mxu0 %v11077_v34  ;;  %8300 = vmatpush1.bf16.msra.mxu1 %v11080_v5 }
 0x4b4   : > { %8228 = vmatprep.subr.bf16.mxu0 %v11083_v21  ;;  %8301 = vmatprep.subr.bf16.mxu1 %v16222_v1 }
 0x4b5   : > { %8133 = vmatmul.mubr.bf16.gmra.mxu0 %v15106_v10  ;;  %8206 = vmatmul.mubr.bf16.gmra.mxu1 %v15106_v10 }
 0x4b6   : > { %9886 = vmatprep.mubr.msk.bf16.mxu0 %vm16273_vm15, %v16230_v43  ;;  %9890 = vmatprep.mubr.msk.bf16.mxu1 %vm16274_vm4, %v16230_v43  ;;  %v11089_v43 = vld [vmem:[%s15891_s8 + $0x330] ss:$36 sps:$4 sm:$0xff]  }
 0x4b7   : > { %8229 = vmatpush1.bf16.msra.mxu0 %v11081_v2  ;;  %8302 = vmatpush1.bf16.msra.mxu1 %v11084_v38 }
 0x4b8   : > { %8230 = vmatprep.subr.bf16.mxu0 %v11087_v30  ;;  %8303 = vmatprep.subr.bf16.mxu1 %v16222_v1 }
 0x4bb   : > { %8231 = vmatpush1.bf16.msra.mxu0 %v11085_v42  ;;  %8304 = vmatpush1.bf16.msra.mxu1 %v11088_v61 }
 0x4bc   : > { %8240 = vmatprep.subr.bf16.mxu0 %v11091_v53  ;;  %8313 = vmatprep.subr.bf16.mxu1 %v16222_v1 }
 0x4bf   : > { %8241 = vmatpush2.bf16.msra.mxu0 %v11089_v43  ;;  %8314 = vmatpush2.bf16.msra.mxu1 %v11092_v14 }
 0x4c0   : > { %8242 = vmatprep.subr.bf16.mxu0 %v11095_v15  ;;  %8315 = vmatprep.subr.bf16.mxu1 %v16222_v1 }
 0x4c3   : > { %8243 = vmatpush2.bf16.msra.mxu0 %v11093_v32  ;;  %8316 = vmatpush2.bf16.msra.mxu1 %v11096_v16 }
 0x4c4   : > { %8244 = vmatprep.subr.bf16.mxu0 %v11099_v41  ;;  %8317 = vmatprep.subr.bf16.mxu1 %v16222_v1 }
 0x4c7   : > { %8245 = vmatpush2.bf16.msra.mxu0 %v11097_v17  ;;  %8318 = vmatpush2.bf16.msra.mxu1 %v11100_v46 }
 0x4c8   : > { %8246 = vmatprep.subr.bf16.mxu0 %v11103_v59  ;;  %8319 = vmatprep.subr.bf16.mxu1 %v16222_v1 }
 0x4cb   : > { %8247 = vmatpush2.bf16.msra.mxu0 %v11101_v45  ;;  %8320 = vmatpush2.bf16.msra.mxu1 %v11104_v31  ;;  %v15324_v63 = vpop.f32.mrf.mxu0  ;;  %v15326_v33 = vpop.f32.mrf.mxu1 }
 0x4cd   : > { %v15328_v49 = vpop.f32.mrf.mxu0  ;;  %v15330_v3 = vpop.f32.mrf.mxu1 }
 0x4ce   : > { %8249 = vmatmul.mubr.bf16.vlgmr.msra.gmra.mxu0 %v14997_v24  ;;  %8322 = vmatmul.mubr.bf16.vlgmr.msra.gmra.mxu1 %v14997_v24 }
 0x4cf   : > { %9887 = vmatprep.mubr.msk.bf16.mxu0 %vm16275_vm5, %v16248_v19  ;;  %9891 = vmatprep.mubr.msk.bf16.mxu1 %vm16276_vm6, %v16248_v19  ;;  %v15338_v1 = vpop.f32.mrf.mxu0  ;;  %v15340_v62 = vpop.f32.mrf.mxu1 }
 0x4d1   : > { %v15342_v51 = vpop.f32.mrf.mxu0  ;;  %v15344_v4 = vpop.f32.mrf.mxu1 }
 0x4d3   : > { %v15346_v28 = vpop.f32.mrf.mxu0  ;;  %v15348_v13 = vpop.f32.mrf.mxu1 }
 0x4d5   : > { %v15350_v0 = vpop.f32.mrf.mxu0  ;;  %v15352_v24 = vpop.f32.mrf.mxu1 }
 0x4d6   : > { %8259 = vmatmul.mubr.bf16.gmra.mxu0 %v15036_v39  ;;  %8330 = vmatmul.mubr.bf16.gmra.mxu1 %v15036_v39 }
 0x4d7   : > { %9888 = vmatprep.mubr.msk.bf16.mxu0 %vm16277_vm12, %v16257_v48  ;;  %9892 = vmatprep.mubr.msk.bf16.mxu1 %vm16278_vm3, %v16257_v48  ;;  %v15360_v19 = vpop.f32.mrf.mxu0  ;;  %v15362_v23 = vpop.f32.mrf.mxu1 }
 0x4d9   : > { %v15364_v25 = vpop.f32.mrf.mxu0  ;;  %v15366_v36 = vpop.f32.mrf.mxu1 }
 0x4db   : > { %v15368_v50 = vpop.f32.mrf.mxu0  ;;  %v15370_v26 = vpop.f32.mrf.mxu1 }
 0x4dd   : > { %v15378_v39 = vpop.f32.mrf.mxu0  ;;  %v15380_v48 = vpop.f32.mrf.mxu1 }
 0x4de   : > { %8269 = vmatmul.mubr.bf16.gmra.mxu0 %v15072_v18  ;;  %8338 = vmatmul.mubr.bf16.gmra.mxu1 %v15072_v18 }
 0x4df   : > { %9889 = vmatprep.mubr.msk.bf16.mxu0 %vm16279_vm10, %v16263_v11  ;;  %9893 = vmatprep.mubr.msk.bf16.mxu1 %vm16280_vm7, %v16263_v11  ;;  %v15382_v27 = vpop.f32.mrf.mxu0  ;;  %v15384_v29 = vpop.f32.mrf.mxu1 }
 0x4e1   : > { %v15388_v9 = vpop.f32.mrf.mxu0  ;;  %v15390_v18 = vpop.f32.mrf.mxu1 }
 0x4e3   : > { %v15392_v57 = vpop.f32.mrf.mxu0  ;;  %v15394_v35 = vpop.f32.mrf.mxu1 }
 0x4e5   : > { %v15396_v11 = vpop.f32.mrf.mxu0  ;;  %v15398_v12 = vpop.f32.mrf.mxu1 }
 0x4e6   : > { %8279 = vmatmul.mubr.bf16.gmra.mxu0 %v15106_v10  ;;  %8346 = vmatmul.mubr.bf16.gmra.mxu1 %v15106_v10 }
 0x4e7   : > { %v15400_v52 = vpop.f32.mrf.mxu0  ;;  %v15402_v40 = vpop.f32.mrf.mxu1 }
 0x4e9   : > { %v15404_v60 = vpop.f32.mrf.mxu0  ;;  %v15406_v20 = vpop.f32.mrf.mxu1 }
 0x4ea   : > { %16281 = vst [vmem:[#allocation62_spill] sm:$0xff] %v15406_v20  ;;  %v11109_v20 = vld [vmem:[%s11542_s9 + $0x8] sm:$0xff] }
 0x4fb   : > { %v15408_v10 = vpop.f32.mrf.mxu0  ;;  %v15410_v22 = vpop.f32.mrf.mxu1 }
 0x4fc   : > { %16282 = vst [vmem:[#allocation43_spill] sm:$0xff] %v15410_v22 }
 0x4fd   : > { %v15412_v44 = vpop.f32.mrf.mxu0  ;;  %v15414_v54 = vpop.f32.mrf.mxu1 }
 0x4fe   : > { %16283 = vst [vmem:[#allocation63_spill] sm:$0xff] %v15414_v54 }
 0x4ff   : > { %v15416_v47 = vpop.f32.mrf.mxu0  ;;  %v15418_v6 = vpop.f32.mrf.mxu1 }
 0x500   : > { %16284 = vst [vmem:[#allocation54_spill] sm:$0xff] %v15418_v6 }
 0x501   : > { %v15420_v55 = vpop.f32.mrf.mxu0  ;;  %v15422_v37 = vpop.f32.mrf.mxu1 }
 0x502   : > { %16285 = vst [vmem:[#allocation45_spill] sm:$0xff] %v15422_v37 }
 0x503   : > { %v15424_v58 = vpop.f32.mrf.mxu0  ;;  %v15426_v8 = vpop.f32.mrf.mxu1 }
 0x504   : > { %16286 = vst [vmem:[#allocation44_spill] sm:$0xff] %v15426_v8 }
 0x505   : > { %v15428_v34 = vpop.f32.mrf.mxu0  ;;  %v15430_v5 = vpop.f32.mrf.mxu1 }
 0x506   : > { %16287 = vst [vmem:[#allocation42_spill] sm:$0xff] %v15430_v5 }
 0x507   : > { %v15432_v21 = vpop.f32.mrf.mxu0  ;;  %v15434_v2 = vpop.f32.mrf.mxu1 }
 0x508   : > { %16288 = vst [vmem:[#allocation71_spill] sm:$0xff] %v15434_v2 }
 0x509   : > { %v15436_v38 = vpop.f32.mrf.mxu0  ;;  %v15438_v30 = vpop.f32.mrf.mxu1 }
 0x50a   : > { %16289 = vst [vmem:[#allocation66_spill] sm:$0xff] %v15438_v30 }
 0x50b   : > { %v15440_v42 = vpop.f32.mrf.mxu0  ;;  %v15442_v61 = vpop.f32.mrf.mxu1 }
 0x50c   : > { %16290 = vst [vmem:[#allocation56_spill] sm:$0xff] %v15442_v61 }
 0x50d   : > { %v15444_v53 = vpop.f32.mrf.mxu0  ;;  %v15446_v43 = vpop.f32.mrf.mxu1 }
 0x50e   : > { %16291 = vst [vmem:[#allocation48_spill] sm:$0xff] %v15446_v43 }
 0x50f   : > { %v15448_v14 = vpop.f32.mrf.mxu0  ;;  %v15450_v15 = vpop.f32.mrf.mxu1 }
 0x510   : > { %16292 = vst [vmem:[#allocation64_spill] sm:$0xff] %v15450_v15  ;;  %v15471_v15 = vld [vmem:[%s15893_s10] sm:$0xff] }
 0x511   : > { %v15452_v32 = vpop.f32.mrf.mxu0  ;;  %v15454_v16 = vpop.f32.mrf.mxu1  ;;  %v15487_v30 = vrot.slane %v15471_v15, %v12913_v56 }
 0x512   : > { %16293 = vst [vmem:[#allocation40_spill] sm:$0xff] %v15454_v16 }
 0x513   : > { %v15456_v41 = vpop.f32.mrf.mxu0  ;;  %v15458_v17 = vpop.f32.mrf.mxu1 }
 0x514   : > { %16294 = vst [vmem:[#allocation49_spill] sm:$0xff] %v15458_v17  ;;  %v15479_v17 = vrot.slane %v15471_v15, %v13009_v7 }
 0x515   : > { %v15460_v46 = vpop.f32.mrf.mxu0  ;;  %v15462_v59 = vpop.f32.mrf.mxu1 }
 0x516   : > { %16295 = vst [vmem:[#allocation51_spill] sm:$0xff] %v15462_v59 }
 0x517   : > { %v15464_v45 = vpop.f32.mrf.mxu0  ;;  %v15466_v31 = vpop.f32.mrf.mxu1 }
 0x518   : > { %16296 = vst [vmem:[#allocation70_spill] sm:$0xff] %v15464_v45  ;;  %16297 = vst [vmem:[#allocation65_spill] sm:$0xff] %v15466_v31 }
 0x519   : > { %v15473_v43 = vpop.f32.mrf.mxu0  ;;  %v15475_v16 = vpop.f32.mrf.mxu1 }
 0x51a   : > { %16298 = vst [vmem:[#allocation58_spill] sm:$0xff] %v15473_v43  ;;  %16299 = vst [vmem:[#allocation50_spill] sm:$0xff] %v15475_v16 }
 0x52c   : > { %v15481_v61 = vpop.f32.mrf.mxu0  ;;  %v8031_v59 = vpop.f32.mrf.mxu1 }
 0x52d   : > { %16300 = vst [vmem:[#allocation55_spill] sm:$0xff] %v15481_v61  ;;  %v8032_v31 = vadd.f32 %v8031_v59, %v15324_v63  ;;  %v11108_v61 = vld [vmem:[%s11542_s9] sm:$0xff] }
 0x52e   : > { %v7404_v2 = vpop.f32.mrf.mxu0  ;;  %v8033_v5 = vpop.f32.mrf.mxu1 }
 0x52f   : > { %v8403_v8 = vadd.f32 %v15479_v17, %v8032_v31  ;;  %v8034_v16 = vadd.f32 %v8033_v5, %v15328_v49 }
 0x530   : > { %v15493_v7 = vpop.f32.mrf.mxu0  ;;  %v8035_v37 = vpop.f32.mrf.mxu1 }
 0x531   : > { %16301 = vst [vmem:[#allocation59_spill] sm:$0xff] %v15493_v7  ;;  %v8475_v6 = vmul.f32 0.1, %v8403_v8  ;;  %v8404_v54 = vadd.f32 %v15487_v30, %v8034_v16  ;;  %v8036_v63 = vadd.f32 %v8035_v37, %v15338_v1 }
 0x532   : > { %v7407_v59 = vpop.f32.mrf.mxu0  ;;  %v8037_v56 = vpop.f32.mrf.mxu1 }
 0x533   : > { %v8547_v2 = vadd.f32 %v11108_v61, %v8475_v6  ;;  %v8476_v22 = vmul.f32 0.1, %v8404_v54  ;;  %v8412_v31 = vadd.f32 %v15479_v17, %v8036_v63  ;;  %v8038_v49 = vadd.f32 %v8037_v56, %v15342_v51  ;;  %v11110_v54 = vld [vmem:[%s11542_s9 + $0x48] sm:$0xff]  ;;  %v11111_v56 = vld [vmem:[%s11542_s9 + $0x50] sm:$0xff] }
 0x534   : > { %v15500_v5 = vpop.f32.mrf.mxu0  ;;  %v8041_v43 = vpop.f32.mrf.mxu1 }
 0x535   : > { %v8619_v7 = vmax.f32 %v8547_v2, 0.0  ;;  %v8548_v8 = vadd.f32 %v11109_v20, %v8476_v22  ;;  %v8484_v45 = vmul.f32 0.1, %v8412_v31  ;;  %v8413_v16 = vadd.f32 %v15487_v30, %v8038_v49 }
 0x536   : > { %v8042_v1 = vadd.f32 %v8041_v43, %v15346_v28  ;;  %v7412_v37 = vpop.f32.mrf.mxu0  ;;  %v8043_v6 = vpop.f32.mrf.mxu1 }
 0x537   : > { %8691 = vst [vmem:[%s15505_s25] sm:$0xff] %v8619_v7  ;;  %v8620_v51 = vmax.f32 %v8548_v8, 0.0  ;;  %v8556_v61 = vadd.f32 %v11110_v54, %v8484_v45  ;;  %v8485_v63 = vmul.f32 0.1, %v8413_v16  ;;  %v8044_v20 = vadd.f32 %v8043_v6, %v15350_v0  ;;  %v11112_v6 = vld [vmem:[%s11542_s9 + $0x90] sm:$0xff] }
 0x538   : > { %v8421_v22 = vadd.f32 %v15479_v17, %v8042_v1  ;;  %v15511_v59 = vpop.f32.mrf.mxu0  ;;  %v8045_v28 = vpop.f32.mrf.mxu1 }
 0x539   : > { %8692 = vst [vmem:[%s15505_s25 + $0x8] sm:$0xff] %v8620_v51  ;;  %v8628_v43 = vmax.f32 %v8556_v61, 0.0  ;;  %v8557_v2 = vadd.f32 %v11111_v56, %v8485_v63  ;;  %v8422_v7 = vadd.f32 %v15487_v30, %v8044_v20  ;;  %v8046_v31 = vadd.f32 %v8045_v28, %v15360_v19  ;;  %v11113_v63 = vld [vmem:[%s11542_s9 + $0x98] sm:$0xff] }
 0x53a   : > { %v8493_v45 = vmul.f32 0.1, %v8421_v22  ;;  %v7415_v49 = vpop.f32.mrf.mxu0  ;;  %v8047_v8 = vpop.f32.mrf.mxu1 }
 0x53b   : > { %8700 = vst [vmem:[%s15505_s25 + $0x48] sm:$0xff] %v8628_v43  ;;  %v8629_v0 = vmax.f32 %v8557_v2, 0.0  ;;  %v8494_v16 = vmul.f32 0.1, %v8422_v7  ;;  %v8430_v1 = vadd.f32 %v15479_v17, %v8046_v31  ;;  %v8048_v37 = vadd.f32 %v8047_v8, %v15364_v25  ;;  %v11114_v7 = vld [vmem:[%s11542_s9 + $0xd8] sm:$0xff] }
 0x53c   : > { %v8565_v51 = vadd.f32 %v11112_v6, %v8493_v45  ;;  %v15521_v54 = vpop.f32.mrf.mxu0  ;;  %v8051_v61 = vpop.f32.mrf.mxu1 }
 0x53d   : > { %8701 = vst [vmem:[%s15505_s25 + $0x50] sm:$0xff] %v8629_v0  ;;  %v8566_v19 = vadd.f32 %v11113_v63, %v8494_v16  ;;  %v8502_v20 = vmul.f32 0.1, %v8430_v1  ;;  %v8431_v22 = vadd.f32 %v15487_v30, %v8048_v37  ;;  %v8052_v28 = vadd.f32 %v8051_v61, %v15368_v50  ;;  %v11115_v50 = vld [vmem:[%s11542_s9 + $0xe0] sm:$0xff] }
 0x53e   : > { %v8637_v43 = vmax.f32 %v8565_v51, 0.0  ;;  %v7420_v56 = vpop.f32.mrf.mxu0  ;;  %v8053_v2 = vpop.f32.mrf.mxu1 }
 0x53f   : > { %v8638_v25 = vmax.f32 %v8566_v19, 0.0  ;;  %v8574_v31 = vadd.f32 %v11114_v7, %v8502_v20  ;;  %v8503_v45 = vmul.f32 0.1, %v8431_v22  ;;  %v8439_v49 = vadd.f32 %v15479_v17, %v8052_v28  ;;  %v11116_v22 = vld [vmem:[%s11542_s9 + $0x120] sm:$0xff] }
 0x540   : > { %8709 = vst [vmem:[%s15505_s25 + $0x90] sm:$0xff] %v8637_v43  ;;  %v8054_v8 = vadd.f32 %v8053_v2, %v15378_v39  ;;  %v15531_v0 = vpop.f32.mrf.mxu0  ;;  %v8055_v16 = vpop.f32.mrf.mxu1 }
 0x541   : > { %8710 = vst [vmem:[%s15505_s25 + $0x98] sm:$0xff] %v8638_v25  ;;  %v8646_v1 = vmax.f32 %v8574_v31, 0.0  ;;  %v8575_v37 = vadd.f32 %v11115_v50, %v8503_v45  ;;  %v8511_v6 = vmul.f32 0.1, %v8439_v49  ;;  %v8056_v51 = vadd.f32 %v8055_v16, %v15382_v27  ;;  %v11117_v49 = vld [vmem:[%s11542_s9 + $0x128] sm:$0xff] }
 0x542   : > { %v8440_v61 = vadd.f32 %v15487_v30, %v8054_v8  ;;  %v7423_v63 = vpop.f32.mrf.mxu0  ;;  %v8057_v19 = vpop.f32.mrf.mxu1  ;;  %v11118_v50 = vld [vmem:[%s11542_s9 + $0x168] sm:$0xff] }
 0x543   : > { %8718 = vst [vmem:[%s15505_s25 + $0xd8] sm:$0xff] %v8646_v1  ;;  %v8647_v20 = vmax.f32 %v8575_v37, 0.0  ;;  %v8583_v39 = vadd.f32 %v11116_v22, %v8511_v6  ;;  %v8448_v28 = vadd.f32 %v15479_v17, %v8056_v51  ;;  %v8058_v43 = vadd.f32 %v8057_v19, %v15388_v9 }
 0x544   : > { %v8512_v56 = vmul.f32 0.1, %v8440_v61  ;;  %v15541_v2 = vpop.f32.mrf.mxu0  ;;  %v8061_v25 = vpop.f32.mrf.mxu1 }
 0x545   : > { %8719 = vst [vmem:[%s15505_s25 + $0xe0] sm:$0xff] %v8647_v20  ;;  %v8655_v27 = vmax.f32 %v8583_v39, 0.0  ;;  %v8520_v7 = vmul.f32 0.1, %v8448_v28  ;;  %v8449_v31 = vadd.f32 %v15487_v30, %v8058_v43  ;;  %v8062_v45 = vadd.f32 %v8061_v25, %v15392_v57  ;;  %v11119_v20 = vld [vmem:[%s11542_s9 + $0x170] sm:$0xff] }
 0x546   : > { %v8584_v8 = vadd.f32 %v11117_v49, %v8512_v56  ;;  %v7428_v16 = vpop.f32.mrf.mxu0  ;;  %v8063_v1 = vpop.f32.mrf.mxu1 }
 0x547   : > { %8727 = vst [vmem:[%s15505_s25 + $0x120] sm:$0xff] %v8655_v27  ;;  %v8592_v9 = vadd.f32 %v11118_v50, %v8520_v7  ;;  %v8521_v37 = vmul.f32 0.1, %v8449_v31  ;;  %v8457_v6 = vadd.f32 %v15479_v17, %v8062_v45  ;;  %v8064_v51 = vadd.f32 %v8063_v1, %v15396_v11  ;;  %v11120_v27 = vld [vmem:[%s11542_s9 + $0x1b0] sm:$0xff] }
 0x548   : > { %v8656_v61 = vmax.f32 %v8584_v8, 0.0  ;;  %v15551_v63 = vpop.f32.mrf.mxu0  ;;  %v8065_v19 = vpop.f32.mrf.mxu1 }
 0x549   : > { %v8664_v57 = vmax.f32 %v8592_v9, 0.0  ;;  %v8593_v22 = vadd.f32 %v11119_v20, %v8521_v37  ;;  %v8529_v39 = vmul.f32 0.1, %v8457_v6  ;;  %v8458_v28 = vadd.f32 %v15487_v30, %v8064_v51  ;;  %v11122_v6 = vld [vmem:[%s11542_s9 + $0x1f8] sm:$0xff] }
 0x54a   : > { %8728 = vst [vmem:[%s15505_s25 + $0x128] sm:$0xff] %v8656_v61  ;;  %v8066_v43 = vadd.f32 %v8065_v19, %v15400_v52  ;;  %v7431_v56 = vpop.f32.mrf.mxu0  ;;  %v8067_v25 = vpop.f32.mrf.mxu1  ;;  %v11121_v52 = vld [vmem:[%s11542_s9 + $0x1b8] sm:$0xff]  ;;  %v11123_v61 = vld [vmem:[%s11542_s9 + $0x200] sm:$0xff] }
 0x54b   : > { %8736 = vst [vmem:[%s15505_s25 + $0x168] sm:$0xff] %v8664_v57  ;;  %v8665_v11 = vmax.f32 %v8593_v22, 0.0  ;;  %v8601_v7 = vadd.f32 %v11120_v27, %v8529_v39  ;;  %v8530_v31 = vmul.f32 0.1, %v8458_v28  ;;  %v8068_v45 = vadd.f32 %v8067_v25, %v15404_v60 }
 0x54c   : > { %v8466_v49 = vadd.f32 %v15479_v17, %v8066_v43  ;;  %v16302_v17 = vld [vmem:[#allocation10_spill] sm:$0xff] }
 0x54d   : > { %8737 = vst [vmem:[%s15505_s25 + $0x170] sm:$0xff] %v8665_v11  ;;  %v8673_v8 = vmax.f32 %v8601_v7, 0.0  ;;  %v8602_v16 = vadd.f32 %v11121_v52, %v8530_v31  ;;  %v8467_v1 = vadd.f32 %v15487_v30, %v8068_v45  ;;  %v8376_v20 = vsub.s32 4, %v16302_v17 }
 0x54e   : > { %v8538_v50 = vmul.f32 0.1, %v8466_v49  ;;  %v8372_v22 = vsub.s32 3, %v16302_v17  ;;  %v8380_v39 = vsub.s32 5, %v16302_v17  ;;  %v16303_v30 = vsub.s32 2, %v16302_v17 }
 0x54f   : > { %8745 = vst [vmem:[%s15505_s25 + $0x1b0] sm:$0xff] %v8673_v8  ;;  %v8674_v9 = vmax.f32 %v8602_v16, 0.0  ;;  %v8539_v37 = vmul.f32 0.1, %v8467_v1  ;;  %v15579_v43 = vrot.slane %v15471_v15, %v8376_v20  ;;  %v11125_v20 = vld [vmem:[%s11542_s9 + $0x20] sm:$0xff] }
 0x550   : > { %v8610_v51 = vadd.f32 %v11122_v6, %v8538_v50  ;;  %v15576_v28 = vrot.slane %v15471_v15, %v16303_v30  ;;  %v15584_v7 = vrot.slane %v15471_v15, %v8372_v22  ;;  %v15587_v31 = vrot.slane %v15471_v15, %v8380_v39 }
 0x551   : > { %8746 = vst [vmem:[%s15505_s25 + $0x1b8] sm:$0xff] %v8674_v9  ;;  %v8611_v19 = vadd.f32 %v11123_v61, %v8539_v37 }
 0x552   : > { %v8682_v60 = vmax.f32 %v8610_v51, 0.0 }
 0x553   : > { %v8683_v57 = vmax.f32 %v8611_v19, 0.0 }
 0x554   : > { %8754 = vst [vmem:[%s15505_s25 + $0x1f8] sm:$0xff] %v8682_v60 }
 0x555   : > { %8755 = vst [vmem:[%s15505_s25 + $0x200] sm:$0xff] %v8683_v57  ;;  %v11124_v57 = vld [vmem:[%s11542_s9 + $0x10] sm:$0xff] }
 0x55d   : > { %v8104_v56 = vpop.f32.mrf.mxu0  ;;  %v8177_v25 = vpop.f32.mrf.mxu1 }
 0x55e   : > { %v8105_v11 = vadd.f32 %v8104_v56, %v15326_v33  ;;  %v8178_v27 = vadd.f32 %v8177_v25, %v15408_v10 }
 0x55f   : > { %v8106_v45 = vpop.f32.mrf.mxu0  ;;  %v8179_v49 = vpop.f32.mrf.mxu1 }
 0x560   : > { %v8405_v8 = vadd.f32 %v15576_v28, %v8105_v11  ;;  %v8407_v52 = vadd.f32 %v15579_v43, %v8178_v27  ;;  %v8107_v16 = vadd.f32 %v8106_v45, %v15330_v3  ;;  %v8180_v33 = vadd.f32 %v8179_v49, %v15412_v44  ;;  %v11126_v49 = vld [vmem:[%s11542_s9 + $0x18] sm:$0xff] }
 0x561   : > { %v8108_v1 = vpop.f32.mrf.mxu0  ;;  %v8181_v10 = vpop.f32.mrf.mxu1 }
 0x562   : > { %v8477_v50 = vmul.f32 0.1, %v8405_v8  ;;  %v8479_v9 = vmul.f32 0.1, %v8407_v52  ;;  %v8406_v37 = vadd.f32 %v15584_v7, %v8107_v16  ;;  %v8408_v6 = vadd.f32 %v15587_v31, %v8180_v33  ;;  %v11127_v52 = vld [vmem:[%s11542_s9 + $0x28] sm:$0xff] }
 0x563   : > { %v8109_v51 = vadd.f32 %v8108_v1, %v15340_v62  ;;  %v8182_v61 = vadd.f32 %v8181_v10, %v15416_v47  ;;  %v8110_v19 = vpop.f32.mrf.mxu0  ;;  %v8183_v60 = vpop.f32.mrf.mxu1 }
 0x564   : > { %v8549_v3 = vadd.f32 %v11124_v57, %v8477_v50  ;;  %v8551_v44 = vadd.f32 %v11125_v20, %v8479_v9  ;;  %v8478_v22 = vmul.f32 0.1, %v8406_v37  ;;  %v8480_v39 = vmul.f32 0.1, %v8408_v6 }
 0x565   : > { %v8414_v30 = vadd.f32 %v15576_v28, %v8109_v51  ;;  %v8416_v56 = vadd.f32 %v15579_v43, %v8182_v61  ;;  %v8111_v25 = vadd.f32 %v8110_v19, %v15344_v4  ;;  %v8184_v62 = vadd.f32 %v8183_v60, %v15420_v55  ;;  %v8114_v47 = vpop.f32.mrf.mxu0  ;;  %v8187_v11 = vpop.f32.mrf.mxu1  ;;  %v11128_v61 = vld [vmem:[%s11542_s9 + $0x58] sm:$0xff]  ;;  %v11129_v60 = vld [vmem:[%s11542_s9 + $0x68] sm:$0xff] }
 0x566   : > { %v8621_v27 = vmax.f32 %v8549_v3, 0.0  ;;  %v8623_v45 = vmax.f32 %v8551_v44, 0.0  ;;  %v8550_v8 = vadd.f32 %v11126_v49, %v8478_v22  ;;  %v8552_v16 = vadd.f32 %v11127_v52, %v8480_v39 }
 0x567   : > { %v8486_v33 = vmul.f32 0.1, %v8414_v30  ;;  %v8488_v1 = vmul.f32 0.1, %v8416_v56  ;;  %v8415_v10 = vadd.f32 %v15584_v7, %v8111_v25  ;;  %v8417_v4 = vadd.f32 %v15587_v31, %v8184_v62  ;;  %v8116_v50 = vpop.f32.mrf.mxu0  ;;  %v8189_v55 = vpop.f32.mrf.mxu1  ;;  %v11130_v62 = vld [vmem:[%s11542_s9 + $0x60] sm:$0xff] }
 0x568   : > { %8693 = vst [vmem:[%s15505_s25 + $0x10] sm:$0xff] %v8621_v27  ;;  %8695 = vst [vmem:[%s15505_s25 + $0x20] sm:$0xff] %v8623_v45  ;;  %v8622_v9 = vmax.f32 %v8550_v8, 0.0  ;;  %v8624_v37 = vmax.f32 %v8552_v16, 0.0  ;;  %v8115_v6 = vadd.f32 %v8114_v47, %v15348_v13  ;;  %v8188_v51 = vadd.f32 %v8187_v11, %v15424_v58  ;;  %v11131_v11 = vld [vmem:[%s11542_s9 + $0x70] sm:$0xff] }
 0x569   : > { %v8558_v19 = vadd.f32 %v11128_v61, %v8486_v33  ;;  %v8560_v57 = vadd.f32 %v11129_v60, %v8488_v1  ;;  %v8487_v3 = vmul.f32 0.1, %v8415_v10  ;;  %v8489_v20 = vmul.f32 0.1, %v8417_v4  ;;  %v8118_v44 = vpop.f32.mrf.mxu0  ;;  %v8191_v22 = vpop.f32.mrf.mxu1 }
 0x56a   : > { %8694 = vst [vmem:[%s15505_s25 + $0x18] sm:$0xff] %v8622_v9  ;;  %8696 = vst [vmem:[%s15505_s25 + $0x28] sm:$0xff] %v8624_v37  ;;  %v8423_v39 = vadd.f32 %v15576_v28, %v8115_v6  ;;  %v8425_v30 = vadd.f32 %v15579_v43, %v8188_v51  ;;  %v8117_v13 = vadd.f32 %v8116_v50, %v15352_v24  ;;  %v11133_v37 = vld [vmem:[%s11542_s9 + $0xb0] sm:$0xff] }
 0x56b   : > { %v8190_v58 = vadd.f32 %v8189_v55, %v15428_v34  ;;  %v8630_v56 = vmax.f32 %v8558_v19, 0.0  ;;  %v8632_v25 = vmax.f32 %v8560_v57, 0.0  ;;  %v8559_v47 = vadd.f32 %v11130_v62, %v8487_v3  ;;  %v8120_v45 = vpop.f32.mrf.mxu0  ;;  %v8193_v49 = vpop.f32.mrf.mxu1  ;;  %v11132_v55 = vld [vmem:[%s11542_s9 + $0xa0] sm:$0xff] }
 0x56c   : > { %v8561_v27 = vadd.f32 %v11131_v11, %v8489_v20  ;;  %v8495_v8 = vmul.f32 0.1, %v8423_v39  ;;  %v8497_v52 = vmul.f32 0.1, %v8425_v30  ;;  %v8424_v16 = vadd.f32 %v15584_v7, %v8117_v13  ;;  %v11135_v30 = vld [vmem:[%s11542_s9 + $0xb8] sm:$0xff] }
 0x56d   : > { %v8426_v33 = vadd.f32 %v15587_v31, %v8190_v58  ;;  %8702 = vst [vmem:[%s15505_s25 + $0x58] sm:$0xff] %v8630_v56  ;;  %8704 = vst [vmem:[%s15505_s25 + $0x68] sm:$0xff] %v8632_v25  ;;  %v8631_v24 = vmax.f32 %v8559_v47, 0.0  ;;  %v8119_v1 = vadd.f32 %v8118_v44, %v15362_v23  ;;  %v8192_v10 = vadd.f32 %v8191_v22, %v15432_v21  ;;  %v8124_v4 = vpop.f32.mrf.mxu0  ;;  %v8197_v50 = vpop.f32.mrf.mxu1  ;;  %v11134_v22 = vld [vmem:[%s11542_s9 + $0xa8] sm:$0xff] }
 0x56e   : > { %v8633_v34 = vmax.f32 %v8561_v27, 0.0  ;;  %v8567_v9 = vadd.f32 %v11132_v55, %v8495_v8  ;;  %v8569_v6 = vadd.f32 %v11133_v37, %v8497_v52  ;;  %v8496_v51 = vmul.f32 0.1, %v8424_v16  ;;  %v11137_v52 = vld [vmem:[%s11542_s9 + $0xf8] sm:$0xff] }
 0x56f   : > { %v8498_v61 = vmul.f32 0.1, %v8426_v33  ;;  %8703 = vst [vmem:[%s15505_s25 + $0x60] sm:$0xff] %v8631_v24  ;;  %v8432_v19 = vadd.f32 %v15576_v28, %v8119_v1  ;;  %v8434_v60 = vadd.f32 %v15579_v43, %v8192_v10  ;;  %v8121_v23 = vadd.f32 %v8120_v45, %v15366_v36  ;;  %v8126_v57 = vpop.f32.mrf.mxu0  ;;  %v8199_v3 = vpop.f32.mrf.mxu1 }
 0x570   : > { %8705 = vst [vmem:[%s15505_s25 + $0x70] sm:$0xff] %v8633_v34  ;;  %v8194_v21 = vadd.f32 %v8193_v49, %v15436_v38  ;;  %v8639_v20 = vmax.f32 %v8567_v9, 0.0  ;;  %v8641_v44 = vmax.f32 %v8569_v6, 0.0  ;;  %v8568_v39 = vadd.f32 %v11134_v22, %v8496_v51  ;;  %v11136_v49 = vld [vmem:[%s11542_s9 + $0xe8] sm:$0xff]  ;;  %v11138_v9 = vld [vmem:[%s11542_s9 + $0xf0] sm:$0xff]  ;;  %v11139_v6 = vld [vmem:[%s11542_s9 + $0x100] sm:$0xff] }
 0x571   : > { %v8570_v13 = vadd.f32 %v11135_v30, %v8498_v61  ;;  %v8504_v58 = vmul.f32 0.1, %v8432_v19  ;;  %v8506_v56 = vmul.f32 0.1, %v8434_v60  ;;  %v8433_v25 = vadd.f32 %v15584_v7, %v8121_v23  ;;  %v8128_v62 = vpop.f32.mrf.mxu0  ;;  %v8201_v38 = vpop.f32.mrf.mxu1 }
 0x572   : > { %v8435_v36 = vadd.f32 %v15587_v31, %v8194_v21  ;;  %8711 = vst [vmem:[%s15505_s25 + $0xa0] sm:$0xff] %v8639_v20  ;;  %8713 = vst [vmem:[%s15505_s25 + $0xb0] sm:$0xff] %v8641_v44  ;;  %v8640_v47 = vmax.f32 %v8568_v39, 0.0  ;;  %v8125_v27 = vadd.f32 %v8124_v4, %v15370_v26  ;;  %v8198_v45 = vadd.f32 %v8197_v50, %v15440_v42  ;;  %v11140_v44 = vld [vmem:[%s11542_s9 + $0x130] sm:$0xff]  ;;  %v11141_v39 = vld [vmem:[%s11542_s9 + $0x140] sm:$0xff] }
 0x573   : > { %v8642_v11 = vmax.f32 %v8570_v13, 0.0  ;;  %v8576_v8 = vadd.f32 %v11136_v49, %v8504_v58  ;;  %v8578_v16 = vadd.f32 %v11137_v52, %v8506_v56  ;;  %v8505_v33 = vmul.f32 0.1, %v8433_v25  ;;  %v8130_v34 = vpop.f32.mrf.mxu0  ;;  %v8203_v1 = vpop.f32.mrf.mxu1 }
 0x574   : > { %v8507_v24 = vmul.f32 0.1, %v8435_v36  ;;  %8712 = vst [vmem:[%s15505_s25 + $0xa8] sm:$0xff] %v8640_v47  ;;  %v8441_v10 = vadd.f32 %v15576_v28, %v8125_v27  ;;  %v8443_v55 = vadd.f32 %v15579_v43, %v8198_v45  ;;  %v8127_v26 = vadd.f32 %v8126_v57, %v15380_v48  ;;  %v11143_v45 = vld [vmem:[%s11542_s9 + $0x148] sm:$0xff] }
 0x575   : > { %8714 = vst [vmem:[%s15505_s25 + $0xb8] sm:$0xff] %v8642_v11  ;;  %v8200_v42 = vadd.f32 %v8199_v3, %v15444_v53  ;;  %v8648_v4 = vmax.f32 %v8576_v8, 0.0  ;;  %v8650_v50 = vmax.f32 %v8578_v16, 0.0  ;;  %v8577_v37 = vadd.f32 %v11138_v9, %v8505_v33  ;;  %v8134_v61 = vpop.f32.mrf.mxu0  ;;  %v8207_v19 = vpop.f32.mrf.mxu1  ;;  %v11142_v11 = vld [vmem:[%s11542_s9 + $0x138] sm:$0xff] }
 0x576   : > { %v8579_v51 = vadd.f32 %v11139_v6, %v8507_v24  ;;  %v8513_v60 = vmul.f32 0.1, %v8441_v10  ;;  %v8515_v23 = vmul.f32 0.1, %v8443_v55  ;;  %v8442_v21 = vadd.f32 %v15584_v7, %v8127_v26  ;;  %v11144_v55 = vld [vmem:[%s11542_s9 + $0x178] sm:$0xff] }
 0x577   : > { %v8444_v20 = vadd.f32 %v15587_v31, %v8200_v42  ;;  %8720 = vst [vmem:[%s15505_s25 + $0xe8] sm:$0xff] %v8648_v4  ;;  %8722 = vst [vmem:[%s15505_s25 + $0xf8] sm:$0xff] %v8650_v50  ;;  %v8649_v48 = vmax.f32 %v8577_v37, 0.0  ;;  %v8129_v57 = vadd.f32 %v8128_v62, %v15384_v29  ;;  %v8202_v3 = vadd.f32 %v8201_v38, %v15448_v14  ;;  %v8136_v56 = vpop.f32.mrf.mxu0  ;;  %v8209_v25 = vpop.f32.mrf.mxu1  ;;  %v11145_v42 = vld [vmem:[%s11542_s9 + $0x188] sm:$0xff] }
 0x578   : > { %v8651_v53 = vmax.f32 %v8579_v51, 0.0  ;;  %v8585_v22 = vadd.f32 %v11140_v44, %v8513_v60  ;;  %v8587_v30 = vadd.f32 %v11141_v39, %v8515_v23  ;;  %v8514_v13 = vmul.f32 0.1, %v8442_v21  ;;  %v11147_v23 = vld [vmem:[%s11542_s9 + $0x190] sm:$0xff]  ;;  %v16304_v39 = vld [vmem:[#allocation70_spill] sm:$0xff] }
 0x579   : > { %v8516_v58 = vmul.f32 0.1, %v8444_v20  ;;  %8721 = vst [vmem:[%s15505_s25 + $0xf0] sm:$0xff] %v8649_v48  ;;  %v8450_v36 = vadd.f32 %v15576_v28, %v8129_v57  ;;  %v8452_v29 = vadd.f32 %v15579_v43, %v8202_v3  ;;  %v8131_v14 = vadd.f32 %v8130_v34, %v15390_v18  ;;  %v8211_v10 = vpop.f32.mrf.mxu1 }
 0x57a   : > { %8723 = vst [vmem:[%s15505_s25 + $0x100] sm:$0xff] %v8651_v53  ;;  %v8204_v62 = vadd.f32 %v8203_v1, %v15452_v32  ;;  %v8657_v38 = vmax.f32 %v8585_v22, 0.0  ;;  %v8659_v47 = vmax.f32 %v8587_v30, 0.0  ;;  %v8586_v27 = vadd.f32 %v11142_v11, %v8514_v13  ;;  %v8138_v1 = vpop.f32.mrf.mxu0  ;;  %v11148_v13 = vld [vmem:[%s11542_s9 + $0x1c0] sm:$0xff] }
 0x57b   : > { %v8588_v49 = vadd.f32 %v11143_v45, %v8516_v58  ;;  %v8522_v8 = vmul.f32 0.1, %v8450_v36  ;;  %v8524_v52 = vmul.f32 0.1, %v8452_v29  ;;  %v8451_v16 = vadd.f32 %v15584_v7, %v8131_v14 }
 0x57c   : > { %v8453_v33 = vadd.f32 %v15587_v31, %v8204_v62  ;;  %8729 = vst [vmem:[%s15505_s25 + $0x130] sm:$0xff] %v8657_v38  ;;  %8731 = vst [vmem:[%s15505_s25 + $0x140] sm:$0xff] %v8659_v47  ;;  %v8658_v18 = vmax.f32 %v8586_v27, 0.0  ;;  %v8135_v24 = vadd.f32 %v8134_v61, %v15394_v35  ;;  %v8208_v34 = vadd.f32 %v8207_v19, %v15456_v41  ;;  %v11146_v19 = vld [vmem:[%s11542_s9 + $0x180] sm:$0xff]  ;;  %v8140_v3 = vpop.f32.mrf.mxu0  ;;  %v16305_v38 = vld [vmem:[#allocation62_spill] sm:$0xff] }
 0x57d   : > { %v8660_v32 = vmax.f32 %v8588_v49, 0.0  ;;  %v8594_v26 = vadd.f32 %v11144_v55, %v8522_v8  ;;  %v8596_v4 = vadd.f32 %v11145_v42, %v8524_v52  ;;  %v8523_v50 = vmul.f32 0.1, %v8451_v16  ;;  %v16306_v47 = vld [vmem:[#allocation58_spill] sm:$0xff]  ;;  %v11151_v52 = vld [vmem:[%s11542_s9 + $0x1d8] sm:$0xff] }
 0x57e   : > { %v8525_v9 = vmul.f32 0.1, %v8453_v33  ;;  %8730 = vst [vmem:[%s15505_s25 + $0x138] sm:$0xff] %v8658_v18  ;;  %v8459_v37 = vadd.f32 %v15576_v28, %v8135_v24  ;;  %v8461_v6 = vadd.f32 %v15579_v43, %v8208_v34  ;;  %v8137_v35 = vadd.f32 %v8136_v56, %v15398_v12  ;;  %v8213_v12 = vpop.f32.mrf.mxu1  ;;  %v11149_v56 = vld [vmem:[%s11542_s9 + $0x1d0] sm:$0xff]  ;;  %v11150_v49 = vld [vmem:[%s11542_s9 + $0x1c8] sm:$0xff] }
 0x57f   : > { %8732 = vst [vmem:[%s15505_s25 + $0x148] sm:$0xff] %v8660_v32  ;;  %v8210_v41 = vadd.f32 %v8209_v25, %v15460_v46  ;;  %v8666_v51 = vmax.f32 %v8594_v26, 0.0  ;;  %v8668_v61 = vmax.f32 %v8596_v4, 0.0  ;;  %v8595_v60 = vadd.f32 %v11146_v19, %v8523_v50  ;;  %v11152_v34 = vld [vmem:[%s11542_s9 + $0x208] sm:$0xff]  ;;  %v11154_v50 = vld [vmem:[%s11542_s9 + $0x210] sm:$0xff] }
 0x580   : > { %v8597_v21 = vadd.f32 %v11147_v23, %v8525_v9  ;;  %v8531_v20 = vmul.f32 0.1, %v8459_v37  ;;  %v8533_v48 = vmul.f32 0.1, %v8461_v6  ;;  %v8460_v53 = vadd.f32 %v15584_v7, %v8137_v35  ;;  %v11155_v37 = vld [vmem:[%s11542_s9 + $0x220] sm:$0xff] }
 0x581   : > { %v8462_v57 = vadd.f32 %v15587_v31, %v8210_v41  ;;  %8738 = vst [vmem:[%s15505_s25 + $0x178] sm:$0xff] %v8666_v51  ;;  %8740 = vst [vmem:[%s15505_s25 + $0x188] sm:$0xff] %v8668_v61  ;;  %v8667_v46 = vmax.f32 %v8595_v60, 0.0  ;;  %v8139_v22 = vadd.f32 %v8138_v1, %v15402_v40  ;;  %v8212_v30 = vadd.f32 %v8211_v10, %v16304_v39  ;;  %v11153_v10 = vld [vmem:[%s11542_s9 + $0x218] sm:$0xff]  ;;  %v15723_v23 = vld [vmem:[%s15893_s10 + $0x8] ss:$0 sm:$0xff] }
 0x582   : > { %v8669_v44 = vmax.f32 %v8597_v21, 0.0  ;;  %v8603_v58 = vadd.f32 %v11148_v13, %v8531_v20  ;;  %v8605_v25 = vadd.f32 %v11149_v56, %v8533_v48  ;;  %v8532_v36 = vmul.f32 0.1, %v8460_v53  ;;  %v16307_v21 = vld [vmem:[#allocation43_spill] sm:$0xff] }
 0x583   : > { %v8534_v29 = vmul.f32 0.1, %v8462_v57  ;;  %8739 = vst [vmem:[%s15505_s25 + $0x180] sm:$0xff] %v8667_v46  ;;  %v8468_v14 = vadd.f32 %v15576_v28, %v8139_v22  ;;  %v8470_v62 = vadd.f32 %v15579_v43, %v8212_v30  ;;  %v8141_v40 = vadd.f32 %v8140_v3, %v16305_v38  ;;  %v16308_v48 = vld [vmem:[#allocation55_spill] sm:$0xff] }
 0x584   : > { %8741 = vst [vmem:[%s15505_s25 + $0x190] sm:$0xff] %v8669_v44  ;;  %v8214_v11 = vadd.f32 %v8213_v12, %v16306_v47  ;;  %v8675_v27 = vmax.f32 %v8603_v58, 0.0  ;;  %v8677_v45 = vmax.f32 %v8605_v25, 0.0  ;;  %v8604_v8 = vadd.f32 %v11150_v49, %v8532_v36  ;;  %v16309_v44 = vld [vmem:[#allocation63_spill] sm:$0xff]  ;;  %v16310_v25 = vld [vmem:[#allocation54_spill] sm:$0xff]  ;;  %v11157_v47 = vld [vmem:[%s11542_s9 + $0x40] sm:$0xff] }
 0x585   : > { %v8606_v16 = vadd.f32 %v11151_v52, %v8534_v29  ;;  %v8540_v33 = vmul.f32 0.1, %v8468_v14  ;;  %v8542_v18 = vmul.f32 0.1, %v8470_v62  ;;  %v8469_v28 = vadd.f32 %v15584_v7, %v8141_v40  ;;  %v16311_v29 = vld [vmem:[#allocation59_spill] sm:$0xff] }
 0x586   : > { %v8471_v43 = vadd.f32 %v15587_v31, %v8214_v11  ;;  %8747 = vst [vmem:[%s15505_s25 + $0x1c0] sm:$0xff] %v8675_v27  ;;  %8749 = vst [vmem:[%s15505_s25 + $0x1d0] sm:$0xff] %v8677_v45  ;;  %v8676_v32 = vmax.f32 %v8604_v8, 0.0  ;;  %v8384_v7 = vsub.s32 6, %v16302_v17  ;;  %v8388_v51 = vsub.s32 7, %v16302_v17  ;;  %v11156_v38 = vld [vmem:[%s11542_s9 + $0x30] sm:$0xff] }
 0x587   : > { %v8678_v24 = vmax.f32 %v8606_v16, 0.0  ;;  %v8612_v1 = vadd.f32 %v11152_v34, %v8540_v33  ;;  %v8614_v55 = vadd.f32 %v11153_v10, %v8542_v18  ;;  %v8541_v26 = vmul.f32 0.1, %v8469_v28  ;;  %v16312_v8 = vld [vmem:[#allocation45_spill] sm:$0xff]  ;;  %v16313_v10 = vld [vmem:[#allocation44_spill] sm:$0xff] }
 0x588   : > { %v8543_v42 = vmul.f32 0.1, %v8471_v43  ;;  %8748 = vst [vmem:[%s15505_s25 + $0x1c8] sm:$0xff] %v8676_v32  ;;  %v15718_v61 = vrot.slane %v15471_v15, %v8384_v7  ;;  %v15728_v57 = vrot.slane %v15471_v15, %v8388_v51  ;;  %v11158_v43 = vld [vmem:[%s11542_s9 + $0x38] sm:$0xff] }
 0x589   : > { %8750 = vst [vmem:[%s15505_s25 + $0x1d8] sm:$0xff] %v8678_v24  ;;  %v8684_v31 = vmax.f32 %v8612_v1, 0.0  ;;  %v8686_v4 = vmax.f32 %v8614_v55, 0.0  ;;  %v8613_v9 = vadd.f32 %v11154_v50, %v8541_v26 }
 0x58a   : > { %v8615_v6 = vadd.f32 %v11155_v37, %v8543_v42 }
 0x58b   : > { %8756 = vst [vmem:[%s15505_s25 + $0x208] sm:$0xff] %v8684_v31  ;;  %8758 = vst [vmem:[%s15505_s25 + $0x218] sm:$0xff] %v8686_v4  ;;  %v8685_v35 = vmax.f32 %v8613_v9, 0.0  ;;  %v11159_v4 = vld [vmem:[%s11542_s9 + $0x78] sm:$0xff]  ;;  %v16315_v9 = vld [vmem:[#allocation42_spill] sm:$0xff] }
 0x58c   : > { %v8687_v41 = vmax.f32 %v8615_v6, 0.0  ;;  %v11160_v6 = vld [vmem:[%s11542_s9 + $0x88] sm:$0xff] }
 0x58d   : > { %8757 = vst [vmem:[%s15505_s25 + $0x210] sm:$0xff] %v8685_v35 }
 0x58e   : > { %8759 = vst [vmem:[%s15505_s25 + $0x220] sm:$0xff] %v8687_v41  ;;  %v8250_v19 = vpop.f32.mrf.mxu0  ;;  %v8323_v60 = vpop.f32.mrf.mxu1 }
 0x58f   : > { %v8251_v20 = vadd.f32 %v8250_v19, %v16307_v21  ;;  %v8324_v53 = vadd.f32 %v8323_v60, %v16308_v48  ;;  %v16316_v48 = vld [vmem:[#allocation71_spill] sm:$0xff] }
 0x590   : > { %v8252_v17 = vpop.f32.mrf.mxu0  ;;  %v8325_v3 = vpop.f32.mrf.mxu1 }
 0x591   : > { %v8409_v12 = vadd.f32 %v15718_v61, %v8251_v20  ;;  %v8411_v46 = vadd.f32 %v15723_v23, %v8324_v53  ;;  %v8253_v22 = vadd.f32 %v8252_v17, %v16309_v44 }
 0x592   : > { %v8254_v39 = vpop.f32.mrf.mxu0  ;;  %v8326_v30 = vpop.f32.mrf.mxu1 }
 0x593   : > { %v8481_v13 = vmul.f32 0.1, %v8409_v12  ;;  %v8483_v58 = vmul.f32 0.1, %v8411_v46  ;;  %v8410_v56 = vadd.f32 %v15728_v57, %v8253_v22  ;;  %v8255_v36 = vadd.f32 %v8254_v39, %v16310_v25  ;;  %v11161_v12 = vld [vmem:[%s11542_s9 + $0x80] sm:$0xff]  ;;  %v16317_v25 = vld [vmem:[#allocation66_spill] sm:$0xff] }
 0x594   : > { %v8327_v15 = vadd.f32 %v8326_v30, %v16311_v29  ;;  %v8256_v14 = vpop.f32.mrf.mxu0  ;;  %v8328_v62 = vpop.f32.mrf.mxu1  ;;  %v11162_v29 = vld [vmem:[%s11542_s9 + $0xc0] sm:$0xff] }
 0x595   : > { %v8553_v40 = vadd.f32 %v11156_v38, %v8481_v13  ;;  %v8555_v11 = vadd.f32 %v11157_v47, %v8483_v58  ;;  %v8482_v27 = vmul.f32 0.1, %v8410_v56  ;;  %v8418_v45 = vadd.f32 %v15718_v61, %v8255_v36  ;;  %v11164_v47 = vld [vmem:[%s11542_s9 + $0xc8] sm:$0xff] }
 0x596   : > { %v8420_v49 = vadd.f32 %v15723_v23, %v8327_v15  ;;  %v8257_v52 = vadd.f32 %v8256_v14, %v16312_v8  ;;  %v8260_v16 = vpop.f32.mrf.mxu0  ;;  %v8331_v33 = vpop.f32.mrf.mxu1  ;;  %v11163_v14 = vld [vmem:[%s11542_s9 + $0xd0] sm:$0xff] }
 0x597   : > { %v8625_v18 = vmax.f32 %v8553_v40, 0.0  ;;  %v8627_v28 = vmax.f32 %v8555_v11, 0.0  ;;  %v8554_v32 = vadd.f32 %v11158_v43, %v8482_v27  ;;  %v8490_v24 = vmul.f32 0.1, %v8418_v45 }
 0x598   : > { %v8492_v34 = vmul.f32 0.1, %v8420_v49  ;;  %v8419_v1 = vadd.f32 %v15728_v57, %v8257_v52  ;;  %v8261_v55 = vadd.f32 %v8260_v16, %v16313_v10  ;;  %v8332_v26 = vadd.f32 %v8331_v33, %v15500_v5  ;;  %v8262_v42 = vpop.f32.mrf.mxu0  ;;  %v8333_v7 = vpop.f32.mrf.mxu1  ;;  %v16319_v16 = vld [vmem:[#allocation56_spill] sm:$0xff] }
 0x599   : > { %8697 = vst [vmem:[%s15505_s25 + $0x30] sm:$0xff] %v8625_v18  ;;  %8699 = vst.msk [vmem:[%s15505_s25 + $0x40] sm:$0xff] %vm16314_vm1, %v8627_v28  ;;  %v8626_v31 = vmax.f32 %v8554_v32, 0.0  ;;  %v8562_v50 = vadd.f32 %v11159_v4, %v8490_v24  ;;  %v8263_v37 = vadd.f32 %v8262_v42, %v16315_v9  ;;  %v11165_v24 = vld [vmem:[%s11542_s9 + $0x108] sm:$0xff]  ;;  %v16321_v7 = vld [vmem:[#allocation48_spill] sm:$0xff] }
 0x59a   : > { %v8564_v35 = vadd.f32 %v11160_v6, %v8492_v34  ;;  %v8491_v41 = vmul.f32 0.1, %v8419_v1  ;;  %v8427_v51 = vadd.f32 %v15718_v61, %v8261_v55  ;;  %v8429_v5 = vadd.f32 %v15723_v23, %v8332_v26  ;;  %v8264_v19 = vpop.f32.mrf.mxu0  ;;  %v8334_v60 = vpop.f32.mrf.mxu1  ;;  %v11166_v1 = vld [vmem:[%s11542_s9 + $0x118] sm:$0xff] }
 0x59b   : > { %8698 = vst [vmem:[%s15505_s25 + $0x38] sm:$0xff] %v8626_v31  ;;  %v8634_v21 = vmax.f32 %v8562_v50, 0.0  ;;  %v8428_v20 = vadd.f32 %v15728_v57, %v8263_v37  ;;  %v8265_v53 = vadd.f32 %v8264_v19, %v16316_v48  ;;  %v8335_v17 = vadd.f32 %v8334_v60, %v15511_v59  ;;  %v11167_v37 = vld [vmem:[%s11542_s9 + $0x110] sm:$0xff] }
 0x59c   : > { %v8636_v3 = vmax.f32 %v8564_v35, 0.0  ;;  %v8563_v46 = vadd.f32 %v11161_v12, %v8491_v41  ;;  %v8499_v44 = vmul.f32 0.1, %v8427_v51  ;;  %v8501_v22 = vmul.f32 0.1, %v8429_v5  ;;  %v8266_v39 = vpop.f32.mrf.mxu0  ;;  %v8336_v30 = vpop.f32.mrf.mxu1  ;;  %v16322_v35 = vld [vmem:[#allocation64_spill] sm:$0xff] }
 0x59d   : > { %8706 = vst [vmem:[%s15505_s25 + $0x78] sm:$0xff] %v8634_v21  ;;  %v8500_v13 = vmul.f32 0.1, %v8428_v20  ;;  %v8436_v58 = vadd.f32 %v15718_v61, %v8265_v53  ;;  %v8438_v56 = vadd.f32 %v15723_v23, %v8335_v17  ;;  %v8267_v36 = vadd.f32 %v8266_v39, %v16317_v25  ;;  %v16323_v17 = vld [vmem:[#allocation40_spill] sm:$0xff]  ;;  %v11168_v12 = vld [vmem:[%s11542_s9 + $0x150] sm:$0xff]  ;;  %v16324_v25 = vld [vmem:[#allocation49_spill] sm:$0xff] }
 0x59e   : > { %8708 = vst.msk [vmem:[%s15505_s25 + $0x88] sm:$0xff] %vm16318_vm13, %v8636_v3  ;;  %v8635_v59 = vmax.f32 %v8563_v46, 0.0  ;;  %v8571_v15 = vadd.f32 %v11162_v29, %v8499_v44  ;;  %v8573_v62 = vadd.f32 %v11163_v14, %v8501_v22  ;;  %v8270_v38 = vpop.f32.mrf.mxu0  ;;  %v8339_v40 = vpop.f32.mrf.mxu1  ;;  %v11169_v44 = vld [vmem:[%s11542_s9 + $0x160] sm:$0xff]  ;;  %v11170_v14 = vld [vmem:[%s11542_s9 + $0x158] sm:$0xff] }
 0x59f   : > { %v8572_v11 = vadd.f32 %v11164_v47, %v8500_v13  ;;  %v8508_v27 = vmul.f32 0.1, %v8436_v58  ;;  %v8510_v45 = vmul.f32 0.1, %v8438_v56  ;;  %v8437_v49 = vadd.f32 %v15728_v57, %v8267_v36 }
 0x5a0   : > { %8707 = vst [vmem:[%s15505_s25 + $0x80] sm:$0xff] %v8635_v59  ;;  %v8643_v8 = vmax.f32 %v8571_v15, 0.0  ;;  %v8645_v52 = vmax.f32 %v8573_v62, 0.0  ;;  %v8271_v33 = vadd.f32 %v8270_v38, %v16319_v16  ;;  %v8340_v18 = vadd.f32 %v8339_v40, %v15521_v54  ;;  %v8272_v28 = vpop.f32.mrf.mxu0  ;;  %v8341_v43 = vpop.f32.mrf.mxu1 }
 0x5a1   : > { %v8644_v32 = vmax.f32 %v8572_v11, 0.0  ;;  %v8580_v34 = vadd.f32 %v11165_v24, %v8508_v27  ;;  %v8582_v10 = vadd.f32 %v11166_v1, %v8510_v45  ;;  %v8509_v55 = vmul.f32 0.1, %v8437_v49  ;;  %v11171_v11 = vld [vmem:[%s11542_s9 + $0x198] sm:$0xff]  ;;  %v11173_v24 = vld [vmem:[%s11542_s9 + $0x1a0] sm:$0xff] }
 0x5a2   : > { %8715 = vst [vmem:[%s15505_s25 + $0xc0] sm:$0xff] %v8643_v8  ;;  %8717 = vst.msk [vmem:[%s15505_s25 + $0xd0] sm:$0xff] %vm16320_vm2, %v8645_v52  ;;  %v8445_v26 = vadd.f32 %v15718_v61, %v8271_v33  ;;  %v8447_v42 = vadd.f32 %v15723_v23, %v8340_v18  ;;  %v8273_v54 = vadd.f32 %v8272_v28, %v16321_v7  ;;  %v8274_v31 = vpop.f32.mrf.mxu0  ;;  %v8342_v4 = vpop.f32.mrf.mxu1  ;;  %v11172_v52 = vld [vmem:[%s11542_s9 + $0x1a8] sm:$0xff]  ;;  %v16326_v33 = vld [vmem:[#allocation51_spill] sm:$0xff] }
 0x5a3   : > { %8716 = vst [vmem:[%s15505_s25 + $0xc8] sm:$0xff] %v8644_v32  ;;  %v8652_v50 = vmax.f32 %v8580_v34, 0.0  ;;  %v8654_v9 = vmax.f32 %v8582_v10, 0.0  ;;  %v8581_v6 = vadd.f32 %v11167_v37, %v8509_v55  ;;  %v8275_v41 = vadd.f32 %v8274_v31, %v16322_v35 }
 0x5a4   : > { %v8517_v51 = vmul.f32 0.1, %v8445_v26  ;;  %v8519_v5 = vmul.f32 0.1, %v8447_v42  ;;  %v8446_v19 = vadd.f32 %v15728_v57, %v8273_v54  ;;  %v8343_v60 = vadd.f32 %v8342_v4, %v15531_v0  ;;  %v8276_v21 = vpop.f32.mrf.mxu0  ;;  %v8344_v20 = vpop.f32.mrf.mxu1  ;;  %v16327_v42 = vld [vmem:[#allocation65_spill] sm:$0xff] }
 0x5a5   : > { %8724 = vst [vmem:[%s15505_s25 + $0x108] sm:$0xff] %v8652_v50  ;;  %8726 = vst.msk [vmem:[%s15505_s25 + $0x118] sm:$0xff] %vm16224_vm0, %v8654_v9  ;;  %v8653_v48 = vmax.f32 %v8581_v6, 0.0  ;;  %v8454_v53 = vadd.f32 %v15718_v61, %v8275_v41  ;;  %v8277_v3 = vadd.f32 %v8276_v21, %v16323_v17  ;;  %v11174_v9 = vld [vmem:[%s11542_s9 + $0x1e0] sm:$0xff]  ;;  %v11175_v6 = vld [vmem:[%s11542_s9 + $0x1f0] sm:$0xff] }
 0x5a6   : > { %v8589_v46 = vadd.f32 %v11168_v12, %v8517_v51  ;;  %v8591_v22 = vadd.f32 %v11169_v44, %v8519_v5  ;;  %v8518_v39 = vmul.f32 0.1, %v8446_v19  ;;  %v8456_v0 = vadd.f32 %v15723_v23, %v8343_v60  ;;  %v8280_v30 = vpop.f32.mrf.mxu0  ;;  %v8347_v13 = vpop.f32.mrf.mxu1  ;;  %v16328_v41 = vld [vmem:[#allocation50_spill] sm:$0xff]  ;;  %v11178_v44 = vld [vmem:[%s11542_s9 + $0x238] sm:$0xff] }
 0x5a7   : > { %8725 = vst [vmem:[%s15505_s25 + $0x110] sm:$0xff] %v8653_v48  ;;  %v8526_v58 = vmul.f32 0.1, %v8454_v53  ;;  %v8455_v56 = vadd.f32 %v15728_v57, %v8277_v3  ;;  %v8281_v36 = vadd.f32 %v8280_v30, %v16324_v25  ;;  %v8348_v59 = vadd.f32 %v8347_v13, %v15541_v2  ;;  %v11176_v48 = vld [vmem:[%s11542_s9 + $0x1e8] sm:$0xff] }
 0x5a8   : > { %v8661_v29 = vmax.f32 %v8589_v46, 0.0  ;;  %v8663_v15 = vmax.f32 %v8591_v22, 0.0  ;;  %v8590_v62 = vadd.f32 %v11170_v14, %v8518_v39  ;;  %v8528_v38 = vmul.f32 0.1, %v8456_v0  ;;  %v8282_v40 = vpop.f32.mrf.mxu0  ;;  %v8349_v47 = vpop.f32.mrf.mxu1  ;;  %v11177_v12 = vld [vmem:[%s11542_s9 + $0x228] sm:$0xff] }
 0x5a9   : > { %v8598_v27 = vadd.f32 %v11171_v11, %v8526_v58  ;;  %v8527_v45 = vmul.f32 0.1, %v8455_v56  ;;  %v8463_v49 = vadd.f32 %v15718_v61, %v8281_v36  ;;  %v8465_v8 = vadd.f32 %v15723_v23, %v8348_v59 }
 0x5aa   : > { %8733 = vst [vmem:[%s15505_s25 + $0x150] sm:$0xff] %v8661_v29  ;;  %8735 = vst.msk [vmem:[%s15505_s25 + $0x160] sm:$0xff] %vm16325_vm14, %v8663_v15  ;;  %v8662_v2 = vmax.f32 %v8590_v62, 0.0  ;;  %v8600_v16 = vadd.f32 %v11172_v52, %v8528_v38  ;;  %v8283_v18 = vadd.f32 %v8282_v40, %v16326_v33  ;;  %v8284_v28 = vpop.f32.mrf.mxu0  ;;  %v8350_v43 = vpop.f32.mrf.mxu1 }
 0x5ab   : > { %v8670_v32 = vmax.f32 %v8598_v27, 0.0  ;;  %v8599_v34 = vadd.f32 %v11173_v24, %v8527_v45  ;;  %v8535_v1 = vmul.f32 0.1, %v8463_v49  ;;  %v8537_v10 = vmul.f32 0.1, %v8465_v8 }
 0x5ac   : > { %8734 = vst [vmem:[%s15505_s25 + $0x158] sm:$0xff] %v8662_v2  ;;  %v8672_v55 = vmax.f32 %v8600_v16, 0.0  ;;  %v8464_v26 = vadd.f32 %v15728_v57, %v8283_v18  ;;  %v8285_v7 = vadd.f32 %v8284_v28, %v16327_v42  ;;  %v8351_v54 = vadd.f32 %v8350_v43, %v15551_v63  ;;  %v8286_v31 = vpop.f32.mrf.mxu0  ;;  %v8352_v4 = vpop.f32.mrf.mxu1 }
 0x5ad   : > { %8742 = vst [vmem:[%s15505_s25 + $0x198] sm:$0xff] %v8670_v32  ;;  %v8671_v50 = vmax.f32 %v8599_v34, 0.0  ;;  %v8607_v37 = vadd.f32 %v11174_v9, %v8535_v1  ;;  %v8609_v35 = vadd.f32 %v11175_v6, %v8537_v10  ;;  %v8287_v51 = vadd.f32 %v8286_v31, %v16328_v41 }
 0x5ae   : > { %8744 = vst.msk [vmem:[%s15505_s25 + $0x1a8] sm:$0xff] %vm16329_vm9, %v8672_v55  ;;  %v8536_v5 = vmul.f32 0.1, %v8464_v26  ;;  %v8472_v63 = vadd.f32 %v15718_v61, %v8285_v7  ;;  %v8474_v19 = vadd.f32 %v15723_v23, %v8351_v54 }
 0x5af   : > { %8743 = vst [vmem:[%s15505_s25 + $0x1a0] sm:$0xff] %v8671_v50  ;;  %v8679_v60 = vmax.f32 %v8607_v37, 0.0  ;;  %v8681_v21 = vmax.f32 %v8609_v35, 0.0  ;;  %v8473_v20 = vadd.f32 %v15728_v57, %v8287_v51  ;;  %v11179_v57 = vld [vmem:[%s11542_s9 + $0x230] sm:$0xff]  ;;  %s15843_s9 = scalar_lea.sflag [#allocation6], %s392_s24 }
 0x5b0   : > { %v8608_v53 = vadd.f32 %v11176_v48, %v8536_v5  ;;  %v8544_v17 = vmul.f32 0.1, %v8472_v63  ;;  %v8546_v3 = vmul.f32 0.1, %v8474_v19 }
 0x5b1   : > { %8751 = vst [vmem:[%s15505_s25 + $0x1e0] sm:$0xff] %v8679_v60  ;;  %8753 = vst.msk [vmem:[%s15505_s25 + $0x1f0] sm:$0xff] %vm16330_vm11, %v8681_v21  ;;  %v8545_v61 = vmul.f32 0.1, %v8473_v20 }
 0x5b2   : > { %v8680_v23 = vmax.f32 %v8608_v53, 0.0  ;;  %v8616_v46 = vadd.f32 %v11177_v12, %v8544_v17  ;;  %v8618_v22 = vadd.f32 %v11178_v44, %v8546_v3 }
 0x5b3   : > { %v8617_v39 = vadd.f32 %v11179_v57, %v8545_v61 }
 0x5b4   : > { %8752 = vst [vmem:[%s15505_s25 + $0x1e8] sm:$0xff] %v8680_v23  ;;  %v8688_v0 = vmax.f32 %v8616_v46, 0.0  ;;  %v8690_v30 = vmax.f32 %v8618_v22, 0.0 }
 0x5b5   : > { %v8689_v13 = vmax.f32 %v8617_v39, 0.0 }
 0x5b6   : > { %8760 = vst [vmem:[%s15505_s25 + $0x228] sm:$0xff] %v8688_v0  ;;  %8762 = vst.msk [vmem:[%s15505_s25 + $0x238] sm:$0xff] %vm16331_vm8, %v8690_v30 }
 0x5b7   : > { %8761 = vst [vmem:[%s15505_s25 + $0x230] sm:$0xff] %v8689_v13 }
 0x5b8   : > { %11219 = shalt.err (!%p11216_p0)
}
 0x5b9   : > { %s11220_s24 = scalar_lea.hbm %s15833_s22, 9216  ;;  %s11224_s21 = scalar_lea.hbm %s15894_s11, 18432 }
 0x5ba   : > { %p11221_p1 = scmp.ne.s32.totalorder %s15833_s22, %s11220_s24  ;;  %p11225_p4 = scmp.lt.s32.totalorder %s15833_s22, %s15894_s11 }
 0x5bb   : > { %p11226_p7 = scmp.lt.s32.totalorder %s11224_s21, %s11220_s24 }
 0x5bc   : > { %p11222_p2 = pnand %p11221_p1, %p11378_p5 }
 0x5bd   : > { %p11227_p6 = por %p11226_p7, %p11225_p4 }
 0x5be   : > { %p11223_p3 = pneg %p11222_p2 }
 0x5c0   : > { %p11228_p8 = pnand %p11227_p6, %p11223_p3 }
 0x5c2   : > { %11231 = shalt.err (!%p11228_p8)
}
 0x5c3   : > { %s11278_s14 = smov 1152   ;;  %s11279_s30 = smov 72  }
 0x5c4   : > { %10089 = dma.vmem_to_hbm [thread:$0]  (%p11378_p5), %s15835_s12, 9216, %s15833_s22, %s15843_s9, %s11278_s14, %s11278_s14, %s11279_s30  }
 0x5c5 PF: > { %p10101_p9 = scmp.ge.s32.totalorder %s11270_s20, 2  ;;  %s8792_s13 = sand.u32 1, %s11258_s17  }
 0x5c6   : > { %p16332_p10 = scmp.ne.s32.totalorder %s15925_s28, 0  ;;  %s8793_s24 = scalar_lea.sflag [#allocation6], %s8792_s13 }
 0x5c8   : > { %p10096_p11 = pnand %p10101_p9, %p16332_p10 }
 0x5ca   : > { %p10097_p12 = pneg %p10096_p11 }
 0x5cc   : > { %11253 = dma.done.wait (%p10097_p12), %s8793_s24, 9216  }
 0x5cd   : > { %11255 = vsyncadd (%p10097_p12), %s8793_s24, 4294958080  ;;  %p22_p13 = scmp.ge.s32.totalorder %s11365_s23, 4   ;;  %s16333_s17 = smov %s11262_s18 }
 0x5ce   : > { %s16334_s18 = smov %s11266_s19  ;;  %s16335_s19 = smov %s11376_s26 }
 0x5cf   : > { %s16336_s20 = smov %s11365_s23  ;;  %24 = sbr.rel (!%p22_p13) target bundleno = 6 (0x6), region = 116 }
 0x5d4   :  { %8798 = vsyncpa [#allocation5], 1 }
 0x5d5   :  { %8800 = vsyncpa [#allocation5 + $0x1], 1 }
 0x5d6   :  { %8801 = vsyncpa [#allocation6], 1 }
 0x5d7   :  { %8803 = vsyncpa [#allocation6 + $0x1], 1 }

</bundles_post_ra>
